<compile_context>
chip_gen: v6e
topology: v6e:2x2x1
jax: 0.10.0
libtpu: 0.0.40
codegen_flags: <defaults>
</compile_context>

<pallas_src>
import functools

import jax
import jax.numpy as jnp
from jax.experimental import pallas as pl
from jax.experimental.pallas import tpu as pltpu

_EPS = 1e-5


def _round_up(x, m):
    return (x + m - 1) // m * m


# ------------------------------ fused kernel --------------------------------

def _center_kernel(x_ref, w1_ref, b1_ref, w2_ref, b2_ref, wd_ref, bd_ref,
                   mask_ref, o_ref, h1_ref, *, taps, P_int, Sd, G):
    """pooled input -> conv1+BN+ReLU -> conv2+BN+ReLU -> deconv, all in VMEM.

    x_ref   : (P_ext, Cin)     flattened padded volume (+ zero guard rows), mm dtype
    w1_ref  : (27*Cin, F1)     conv1 weights (BN scale folded in), tap-major rows
    b1_ref  : (1, F1)          conv1 folded bias (f32)
    w2_ref  : (27*F1, F2)
    b2_ref  : (1, F2)
    wd_ref  : (F2, OUT_PAD)    deconv weights (lane dim zero-padded to 128)
    bd_ref  : (1, OUT_PAD)
    mask_ref: (P_int, 1)       1.0 on H/W-interior voxels, 0.0 on the halo ring
    o_ref   : (P_int, OUT_PAD) interior-D rows only
    h1_ref  : (P_ext, F1)      VMEM scratch staging conv1 output (mm dtype)
    """
    P_ext, F1 = h1_ref.shape
    lo = G + Sd            # scratch/x row of the first interior-D output row
    hi = lo + P_int

    # ---- Conv3d(3, pad=1) #1 + folded BN + ReLU ----------------------------
    # im2col slab built in registers from the VMEM-resident padded volume:
    # one MXU matmul with K = 27*Cin instead of 27 shift-accumulate matmuls.
    slab1 = jnp.concatenate(
        [x_ref[pl.ds(lo + off, P_int), :] for off in taps], axis=-1)
    h1 = jnp.dot(slab1, w1_ref[...], preferred_element_type=jnp.float32)
    h1 = jnp.maximum(h1 + b1_ref[...], 0.0) * mask_ref[...]  # H/W halo -> 0

    # Stage conv1 output in a guarded scratch so conv2's taps are contiguous
    # row slices.  Only the D-halo + guard bands need zeros (they are never
    # written by the interior store); zero just those bands, every step, so
    # correctness does not depend on how the grid is split across cores.
    h1_ref[pl.ds(0, lo), :] = jnp.zeros((lo, F1), h1_ref.dtype)
    h1_ref[pl.ds(hi, P_ext - hi), :] = jnp.zeros((P_ext - hi, F1), h1_ref.dtype)
    h1_ref[pl.ds(lo, P_int), :] = h1.astype(h1_ref.dtype)     # cast once

    # ---- Conv3d(3, pad=1) #2 + folded BN + ReLU ----------------------------
    slab2 = jnp.concatenate(
        [h1_ref[pl.ds(lo + off, P_int), :] for off in taps], axis=-1)
    h2 = jnp.dot(slab2, w2_ref[...], preferred_element_type=jnp.float32)
    h2 = jnp.maximum(h2 + b2_ref[...], 0.0)

    # ---- ConvTranspose3d(2, stride=2): non-overlapping -> pointwise matmul.
    y = jnp.dot(h2.astype(wd_ref.dtype), wd_ref[...],
                preferred_element_type=jnp.float32)
    o_ref[...] = (y + bd_ref[...]).astype(o_ref.dtype)


# ------------------------------- forward ------------------------------------

def center3d_forward(x_ncdhw, p, matmul_dtype=jnp.bfloat16):
    """Forward pass matching PyTorch Center3D (inference-mode BatchNorm).

    matmul_dtype: MXU operand dtype.  bfloat16 is MXU-native on v5e/v6e/v7x
    (accumulation and the BN/ReLU epilogue stay f32); pass jnp.float32 for a
    full-precision path.
    """
    x = jnp.transpose(x_ncdhw, (0, 2, 3, 4, 1)).astype(jnp.float32)   # NDHWC
    N, D, H, W, Cin = x.shape
    Dp, Hp, Wp = D // 2, H // 2, W // 2

    # --- MaxPool3d(2): plain XLA (output is 1/8 of the input).
    h = x.reshape(N, Dp, 2, Hp, 2, Wp, 2, Cin).max(axis=(2, 4, 6))

    # --- Flattened padded-volume layout with guard rows.
    Sh = Wp + 2                              # row stride per H step
    Sd = (Hp + 2) * Sh                       # row stride per D slab
    P = (Dp + 2) * Sd                        # rows in the padded volume
    P_int = Dp * Sd                          # interior-D rows (computed rows)
    G = _round_up(Sd + Sh + 1, 8)            # guard rows (>= max |tap offset|)
    P_ext = P + 2 * G

    # Cast activations to the matmul dtype once, before the kernel (halves the
    # x DMA and removes per-tap casts inside the kernel).
    hp = jnp.pad(h.astype(matmul_dtype), ((0, 0), (1, 1), (1, 1), (1, 1), (0, 0)))
    x_ext = jnp.pad(hp.reshape(N, P, Cin), ((0, 0), (G, G), (0, 0)))

    taps = tuple((kd - 1) * Sd + (kh - 1) * Sh + (kw - 1)
                 for kd in range(3) for kh in range(3) for kw in range(3))

    # Interior mask over the interior-D rows only: zero on the +-1 H/W halo.
    mh = (jnp.arange(Hp + 2) >= 1) & (jnp.arange(Hp + 2) <= Hp)
    mw = (jnp.arange(Wp + 2) >= 1) & (jnp.arange(Wp + 2) <= Wp)
    mask = (mh[:, None] & mw[None, :]).astype(jnp.float32).reshape(1, Sd)
    mask = jnp.tile(mask, (Dp, 1)).reshape(P_int, 1)

    # Fold BN (inference) into conv weights / bias; flatten tap-major so the
    # kernel does a single K = 27*C matmul per conv.
    def fold(w_pt, b, g, be, mu, var):
        co, ci = w_pt.shape[0], w_pt.shape[1]
        scale = g / jnp.sqrt(var + _EPS)
        wm = jnp.transpose(w_pt, (2, 3, 4, 1, 0)).reshape(27 * ci, co) * scale
        bias = ((b - mu) * scale + be).reshape(1, co)
        return wm.astype(matmul_dtype), bias.astype(jnp.float32)

    w1m, b1 = fold(p['w1'], p['b1'], p['g1'], p['be1'], p['m1'], p['v1'])
    w2m, b2 = fold(p['w2'], p['b2'], p['g2'], p['be2'], p['m2'], p['v2'])
    F1, F2 = w1m.shape[-1], w2m.shape[-1]

    # Deconv as a pointwise matmul; pad lane dim to 128 for lane-dense stores.
    dec = p['wd'].shape[1]
    OUT = 8 * dec
    OUT_PAD = _round_up(OUT, 128)
    wdm = jnp.transpose(p['wd'], (0, 2, 3, 4, 1)).reshape(F2, OUT)
    wdm = jnp.pad(wdm, ((0, 0), (0, OUT_PAD - OUT))).astype(matmul_dtype)
    bdm = jnp.pad(jnp.tile(p['bd'], 8), (0, OUT_PAD - OUT)).reshape(1, OUT_PAD)
    bdm = bdm.astype(jnp.float32)

    # Explicit VMEM budget (double-buffered blocks + scratch + in-kernel temps),
    # clamped to the v7x 64 MiB physical budget.
    bpe = jnp.dtype(matmul_dtype).itemsize
    vmem_bytes = (
        2 * P_ext * Cin * bpe                                       # x_ext
        + 2 * (27 * Cin * F1 + 27 * F1 * F2 + F2 * OUT_PAD) * bpe   # weights
        + 2 * (F1 + F2 + OUT_PAD + P_int) * 4                       # biases+mask
        + 2 * P_int * OUT_PAD * 4                                   # output
        + P_ext * F1 * bpe                                          # h1 scratch
        + P_int * 27 * (Cin + F1) * bpe                             # im2col slabs
        + P_int * (F1 + F2 + 2 * OUT_PAD) * 4                       # epilogue temps
    )
    vmem_limit = int(min(64 * 2 ** 20, max(8 * 2 ** 20, 2 * vmem_bytes)))

    kern = functools.partial(_center_kernel, taps=taps, P_int=P_int, Sd=Sd, G=G)
    out = pl.pallas_call(
        kern,
        out_shape=jax.ShapeDtypeStruct((N, P_int, OUT_PAD), jnp.float32),
        grid_spec=pltpu.PrefetchScalarGridSpec(
            num_scalar_prefetch=0,
            grid=(N,),
            in_specs=[
                pl.BlockSpec((None, P_ext, Cin), lambda n: (n, 0, 0)),
                pl.BlockSpec((27 * Cin, F1), lambda n: (0, 0)),
                pl.BlockSpec((1, F1), lambda n: (0, 0)),
                pl.BlockSpec((27 * F1, F2), lambda n: (0, 0)),
                pl.BlockSpec((1, F2), lambda n: (0, 0)),
                pl.BlockSpec((F2, OUT_PAD), lambda n: (0, 0)),
                pl.BlockSpec((1, OUT_PAD), lambda n: (0, 0)),
                pl.BlockSpec((P_int, 1), lambda n: (0, 0)),
            ],
            out_specs=pl.BlockSpec((None, P_int, OUT_PAD), lambda n: (n, 0, 0)),
            scratch_shapes=[pltpu.VMEM((P_ext, F1), matmul_dtype)],
        ),
        compiler_params=pltpu.CompilerParams(
            dimension_semantics=("parallel",),
            vmem_limit_bytes=vmem_limit),
    )(x_ext, w1m, b1, w2m, b2, wdm, bdm, mask)

    # Drop H/W halo rows / padded lanes (D halo was never computed),
    # interleave the 2x2x2 upsample, -> NCDHW.
    y = out.reshape(N, Dp, Hp + 2, Wp + 2, OUT_PAD)[:, :, 1:-1, 1:-1, :OUT]
    y = (y.reshape(N, Dp, Hp, Wp, 2, 2, 2, dec)
           .transpose(0, 1, 4, 2, 5, 3, 6, 7)
           .reshape(N, 2 * Dp, 2 * Hp, 2 * Wp, dec))
    return jnp.transpose(y, (0, 4, 1, 2, 3))                          # NCDHW


# --------------------------- pure-JAX reference -----------------------------

def ref_forward(x_ncdhw, p):
    x = jnp.transpose(x_ncdhw, (0, 2, 3, 4, 1)).astype(jnp.float32)
    N, D, H, W, C = x.shape
    h = x.reshape(N, D // 2, 2, H // 2, 2, W // 2, 2, C).max(axis=(2, 4, 6))

    def conv_bn_relu(h, w_pt, b, g, be, mu, var):
        co = w_pt.shape[0]
        n, d, hh, ww, _ = h.shape
        hp = jnp.pad(h, ((0, 0), (1, 1), (1, 1), (1, 1), (0, 0)))
        out = jnp.zeros((n, d, hh, ww, co), jnp.float32)
        for kd in range(3):
            for kh in range(3):
                for kw in range(3):
                    out = out + jnp.tensordot(
                        hp[:, kd:kd + d, kh:kh + hh, kw:kw + ww, :],
                        w_pt[:, :, kd, kh, kw], axes=[[4], [1]])
        out = out + b
        out = (out - mu) / jnp.sqrt(var + _EPS) * g + be
        return jnp.maximum(out, 0.0)

    h = conv_bn_relu(h, p['w1'], p['b1'], p['g1'], p['be1'], p['m1'], p['v1'])
    h = conv_bn_relu(h, p['w2'], p['b2'], p['g2'], p['be2'], p['m2'], p['v2'])

    n, d, hh, ww, _ = h.shape
    cdec = p['wd'].shape[1]
    y = jnp.zeros((n, 2 * d, 2 * hh, 2 * ww, cdec), jnp.float32)
    for kd in range(2):
        for kh in range(2):
            for kw in range(2):
                contrib = jnp.tensordot(h, p['wd'][:, :, kd, kh, kw], axes=[[4], [0]])
                y = y.at[:, kd::2, kh::2, kw::2, :].set(contrib)
    y = y + p['bd']
    return jnp.transpose(y, (0, 4, 1, 2, 3))


# ------------------------------ parameters ----------------------------------

def init_params(key, in_ch, mid_ch, out_ch, dec_ch):
    ks = jax.random.split(key, 14)
    n = lambda i, shape, s=0.1: s * jax.random.normal(ks[i], shape, jnp.float32)
    return dict(
        w1=n(0, (mid_ch, in_ch, 3, 3, 3)), b1=n(1, (mid_ch,)),
        g1=1.0 + n(2, (mid_ch,)), be1=n(3, (mid_ch,)),
        m1=n(4, (mid_ch,)),
        v1=jax.random.uniform(ks[5], (mid_ch,), jnp.float32, 0.5, 1.5),
        w2=n(6, (out_ch, mid_ch, 3, 3, 3)), b2=n(7, (out_ch,)),
        g2=1.0 + n(8, (out_ch,)), be2=n(9, (out_ch,)),
        m2=n(10, (out_ch,)),
        v2=jax.random.uniform(ks[11], (out_ch,), jnp.float32, 0.5, 1.5),
        wd=n(12, (out_ch, dec_ch, 2, 2, 2)), bd=n(13, (dec_ch,)),
    )


if __name__ == "__main__":
    N, Cin, D, H, W = 2, 4, 8, 8, 8
    mid_ch, out_ch, dec_ch = 8, 8, 4

    key = jax.random.PRNGKey(0)
    kx, kp = jax.random.split(key)
    x = jax.random.normal(kx, (N, Cin, D, H, W), jnp.float32)
    params = init_params(kp, Cin, mid_ch, out_ch, dec_ch)

    fwd = jax.jit(center3d_forward, static_argnames="matmul_dtype")
    y_ref = jax.block_until_ready(ref_forward(x, params))

    # Default path: bf16 MXU operands (MXU-native on v5e/v6e/v7x), f32 accumulate.
    y = jax.block_until_ready(fwd(x, params))
    assert y.shape == (N, dec_ch, D, H, W), y.shape
    err = float(jnp.max(jnp.abs(y - y_ref)))
    assert err < 1e-1, f"bf16 max abs err {err}"

    # Full-precision path: f32 operands everywhere.
    y_f32 = jax.block_until_ready(fwd(x, params, matmul_dtype=jnp.float32))
    err_f32 = float(jnp.max(jnp.abs(y_f32 - y_ref)))
    assert err_f32 < 1e-2, f"f32 max abs err {err_f32}"

    print("KERNEL_OK")
</pallas_src>

<mosaic_0001>
module attributes {stable_mosaic.version = 11 : i64} {
  func.func @_center_kernel(%arg0: i32, %arg1: memref<1x312x4xbf16, #tpu.memory_space<vmem>>, %arg2: memref<108x8xbf16, #tpu.memory_space<vmem>>, %arg3: memref<1x8xf32, #tpu.memory_space<vmem>>, %arg4: memref<216x8xbf16, #tpu.memory_space<vmem>>, %arg5: memref<1x8xf32, #tpu.memory_space<vmem>>, %arg6: memref<8x128xbf16, #tpu.memory_space<vmem>>, %arg7: memref<1x128xf32, #tpu.memory_space<vmem>>, %arg8: memref<144x1xf32, #tpu.memory_space<vmem>>, %arg9: memref<1x144x128xf32, #tpu.memory_space<vmem>>, %arg10: memref<312x8xbf16, #tpu.memory_space<vmem>>) attributes {dimension_semantics = [#tpu.dimension_semantics<parallel>], iteration_bounds = array<i64: 2>, scalar_prefetch = 0 : i64, scratch_operands = 1 : i64, tpu.core_type = #tpu.core_type<tc>, window_params = [{transform_indices = @transform_0, window_bounds = array<i64: 1, 312, 4>}, {pipeline_mode = #tpu.pipeline_mode<synchronous>, transform_indices = @transform_1, window_bounds = array<i64: 108, 8>}, {pipeline_mode = #tpu.pipeline_mode<synchronous>, transform_indices = @transform_2, window_bounds = array<i64: 1, 8>}, {pipeline_mode = #tpu.pipeline_mode<synchronous>, transform_indices = @transform_3, window_bounds = array<i64: 216, 8>}, {pipeline_mode = #tpu.pipeline_mode<synchronous>, transform_indices = @transform_4, window_bounds = array<i64: 1, 8>}, {pipeline_mode = #tpu.pipeline_mode<synchronous>, transform_indices = @transform_5, window_bounds = array<i64: 8, 128>}, {pipeline_mode = #tpu.pipeline_mode<synchronous>, transform_indices = @transform_6, window_bounds = array<i64: 1, 128>}, {pipeline_mode = #tpu.pipeline_mode<synchronous>, transform_indices = @transform_7, window_bounds = array<i64: 144, 1>}, {transform_indices = @transform_8, window_bounds = array<i64: 1, 144, 128>}]} {
    %c0 = arith.constant 0 : index
    %c41 = arith.constant 41 : index
    %c0_0 = arith.constant 0 : index
    %0 = vector.load %arg1[%c0, %c41, %c0_0] : memref<1x312x4xbf16, #tpu.memory_space<vmem>>, vector<1x144x4xbf16>
    %1 = vector.shape_cast %0 : vector<1x144x4xbf16> to vector<144x4xbf16>
    %c0_1 = arith.constant 0 : index
    %c42 = arith.constant 42 : index
    %c0_2 = arith.constant 0 : index
    %2 = vector.load %arg1[%c0_1, %c42, %c0_2] : memref<1x312x4xbf16, #tpu.memory_space<vmem>>, vector<1x144x4xbf16>
    %3 = vector.shape_cast %2 : vector<1x144x4xbf16> to vector<144x4xbf16>
    %c0_3 = arith.constant 0 : index
    %c43 = arith.constant 43 : index
    %c0_4 = arith.constant 0 : index
    %4 = vector.load %arg1[%c0_3, %c43, %c0_4] : memref<1x312x4xbf16, #tpu.memory_space<vmem>>, vector<1x144x4xbf16>
    %5 = vector.shape_cast %4 : vector<1x144x4xbf16> to vector<144x4xbf16>
    %c0_5 = arith.constant 0 : index
    %c47 = arith.constant 47 : index
    %c0_6 = arith.constant 0 : index
    %6 = vector.load %arg1[%c0_5, %c47, %c0_6] : memref<1x312x4xbf16, #tpu.memory_space<vmem>>, vector<1x144x4xbf16>
    %7 = vector.shape_cast %6 : vector<1x144x4xbf16> to vector<144x4xbf16>
    %c0_7 = arith.constant 0 : index
    %c48 = arith.constant 48 : index
    %c0_8 = arith.constant 0 : index
    %8 = vector.load %arg1[%c0_7, %c48, %c0_8] : memref<1x312x4xbf16, #tpu.memory_space<vmem>>, vector<1x144x4xbf16>
    %9 = vector.shape_cast %8 : vector<1x144x4xbf16> to vector<144x4xbf16>
    %c0_9 = arith.constant 0 : index
    %c49 = arith.constant 49 : index
    %c0_10 = arith.constant 0 : index
    %10 = vector.load %arg1[%c0_9, %c49, %c0_10] : memref<1x312x4xbf16, #tpu.memory_space<vmem>>, vector<1x144x4xbf16>
    %11 = vector.shape_cast %10 : vector<1x144x4xbf16> to vector<144x4xbf16>
    %c0_11 = arith.constant 0 : index
    %c53 = arith.constant 53 : index
    %c0_12 = arith.constant 0 : index
    %12 = vector.load %arg1[%c0_11, %c53, %c0_12] : memref<1x312x4xbf16, #tpu.memory_space<vmem>>, vector<1x144x4xbf16>
    %13 = vector.shape_cast %12 : vector<1x144x4xbf16> to vector<144x4xbf16>
    %c0_13 = arith.constant 0 : index
    %c54 = arith.constant 54 : index
    %c0_14 = arith.constant 0 : index
    %14 = vector.load %arg1[%c0_13, %c54, %c0_14] : memref<1x312x4xbf16, #tpu.memory_space<vmem>>, vector<1x144x4xbf16>
    %15 = vector.shape_cast %14 : vector<1x144x4xbf16> to vector<144x4xbf16>
    %c0_15 = arith.constant 0 : index
    %c55 = arith.constant 55 : index
    %c0_16 = arith.constant 0 : index
    %16 = vector.load %arg1[%c0_15, %c55, %c0_16] : memref<1x312x4xbf16, #tpu.memory_space<vmem>>, vector<1x144x4xbf16>
    %17 = vector.shape_cast %16 : vector<1x144x4xbf16> to vector<144x4xbf16>
    %c0_17 = arith.constant 0 : index
    %c77 = arith.constant 77 : index
    %c0_18 = arith.constant 0 : index
    %18 = vector.load %arg1[%c0_17, %c77, %c0_18] : memref<1x312x4xbf16, #tpu.memory_space<vmem>>, vector<1x144x4xbf16>
    %19 = vector.shape_cast %18 : vector<1x144x4xbf16> to vector<144x4xbf16>
    %c0_19 = arith.constant 0 : index
    %c78 = arith.constant 78 : index
    %c0_20 = arith.constant 0 : index
    %20 = vector.load %arg1[%c0_19, %c78, %c0_20] : memref<1x312x4xbf16, #tpu.memory_space<vmem>>, vector<1x144x4xbf16>
    %21 = vector.shape_cast %20 : vector<1x144x4xbf16> to vector<144x4xbf16>
    %c0_21 = arith.constant 0 : index
    %c79 = arith.constant 79 : index
    %c0_22 = arith.constant 0 : index
    %22 = vector.load %arg1[%c0_21, %c79, %c0_22] : memref<1x312x4xbf16, #tpu.memory_space<vmem>>, vector<1x144x4xbf16>
    %23 = vector.shape_cast %22 : vector<1x144x4xbf16> to vector<144x4xbf16>
    %c0_23 = arith.constant 0 : index
    %c83 = arith.constant 83 : index
    %c0_24 = arith.constant 0 : index
    %24 = vector.load %arg1[%c0_23, %c83, %c0_24] : memref<1x312x4xbf16, #tpu.memory_space<vmem>>, vector<1x144x4xbf16>
    %25 = vector.shape_cast %24 : vector<1x144x4xbf16> to vector<144x4xbf16>
    %c0_25 = arith.constant 0 : index
    %c84 = arith.constant 84 : index
    %c0_26 = arith.constant 0 : index
    %26 = vector.load %arg1[%c0_25, %c84, %c0_26] : memref<1x312x4xbf16, #tpu.memory_space<vmem>>, vector<1x144x4xbf16>
    %27 = vector.shape_cast %26 : vector<1x144x4xbf16> to vector<144x4xbf16>
    %c0_27 = arith.constant 0 : index
    %c85 = arith.constant 85 : index
    %c0_28 = arith.constant 0 : index
    %28 = vector.load %arg1[%c0_27, %c85, %c0_28] : memref<1x312x4xbf16, #tpu.memory_space<vmem>>, vector<1x144x4xbf16>
    %29 = vector.shape_cast %28 : vector<1x144x4xbf16> to vector<144x4xbf16>
    %c0_29 = arith.constant 0 : index
    %c89 = arith.constant 89 : index
    %c0_30 = arith.constant 0 : index
    %30 = vector.load %arg1[%c0_29, %c89, %c0_30] : memref<1x312x4xbf16, #tpu.memory_space<vmem>>, vector<1x144x4xbf16>
    %31 = vector.shape_cast %30 : vector<1x144x4xbf16> to vector<144x4xbf16>
    %c0_31 = arith.constant 0 : index
    %c90 = arith.constant 90 : index
    %c0_32 = arith.constant 0 : index
    %32 = vector.load %arg1[%c0_31, %c90, %c0_32] : memref<1x312x4xbf16, #tpu.memory_space<vmem>>, vector<1x144x4xbf16>
    %33 = vector.shape_cast %32 : vector<1x144x4xbf16> to vector<144x4xbf16>
    %c0_33 = arith.constant 0 : index
    %c91 = arith.constant 91 : index
    %c0_34 = arith.constant 0 : index
    %34 = vector.load %arg1[%c0_33, %c91, %c0_34] : memref<1x312x4xbf16, #tpu.memory_space<vmem>>, vector<1x144x4xbf16>
    %35 = vector.shape_cast %34 : vector<1x144x4xbf16> to vector<144x4xbf16>
    %c0_35 = arith.constant 0 : index
    %c113 = arith.constant 113 : index
    %c0_36 = arith.constant 0 : index
    %36 = vector.load %arg1[%c0_35, %c113, %c0_36] : memref<1x312x4xbf16, #tpu.memory_space<vmem>>, vector<1x144x4xbf16>
    %37 = vector.shape_cast %36 : vector<1x144x4xbf16> to vector<144x4xbf16>
    %c0_37 = arith.constant 0 : index
    %c114 = arith.constant 114 : index
    %c0_38 = arith.constant 0 : index
    %38 = vector.load %arg1[%c0_37, %c114, %c0_38] : memref<1x312x4xbf16, #tpu.memory_space<vmem>>, vector<1x144x4xbf16>
    %39 = vector.shape_cast %38 : vector<1x144x4xbf16> to vector<144x4xbf16>
    %c0_39 = arith.constant 0 : index
    %c115 = arith.constant 115 : index
    %c0_40 = arith.constant 0 : index
    %40 = vector.load %arg1[%c0_39, %c115, %c0_40] : memref<1x312x4xbf16, #tpu.memory_space<vmem>>, vector<1x144x4xbf16>
    %41 = vector.shape_cast %40 : vector<1x144x4xbf16> to vector<144x4xbf16>
    %c0_41 = arith.constant 0 : index
    %c119 = arith.constant 119 : index
    %c0_42 = arith.constant 0 : index
    %42 = vector.load %arg1[%c0_41, %c119, %c0_42] : memref<1x312x4xbf16, #tpu.memory_space<vmem>>, vector<1x144x4xbf16>
    %43 = vector.shape_cast %42 : vector<1x144x4xbf16> to vector<144x4xbf16>
    %c0_43 = arith.constant 0 : index
    %c120 = arith.constant 120 : index
    %c0_44 = arith.constant 0 : index
    %44 = vector.load %arg1[%c0_43, %c120, %c0_44] : memref<1x312x4xbf16, #tpu.memory_space<vmem>>, vector<1x144x4xbf16>
    %45 = vector.shape_cast %44 : vector<1x144x4xbf16> to vector<144x4xbf16>
    %c0_45 = arith.constant 0 : index
    %c121 = arith.constant 121 : index
    %c0_46 = arith.constant 0 : index
    %46 = vector.load %arg1[%c0_45, %c121, %c0_46] : memref<1x312x4xbf16, #tpu.memory_space<vmem>>, vector<1x144x4xbf16>
    %47 = vector.shape_cast %46 : vector<1x144x4xbf16> to vector<144x4xbf16>
    %c0_47 = arith.constant 0 : index
    %c125 = arith.constant 125 : index
    %c0_48 = arith.constant 0 : index
    %48 = vector.load %arg1[%c0_47, %c125, %c0_48] : memref<1x312x4xbf16, #tpu.memory_space<vmem>>, vector<1x144x4xbf16>
    %49 = vector.shape_cast %48 : vector<1x144x4xbf16> to vector<144x4xbf16>
    %c0_49 = arith.constant 0 : index
    %c126 = arith.constant 126 : index
    %c0_50 = arith.constant 0 : index
    %50 = vector.load %arg1[%c0_49, %c126, %c0_50] : memref<1x312x4xbf16, #tpu.memory_space<vmem>>, vector<1x144x4xbf16>
    %51 = vector.shape_cast %50 : vector<1x144x4xbf16> to vector<144x4xbf16>
    %c0_51 = arith.constant 0 : index
    %c127 = arith.constant 127 : index
    %c0_52 = arith.constant 0 : index
    %52 = vector.load %arg1[%c0_51, %c127, %c0_52] : memref<1x312x4xbf16, #tpu.memory_space<vmem>>, vector<1x144x4xbf16>
    %53 = vector.shape_cast %52 : vector<1x144x4xbf16> to vector<144x4xbf16>
    %54 = tpu.concatenate %1, %3, %5, %7, %9, %11, %13, %15, %17, %19, %21, %23, %25, %27, %29, %31 in 1 : vector<144x4xbf16>, vector<144x4xbf16>, vector<144x4xbf16>, vector<144x4xbf16>, vector<144x4xbf16>, vector<144x4xbf16>, vector<144x4xbf16>, vector<144x4xbf16>, vector<144x4xbf16>, vector<144x4xbf16>, vector<144x4xbf16>, vector<144x4xbf16>, vector<144x4xbf16>, vector<144x4xbf16>, vector<144x4xbf16>, vector<144x4xbf16> -> vector<144x64xbf16>
    %55 = tpu.concatenate %33, %35, %37, %39, %41, %43, %45, %47, %49, %51, %53 in 1 : vector<144x4xbf16>, vector<144x4xbf16>, vector<144x4xbf16>, vector<144x4xbf16>, vector<144x4xbf16>, vector<144x4xbf16>, vector<144x4xbf16>, vector<144x4xbf16>, vector<144x4xbf16>, vector<144x4xbf16>, vector<144x4xbf16> -> vector<144x44xbf16>
    %56 = tpu.concatenate %54, %55 in 1 : vector<144x64xbf16>, vector<144x44xbf16> -> vector<144x108xbf16>
    %c0_53 = arith.constant 0 : index
    %c0_54 = arith.constant 0 : index
    %57 = vector.load %arg2[%c0_53, %c0_54] : memref<108x8xbf16, #tpu.memory_space<vmem>>, vector<108x8xbf16>
    %cst = arith.constant dense<0.000000e+00> : vector<144x8xf32>
    %58 = tpu.matmul %56, %57, %cst {dimension_numbers = #tpu.dot_dimension_numbers<[1], [0], [0], [1], [0, 0, 1, 1], [], []>} : vector<144x108xbf16>, vector<108x8xbf16>, vector<144x8xf32> -> vector<144x8xf32>
    %c0_55 = arith.constant 0 : index
    %c0_56 = arith.constant 0 : index
    %59 = vector.load %arg3[%c0_55, %c0_56] : memref<1x8xf32, #tpu.memory_space<vmem>>, vector<1x8xf32>
    %60 = vector.broadcast %59 : vector<1x8xf32> to vector<144x8xf32>
    %61 = arith.addf %58, %60 : vector<144x8xf32>
    %cst_57 = arith.constant 0.000000e+00 : f32
    %62 = vector.broadcast %cst_57 : f32 to vector<144x8xf32>
    %63 = arith.maximumf %61, %62 : vector<144x8xf32>
    %c0_58 = arith.constant 0 : index
    %c0_59 = arith.constant 0 : index
    %64 = vector.load %arg8[%c0_58, %c0_59] : memref<144x1xf32, #tpu.memory_space<vmem>>, vector<144x1xf32>
    %65 = vector.broadcast %64 : vector<144x1xf32> to vector<144x8xf32>
    %66 = arith.mulf %63, %65 : vector<144x8xf32>
    %cst_60 = arith.constant 0.000000e+00 : bf16
    %67 = vector.broadcast %cst_60 : bf16 to vector<84x8xbf16>
    %c0_61 = arith.constant 0 : index
    %c0_62 = arith.constant 0 : index
    %68 = vector.load %arg10[%c0_61, %c0_62] : memref<312x8xbf16, #tpu.memory_space<vmem>>, vector<84x8xbf16>
    tpu.vector_store %arg10[%c0_61, %c0_62], %67 {strides = array<i32>} : memref<312x8xbf16, #tpu.memory_space<vmem>>, vector<84x8xbf16>,
    %cst_63 = arith.constant 0.000000e+00 : bf16
    %69 = vector.broadcast %cst_63 : bf16 to vector<84x8xbf16>
    %c228 = arith.constant 228 : index
    %c0_64 = arith.constant 0 : index
    %70 = vector.load %arg10[%c228, %c0_64] : memref<312x8xbf16, #tpu.memory_space<vmem>>, vector<84x8xbf16>
    tpu.vector_store %arg10[%c228, %c0_64], %69 {strides = array<i32>} : memref<312x8xbf16, #tpu.memory_space<vmem>>, vector<84x8xbf16>,
    %71 = arith.truncf %66 : vector<144x8xf32> to vector<144x8xbf16>
    %c84_65 = arith.constant 84 : index
    %c0_66 = arith.constant 0 : index
    %72 = vector.load %arg10[%c84_65, %c0_66] : memref<312x8xbf16, #tpu.memory_space<vmem>>, vector<144x8xbf16>
    tpu.vector_store %arg10[%c84_65, %c0_66], %71 {strides = array<i32>} : memref<312x8xbf16, #tpu.memory_space<vmem>>, vector<144x8xbf16>,
    %c41_67 = arith.constant 41 : index
    %c0_68 = arith.constant 0 : index
    %73 = vector.load %arg10[%c41_67, %c0_68] : memref<312x8xbf16, #tpu.memory_space<vmem>>, vector<144x8xbf16>
    %c42_69 = arith.constant 42 : index
    %c0_70 = arith.constant 0 : index
    %74 = vector.load %arg10[%c42_69, %c0_70] : memref<312x8xbf16, #tpu.memory_space<vmem>>, vector<144x8xbf16>
    %c43_71 = arith.constant 43 : index
    %c0_72 = arith.constant 0 : index
    %75 = vector.load %arg10[%c43_71, %c0_72] : memref<312x8xbf16, #tpu.memory_space<vmem>>, vector<144x8xbf16>
    %c47_73 = arith.constant 47 : index
    %c0_74 = arith.constant 0 : index
    %76 = vector.load %arg10[%c47_73, %c0_74] : memref<312x8xbf16, #tpu.memory_space<vmem>>, vector<144x8xbf16>
    %c48_75 = arith.constant 48 : index
    %c0_76 = arith.constant 0 : index
    %77 = vector.load %arg10[%c48_75, %c0_76] : memref<312x8xbf16, #tpu.memory_space<vmem>>, vector<144x8xbf16>
    %c49_77 = arith.constant 49 : index
    %c0_78 = arith.constant 0 : index
    %78 = vector.load %arg10[%c49_77, %c0_78] : memref<312x8xbf16, #tpu.memory_space<vmem>>, vector<144x8xbf16>
    %c53_79 = arith.constant 53 : index
    %c0_80 = arith.constant 0 : index
    %79 = vector.load %arg10[%c53_79, %c0_80] : memref<312x8xbf16, #tpu.memory_space<vmem>>, vector<144x8xbf16>
    %c54_81 = arith.constant 54 : index
    %c0_82 = arith.constant 0 : index
    %80 = vector.load %arg10[%c54_81, %c0_82] : memref<312x8xbf16, #tpu.memory_space<vmem>>, vector<144x8xbf16>
    %c55_83 = arith.constant 55 : index
    %c0_84 = arith.constant 0 : index
    %81 = vector.load %arg10[%c55_83, %c0_84] : memref<312x8xbf16, #tpu.memory_space<vmem>>, vector<144x8xbf16>
    %c77_85 = arith.constant 77 : index
    %c0_86 = arith.constant 0 : index
    %82 = vector.load %arg10[%c77_85, %c0_86] : memref<312x8xbf16, #tpu.memory_space<vmem>>, vector<144x8xbf16>
    %c78_87 = arith.constant 78 : index
    %c0_88 = arith.constant 0 : index
    %83 = vector.load %arg10[%c78_87, %c0_88] : memref<312x8xbf16, #tpu.memory_space<vmem>>, vector<144x8xbf16>
    %c79_89 = arith.constant 79 : index
    %c0_90 = arith.constant 0 : index
    %84 = vector.load %arg10[%c79_89, %c0_90] : memref<312x8xbf16, #tpu.memory_space<vmem>>, vector<144x8xbf16>
    %c83_91 = arith.constant 83 : index
    %c0_92 = arith.constant 0 : index
    %85 = vector.load %arg10[%c83_91, %c0_92] : memref<312x8xbf16, #tpu.memory_space<vmem>>, vector<144x8xbf16>
    %c84_93 = arith.constant 84 : index
    %c0_94 = arith.constant 0 : index
    %86 = vector.load %arg10[%c84_93, %c0_94] : memref<312x8xbf16, #tpu.memory_space<vmem>>, vector<144x8xbf16>
    %c85_95 = arith.constant 85 : index
    %c0_96 = arith.constant 0 : index
    %87 = vector.load %arg10[%c85_95, %c0_96] : memref<312x8xbf16, #tpu.memory_space<vmem>>, vector<144x8xbf16>
    %c89_97 = arith.constant 89 : index
    %c0_98 = arith.constant 0 : index
    %88 = vector.load %arg10[%c89_97, %c0_98] : memref<312x8xbf16, #tpu.memory_space<vmem>>, vector<144x8xbf16>
    %c90_99 = arith.constant 90 : index
    %c0_100 = arith.constant 0 : index
    %89 = vector.load %arg10[%c90_99, %c0_100] : memref<312x8xbf16, #tpu.memory_space<vmem>>, vector<144x8xbf16>
    %c91_101 = arith.constant 91 : index
    %c0_102 = arith.constant 0 : index
    %90 = vector.load %arg10[%c91_101, %c0_102] : memref<312x8xbf16, #tpu.memory_space<vmem>>, vector<144x8xbf16>
    %c113_103 = arith.constant 113 : index
    %c0_104 = arith.constant 0 : index
    %91 = vector.load %arg10[%c113_103, %c0_104] : memref<312x8xbf16, #tpu.memory_space<vmem>>, vector<144x8xbf16>
    %c114_105 = arith.constant 114 : index
    %c0_106 = arith.constant 0 : index
    %92 = vector.load %arg10[%c114_105, %c0_106] : memref<312x8xbf16, #tpu.memory_space<vmem>>, vector<144x8xbf16>
    %c115_107 = arith.constant 115 : index
    %c0_108 = arith.constant 0 : index
    %93 = vector.load %arg10[%c115_107, %c0_108] : memref<312x8xbf16, #tpu.memory_space<vmem>>, vector<144x8xbf16>
    %c119_109 = arith.constant 119 : index
    %c0_110 = arith.constant 0 : index
    %94 = vector.load %arg10[%c119_109, %c0_110] : memref<312x8xbf16, #tpu.memory_space<vmem>>, vector<144x8xbf16>
    %c120_111 = arith.constant 120 : index
    %c0_112 = arith.constant 0 : index
    %95 = vector.load %arg10[%c120_111, %c0_112] : memref<312x8xbf16, #tpu.memory_space<vmem>>, vector<144x8xbf16>
    %c121_113 = arith.constant 121 : index
    %c0_114 = arith.constant 0 : index
    %96 = vector.load %arg10[%c121_113, %c0_114] : memref<312x8xbf16, #tpu.memory_space<vmem>>, vector<144x8xbf16>
    %c125_115 = arith.constant 125 : index
    %c0_116 = arith.constant 0 : index
    %97 = vector.load %arg10[%c125_115, %c0_116] : memref<312x8xbf16, #tpu.memory_space<vmem>>, vector<144x8xbf16>
    %c126_117 = arith.constant 126 : index
    %c0_118 = arith.constant 0 : index
    %98 = vector.load %arg10[%c126_117, %c0_118] : memref<312x8xbf16, #tpu.memory_space<vmem>>, vector<144x8xbf16>
    %c127_119 = arith.constant 127 : index
    %c0_120 = arith.constant 0 : index
    %99 = vector.load %arg10[%c127_119, %c0_120] : memref<312x8xbf16, #tpu.memory_space<vmem>>, vector<144x8xbf16>
    %100 = tpu.concatenate %73, %74, %75, %76, %77, %78, %79, %80, %81, %82, %83, %84, %85, %86, %87, %88 in 1 : vector<144x8xbf16>, vector<144x8xbf16>, vector<144x8xbf16>, vector<144x8xbf16>, vector<144x8xbf16>, vector<144x8xbf16>, vector<144x8xbf16>, vector<144x8xbf16>, vector<144x8xbf16>, vector<144x8xbf16>, vector<144x8xbf16>, vector<144x8xbf16>, vector<144x8xbf16>, vector<144x8xbf16>, vector<144x8xbf16>, vector<144x8xbf16> -> vector<144x128xbf16>
    %101 = tpu.concatenate %89, %90, %91, %92, %93, %94, %95, %96, %97, %98, %99 in 1 : vector<144x8xbf16>, vector<144x8xbf16>, vector<144x8xbf16>, vector<144x8xbf16>, vector<144x8xbf16>, vector<144x8xbf16>, vector<144x8xbf16>, vector<144x8xbf16>, vector<144x8xbf16>, vector<144x8xbf16>, vector<144x8xbf16> -> vector<144x88xbf16>
    %102 = tpu.concatenate %100, %101 in 1 : vector<144x128xbf16>, vector<144x88xbf16> -> vector<144x216xbf16>
    %c0_121 = arith.constant 0 : index
    %c0_122 = arith.constant 0 : index
    %103 = vector.load %arg4[%c0_121, %c0_122] : memref<216x8xbf16, #tpu.memory_space<vmem>>, vector<216x8xbf16>
    %cst_123 = arith.constant dense<0.000000e+00> : vector<144x8xf32>
    %104 = tpu.matmul %102, %103, %cst_123 {dimension_numbers = #tpu.dot_dimension_numbers<[1], [0], [0], [1], [0, 0, 1, 1], [], []>} : vector<144x216xbf16>, vector<216x8xbf16>, vector<144x8xf32> -> vector<144x8xf32>
    %c0_124 = arith.constant 0 : index
    %c0_125 = arith.constant 0 : index
    %105 = vector.load %arg5[%c0_124, %c0_125] : memref<1x8xf32, #tpu.memory_space<vmem>>, vector<1x8xf32>
    %106 = vector.broadcast %105 : vector<1x8xf32> to vector<144x8xf32>
    %107 = arith.addf %104, %106 : vector<144x8xf32>
    %cst_126 = arith.constant 0.000000e+00 : f32
    %108 = vector.broadcast %cst_126 : f32 to vector<144x8xf32>
    %109 = arith.maximumf %107, %108 : vector<144x8xf32>
    %110 = arith.truncf %109 : vector<144x8xf32> to vector<144x8xbf16>
    %c0_127 = arith.constant 0 : index
    %c0_128 = arith.constant 0 : index
    %111 = vector.load %arg6[%c0_127, %c0_128] : memref<8x128xbf16, #tpu.memory_space<vmem>>, vector<8x128xbf16>
    %cst_129 = arith.constant dense<0.000000e+00> : vector<144x128xf32>
    %112 = tpu.matmul %110, %111, %cst_129 {dimension_numbers = #tpu.dot_dimension_numbers<[1], [0], [0], [1], [0, 0, 1, 1], [], []>} : vector<144x8xbf16>, vector<8x128xbf16>, vector<144x128xf32> -> vector<144x128xf32>
    %c0_130 = arith.constant 0 : index
    %c0_131 = arith.constant 0 : index
    %113 = vector.load %arg7[%c0_130, %c0_131] : memref<1x128xf32, #tpu.memory_space<vmem>>, vector<1x128xf32>
    %114 = vector.broadcast %113 : vector<1x128xf32> to vector<144x128xf32>
    %115 = arith.addf %112, %114 : vector<144x128xf32>
    %c0_132 = arith.constant 0 : index
    %c0_133 = arith.constant 0 : index
    %c0_134 = arith.constant 0 : index
    %116 = vector.load %arg9[%c0_132, %c0_133, %c0_134] : memref<1x144x128xf32, #tpu.memory_space<vmem>>, vector<1x144x128xf32>
    %117 = vector.shape_cast %116 : vector<1x144x128xf32> to vector<144x128xf32>
    %118 = vector.shape_cast %115 : vector<144x128xf32> to vector<1x144x128xf32>
    tpu.vector_store %arg9[%c0_132, %c0_133, %c0_134], %118 {strides = array<i32>} : memref<1x144x128xf32, #tpu.memory_space<vmem>>, vector<1x144x128xf32>,
    return
  }
  func.func @transform_0(%arg0: i32) -> (i32, i32, i32) {
    %c0_i32 = arith.constant 0 : i32
    %c0_i32_0 = arith.constant 0 : i32
    %c0_i32_1 = arith.constant 0 : i32
    return %arg0, %c0_i32, %c0_i32_0 : i32, i32, i32
  }
  func.func @transform_1(%arg0: i32) -> (i32, i32) {
    %c0_i32 = arith.constant 0 : i32
    %c0_i32_0 = arith.constant 0 : i32
    %c0_i32_1 = arith.constant 0 : i32
    return %c0_i32, %c0_i32_0 : i32, i32
  }
  func.func @transform_2(%arg0: i32) -> (i32, i32) {
    %c0_i32 = arith.constant 0 : i32
    %c0_i32_0 = arith.constant 0 : i32
    %c0_i32_1 = arith.constant 0 : i32
    return %c0_i32, %c0_i32_0 : i32, i32
  }
  func.func @transform_3(%arg0: i32) -> (i32, i32) {
    %c0_i32 = arith.constant 0 : i32
    %c0_i32_0 = arith.constant 0 : i32
    %c0_i32_1 = arith.constant 0 : i32
    return %c0_i32, %c0_i32_0 : i32, i32
  }
  func.func @transform_4(%arg0: i32) -> (i32, i32) {
    %c0_i32 = arith.constant 0 : i32
    %c0_i32_0 = arith.constant 0 : i32
    %c0_i32_1 = arith.constant 0 : i32
    return %c0_i32, %c0_i32_0 : i32, i32
  }
  func.func @transform_5(%arg0: i32) -> (i32, i32) {
    %c0_i32 = arith.constant 0 : i32
    %c0_i32_0 = arith.constant 0 : i32
    %c0_i32_1 = arith.constant 0 : i32
    return %c0_i32, %c0_i32_0 : i32, i32
  }
  func.func @transform_6(%arg0: i32) -> (i32, i32) {
    %c0_i32 = arith.constant 0 : i32
    %c0_i32_0 = arith.constant 0 : i32
    %c0_i32_1 = arith.constant 0 : i32
    return %c0_i32, %c0_i32_0 : i32, i32
  }
  func.func @transform_7(%arg0: i32) -> (i32, i32) {
    %c0_i32 = arith.constant 0 : i32
    %c0_i32_0 = arith.constant 0 : i32
    %c0_i32_1 = arith.constant 0 : i32
    return %c0_i32, %c0_i32_0 : i32, i32
  }
  func.func @transform_8(%arg0: i32) -> (i32, i32, i32) {
    %c0_i32 = arith.constant 0 : i32
    %c0_i32_0 = arith.constant 0 : i32
    %c0_i32_1 = arith.constant 0 : i32
    return %arg0, %c0_i32, %c0_i32_0 : i32, i32, i32
  }
}

</mosaic_0001>

<bundles_post_ra>
// kernel: tile.11
= control target key start
LH: loop header
LB: loop body
LE: loop exit
PB: predicated region body
PF: predicated region fallthrough
CT: control target
= control target key end

     0   :  { %s22_s0 = inlined_call_operand.vmem [shape: f32[36], index: 0, kind: input, shape index: {}]   ;;  %s23_s1 = inlined_call_operand.vmem [shape: f32[4,1,1,36], index: 1, kind: output, shape index: {}]  }
   0x1   :  { %v4_v0 = vld [vmem:[%s22_s0] ss:$0 sm:$0xff] }
   0x2   :  { %5 = vst [vmem:[%s23_s1] sm:$0xf] %v4_v0 }

// kernel: tile.16
= control target key start
LH: loop header
LB: loop body
LE: loop exit
PB: predicated region body
PF: predicated region fallthrough
CT: control target
= control target key end

     0   :  { %2 = vsyncpa [#allocation1], 0  ;;  %s42_s6 = smov [#allocation0]   ;;  %s59_s0 = inlined_call_operand.hbm [shape: f32[4], index: 0, kind: input, shape index: {}]   ;;  %s60_s1 = inlined_call_operand.vmem [shape: f32[8,4], index: 1, kind: output, shape index: {}]  }
   0x1   :  { %s9_s7 = sshll.u32 %s42_s6, 4  ;;  %s10_s7 = int_to_ptr.vmem [resolvable:$true] %s9_s7 }
   0x2   :  { %s28_s8 = scalar_lea.vmem %s10_s7, 16  ;;  %s32_s9 = scalar_lea.vmem %s10_s7, 32 }
   0x3   :  { %p29_p0 = scmp.ne.s32.totalorder %s10_s7, %s28_s8  ;;  %p33_p1 = scmp.lt.s32.totalorder %s10_s7, %s10_s7 }
   0x4   :  { %p34_p2 = scmp.lt.s32.totalorder %s32_s9, %s28_s8 }
   0x6   :  { %p35_p3 = por %p34_p2, %p33_p1 }
   0x8   :  { %p36_p4 = pnand %p35_p3, %p29_p0 }
   0xa   :  { %39 = shalt.err (!%p36_p4)
}
   0xb   :  { %12 = dma.hbm_to_vmem [thread:$0]  %s59_s0, 16, %s10_s7, [#allocation1]  }
   0xc   :  { %40 = dma.done.wait [#allocation1], 16  }
   0xd   :  { %41 = vsyncadd [#allocation1], 4294967280  ;;  %v16_v0 = vld [vmem:[#allocation0] ss:$0 sm:$0xff] }
   0xe   :  { %17 = vst [vmem:[%s60_s1] sm:$0xff] %v16_v0 }
   0xf   :  { %18 = vsyncpa [#allocation1], 1 }

// kernel: tile.17
= control target key start
LH: loop header
LB: loop body
LE: loop exit
PB: predicated region body
PF: predicated region fallthrough
CT: control target
= control target key end

     0   :  { %s69_s10 = smov 28   ;;  %s70_s11 = smov 20   ;;  %vm3_vm0 = vcmask 31744   ;;  %vm9_vm1 = vcmask 261344   ;;  %vm15_vm2 = vcmask 228544   ;;  %vm21_vm3 = vcmask 195744   ;;  %s113_s0 = inlined_call_operand.vmem [shape: f32[8,4], index: 0, kind: input, shape index: {}]   ;;  %s114_s1 = inlined_call_operand.vmem [shape: f32[32], index: 1, kind: output, shape index: {}]  }
   0x1   :  { %v55_v0 = vld [vmem:[%s113_s0 + $0x7] sm:$0x1]   ;;  %v57_v1 = vld [vmem:[%s113_s0 + $0x5] sm:$0x1]   ;;  %v56_v2 = vld [vmem:[%s113_s0 + $0x6] sm:$0x1]  }
   0x2   :  { %7 = vrot.lane.b32.xlu0 %v55_v0, %s69_s10  ;;  %19 = vrot.lane.b32.xlu1 %v57_v1, %s70_s11  ;;  %v58_v3 = vld [vmem:[%s113_s0 + $0x4] sm:$0x1]   ;;  %v2_v4 = vld [vmem:[%s113_s0] sm:$0x1]   ;;  %s71_s18 = smov 24   ;;  %s72_s19 = smov 16  }
   0x3   :  { %4 = vst.msk [vmem:[#allocation0] sm:$0x1] %vm3_vm0, %v2_v4   ;;  %v59_v5 = vld [vmem:[%s113_s0 + $0x3] sm:$0x1]   ;;  %v60_v6 = vld [vmem:[%s113_s0 + $0x2] sm:$0x1]  }
   0x4   :  { %s73_s24 = smov 12   ;;  %s74_s25 = smov 8   ;;  %v61_v7 = vld [vmem:[%s113_s0 + $0x1] sm:$0x1]   ;;  %vm27_vm4 = vcmask 162944   ;;  %vm33_vm5 = vcmask 130144  }
   0x5   :  { %s75_s0 = smov 4   ;;  %vm39_vm6 = vcmask 97344   ;;  %vm45_vm7 = vcmask 64544  }
   0x6   :  { %13 = vrot.lane.b32.xlu0 %v56_v2, %s71_s18  ;;  %25 = vrot.lane.b32.xlu1 %v58_v3, %s72_s19 }
   0xa   :  { %31 = vrot.lane.b32.xlu0 %v59_v5, %s73_s24  ;;  %37 = vrot.lane.b32.xlu1 %v60_v6, %s74_s25 }
   0xe   :  { %43 = vrot.lane.b32.xlu0 %v61_v7, %s75_s0 }
  0x74   :  { %v8_v8 = vpop.permute.xlu0 %7   ;;  %v20_v9 = vpop.permute.xlu1 %19  }
  0x75   :  { %10 = vst.msk [vmem:[#allocation0] sm:$0x1] %vm9_vm1, %v8_v8  }
  0x78   :  { %v14_v10 = vpop.permute.xlu0 %13   ;;  %v26_v11 = vpop.permute.xlu1 %25  }
  0x79   :  { %16 = vst.msk [vmem:[#allocation0] sm:$0x1] %vm15_vm2, %v14_v10  }
  0x7a   :  { %22 = vst.msk [vmem:[#allocation0] sm:$0x1] %vm21_vm3, %v20_v9  }
  0x7b   :  { %28 = vst.msk [vmem:[#allocation0] sm:$0x1] %vm27_vm4, %v26_v11  }
  0x7c   :  { %v32_v12 = vpop.permute.xlu0 %31   ;;  %v38_v13 = vpop.permute.xlu1 %37  }
  0x7d   :  { %34 = vst.msk [vmem:[#allocation0] sm:$0x1] %vm33_vm5, %v32_v12  }
  0x7e   :  { %40 = vst.msk [vmem:[#allocation0] sm:$0x1] %vm39_vm6, %v38_v13  }
  0x80   :  { %v44_v14 = vpop.permute.xlu0 %43  }
  0x81   :  { %46 = vst.msk [vmem:[#allocation0] sm:$0x1] %vm45_vm7, %v44_v14  }
  0x88   :  { %v51_v15 = vld [vmem:[#allocation0] sm:$0x1] }
  0x89   :  { %54 = vst [vmem:[%s114_s1] sm:$0x1] %v51_v15 }

// kernel: tile.0
= control target key start
LH: loop header
LB: loop body
LE: loop exit
PB: predicated region body
PF: predicated region fallthrough
CT: control target
= control target key end

     0   :  { %s327_s8 = smov 125   ;;  %s328_s9 = smov 126   ;;  %vm8_vm0 = vcmask 7168   ;;  %s566_s0 = inlined_call_operand.vmem [shape: f32[4,1,1,36], index: 0, kind: input, shape index: {}]   ;;  %s567_s1 = inlined_call_operand.vmem [shape: f32[144,1], index: 1, kind: output, shape index: {}]  }
   0x1   :  { %v5_v0 = vld [vmem:[%s566_s0] sm:$0xf]  ;;  %s326_s0 = smov 127   ;;  %s329_s10 = smov 124  }
   0x2   :  { %6 = vst [vmem:[#allocation0] sm:$0xf] %v5_v0  ;;  %s330_s11 = smov 123   ;;  %s331_s12 = smov 122  }
   0x3   :  { %s332_s13 = smov 121   ;;  %s333_s14 = smov 120  }
   0x4   :  { %s334_s15 = smov 119   ;;  %s335_s16 = smov 118  }
   0x5   :  { %s336_s17 = smov 117   ;;  %s337_s18 = smov 116  }
   0x6   :  { %s338_s19 = smov 115   ;;  %s339_s20 = smov 114  }
   0x7   :  { %s340_s21 = smov 113   ;;  %s341_s22 = smov 112  }
   0x8   :  { %s342_s23 = smov 111   ;;  %s343_s24 = smov 110  }
   0x9   :  { %v10_v1 = vld [vmem:[#allocation0] sm:$0xf]   ;;  %s344_s25 = smov 109   ;;  %s345_s26 = smov 108  }
   0xa   :  { %v22_v2 = vld [vmem:[#allocation0] sm:$0xf]   ;;  %11 = vrot.lane.b32.xlu0 %v10_v1, %s326_s0  ;;  %s346_s27 = smov 107   ;;  %s347_s28 = smov 106  }
   0xb   :  { %23 = vrot.lane.b32.xlu1 %v22_v2, %s327_s8  ;;  %v16_v3 = vld [vmem:[#allocation0] sm:$0xf]   ;;  %s348_s29 = smov 105   ;;  %s349_s30 = smov 104  }
   0xc   :  { %v28_v4 = vld [vmem:[#allocation0] sm:$0xf]   ;;  %s350_s2 = smov 103   ;;  %s351_s3 = smov 102  }
   0xd   :  { %v34_v5 = vld [vmem:[#allocation0] sm:$0xf]   ;;  %s352_s4 = smov 101   ;;  %s353_s5 = smov 100  }
   0xe   :  { %17 = vrot.lane.b32.xlu0 %v16_v3, %s328_s9  ;;  %v40_v6 = vld [vmem:[#allocation0] sm:$0xf]   ;;  %s354_s0 = smov 99   ;;  %s355_s8 = smov 98  }
   0xf   :  { %29 = vrot.lane.b32.xlu1 %v28_v4, %s329_s10  ;;  %v46_v7 = vld [vmem:[#allocation0] sm:$0xf]   ;;  %s356_s9 = smov 97   ;;  %s357_s10 = smov 96  }
  0x10   :  { %v52_v8 = vld [vmem:[#allocation0] sm:$0xf]  }
  0x11   :  { %v58_v9 = vld [vmem:[#allocation0] sm:$0xf]  }
  0x12   :  { %35 = vrot.lane.b32.xlu0 %v34_v5, %s330_s11  ;;  %v64_v10 = vld [vmem:[#allocation0] sm:$0xf]   ;;  %s358_s11 = smov 95  }
  0x13   :  { %41 = vrot.lane.b32.xlu1 %v40_v6, %s331_s12  ;;  %v70_v11 = vld [vmem:[#allocation0] sm:$0xf]   ;;  %s359_s12 = smov 94  }
  0x14   :  { %v76_v12 = vld [vmem:[#allocation0] sm:$0xf]  }
  0x15   :  { %v82_v13 = vld [vmem:[#allocation0] sm:$0xf]  }
  0x16   :  { %47 = vrot.lane.b32.xlu0 %v46_v7, %s332_s13  ;;  %v88_v14 = vld [vmem:[#allocation0] sm:$0xf]   ;;  %s360_s13 = smov 93  }
  0x17   :  { %53 = vrot.lane.b32.xlu1 %v52_v8, %s333_s14  ;;  %v94_v15 = vld [vmem:[#allocation0] sm:$0xf]  }
  0x18   :  { %v100_v16 = vld [vmem:[#allocation0] sm:$0xf]  }
  0x19   :  { %v106_v17 = vld [vmem:[#allocation0] sm:$0xf]  }
  0x1a   :  { %59 = vrot.lane.b32.xlu0 %v58_v9, %s334_s15  ;;  %v112_v18 = vld [vmem:[#allocation0] sm:$0xf]  }
  0x1b   :  { %65 = vrot.lane.b32.xlu1 %v64_v10, %s335_s16  ;;  %v118_v19 = vld [vmem:[#allocation0] sm:$0xf]  }
  0x1c   :  { %v124_v20 = vld.sshfl [vmem:[#allocation0] sm:$0xff pattern:$0x22222103]  }
  0x1d   :  { %v156_v21 = vld.sshfl [vmem:[#allocation0] sm:$0xff pattern:$0x11111032]  }
  0x1e   :  { %71 = vrot.lane.b32.xlu0 %v70_v11, %s336_s17  ;;  %v188_v22 = vld.sshfl [vmem:[#allocation0] sm:$0xff pattern:$0x321]  }
  0x1f   :  { %77 = vrot.lane.b32.xlu1 %v76_v12, %s337_s18  ;;  %v7_v23 = vld [vmem:[#allocation0] sm:$0xf]  }
  0x20   :  { %9 = vst.msk [vmem:[%s567_s1] ss:$36 sm:$0xf] %vm8_vm0, %v7_v23   ;;  %v220_v24 = vld [vmem:[#allocation0] sm:$0xf]  }
  0x21   :  { %v226_v25 = vld [vmem:[#allocation0] sm:$0xf]  }
  0x22   :  { %83 = vrot.lane.b32.xlu0 %v82_v13, %s338_s19  ;;  %v232_v26 = vld [vmem:[#allocation0] sm:$0xf]  }
  0x23   :  { %89 = vrot.lane.b32.xlu1 %v88_v14, %s339_s20  ;;  %v238_v27 = vld [vmem:[#allocation0] sm:$0xf]  }
  0x26   :  { %95 = vrot.lane.b32.xlu0 %v94_v15, %s340_s21 }
  0x27   :  { %101 = vrot.lane.b32.xlu1 %v100_v16, %s341_s22 }
  0x2a   :  { %107 = vrot.lane.b32.xlu0 %v106_v17, %s342_s23 }
  0x2b   :  { %113 = vrot.lane.b32.xlu1 %v112_v18, %s343_s24 }
  0x2e   :  { %119 = vrot.lane.b32.xlu0 %v118_v19, %s344_s25 }
  0x2f   :  { %125 = vrot.lane.b32.xlu1 %v124_v20, %s345_s26 }
  0x32   :  { %133 = vrot.lane.b32.xlu0 %v124_v20, %s346_s27 }
  0x33   :  { %141 = vrot.lane.b32.xlu1 %v124_v20, %s347_s28 }
  0x36   :  { %149 = vrot.lane.b32.xlu0 %v124_v20, %s348_s29 }
  0x37   :  { %157 = vrot.lane.b32.xlu1 %v156_v21, %s349_s30 }
  0x3a   :  { %165 = vrot.lane.b32.xlu0 %v156_v21, %s350_s2 }
  0x3b   :  { %173 = vrot.lane.b32.xlu1 %v156_v21, %s351_s3 }
  0x3e   :  { %181 = vrot.lane.b32.xlu0 %v156_v21, %s352_s4 }
  0x3f   :  { %189 = vrot.lane.b32.xlu1 %v188_v22, %s353_s5 }
  0x42   :  { %197 = vrot.lane.b32.xlu0 %v188_v22, %s354_s0 }
  0x43   :  { %205 = vrot.lane.b32.xlu1 %v188_v22, %s355_s8 }
  0x46   :  { %213 = vrot.lane.b32.xlu0 %v188_v22, %s356_s9 }
  0x47   :  { %221 = vrot.lane.b32.xlu1 %v220_v24, %s357_s10 }
  0x4a   :  { %227 = vrot.lane.b32.xlu0 %v226_v25, %s358_s11 }
  0x4b   :  { %233 = vrot.lane.b32.xlu1 %v232_v26, %s359_s12 }
  0x4e   :  { %239 = vrot.lane.b32.xlu0 %v238_v27, %s360_s13 }
  0x7c   :  { %v12_v28 = vpop.permute.xlu0 %11  }
  0x7d   :  { %v24_v29 = vpop.permute.xlu1 %23   ;;  %244 = vst.msk [vmem:[%s567_s1 + $0x1] ss:$36 sm:$0xf] %vm8_vm0, %v12_v28  }
  0x7e   :  { %246 = vst.msk [vmem:[%s567_s1 + $0x3] ss:$36 sm:$0xf] %vm8_vm0, %v24_v29  }
  0x80   :  { %v18_v30 = vpop.permute.xlu0 %17  }
  0x81   :  { %v30_v31 = vpop.permute.xlu1 %29   ;;  %245 = vst.msk [vmem:[%s567_s1 + $0x2] ss:$36 sm:$0xf] %vm8_vm0, %v18_v30  }
  0x82   :  { %247 = vst.msk [vmem:[%s567_s1 + $0x4] ss:$36 sm:$0xf] %vm8_vm0, %v30_v31  }
  0x84   :  { %v36_v32 = vpop.permute.xlu0 %35  }
  0x85   :  { %v42_v33 = vpop.permute.xlu1 %41   ;;  %248 = vst.msk [vmem:[%s567_s1 + $0x5] ss:$36 sm:$0xf] %vm8_vm0, %v36_v32  }
  0x86   :  { %249 = vst.msk [vmem:[%s567_s1 + $0x6] ss:$36 sm:$0xf] %vm8_vm0, %v42_v33  }
  0x88   :  { %v48_v34 = vpop.permute.xlu0 %47  }
  0x89   :  { %v54_v35 = vpop.permute.xlu1 %53   ;;  %250 = vst.msk [vmem:[%s567_s1 + $0x7] ss:$36 sm:$0xf] %vm8_vm0, %v48_v34  }
  0x8a   :  { %251 = vst.msk [vmem:[%s567_s1 + $0x8] ss:$36 sm:$0xf] %vm8_vm0, %v54_v35  }
  0x8c   :  { %v60_v36 = vpop.permute.xlu0 %59  }
  0x8d   :  { %v66_v37 = vpop.permute.xlu1 %65   ;;  %252 = vst.msk [vmem:[%s567_s1 + $0x9] ss:$36 sm:$0xf] %vm8_vm0, %v60_v36  }
  0x8e   :  { %253 = vst.msk [vmem:[%s567_s1 + $0xa] ss:$36 sm:$0xf] %vm8_vm0, %v66_v37  }
  0x90   :  { %v72_v38 = vpop.permute.xlu0 %71  }
  0x91   :  { %v78_v39 = vpop.permute.xlu1 %77   ;;  %254 = vst.msk [vmem:[%s567_s1 + $0xb] ss:$36 sm:$0xf] %vm8_vm0, %v72_v38  }
  0x92   :  { %255 = vst.msk [vmem:[%s567_s1 + $0xc] ss:$36 sm:$0xf] %vm8_vm0, %v78_v39  }
  0x94   :  { %v84_v40 = vpop.permute.xlu0 %83  }
  0x95   :  { %v90_v41 = vpop.permute.xlu1 %89   ;;  %256 = vst.msk [vmem:[%s567_s1 + $0xd] ss:$36 sm:$0xf] %vm8_vm0, %v84_v40  }
  0x96   :  { %257 = vst.msk [vmem:[%s567_s1 + $0xe] ss:$36 sm:$0xf] %vm8_vm0, %v90_v41  }
  0x98   :  { %v96_v42 = vpop.permute.xlu0 %95  }
  0x99   :  { %v102_v43 = vpop.permute.xlu1 %101   ;;  %258 = vst.msk [vmem:[%s567_s1 + $0xf] ss:$36 sm:$0xf] %vm8_vm0, %v96_v42  }
  0x9a   :  { %259 = vst.msk [vmem:[%s567_s1 + $0x10] ss:$36 sm:$0xf] %vm8_vm0, %v102_v43  }
  0x9c   :  { %v108_v44 = vpop.permute.xlu0 %107  }
  0x9d   :  { %v114_v45 = vpop.permute.xlu1 %113   ;;  %260 = vst.msk [vmem:[%s567_s1 + $0x11] ss:$36 sm:$0xf] %vm8_vm0, %v108_v44  }
  0x9e   :  { %261 = vst.msk [vmem:[%s567_s1 + $0x12] ss:$36 sm:$0xf] %vm8_vm0, %v114_v45  }
  0xa0   :  { %v120_v46 = vpop.permute.xlu0 %119  }
  0xa1   :  { %v126_v47 = vpop.permute.xlu1 %125   ;;  %262 = vst.msk [vmem:[%s567_s1 + $0x13] ss:$36 sm:$0xf] %vm8_vm0, %v120_v46  }
  0xa2   :  { %263 = vst.msk [vmem:[%s567_s1 + $0x80] ss:$-108 sm:$0x3] %vm8_vm0, %v126_v47   ;;  %264 = vst.msk [vmem:[%s567_s1 - $0x10] ss:$36 sm:$0xc] %vm8_vm0, %v126_v47  }
  0xa4   :  { %v134_v48 = vpop.permute.xlu0 %133  }
  0xa5   :  { %v142_v49 = vpop.permute.xlu1 %141   ;;  %265 = vst.msk [vmem:[%s567_s1 + $0x81] ss:$-108 sm:$0x3] %vm8_vm0, %v134_v48   ;;  %266 = vst.msk [vmem:[%s567_s1 - $0xf] ss:$36 sm:$0xc] %vm8_vm0, %v134_v48  }
  0xa6   :  { %267 = vst.msk [vmem:[%s567_s1 + $0x82] ss:$-108 sm:$0x3] %vm8_vm0, %v142_v49   ;;  %268 = vst.msk [vmem:[%s567_s1 - $0xe] ss:$36 sm:$0xc] %vm8_vm0, %v142_v49  }
  0xa8   :  { %v150_v50 = vpop.permute.xlu0 %149  }
  0xa9   :  { %v158_v51 = vpop.permute.xlu1 %157   ;;  %269 = vst.msk [vmem:[%s567_s1 + $0x83] ss:$-108 sm:$0x3] %vm8_vm0, %v150_v50   ;;  %270 = vst.msk [vmem:[%s567_s1 - $0xd] ss:$36 sm:$0xc] %vm8_vm0, %v150_v50  }
  0xaa   :  { %271 = vst.msk [vmem:[%s567_s1 + $0x60] ss:$36 sm:$0x3] %vm8_vm0, %v158_v51   ;;  %272 = vst.msk [vmem:[%s567_s1 - $0x30] ss:$36 sm:$0xc] %vm8_vm0, %v158_v51  }
  0xac   :  { %v166_v52 = vpop.permute.xlu0 %165  }
  0xad   :  { %v174_v53 = vpop.permute.xlu1 %173   ;;  %273 = vst.msk [vmem:[%s567_s1 + $0x61] ss:$36 sm:$0x3] %vm8_vm0, %v166_v52   ;;  %274 = vst.msk [vmem:[%s567_s1 - $0x2f] ss:$36 sm:$0xc] %vm8_vm0, %v166_v52  }
  0xae   :  { %275 = vst.msk [vmem:[%s567_s1 + $0x62] ss:$36 sm:$0x3] %vm8_vm0, %v174_v53   ;;  %276 = vst.msk [vmem:[%s567_s1 - $0x2e] ss:$36 sm:$0xc] %vm8_vm0, %v174_v53  }
  0xb0   :  { %v182_v54 = vpop.permute.xlu0 %181  }
  0xb1   :  { %v190_v55 = vpop.permute.xlu1 %189   ;;  %277 = vst.msk [vmem:[%s567_s1 + $0x63] ss:$36 sm:$0x3] %vm8_vm0, %v182_v54   ;;  %278 = vst.msk [vmem:[%s567_s1 - $0x2d] ss:$36 sm:$0xc] %vm8_vm0, %v182_v54  }
  0xb2   :  { %279 = vst.msk [vmem:[%s567_s1 + $0x40] ss:$36 sm:$0x7] %vm8_vm0, %v190_v55   ;;  %280 = vst.msk [vmem:[%s567_s1 + $0x19] sm:$0x8] %vm8_vm0, %v190_v55  }
  0xb4   :  { %v198_v56 = vpop.permute.xlu0 %197  }
  0xb5   :  { %v206_v57 = vpop.permute.xlu1 %205   ;;  %281 = vst.msk [vmem:[%s567_s1 + $0x41] ss:$36 sm:$0x7] %vm8_vm0, %v198_v56   ;;  %282 = vst.msk [vmem:[%s567_s1 + $0x1a] sm:$0x8] %vm8_vm0, %v198_v56  }
  0xb6   :  { %283 = vst.msk [vmem:[%s567_s1 + $0x42] ss:$36 sm:$0x7] %vm8_vm0, %v206_v57   ;;  %284 = vst.msk [vmem:[%s567_s1 + $0x1b] sm:$0x8] %vm8_vm0, %v206_v57  }
  0xb8   :  { %v214_v58 = vpop.permute.xlu0 %213  }
  0xb9   :  { %v222_v59 = vpop.permute.xlu1 %221   ;;  %285 = vst.msk [vmem:[%s567_s1 + $0x43] ss:$36 sm:$0x7] %vm8_vm0, %v214_v58   ;;  %286 = vst.msk [vmem:[%s567_s1 + $0x1c] sm:$0x8] %vm8_vm0, %v214_v58  }
  0xba   :  { %287 = vst.msk [vmem:[%s567_s1 + $0x20] ss:$36 sm:$0xf] %vm8_vm0, %v222_v59  }
  0xbc   :  { %v228_v60 = vpop.permute.xlu0 %227  }
  0xbd   :  { %v234_v61 = vpop.permute.xlu1 %233   ;;  %288 = vst.msk [vmem:[%s567_s1 + $0x21] ss:$36 sm:$0xf] %vm8_vm0, %v228_v60  }
  0xbe   :  { %289 = vst.msk [vmem:[%s567_s1 + $0x22] ss:$36 sm:$0xf] %vm8_vm0, %v234_v61  }
  0xc0   :  { %v240_v62 = vpop.permute.xlu0 %239  }
  0xc1   :  { %290 = vst.msk [vmem:[%s567_s1 + $0x23] ss:$36 sm:$0xf] %vm8_vm0, %v240_v62  }

// kernel: center3d_forward.1
= control target key start
LH: loop header
LB: loop body
LE: loop exit
PB: predicated region body
PF: predicated region fallthrough
CT: control target
= control target key end

     0   :  { %s6122_s27 = smov 0   ;;  %s11486_s0 = inlined_call_operand.vmem [shape: bf16[2,312,4], index: 0, kind: input, shape index: {}]   ;;  %s11487_s1 = inlined_call_operand.vmem [shape: bf16[108,8], index: 1, kind: input, shape index: {}]   ;;  %s11488_s2 = inlined_call_operand.vmem [shape: f32[1,8], index: 2, kind: input, shape index: {}]   ;;  %s11489_s3 = inlined_call_operand.vmem [shape: bf16[216,8], index: 3, kind: input, shape index: {}]   ;;  %s11490_s4 = inlined_call_operand.vmem [shape: f32[1,8], index: 4, kind: input, shape index: {}]   ;;  %s11491_s5 = inlined_call_operand.vmem [shape: bf16[8,128], index: 5, kind: input, shape index: {}]   ;;  %s11492_s6 = inlined_call_operand.vmem [shape: f32[1,128], index: 6, kind: input, shape index: {}]   ;;  %s11493_s7 = inlined_call_operand.vmem [shape: f32[144,1], index: 7, kind: input, shape index: {}]   ;;  %s11494_s8 = inlined_call_operand.vmem [shape: f32[2,144,128], index: 8, kind: output, shape index: {}]  }
   0x1 LB: > { %s5553_s28 = sadd.s32 4294967295, %s6049_s27   ;;  %p5557_p0 = scmp.ge.s32.totalorder %s6049_s27, 1  ;;  %s6049_s27 = sphi %s6122_s27, %s18_s27  }
   0x2   : > { %p262_p1 = scmp.lt.s32.totalorder %s6049_s27, 3 }
   0x4   : > { %p263_p2 = pnand %p5557_p0, %p262_p1 }
   0x6   : > { %266 = sbr.rel (%p263_p2) target bundleno = 1771 (0x6eb), region = 52 }
   0xb   : > { %p296_p3 = scmp.lt.s32.totalorder %s5553_s28, 1  ;;  %vm413_vm0 = vsmask.f32 7424  ;;  %s6051_s11 = smov 4   ;;  %vm11613_vm1 = vcmask 1046528   ;;  %vm11615_vm2 = vcmask 1044480  }
   0xc   : > { %s6052_s12 = smov 8   ;;  %s6053_s13 = smov 12   ;;  %vm11589_vm3 = vsmask.f32 256  ;;  %vm11612_vm4 = vsmask.f32 6400 }
   0xd   : > { %s12538_s28 = smov (!%p296_p3, %s5553_s28), 1  ;;  %vm11603_vm5 = vsmask.f32 5376  ;;  %s6054_s14 = smov 16   ;;  %vm11588_vm6 = vcmask 1040384   ;;  %vm11619_vm7 = vcmask 1045504  }
   0xe   : > { %s5881_s29 = smul.u32 156, %s12538_s28  ;;  %s6055_s15 = smov 20   ;;  %vm11616_vm8 = vcmask 31744   ;;  %vm11617_vm9 = vcmask 64512   ;;  %vm11618_vm10 = vcmask 97280   ;;  %vm11590_vm11 = vcmask 130048  }
   0xf   : > { %s6056_s16 = smov 24   ;;  %s6057_s17 = smov 32   ;;  %vm1322_vm12 = vcmask 162816   ;;  %vm11614_vm13 = vcmask 195584   ;;  %vm1364_vm14 = vcmask 228352   ;;  %vm1385_vm15 = vcmask 261120  }
  0x10   : > { %s6136_s10 = scalar_lea.vmem %s11486_s0, %s5881_s29  ;;  %s6058_s18 = smov 28  }
  0x11   : > { %v6139_v0 = vld [vmem:[%s6136_s10 + $0x5c] ss:$0 sps:$4 sm:$0x11]   ;;  %v6142_v1 = vld [vmem:[%s6136_s10 + $0x24] sm:$0xf]  ;;  %s6059_s19 = smov 40  }
  0x12   : > { %v6145_v2 = vld [vmem:[%s6136_s10 + $0x28] sm:$0xf]  ;;  %v6148_v3 = vld [vmem:[%s6136_s10 + $0x2c] sm:$0xf]  ;;  %v490_v4 = vshrl.u32 %v6139_v0, 16  ;;  %s6060_s20 = smov 36  }
  0x13   : > { %v6152_v5 = vld [vmem:[%s6136_s10 + $0x30] sm:$0xf]  ;;  %v6156_v6 = vcombine.low %v6142_v1, %v6145_v2  ;;  %v6159_v7 = vld [vmem:[%s6136_s10 + $0x18] sm:$0xf]  ;;  %v6166_v9 = vld [vmem:[%s6136_s10 + $0x1c] sm:$0xf] }
  0x14   : > { %v6163_v8 = vcombine.low %v6148_v3, %v6152_v5  ;;  %v6169_v10 = vld [vmem:[%s6136_s10 + $0x20] sm:$0xf]  ;;  %v326_v11 = vld [vmem:[%s6136_s10 + $0x14] sm:$0xe]  ;;  %510 = vrot.lane.b32.xlu1 %v490_v4, %s6051_s11  ;;  %v6186_v17 = vld [vmem:[%s6136_s10 + $0x38] sm:$0xf] }
  0x15   : > { %11752 = vst [vmem:[#allocation3_spill] sm:$0xff] %v6156_v6  ;;  %v430_v12 = vshll.u32 %v6156_v6, 16  ;;  %v434_v13 = vshrl.u32 %v6156_v6, 16  ;;  %v6177_v14 = vcombine.low %v6166_v9, %v6169_v10  ;;  %v6180_v15 = vcombine.low %v326_v11, %v6159_v7  ;;  %v6183_v16 = vld [vmem:[%s6136_s10 + $0x34] sm:$0xf]  ;;  %s6061_s21 = smov 44  }
  0x16   : > { %v11497_v18 = vshll.u32 %v6163_v8, 16  ;;  %v6191_v19 = vcombine.low %v6183_v16, %v6186_v17  ;;  %v11498_v20 = vshrl.u32 %v6163_v8, 16  ;;  %v6195_v21 = vld [vmem:[%s6136_s10 + $0x3c] sm:$0xf]  ;;  %v6198_v22 = vld [vmem:[%s6136_s10 + $0x40] sm:$0xf] }
  0x17   : > { %11753 = vst [vmem:[#allocation4_spill] sm:$0xff] %v6177_v14  ;;  %v432_v23 = vrot.slane %v430_v12, 1  ;;  %v415_v24 = vshrl.u32 %v6180_v15, 16  ;;  %v417_v25 = vshll.u32 %v6180_v15, 16  ;;  %v422_v26 = vshll.u32 %v6177_v14, 16  ;;  %s6063_s24 = smov 48  }
  0x18   : > { %v6204_v27 = vld [vmem:[%s6136_s10 + $0x44] sm:$0xf]  ;;  %v440_v28 = vrot.slane %v11497_v18, 1  ;;  %v11495_v29 = vshll.u32 %v6191_v19, 16  ;;  %v426_v30 = vshrl.u32 %v6177_v14, 16  ;;  %v6215_v32 = vcombine.low %v6195_v21, %v6198_v22  ;;  %s6064_s29 = smov 52  }
  0x19   : > { %v6211_v31 = vld [vmem:[%s6136_s10 + $0x48] sm:$0xf]  ;;  %v436_v33 = vor.u32 %v434_v13, %v432_v23  ;;  %v419_v34 = vrot.slane %v417_v25, 1  ;;  %v424_v35 = vrot.slane %v422_v26, 1  ;;  %v6222_v37 = vld [vmem:[%s6136_s10 + $0x4c] sm:$0xf] }
  0x1a   : > { %v6219_v36 = vcombine.low %v6204_v27, %v6211_v31  ;;  %v6225_v38 = vld [vmem:[%s6136_s10 + $0x50] sm:$0xf]  ;;  %v444_v39 = vor.u32 %v11498_v20, %v440_v28  ;;  %v6231_v40 = vrot.slane %v11495_v29, 1  ;;  %v6234_v41 = vshll.u32 %v6215_v32, 16  ;;  %v6240_v43 = vld [vmem:[%s6136_s10 + $0x54] sm:$0xf] }
  0x1b   : > { %v6237_v42 = vshrl.u32 %v6215_v32, 16  ;;  %v441_v44 = vsel %vm413_vm0, %v436_v33, %v440_v28  ;;  %v420_v45 = vor.u32 %v419_v34, %v415_v24  ;;  %v428_v46 = vor.u32 %v426_v30, %v424_v35  ;;  %v6247_v48 = vld [vmem:[%s6136_s10 + $0x58] sm:$0xf]  ;;  %s6066_s23 = smov 60   ;;  %s6067_s25 = smov 64  }
  0x1c   : > { %11754 = vst [vmem:[#allocation5_spill] sm:$0xff] %v6219_v36  ;;  %11755 = vst [vmem:[#allocation6_spill] sm:$0xff] %v6234_v41  ;;  %v6244_v47 = vshll.u32 %v6219_v36, 16  ;;  %496 = vrot.lane.b32.xlu1 %v441_v44, %s6051_s11  ;;  %v456_v49 = vrot.slane %v6234_v41, 1  ;;  %v11496_v50 = vshrl.u32 %v6191_v19, 16  ;;  %v6254_v51 = vcombine.low %v6222_v37, %v6225_v38  ;;  %s6071_s26 = smov 80  }
  0x1d   : > { %11756 = vst [vmem:[#allocation7_spill] sm:$0xff] %v6237_v42  ;;  %v425_v52 = vsel %vm413_vm0, %v420_v45, %v424_v35  ;;  %v449_v53 = vsel %vm413_vm0, %v444_v39, %v6231_v40  ;;  %v6262_v55 = vcombine.low %v6240_v43, %v6247_v48  ;;  %v433_v59 = vsel %vm413_vm0, %v428_v46, %v432_v23  ;;  %s6072_s30 = smov 88   ;;  %s6074_s9 = smov 104  }
  0x1e   : > { %11757 = vst [vmem:[#allocation8_spill] sm:$0xff] %v6254_v51  ;;  %v464_v54 = vrot.slane %v6244_v47, 1  ;;  %492 = vrot.lane.b32.xlu0 %v425_v52, %s6051_s11  ;;  %v460_v56 = vor.u32 %v6237_v42, %v456_v49  ;;  %v6267_v57 = vshll.u32 %v6254_v51, 16  ;;  %v6270_v58 = vshrl.u32 %v6254_v51, 16  ;;  %s6075_s22 = smov 112  }
  0x1f   : > { %11758 = vst [vmem:[#allocation9_spill] sm:$0xff] %v6262_v55  ;;  %v452_v60 = vor.u32 %v11496_v50, %v6231_v40  ;;  %v6277_v61 = vshll.u32 %v6262_v55, 16  ;;  %v6280_v62 = vshrl.u32 %v6219_v36, 16  ;;  %v6291_v24 = vshrl.u32 %v6262_v55, 16 }
  0x20   : > { %498 = vrot.lane.b32.xlu1 %v449_v53, %s6051_s11  ;;  %v472_v63 = vrot.slane %v6267_v57, 1  ;;  %v465_v4 = vsel %vm413_vm0, %v460_v56, %v464_v54  ;;  %v486_v25 = vshll.u32 %v6139_v0, 16  ;;  %v517_v28 = vrot.slane %v6177_v14, 1 }
  0x21   : > { %v480_v11 = vrot.slane %v6277_v61, 1  ;;  %v457_v13 = vsel %vm413_vm0, %v452_v60, %v456_v49  ;;  %v468_v23 = vor.u32 %v6280_v62, %v464_v54  ;;  %v519_v30 = vrot.slane %v6156_v6, 1  ;;  %v5930_v60 = vld [vmem:[%s6136_s10 + $0x5c] ss:$0 sps:$4 sm:$0x33]  }
  0x22   : > { %494 = vrot.lane.b32.xlu0 %v433_v59, %s6051_s11  ;;  %v476_v12 = vor.u32 %v6270_v58, %v472_v63  ;;  %v488_v35 = vrot.slane %v486_v25, 1  ;;  %v521_v39 = vrot.slane %v6163_v8, 1  ;;  %v523_v44 = vrot.slane %v6191_v19, 1 }
  0x23   : > { %v473_v33 = vsel %vm413_vm0, %v468_v23, %v472_v63  ;;  %v6301_v34 = vor.u32 %v6291_v24, %v480_v11  ;;  %v520_v0 = vsel %vm11613_vm1, %v517_v28, %v519_v30  ;;  %v516_v45 = vrot.slane %v6180_v15, 1 }
  0x24   : > { %502 = vrot.lane.b32.xlu1 %v465_v4, %s6051_s11  ;;  %v481_v26 = vsel %vm413_vm0, %v476_v12, %v480_v11  ;;  %v525_v49 = vrot.slane %v6215_v32, 1  ;;  %v527_v52 = vrot.slane %v6219_v36, 1  ;;  %v524_v53 = vsel %vm11613_vm1, %v521_v39, %v523_v44  ;;  %v328_v12 = vld [vmem:[%s6136_s10 + $0x14] sm:$0x8] }
  0x25   : > { %v489_v46 = vsel %vm413_vm0, %v6301_v34, %v488_v35  ;;  %v518_v54 = vsel %vm11613_vm1, %v516_v45, %v517_v28  ;;  %v529_v56 = vrot.slane %v6254_v51, 1  ;;  %v531_v59 = vrot.slane %v6262_v55, 1  ;;  %v358_v45 = vld [vmem:[%s6136_s10 + $0x3c] sm:$0xc] }
  0x26   : > { %500 = vrot.lane.b32.xlu0 %v457_v13, %s6051_s11  ;;  %v528_v15 = vsel %vm11613_vm1, %v525_v49, %v527_v52  ;;  %v522_v63 = vsel %vm11613_vm1, %v519_v30, %v521_v39  ;;  %v526_v11 = vsel %vm11613_vm1, %v523_v44, %v525_v49  ;;  %v533_v13 = vrot.slane %v5930_v60, 1 }
  0x27   : > { %v532_v4 = vsel %vm11613_vm1, %v529_v56, %v531_v59  ;;  %v563_v23 = vrot.slane %v6177_v14, 3  ;;  %v565_v25 = vrot.slane %v6156_v6, 3  ;;  %v5572_v28 = vcombine.low %v328_v12, %v6159_v7 }
  0x28   : > { %506 = vrot.lane.b32.xlu1 %v481_v26, %s6051_s11  ;;  %v530_v26 = vsel %vm11613_vm1, %v527_v52, %v529_v56  ;;  %v569_v35 = vrot.slane %v6191_v19, 3  ;;  %v534_v39 = vsel %vm11613_vm1, %v531_v59, %v533_v13  ;;  %v6352_v49 = vcombine.low %v6145_v2, %v6148_v3  ;;  %v6370_v2 = vld [vmem:[%s6136_s10 + $0x5c] sm:$0xf] }
  0x29   : > { %v566_v30 = vsel %vm11615_vm2, %v563_v23, %v565_v25  ;;  %v562_v44 = vrot.slane %v5572_v28, 3  ;;  %v6374_v3 = vcombine.low %v6159_v7, %v6166_v9  ;;  %v5614_v56 = vcombine.low %v358_v45, %v6198_v22 }
  0x2a   : > { %504 = vrot.lane.b32.xlu0 %v473_v33, %s6051_s11  ;;  %v6338_v33 = vrot.slane %v6163_v8, 3  ;;  %v1848_v12 = vrot.slane %v6280_v62, 7  ;;  %v6406_v45 = vcombine.low %v6186_v17, %v6195_v21  ;;  %v6423_v17 = vcombine.low %v6198_v22, %v6204_v27 }
  0x2b   : > { %v564_v59 = vsel %vm11615_vm2, %v562_v44, %v563_v23  ;;  %v1913_v7 = vshrl.u32 %v5614_v56, 16  ;;  %v1916_v9 = vshll.u32 %v5614_v56, 16  ;;  %v5573_v23 = vcombine.low %v6370_v2, %v6370_v2 }
  0x2c   : > { %537 = vrot.lane.b32.xlu1 %v520_v0, %s6052_s12  ;;  %v6344_v0 = vcombine.low %v6169_v10, %v6142_v1  ;;  %v6356_v52 = vsel %vm11615_vm2, %v6338_v33, %v569_v35  ;;  %v573_v1 = vrot.slane %v6219_v36, 3  ;;  %v568_v10 = vsel %vm11615_vm2, %v565_v25, %v6338_v33  ;;  %11765 = vst [vmem:[#allocation16_spill] sm:$0xff] %v6423_v17 }
  0x2d   : > { %11759 = vst [vmem:[#allocation10_spill] sm:$0xff] %v6356_v52  ;;  %v612_v28 = vshrl.u32 %v6374_v3, 16  ;;  %v11499_v44 = vshrl.u32 %v6352_v49, 16  ;;  %v6455_v18 = vcombine.low %v6225_v38, %v6240_v43  ;;  %v6462_v20 = vshll.u32 %v6423_v17, 16 }
  0x2e   : > { %508 = vrot.lane.b32.xlu0 %v489_v46, %s6051_s11  ;;  %v571_v46 = vrot.slane %v6215_v32, 3  ;;  %v11501_v60 = vshrl.u32 %v6344_v0, 16  ;;  %v11500_v25 = vshll.u32 %v6344_v0, 16  ;;  %v964_v6 = vrot.slane %v6270_v58, 2 }
  0x2f   : > { %v614_v29 = vrot.slane %v612_v28, 7  ;;  %v629_v27 = vrot.slane %v11499_v44, 7  ;;  %v1924_v28 = vrot.slane %v6270_v58, 1  ;;  %11769 = vst [vmem:[#allocation20_spill] sm:$0xff] %v6455_v18  ;;  %11770 = vst [vmem:[#allocation21_spill] sm:$0xff] %v6462_v20  ;;  %v6466_v44 = vcombine.low %v6211_v31, %v6222_v37 }
  0x30   : > { %541 = vrot.lane.b32.xlu1 %v524_v53, %s6052_s12  ;;  %v575_v53 = vrot.slane %v6254_v51, 3  ;;  %v965_v14 = vrot.slane %v6267_v57, 3  ;;  %v968_v31 = vrot.slane %v6291_v24, 2  ;;  %v969_v37 = vrot.slane %v6277_v61, 3 }
  0x31   : > { %11771 = vst [vmem:[#allocation22_spill] sm:$0xff] %v6466_v44 }
  0x32   : > { %535 = vrot.lane.b32.xlu0 %v518_v54, %s6052_s12  ;;  %v6364_v54 = vrot.slane %v6262_v55, 3 }
  0x34   : > { %545 = vrot.lane.b32.xlu1 %v528_v15, %s6052_s12  ;;  %11760 = vst [vmem:[#allocation11_spill] sm:$0xff] %v6364_v54  ;;  %v6367_v15 = vsel %vm11615_vm2, %v569_v35, %v571_v46  ;;  %v6397_v35 = vor.u32 %v1848_v12, %v6244_v47 }
  0x35   : > { %11761 = vst [vmem:[#allocation12_spill] sm:$0xff] %v6367_v15 }
  0x36   : > { %539 = vrot.lane.b32.xlu0 %v522_v63, %s6052_s12  ;;  %v1920_v63 = vrot.slane %v6280_v62, 1 }
  0x38   : > { %549 = vrot.lane.b32.xlu1 %v532_v4, %s6052_s12  ;;  %v1921_v4 = vrot.slane %v6244_v47, 2 }
  0x3a   : > { %543 = vrot.lane.b32.xlu0 %v526_v11, %s6052_s12  ;;  %v6385_v11 = vcombine.low %v6152_v5, %v6183_v16  ;;  %v1918_v16 = vrot.slane %v1916_v9, 2  ;;  %v961_v9 = vrot.slane %v6244_v47, 3  ;;  %v6440_v47 = vshrl.u32 %v6406_v45, 16 }
  0x3c   : > { %553 = vrot.lane.b32.xlu1 %v533_v13, %s6052_s12  ;;  %v6389_v13 = vsel %vm11615_vm2, %v571_v46, %v573_v1  ;;  %v6412_v46 = vsel %vm11615_vm2, %v575_v53, %v6364_v54  ;;  %v6415_v56 = vshrl.u32 %v6385_v11, 16  ;;  %v6428_v50 = vshll.u32 %v6385_v11, 16  ;;  %11766 = vst [vmem:[#allocation17_spill] sm:$0xff] %v6440_v47 }
  0x3d   : > { %11762 = vst [vmem:[#allocation13_spill] sm:$0xff] %v6389_v13  ;;  %11763 = vst [vmem:[#allocation14_spill] sm:$0xff] %v6412_v46 }
  0x3e   : > { %547 = vrot.lane.b32.xlu0 %v530_v26, %s6052_s12  ;;  %v1922_v26 = vor.u32 %v1921_v4, %v1920_v63  ;;  %v960_v63 = vrot.slane %v6280_v62, 2  ;;  %v579_v4 = vrot.slane %v5573_v23, 3  ;;  %v1851_v62 = vrot.slane %v6270_v58, 7 }
  0x40   : > { %583 = vrot.lane.b32.xlu1 %v566_v30, %s6053_s13  ;;  %v1915_v30 = vrot.slane %v1913_v7, 1  ;;  %v6419_v7 = vsel %vm11615_vm2, %v573_v1, %v575_v53  ;;  %v637_v53 = vrot.slane %v6415_v56, 7  ;;  %v1852_v23 = vor.u32 %v1851_v62, %v6267_v57 }
  0x41   : > { %11764 = vst [vmem:[#allocation15_spill] sm:$0xff] %v6419_v7 }
  0x42   : > { %551 = vrot.lane.b32.xlu0 %v534_v39, %s6052_s12  ;;  %v6401_v39 = vrot.slane %v11501_v60, 7 }
  0x44   : > { %587 = vrot.lane.b32.xlu1 %v6356_v52, %s6053_s13  ;;  %v624_v1 = vor.u32 %v11500_v25, %v6401_v39  ;;  %v6469_v25 = vsel %vm11589_vm3, %v1848_v12, %v1852_v23  ;;  %v6496_v23 = vor.u32 %v969_v37, %v968_v31  ;;  %v6516_v37 = vshll.u32 %v6455_v18, 16 }
  0x46   : > { %581 = vrot.lane.b32.xlu0 %v564_v59, %s6053_s13  ;;  %v1919_v59 = vor.u32 %v1918_v16, %v1915_v30  ;;  %v1925_v16 = vrot.slane %v6267_v57, 2  ;;  %v625_v38 = vsel %vm11589_vm3, %v614_v29, %v624_v1  ;;  %v6485_v1 = vshrl.u32 %v6455_v18, 16  ;;  %11774 = vst [vmem:[#allocation25_spill] sm:$0xff] %v6516_v37 }
  0x47   : > { %v6491_v57 = vor.u32 %v965_v14, %v964_v6  ;;  %v645_v14 = vrot.slane %v6440_v47, 7 }
  0x48   : > { %591 = vrot.lane.b32.xlu1 %v6389_v13, %s6053_s13  ;;  %v6431_v30 = vsel %vm11612_vm4, %v1919_v59, %v1922_v26  ;;  %v6451_v59 = vshrl.u32 %v6423_v17, 16  ;;  %v1926_v60 = vor.u32 %v1925_v16, %v1924_v28  ;;  %11772 = vst [vmem:[#allocation23_spill] sm:$0xff] %v6485_v1  ;;  %v580_v28 = vsel %vm11615_vm2, %v6364_v54, %v579_v4 }
  0x49   : > { %v669_v31 = vrot.slane %v6485_v1, 7  ;;  %v6524_v16 = vcombine.low %v6247_v48, %v6370_v2  ;;  %v11776_v54 = vshll.u32 %v6352_v49, 16 }
  0x4a   : > { %585 = vrot.lane.b32.xlu0 %v568_v10, %s6053_s13  ;;  %v6442_v10 = vor.u32 %v961_v9, %v960_v63  ;;  %11768 = vst [vmem:[#allocation19_spill] sm:$0xff] %v6451_v59  ;;  %v1928_v63 = vrot.slane %v6291_v24, 1  ;;  %v1929_v9 = vrot.slane %v6277_v61, 2  ;;  %v6479_v13 = vsel %vm11612_vm4, %v1922_v26, %v1926_v60 }
  0x4b   : > { %v653_v12 = vrot.slane %v6451_v59, 7  ;;  %v615_v26 = vshll.u32 %v6374_v3, 16  ;;  %11775 = vst [vmem:[#allocation26_spill] sm:$0xff] %v6524_v16 }
  0x4c   : > { %11767 = vst [vmem:[#allocation18_spill] sm:$0xff] %v6442_v10  ;;  %595 = vrot.lane.b32.xlu1 %v6412_v46, %s6053_s13  ;;  %v6472_v43 = vor.u32 %v1929_v9, %v1928_v63  ;;  %v640_v46 = vor.u32 %v6428_v50, %v637_v53  ;;  %v11510_v63 = vrot.slane %v6291_v24, 7  ;;  %v6511_v9 = vsel %vm11603_vm5, %v6491_v57, %v6496_v23 }
  0x4e   : > { %589 = vrot.lane.b32.xlu0 %v6367_v15, %s6053_s13  ;;  %v6489_v58 = vsel %vm11612_vm4, %v1926_v60, %v6472_v43  ;;  %v641_v6 = vsel %vm11589_vm3, %v629_v27, %v640_v46  ;;  %v6506_v60 = vshrl.u32 %v6466_v44, 16  ;;  %v1855_v46 = vor.u32 %v11510_v63, %v6277_v61 }
  0x4f   : > { %v6529_v15 = vshll.u32 %v6406_v45, 16 }
  0x50   : > { %599 = vrot.lane.b32.xlu1 %v579_v4, %s6053_s13  ;;  %11773 = vst [vmem:[#allocation24_spill] sm:$0xff] %v6506_v60  ;;  %v656_v4 = vor.u32 %v6462_v20, %v653_v12  ;;  %v6532_v52 = vsel %vm11589_vm3, %v1851_v62, %v1855_v46  ;;  %v6546_v62 = vshll.u32 %v6466_v44, 16 }
  0x51   : > { %11777 = vst [vmem:[#allocation27_spill] sm:$0xff] %v6529_v15 }
  0x52   : > { %593 = vrot.lane.b32.xlu0 %v6419_v7, %s6053_s13  ;;  %v632_v7 = vor.u32 %v11776_v54, %v629_v27  ;;  %v657_v61 = vsel %vm11589_vm3, %v645_v14, %v656_v4  ;;  %v648_v54 = vor.u32 %v6529_v15, %v645_v14  ;;  %v6543_v27 = vshrl.u32 %v6524_v16, 16  ;;  %11779 = vst [vmem:[#allocation29_spill] sm:$0xff] %v6546_v62 }
  0x53   : > { %v6559_v14 = vshll.u32 %v6524_v16, 16 }
  0x54   : > { %684 = vrot.lane.b32.xlu1 %v625_v38, %s6054_s14  ;;  %v617_v38 = vor.u32 %v615_v26, %v614_v29  ;;  %v672_v29 = vor.u32 %v6516_v37, %v669_v31  ;;  %v633_v48 = vsel %vm11589_vm3, %v6401_v39, %v632_v7  ;;  %11778 = vst [vmem:[#allocation28_spill] sm:$0xff] %v6543_v27  ;;  %v6555_v39 = vrot.slane %v6543_v27, 7 }
  0x55   : > { %11780 = vst [vmem:[#allocation30_spill] sm:$0xff] %v6559_v14 }
  0x56   : > { %597 = vrot.lane.b32.xlu0 %v580_v28, %s6053_s13  ;;  %v661_v28 = vrot.slane %v6506_v60, 7  ;;  %v680_v46 = vor.u32 %v6559_v14, %v6555_v39 }
  0x58   : > { %688 = vrot.lane.b32.xlu1 %v641_v6, %s6054_s14  ;;  %v6550_v26 = vsel %vm11589_vm3, %v661_v28, %v672_v29  ;;  %v649_v6 = vsel %vm11589_vm3, %v637_v53, %v648_v54  ;;  %v664_v7 = vor.u32 %v6546_v62, %v661_v28  ;;  %v6571_v53 = vsel %vm11589_vm3, %v669_v31, %v680_v46  ;;  %v353_v28 = vld [vmem:[%s6136_s10 + $0x38] sm:$0xe] }
  0x5a   : > { %682 = vrot.lane.b32.xlu0 %v617_v38, %s6054_s14  ;;  %v665_v4 = vsel %vm11589_vm3, %v653_v12, %v664_v7  ;;  %v347_v38 = vld [vmem:[%s6136_s10 + $0x2c] sm:$0xe] }
  0x5b   : > { %v6579_v12 = vcombine.low %v347_v38, %v6152_v5  ;;  %v5607_v5 = vcombine.low %v353_v28, %v6195_v21 }
  0x5c   : > { %692 = vrot.lane.b32.xlu1 %v657_v61, %s6054_s14 }
  0x5d   : > { %v1562_v31 = vshll.u32 %v6579_v12, 16  ;;  %v1560_v29 = vshrl.u32 %v6579_v12, 16  ;;  %v1687_v7 = vshll.u32 %v5607_v5, 16  ;;  %v1685_v38 = vshrl.u32 %v5607_v5, 16 }
  0x5e   : > { %686 = vrot.lane.b32.xlu0 %v633_v48, %s6054_s14 }
  0x5f   : > { %v1564_v48 = vrot.slane %v1562_v31, 1  ;;  %v1689_v28 = vrot.slane %v1687_v7, 1 }
  0x60   : > { %696 = vrot.lane.b32.xlu1 %v6550_v26, %s6054_s14 }
  0x62   : > { %690 = vrot.lane.b32.xlu0 %v649_v6, %s6054_s14  ;;  %v355_v6 = vld [vmem:[%s6136_s10 + $0x38] sm:$0x8] }
  0x63   : > { %v5609_v46 = vcombine.low %v355_v6, %v6195_v21  ;;  %v799_v21 = vrot.slane %v6451_v59, 2 }
  0x64   : > { %700 = vrot.lane.b32.xlu1 %v6555_v39, %s6054_s14 }
  0x65   : > { %v1750_v63 = vshrl.u32 %v5609_v46, 16  ;;  %v1753_v15 = vshll.u32 %v5609_v46, 16 }
  0x66   : > { %694 = vrot.lane.b32.xlu0 %v665_v4, %s6054_s14 }
  0x67   : > { %v1752_v6 = vrot.slane %v1750_v63, 2  ;;  %v1755_v47 = vrot.slane %v1753_v15, 3  ;;  %v1806_v63 = vrot.slane %v6215_v32, 7 }
  0x68   : > { %707 = vrot.lane.b32.xlu1 %v6344_v0, %s6055_s15 }
  0x69   : > { %v1756_v46 = vor.u32 %v1755_v47, %v1752_v6 }
  0x6a   : > { %698 = vrot.lane.b32.xlu0 %v6571_v53, %s6054_s14 }
  0x6c   : > { %711 = vrot.lane.b32.xlu1 %v6385_v11, %s6055_s15 }
  0x6e   : > { %705 = vrot.lane.b32.xlu0 %v6374_v3, %s6055_s15  ;;  %v1565_v3 = vor.u32 %v1564_v48, %v1560_v29  ;;  %v1691_v29 = vrot.slane %v6462_v20, 1  ;;  %v1690_v48 = vor.u32 %v1689_v28, %v1685_v38 }
  0x70   : > { %715 = vrot.lane.b32.xlu1 %v6423_v17, %s6055_s15  ;;  %v1566_v31 = vsel %vm413_vm0, %v1565_v3, %v6231_v40  ;;  %v803_v40 = vrot.slane %v6506_v60, 2  ;;  %v804_v3 = vrot.slane %v6546_v62, 3 }
  0x72   : > { %709 = vrot.lane.b32.xlu0 %v6352_v49, %s6055_s15  ;;  %v805_v15 = vor.u32 %v804_v3, %v803_v40  ;;  %v1846_v3 = vrot.slane %v6237_v42, 7 }
  0x74   : > { %719 = vrot.lane.b32.xlu1 %v6455_v18, %s6055_s15 }
  0x76   : > { %713 = vrot.lane.b32.xlu0 %v6406_v45, %s6055_s15 }
  0x78   : > { %1638 = vrot.lane.b32.xlu1 %v648_v54, %s6052_s12  ;;  %v800_v54 = vrot.slane %v6462_v20, 3 }
  0x7a   : > { %717 = vrot.lane.b32.xlu0 %v6466_v44, %s6055_s15  ;;  %v6615_v7 = vor.u32 %v800_v54, %v799_v21  ;;  %v11515_v21 = vrot.slane %v6516_v37, 1 }
  0x7c   : > { %1640 = vrot.lane.b32.xlu1 %v657_v61, %s6052_s12  ;;  %v1692_v61 = vsel %vm413_vm0, %v1690_v48, %v1691_v29  ;;  %11781 = vst [vmem:[#allocation31_spill] sm:$0xff] %v6615_v7  ;;  %v1757_v38 = vsel %vm11603_vm5, %v1756_v46, %v6615_v7  ;;  %v6629_v47 = vsel %vm11603_vm5, %v6615_v7, %v805_v15  ;;  %v360_v48 = vld [vmem:[%s6136_s10 + $0x3c] sm:$0x8] }
  0x7d   : > { %11783 = vst [vmem:[#allocation33_spill] sm:$0xff] %v6629_v47  ;;  %v5616_v6 = vcombine.low %v360_v48, %v6198_v22  ;;  %v1807_v22 = vrot.slane %v6219_v36, 7  ;;  %v808_v48 = vrot.slane %v6516_v37, 3 }
  0x7e   : > { %1589 = vrot.lane.b32.xlu0 %v1566_v31, %s6051_s11  ;;  %v1693_v31 = vor.u32 %v1691_v29, %v6451_v59 }
  0x7f   : > { %v2010_v46 = vshrl.u32 %v5616_v6, 16 }
  0x80   : > { %1663 = vrot.lane.b32.xlu1 %v6423_v17, %s6053_s13 }
  0x82   : > { %1661 = vrot.lane.b32.xlu0 %v5607_v5, %s6053_s13  ;;  %v1694_v5 = vrot.slane %v6546_v62, 1 }
  0x84   : > { %1642 = vrot.lane.b32.xlu1 %v665_v4, %s6052_s12  ;;  %v1696_v4 = vor.u32 %v1694_v5, %v6506_v60  ;;  %v1695_v29 = vsel %vm413_vm0, %v1693_v31, %v1694_v5  ;;  %v1847_v5 = vor.u32 %v1846_v3, %v6234_v41 }
  0x86   : > { %1723 = vrot.lane.b32.xlu0 %v1692_v61, %s6054_s14  ;;  %v6625_v28 = vpop.permute.xlu1 %510  ;;  %v1698_v54 = vsel %vm413_vm0, %v1696_v4, %v11515_v21  ;;  %v807_v4 = vrot.slane %v6485_v1, 2  ;;  %v11517_v21 = vrot.slane %v6254_v51, 7 }
  0x87   : > { %11782 = vst [vmem:[#allocation32_spill] sm:$0xff] %v6625_v28  ;;  %v2012_v28 = vrot.slane %v2010_v46, 2 }
  0x88   : > { %1823 = vrot.lane.b32.xlu1 %v1806_v63, %s6056_s16 }
  0x8a   : > { %1783 = vrot.lane.b32.xlu0 %v1757_v38, %s6055_s15  ;;  %v2013_v38 = vshll.u32 %v5616_v6, 16 }
  0x8c   : > { %1785 = vrot.lane.b32.xlu1 %v6629_v47, %s6055_s15 }
  0x8e   : > { %1725 = vrot.lane.b32.xlu0 %v1695_v29, %s6054_s14  ;;  %v6643_v40 = vpop.permute.xlu1 %496 }
  0x8f   : > { %11784 = vst [vmem:[#allocation34_spill] sm:$0xff] %v6643_v40 }
  0x90   : > { %v6646_v61 = vpop.permute.xlu0 %492  ;;  %1727 = vrot.lane.b32.xlu1 %v1698_v54, %s6054_s14  ;;  %v1850_v54 = vsel %vm11589_vm3, %v1846_v3, %v6397_v35  ;;  %v1810_v35 = vsel %vm11588_vm6, %v1807_v22, %v11517_v21 }
  0x91   : > { %11785 = vst [vmem:[#allocation35_spill] sm:$0xff] %v6646_v61  ;;  %v1808_v61 = vsel %vm11588_vm6, %v1806_v63, %v1807_v22  ;;  %v1984_v63 = vrot.slane %v5616_v6, 2 }
  0x92   : > { %1665 = vrot.lane.b32.xlu0 %v6466_v44, %s6053_s13  ;;  %v6651_v31 = vpop.permute.xlu1 %498 }
  0x93   : > { %11786 = vst [vmem:[#allocation36_spill] sm:$0xff] %v6651_v31  ;;  %v2015_v31 = vrot.slane %v2013_v38, 3  ;;  %v6681_v38 = vrot.slane %v6219_v36, 2 }
  0x94   : > { %v6657_v29 = vpop.permute.xlu0 %494  ;;  %1961 = vrot.lane.b32.xlu1 %v6431_v30, %s6057_s17 }
  0x95   : > { %11787 = vst [vmem:[#allocation37_spill] sm:$0xff] %v6657_v29  ;;  %v809_v29 = vor.u32 %v808_v48, %v807_v4  ;;  %v2016_v30 = vor.u32 %v2015_v31, %v2012_v28  ;;  %11790 = vst [vmem:[#allocation40_spill] sm:$0xff] %v6681_v38  ;;  %v907_v31 = vrot.slane %v6254_v51, 2 }
  0x96   : > { %1886 = vrot.lane.b32.xlu0 %v1847_v5, %s6058_s18  ;;  %v6665_v40 = vpop.permute.xlu1 %502 }
  0x97   : > { %v6678_v46 = vsel %vm11603_vm5, %v805_v15, %v809_v29  ;;  %v2017_v22 = vsel %vm11603_vm5, %v2016_v30, %v6442_v10  ;;  %v1985_v15 = vsel %vm11619_vm7, %v1984_v63, %v6681_v38  ;;  %v811_v30 = vrot.slane %v6543_v27, 2 }
  0x98   : > { %v6668_v47 = vpop.permute.xlu0 %500  ;;  %1888 = vrot.lane.b32.xlu1 %v1850_v54, %s6058_s18  ;;  %11789 = vst [vmem:[#allocation39_spill] sm:$0xff] %v6678_v46  ;;  %v908_v54 = vsel %vm11619_vm7, %v6681_v38, %v907_v31  ;;  %v812_v63 = vrot.slane %v6559_v14, 3 }
  0x9a   : > { %1825 = vrot.lane.b32.xlu0 %v1808_v61, %s6056_s16  ;;  %v6675_v3 = vpop.permute.xlu1 %506 }
  0x9b   : > { %11788 = vst [vmem:[#allocation38_spill] sm:$0xff] %v6675_v3 }
  0x9c   : > { %v6683_v5 = vpop.permute.xlu0 %504  ;;  %1827 = vrot.lane.b32.xlu1 %v1810_v35, %s6056_s16 }
  0x9d   : > { %11791 = vst [vmem:[#allocation41_spill] sm:$0xff] %v6683_v5 }
  0x9e   : > { %1787 = vrot.lane.b32.xlu0 %v6678_v46, %s6055_s15  ;;  %v6690_v28 = vpop.permute.xlu1 %537 }
  0x9f   : > { %11792 = vst [vmem:[#allocation42_spill] sm:$0xff] %v6690_v28 }
  0xa0   : > { %v6694_v61 = vpop.permute.xlu0 %508  ;;  %2039 = vrot.lane.b32.xlu1 %v2017_v22, %s6059_s19  ;;  %v909_v22 = vrot.slane %v6262_v55, 2 }
  0xa1   : > { %11793 = vst [vmem:[#allocation43_spill] sm:$0xff] %v6694_v61 }
  0xa2   : > { %1994 = vrot.lane.b32.xlu0 %v1985_v15, %s6060_s20  ;;  %v6698_v6 = vpop.permute.xlu1 %541  ;;  %v334_v15 = vld [vmem:[%s6136_s10 + $0x60] sm:$0xf] }
  0xa3   : > { %11794 = vst [vmem:[#allocation44_spill] sm:$0xff] %v6698_v6 }
  0xa4   : > { %v6701_v4 = vpop.permute.xlu0 %535  ;;  %1890 = vrot.lane.b32.xlu1 %v6469_v25, %s6058_s18 }
  0xa5   : > { %11795 = vst [vmem:[#allocation45_spill] sm:$0xff] %v6701_v4 }
  0xa6   : > { %1963 = vrot.lane.b32.xlu0 %v6479_v13, %s6057_s17  ;;  %v6707_v48 = vpop.permute.xlu1 %545  ;;  %v967_v13 = vsel %vm11603_vm5, %v6442_v10, %v6491_v57  ;;  %v910_v57 = vsel %vm11619_vm7, %v907_v31, %v909_v22  ;;  %v1700_v31 = vrot.slane %v6559_v14, 1  ;;  %v7159_v10 = vld [vmem:[%s6136_s10 + $0x74] ss:$0 sps:$4 sm:$0x33]  }
  0xa7   : > { %11796 = vst [vmem:[#allocation46_spill] sm:$0xff] %v6707_v48 }
  0xa8   : > { %v6711_v35 = vpop.permute.xlu0 %539  ;;  %1965 = vrot.lane.b32.xlu1 %v6489_v58, %s6057_s17  ;;  %v6729_v58 = vor.u32 %v812_v63, %v811_v30  ;;  %v336_v30 = vld [vmem:[%s6136_s10 + $0x64] sm:$0xf] }
  0xa9   : > { %11797 = vst [vmem:[#allocation47_spill] sm:$0xff] %v6711_v35  ;;  %v1811_v35 = vrot.slane %v6262_v55, 7 }
  0xaa   : > { %925 = vrot.lane.b32.xlu0 %v908_v54, %s6060_s20  ;;  %v6718_v25 = vpop.permute.xlu1 %549  ;;  %11800 = vst [vmem:[#allocation50_spill] sm:$0xff] %v6729_v58  ;;  %v6735_v54 = vcombine.low %v6370_v2, %v334_v15  ;;  %v11806_v2 = vrot.slane %v6516_v37, 1 }
  0xab   : > { %11798 = vst [vmem:[#allocation48_spill] sm:$0xff] %v6718_v25 }
  0xac   : > { %v6725_v21 = vpop.permute.xlu0 %543  ;;  %1009 = vrot.lane.b32.xlu1 %v6511_v9, %s6059_s19  ;;  %11802 = vst [vmem:[#allocation52_spill] sm:$0xff] %v6735_v54  ;;  %v6744_v9 = vsel %vm11603_vm5, %v809_v29, %v6729_v58  ;;  %v6764_v29 = vcombine.low %v334_v15, %v336_v30 }
  0xad   : > { %11799 = vst [vmem:[#allocation49_spill] sm:$0xff] %v6725_v21  ;;  %11804 = vst [vmem:[#allocation54_spill] sm:$0xff] %v6744_v9  ;;  %v337_v21 = vld [vmem:[%s6136_s10 + $0x68] sm:$0xf] }
  0xae   : > { %1007 = vrot.lane.b32.xlu0 %v967_v13, %s6059_s19  ;;  %v6732_v61 = vpop.permute.xlu1 %553  ;;  %v1699_v13 = vor.u32 %v11806_v2, %v6485_v1  ;;  %11808 = vst [vmem:[#allocation57_spill] sm:$0xff] %v6764_v29  ;;  %v6780_v15 = vcombine.low %v336_v30, %v337_v21 }
  0xaf   : > { %11801 = vst [vmem:[#allocation51_spill] sm:$0xff] %v6732_v61  ;;  %v6755_v61 = vshrl.u32 %v6735_v54, 16 }
  0xb0   : > { %v6738_v25 = vpop.permute.xlu0 %547  ;;  %1667 = vrot.lane.b32.xlu1 %v6455_v18, %s6053_s13  ;;  %v1701_v6 = vsel %vm413_vm0, %v1699_v13, %v1700_v31  ;;  %11811 = vst [vmem:[#allocation60_spill] sm:$0xff] %v6780_v15 }
  0xb1   : > { %11803 = vst [vmem:[#allocation53_spill] sm:$0xff] %v6738_v25  ;;  %v6758_v25 = vshll.u32 %v6735_v54, 16  ;;  %v11527_v18 = vrot.slane %v6755_v61, 7 }
  0xb2   : > { %927 = vrot.lane.b32.xlu0 %v910_v57, %s6060_s20  ;;  %v6748_v63 = vpop.permute.xlu1 %583  ;;  %v11520_v57 = vrot.slane %v6735_v54, 2 }
  0xb3   : > { %11805 = vst [vmem:[#allocation55_spill] sm:$0xff] %v6748_v63  ;;  %v1932_v63 = vrot.slane %v6755_v61, 1  ;;  %v978_v30 = vrot.slane %v6758_v25, 3 }
  0xb4   : > { %v6760_v48 = vpop.permute.xlu0 %551  ;;  %1789 = vrot.lane.b32.xlu1 %v6744_v9, %s6055_s15  ;;  %v11814_v9 = vrot.slane %v6254_v51, 7 }
  0xb5   : > { %11807 = vst [vmem:[#allocation56_spill] sm:$0xff] %v6760_v48  ;;  %v1933_v48 = vrot.slane %v6758_v25, 2 }
  0xb6   : > { %1644 = vrot.lane.b32.xlu0 %v6550_v26, %s6052_s12  ;;  %v6770_v2 = vpop.permute.xlu1 %587  ;;  %v912_v26 = vsel %vm11619_vm7, %v909_v22, %v11520_v57  ;;  %v1702_v22 = vor.u32 %v1700_v31, %v6543_v27 }
  0xb7   : > { %11809 = vst [vmem:[#allocation58_spill] sm:$0xff] %v6770_v2  ;;  %v6786_v2 = vshll.u32 %v6764_v29, 16  ;;  %v1934_v4 = vor.u32 %v1933_v48, %v1932_v63 }
  0xb8   : > { %v6776_v28 = vpop.permute.xlu0 %581  ;;  %1892 = vrot.lane.b32.xlu1 %v6532_v52, %s6058_s18  ;;  %v975_v52 = vrot.slane %v6755_v61, 2 }
  0xb9   : > { %11810 = vst [vmem:[#allocation59_spill] sm:$0xff] %v6776_v28  ;;  %11812 = vst [vmem:[#allocation61_spill] sm:$0xff] %v6786_v2  ;;  %v1812_v28 = vsel %vm11588_vm6, %v11814_v9, %v1811_v35  ;;  %v1703_v57 = vrot.slane %v6786_v2, 1  ;;  %v1935_v9 = vsel %vm11612_vm4, %v6472_v43, %v1934_v4 }
  0xba   : > { %1729 = vrot.lane.b32.xlu0 %v1701_v6, %s6054_s14  ;;  %v6789_v13 = vpop.permute.xlu1 %591  ;;  %v6802_v6 = vshrl.u32 %v6780_v15, 16  ;;  %v6812_v63 = vor.u32 %v978_v30, %v975_v52 }
  0xbb   : > { %11813 = vst [vmem:[#allocation62_spill] sm:$0xff] %v6789_v13  ;;  %v6805_v13 = vshll.u32 %v6780_v15, 16 }
  0xbc   : > { %v6796_v46 = vpop.permute.xlu0 %585  ;;  %929 = vrot.lane.b32.xlu1 %v912_v26, %s6060_s20  ;;  %v6815_v26 = vshrl.u32 %v6764_v29, 16  ;;  %v980_v52 = vsel %vm11603_vm5, %v6496_v23, %v6812_v63 }
  0xbd   : > { %11815 = vst [vmem:[#allocation63_spill] sm:$0xff] %v6796_v46  ;;  %v1704_v46 = vsel %vm413_vm0, %v1702_v22, %v1703_v57  ;;  %v1937_v14 = vrot.slane %v6805_v13, 2 }
  0xbe   : > { %1829 = vrot.lane.b32.xlu0 %v1812_v28, %s6056_s16  ;;  %v6808_v48 = vpop.permute.xlu1 %595  ;;  %11817 = vst [vmem:[#allocation65_spill] sm:$0xff] %v6815_v26  ;;  %v11526_v28 = vrot.slane %v6735_v54, 7  ;;  %v1758_v30 = vrot.slane %v6815_v26, 2 }
  0xbf   : > { %11816 = vst [vmem:[#allocation64_spill] sm:$0xff] %v6808_v48  ;;  %v1936_v48 = vrot.slane %v6802_v6, 1 }
  0xc0   : > { %v6817_v31 = vpop.permute.xlu0 %589  ;;  %1646 = vrot.lane.b32.xlu1 %v6571_v53, %s6052_s12  ;;  %v1759_v53 = vrot.slane %v6786_v2, 3 }
  0xc1   : > { %11818 = vst [vmem:[#allocation66_spill] sm:$0xff] %v6817_v31  ;;  %v1814_v31 = vsel %vm11588_vm6, %v1811_v35, %v11526_v28 }
  0xc2   : > { %1967 = vrot.lane.b32.xlu0 %v1935_v9, %s6057_s17  ;;  %v6826_v43 = vpop.permute.xlu1 %599  ;;  %v6839_v9 = vor.u32 %v1937_v14, %v1936_v48  ;;  %v6845_v23 = vor.u32 %v1759_v53, %v1758_v30  ;;  %v11528_v14 = vrot.slane %v6758_v25, 1  ;;  %v11530_v48 = vrot.slane %v6815_v26, 7 }
  0xc3   : > { %11819 = vst [vmem:[#allocation67_spill] sm:$0xff] %v6826_v43  ;;  %v340_v43 = vld [vmem:[%s6136_s10 + $0x6c] sm:$0xf] }
  0xc4   : > { %v6833_v22 = vpop.permute.xlu0 %593  ;;  %1731 = vrot.lane.b32.xlu1 %v1704_v46, %s6054_s14  ;;  %v6851_v46 = vcombine.low %v337_v21, %v340_v43  ;;  %v1939_v35 = vsel %vm11612_vm4, %v1934_v4, %v6839_v9  ;;  %v1761_v53 = vsel %vm11603_vm5, %v6729_v58, %v6845_v23  ;;  %v1858_v21 = vor.u32 %v11527_v18, %v6758_v25 }
  0xc5   : > { %11820 = vst [vmem:[#allocation68_spill] sm:$0xff] %v6833_v22  ;;  %v1568_v28 = vsel %vm413_vm0, %v6301_v34, %v11528_v14  ;;  %v984_v34 = vrot.slane %v6802_v6, 2  ;;  %v987_v14 = vrot.slane %v6805_v13, 3 }
  0xc6   : > { %1011 = vrot.lane.b32.xlu0 %v980_v52, %s6059_s19  ;;  %v6843_v27 = vpop.permute.xlu1 %684  ;;  %11823 = vst [vmem:[#allocation71_spill] sm:$0xff] %v6851_v46  ;;  %v345_v52 = vld [vmem:[%s6136_s10 + $0x70] sm:$0xf]  ;;  %v6881_v22 = vshll.u32 %v6851_v46, 16 }
  0xc7   : > { %11821 = vst [vmem:[#allocation69_spill] sm:$0xff] %v6843_v27  ;;  %v6871_v4 = vcombine.low %v340_v43, %v345_v52 }
  0xc8   : > { %v6848_v37 = vpop.permute.xlu0 %597  ;;  %1831 = vrot.lane.b32.xlu1 %v1814_v31, %s6056_s16  ;;  %11827 = vst [vmem:[#allocation75_spill] sm:$0xff] %v6881_v22 }
  0xc9   : > { %11822 = vst [vmem:[#allocation70_spill] sm:$0xff] %v6848_v37  ;;  %11826 = vst [vmem:[#allocation74_spill] sm:$0xff] %v6871_v4  ;;  %v1613_v37 = vor.u32 %v11530_v48, %v6786_v2  ;;  %v1705_v48 = vor.u32 %v1703_v57, %v6815_v26  ;;  %v349_v2 = vld [vmem:[%s6136_s10 + $0x74] sm:$0xf]  ;;  %v11856_v3 = vrot.slane %v6871_v4, 7 }
  0xca   : > { %1669 = vrot.lane.b32.xlu0 %v6524_v16, %s6053_s13  ;;  %v6860_v30 = vpop.permute.xlu1 %688 }
  0xcb   : > { %11824 = vst [vmem:[#allocation72_spill] sm:$0xff] %v6860_v30  ;;  %v6890_v30 = vrot.slane %v6780_v15, 2 }
  0xcc   : > { %v6868_v31 = vpop.permute.xlu0 %682  ;;  %1969 = vrot.lane.b32.xlu1 %v1939_v35, %s6057_s17  ;;  %v11829_v35 = vrot.slane %v6291_v24, 7  ;;  %v1706_v24 = vrot.slane %v6881_v22, 1 }
  0xcd   : > { %11825 = vst [vmem:[#allocation73_spill] sm:$0xff] %v6868_v31  ;;  %11830 = vst [vmem:[#allocation77_spill] sm:$0xff] %v6890_v30 }
  0xce   : > { %1791 = vrot.lane.b32.xlu0 %v1761_v53, %s6055_s15  ;;  %v6884_v18 = vpop.permute.xlu1 %692  ;;  %v1859_v43 = vsel %vm11589_vm3, %v11829_v35, %v1858_v21  ;;  %v1614_v53 = vsel %vm11589_vm3, %v6555_v39, %v1613_v37  ;;  %v6902_v21 = vshll.u32 %v6871_v4, 16  ;;  %v6905_v35 = vshrl.u32 %v6871_v4, 16 }
  0xcf   : > { %11828 = vst [vmem:[#allocation76_spill] sm:$0xff] %v6884_v18  ;;  %v6917_v37 = vshrl.u32 %v6851_v46, 16  ;;  %v1707_v27 = vsel %vm413_vm0, %v1705_v48, %v1706_v24  ;;  %v11839_v48 = vrot.slane %v6735_v54, 7 }
  0xd0   : > { %v6894_v58 = vpop.permute.xlu0 %686  ;;  %1591 = vrot.lane.b32.xlu1 %v1568_v28, %s6051_s11  ;;  %v11833_v28 = vrot.slane %v6735_v54, 2  ;;  %v1941_v31 = vrot.slane %v6902_v21, 2  ;;  %v1576_v62 = vrot.slane %v6902_v21, 1  ;;  %v11860_v42 = vrot.slane %v6905_v35, 7 }
  0xd1   : > { %11831 = vst [vmem:[#allocation78_spill] sm:$0xff] %v6894_v58  ;;  %v6914_v58 = vor.u32 %v987_v14, %v984_v34  ;;  %11835 = vst [vmem:[#allocation81_spill] sm:$0xff] %v6917_v37 }
  0xd2   : > { %1894 = vrot.lane.b32.xlu0 %v1859_v43, %s6058_s18  ;;  %v6908_v18 = vpop.permute.xlu1 %696  ;;  %v914_v57 = vsel %vm11619_vm7, %v11833_v28, %v6890_v30  ;;  %v11535_v43 = vrot.slane %v6780_v15, 7  ;;  %v1762_v28 = vrot.slane %v6917_v37, 2 }
  0xd3   : > { %11832 = vst [vmem:[#allocation79_spill] sm:$0xff] %v6908_v18  ;;  %11834 = vst [vmem:[#allocation80_spill] sm:$0xff] %v6914_v58  ;;  %v1940_v18 = vrot.slane %v6905_v35, 1  ;;  %v989_v34 = vsel %vm11603_vm5, %v6812_v63, %v6914_v58 }
  0xd4   : > { %v6919_v39 = vpop.permute.xlu0 %690  ;;  %1648 = vrot.lane.b32.xlu1 %v1614_v53, %s6052_s12  ;;  %v1763_v53 = vrot.slane %v6881_v22, 3 }
  0xd5   : > { %11836 = vst [vmem:[#allocation82_spill] sm:$0xff] %v6919_v39 }
  0xd6   : > { %931 = vrot.lane.b32.xlu0 %v914_v57, %s6060_s20  ;;  %v6927_v14 = vpop.permute.xlu1 %700  ;;  %v1816_v57 = vsel %vm11588_vm6, %v11839_v48, %v11535_v43  ;;  %v6948_v16 = vor.u32 %v1763_v53, %v1762_v28  ;;  %v2019_v48 = vrot.slane %v6902_v21, 3  ;;  %v350_v53 = vld [vmem:[%s6136_s10 + $0x78] sm:$0xf] }
  0xd7   : > { %11837 = vst [vmem:[#allocation83_spill] sm:$0xff] %v6927_v14  ;;  %v6942_v14 = vor.u32 %v1941_v31, %v1940_v18  ;;  %v11537_v31 = vrot.slane %v6871_v4, 2 }
  0xd8   : > { %v6934_v39 = vpop.permute.xlu0 %694  ;;  %1733 = vrot.lane.b32.xlu1 %v1707_v27, %s6054_s14  ;;  %v2018_v27 = vrot.slane %v6905_v35, 2 }
  0xd9   : > { %11838 = vst [vmem:[#allocation84_spill] sm:$0xff] %v6934_v39  ;;  %v11536_v39 = vrot.slane %v6802_v6, 7  ;;  %v1943_v18 = vsel %vm11612_vm4, %v6839_v9, %v6942_v14 }
  0xda   : > { %1013 = vrot.lane.b32.xlu0 %v989_v34, %s6059_s19  ;;  %v6945_v63 = vpop.permute.xlu1 %707  ;;  %v6960_v34 = vcombine.low %v345_v52, %v349_v2  ;;  %v6976_v9 = vor.u32 %v2019_v48, %v2018_v27  ;;  %v1987_v52 = vsel %vm11619_vm7, %v6890_v30, %v11537_v31  ;;  %v11846_v27 = vrot.slane %v6758_v25, 1 }
  0xdb   : > { %11840 = vst [vmem:[#allocation85_spill] sm:$0xff] %v6945_v63  ;;  %v1861_v43 = vor.u32 %v11536_v39, %v6805_v13  ;;  %v6985_v63 = vcombine.low %v349_v2, %v350_v53  ;;  %v11845_v39 = vrot.slane %v6755_v61, 7  ;;  %v11539_v31 = vrot.slane %v6917_v37, 7 }
  0xdc   : > { %v6951_v1 = vpop.permute.xlu0 %698  ;;  %1833 = vrot.lane.b32.xlu1 %v1816_v57, %s6056_s16  ;;  %v1765_v57 = vsel %vm11603_vm5, %v6845_v23, %v6948_v16  ;;  %v1569_v48 = vor.u32 %v11846_v27, %v6755_v61  ;;  %v2021_v2 = vsel %vm11603_vm5, %v6914_v58, %v6976_v9 }
  0xdd   : > { %11841 = vst [vmem:[#allocation86_spill] sm:$0xff] %v6951_v1  ;;  %v7010_v61 = vshll.u32 %v6985_v63, 16  ;;  %v11569_v38 = vrot.slane %v6985_v63, 7 }
  0xde   : > { %1671 = vrot.lane.b32.xlu0 %v6764_v29, %s6053_s13  ;;  %v6964_v28 = vpop.permute.xlu1 %711 }
  0xdf   : > { %11842 = vst [vmem:[#allocation87_spill] sm:$0xff] %v6964_v28  ;;  %v6983_v28 = vshll.u32 %v6960_v34, 16 }
  0xe0   : > { %v6973_v1 = vpop.permute.xlu0 %705  ;;  %1971 = vrot.lane.b32.xlu1 %v1943_v18, %s6057_s17  ;;  %v1862_v18 = vsel %vm11589_vm3, %v11845_v39, %v1861_v43  ;;  %v7007_v43 = vshrl.u32 %v6985_v63, 16 }
  0xe1   : > { %11843 = vst [vmem:[#allocation88_spill] sm:$0xff] %v6973_v1  ;;  %v1570_v1 = vrot.slane %v6805_v13, 1  ;;  %v1709_v39 = vrot.slane %v6983_v28, 1 }
  0xe2   : > { %1793 = vrot.lane.b32.xlu0 %v1765_v57, %s6055_s15  ;;  %v6988_v23 = vpop.permute.xlu1 %715  ;;  %v1708_v57 = vor.u32 %v1706_v24, %v6917_v37  ;;  %v7020_v24 = vshrl.u32 %v6960_v34, 16 }
  0xe3   : > { %11844 = vst [vmem:[#allocation89_spill] sm:$0xff] %v6988_v23  ;;  %v1571_v13 = vsel %vm413_vm0, %v1569_v48, %v1570_v1  ;;  %v1945_v48 = vrot.slane %v7010_v61, 2 }
  0xe4   : > { %v6998_v30 = vpop.permute.xlu0 %709  ;;  %1996 = vrot.lane.b32.xlu1 %v1987_v52, %s6060_s20  ;;  %v1616_v52 = vor.u32 %v11539_v31, %v6881_v22  ;;  %v1710_v23 = vsel %vm413_vm0, %v1708_v57, %v1709_v39  ;;  %v11850_v31 = vrot.slane %v6815_v26, 7  ;;  %v11852_v57 = vrot.slane %v6780_v15, 7 }
  0xe5   : > { %11847 = vst [vmem:[#allocation90_spill] sm:$0xff] %v6998_v30 }
  0xe6   : > { %1896 = vrot.lane.b32.xlu0 %v1862_v18, %s6058_s18  ;;  %v7013_v25 = vpop.permute.xlu1 %719  ;;  %v11547_v18 = vrot.slane %v6871_v4, 7  ;;  %v1617_v58 = vsel %vm11589_vm3, %v11850_v31, %v1616_v52  ;;  %v351_v52 = vld [vmem:[%s6136_s10 + $0x7c] sm:$0xf] }
  0xe7   : > { %11848 = vst [vmem:[#allocation91_spill] sm:$0xff] %v7013_v25  ;;  %v1944_v25 = vrot.slane %v7007_v43, 1 }
  0xe8   : > { %v7022_v27 = vpop.permute.xlu0 %713  ;;  %2041 = vrot.lane.b32.xlu1 %v2021_v2, %s6059_s19  ;;  %v1767_v2 = vrot.slane %v6983_v28, 3 }
  0xe9   : > { %11849 = vst [vmem:[#allocation92_spill] sm:$0xff] %v7022_v27  ;;  %v1766_v27 = vrot.slane %v7020_v24, 2  ;;  %v7045_v29 = vor.u32 %v1945_v48, %v1944_v25  ;;  %v7063_v48 = vcombine.low %v350_v53, %v351_v52 }
  0xea   : > { %1593 = vrot.lane.b32.xlu0 %v1571_v13, %s6051_s11  ;;  %v7030_v30 = vpop.permute.xlu1 %1638  ;;  %v1818_v13 = vsel %vm11588_vm6, %v11852_v57, %v11547_v18  ;;  %v2023_v57 = vrot.slane %v7010_v61, 3 }
  0xeb   : > { %v7051_v26 = vor.u32 %v1767_v2, %v1766_v27  ;;  %v1947_v25 = vsel %vm11612_vm4, %v6942_v14, %v7045_v29  ;;  %v7070_v2 = vld [vmem:[%s6136_s10 + $0x80] sm:$0xf]  ;;  %v7089_v7 = vshll.u32 %v7063_v48, 16 }
  0xec   : > { %v7037_v22 = vpop.permute.xlu0 %717  ;;  %1735 = vrot.lane.b32.xlu1 %v1710_v23, %s6054_s14  ;;  %v2022_v23 = vrot.slane %v7007_v43, 2 }
  0xed   : > { %11851 = vst [vmem:[#allocation93_spill] sm:$0xff] %v7037_v22  ;;  %v11553_v22 = vrot.slane %v6905_v35, 7  ;;  %v1712_v60 = vrot.slane %v7089_v7, 1 }
  0xee   : > { %1650 = vrot.lane.b32.xlu0 %v1617_v58, %s6052_s12  ;;  %v7048_v31 = vpop.permute.xlu1 %1640  ;;  %v11555_v58 = vrot.slane %v6985_v63, 2  ;;  %v7081_v53 = vor.u32 %v2023_v57, %v2022_v23  ;;  %v1572_v57 = vor.u32 %v1570_v1, %v6802_v6 }
  0xef   : > { %v1864_v18 = vor.u32 %v11553_v22, %v6902_v21 }
  0xf0   : > { %v7054_v54 = vpop.permute.xlu0 %1589  ;;  %1835 = vrot.lane.b32.xlu1 %v1818_v13, %s6056_s16  ;;  %v1769_v13 = vsel %vm11603_vm5, %v6948_v16, %v7051_v26  ;;  %v7092_v16 = vcombine.low %v351_v52, %v7070_v2  ;;  %v2025_v52 = vsel %vm11603_vm5, %v6976_v9, %v7081_v53  ;;  %v7125_v9 = vshrl.u32 %v7063_v48, 16 }
  0xf2   : > { %1673 = vrot.lane.b32.xlu0 %v6851_v46, %s6053_s13  ;;  %v7067_v27 = vpop.permute.xlu1 %1663  ;;  %v11853_v46 = vrot.slane %v6871_v4, 2  ;;  %v7115_v1 = vshll.u32 %v7092_v16, 16  ;;  %v1770_v51 = vrot.slane %v7125_v9, 2  ;;  %v11859_v4 = vrot.slane %v6985_v63, 2 }
  0xf3   : > { %v11579_v20 = vrot.slane %v7125_v9, 7  ;;  %v1714_v59 = vor.u32 %v1712_v60, %v7125_v9 }
  0xf4   : > { %v7078_v14 = vpop.permute.xlu0 %1661  ;;  %1973 = vrot.lane.b32.xlu1 %v1947_v25, %s6057_s17  ;;  %v1989_v15 = vsel %vm11619_vm7, %v11853_v46, %v11555_v58  ;;  %v11854_v25 = vrot.slane %v6802_v6, 7  ;;  %v11560_v46 = vrot.slane %v7020_v24, 7 }
  0xf6   : > { %1795 = vrot.lane.b32.xlu0 %v1769_v13, %s6055_s15  ;;  %v7095_v22 = vpop.permute.xlu1 %1642  ;;  %v1865_v23 = vsel %vm11589_vm3, %v11854_v25, %v1864_v18  ;;  %v1711_v13 = vor.u32 %v1709_v39, %v7020_v24  ;;  %v7112_v18 = vshrl.u32 %v7092_v16, 16  ;;  %v1624_v21 = vor.u32 %v6983_v28, %v11560_v46 }
  0xf7   : > { %v11855_v28 = vrot.slane %v6917_v37, 7 }
  0xf8   : > { %v7103_v58 = vpop.permute.xlu0 %1723  ;;  %1998 = vrot.lane.b32.xlu1 %v1989_v15, %s6060_s20  ;;  %v1577_v15 = vsel %vm413_vm0, %v1572_v57, %v1576_v62  ;;  %v1713_v25 = vsel %vm413_vm0, %v1711_v13, %v1712_v60  ;;  %v1949_v57 = vrot.slane %v7115_v1, 2 }
  0xf9   : > { %v1625_v46 = vsel %vm11589_vm3, %v11855_v28, %v1624_v21  ;;  %v11573_v28 = vrot.slane %v7007_v43, 7 }
  0xfa   : > { %1898 = vrot.lane.b32.xlu0 %v1865_v23, %s6058_s18  ;;  %v7118_v6 = vpop.permute.xlu1 %1823  ;;  %v1948_v23 = vrot.slane %v7112_v18, 1 }
  0xfc   : > { %v7127_v39 = vpop.permute.xlu0 %1783  ;;  %2043 = vrot.lane.b32.xlu1 %v2025_v52, %s6059_s19  ;;  %v1771_v52 = vrot.slane %v7089_v7, 3  ;;  %v7150_v44 = vor.u32 %v1949_v57, %v1948_v23  ;;  %v7171_v57 = vld [vmem:[%s6136_s10 + $0x80] ss:$0 sps:$4 sm:$0x33]  }
  0xfe   : > { %1595 = vrot.lane.b32.xlu0 %v1577_v15, %s6051_s11  ;;  %v7135_v55 = vpop.permute.xlu1 %1785  ;;  %v1820_v15 = vsel %vm11588_vm6, %v11856_v3, %v11569_v38  ;;  %v7156_v37 = vor.u32 %v1771_v52, %v1770_v51  ;;  %v2027_v3 = vrot.slane %v7115_v1, 3  ;;  %v1872_v52 = vor.u32 %v7010_v61, %v11573_v28  ;;  %v7196_v28 = vld [vmem:[%s6136_s10 + $0x84] ss:$0 sps:$4 sm:$0x77]  }
  0xff   : > { %v1582_v38 = vshll.u32 %v7159_v10, 16  ;;  %v1716_v61 = vshll.u32 %v7171_v57, 16 }
 0x100   : > { %v7142_v13 = vpop.permute.xlu0 %1725  ;;  %1737 = vrot.lane.b32.xlu1 %v1713_v25, %s6054_s14  ;;  %v2026_v25 = vrot.slane %v7112_v18, 2 }
 0x102   : > { %1652 = vrot.lane.b32.xlu0 %v1625_v46, %s6052_s12  ;;  %v7153_v21 = vpop.permute.xlu1 %1727  ;;  %v1951_v46 = vsel %vm11612_vm4, %v7045_v29, %v7150_v44  ;;  %v7187_v23 = vor.u32 %v2027_v3, %v2026_v25  ;;  %v1580_v25 = vor.u32 %v6905_v35, %v1576_v62  ;;  %v7205_v3 = vrot.slane %v1582_v38, 1 }
 0x103   : > { %11857 = vst [vmem:[#allocation94_spill] sm:$0xff] %v7153_v21  ;;  %v1953_v62 = vshrl.u32 %v7196_v28, 16  ;;  %v1956_v38 = vshll.u32 %v7196_v28, 16 }
 0x104   : > { %v7161_v17 = vpop.permute.xlu0 %1665  ;;  %1837 = vrot.lane.b32.xlu1 %v1820_v15, %s6056_s16  ;;  %v1773_v15 = vsel %vm11603_vm5, %v7051_v26, %v7156_v37 }
 0x105   : > { %v1955_v36 = vrot.slane %v1953_v62, 1  ;;  %v1958_v5 = vrot.slane %v1956_v38, 2 }
 0x106   : > { %1675 = vrot.lane.b32.xlu0 %v6960_v34, %s6053_s13  ;;  %v7175_v51 = vpop.permute.xlu1 %1961  ;;  %v11858_v34 = vrot.slane %v7092_v16, 2 }
 0x107   : > { %v7250_v62 = vor.u32 %v1958_v5, %v1955_v36  ;;  %v11582_v5 = vrot.slane %v7196_v28, 2 }
 0x108   : > { %v7184_v29 = vpop.permute.xlu0 %1886  ;;  %1975 = vrot.lane.b32.xlu1 %v1951_v46, %s6057_s17  ;;  %v1991_v41 = vsel %vm11619_vm7, %v11859_v4, %v11858_v34  ;;  %v1873_v46 = vsel %vm11589_vm3, %v11860_v42, %v1872_v52  ;;  %v5610_v4 = vcombine.low %v7070_v2, %v7070_v2  ;;  %v7217_v42 = vrot.slane %v1716_v61, 1 }
 0x109   : > { %v1632_v2 = vor.u32 %v7089_v7, %v11579_v20  ;;  %v11863_v7 = vrot.slane %v7020_v24, 7  ;;  %v1960_v36 = vsel %vm11612_vm4, %v7150_v44, %v7250_v62 }
 0x10a   : > { %1797 = vrot.lane.b32.xlu0 %v1773_v15, %s6055_s15  ;;  %v7199_v26 = vpop.permute.xlu1 %1888  ;;  %v2029_v15 = vsel %vm11603_vm5, %v7081_v53, %v7187_v23  ;;  %v1775_v53 = vshrl.u32 %v5610_v4, 16  ;;  %v1778_v60 = vshll.u32 %v5610_v4, 16  ;;  %v1719_v61 = vsel %vm413_vm0, %v1714_v59, %v7217_v42 }
 0x10b   : > { %v1633_v4 = vsel %vm11589_vm3, %v11863_v7, %v1632_v2  ;;  %v11864_v59 = vrot.slane %v6985_v63, 7 }
 0x10c   : > { %v7210_v34 = vpop.permute.xlu0 %1825  ;;  %2000 = vrot.lane.b32.xlu1 %v1991_v41, %s6060_s20  ;;  %v1585_v41 = vsel %vm413_vm0, %v1580_v25, %v7205_v3  ;;  %v1777_v20 = vrot.slane %v1775_v53, 2  ;;  %v11580_v53 = vrot.slane %v7112_v18, 7 }
 0x10e   : > { %1900 = vrot.lane.b32.xlu0 %v1873_v46, %s6058_s18  ;;  %v7222_v35 = vpop.permute.xlu1 %1827  ;;  %v11581_v46 = vrot.slane %v7092_v16, 7  ;;  %v1880_v7 = vor.u32 %v7115_v1, %v11580_v53  ;;  %v1586_v1 = vshrl.u32 %v7159_v10, 16 }
 0x10f   : > { %11861 = vst [vmem:[#allocation95_spill] sm:$0xff] %v7222_v35  ;;  %v5960_v35 = vld [vmem:[%s6136_s10 + $0x84] ss:$0 sps:$4 sm:$0xff]  }
 0x110   : > { %v7229_v52 = vpop.permute.xlu0 %1787  ;;  %2045 = vrot.lane.b32.xlu1 %v2029_v15, %s6059_s19  ;;  %v1822_v15 = vsel %vm11588_vm6, %v11864_v59, %v11581_v46  ;;  %v2031_v38 = vshrl.u32 %v5960_v35, 16  ;;  %v5961_v46 = vld [vmem:[%s6136_s10 + $0x80] ss:$0 sps:$4 sm:$0x11]   ;;  %vm1406_vm6 = vcmask 293888  }
 0x111   : > { %11862 = vst [vmem:[#allocation96_spill] sm:$0xff] %v7229_v52  ;;  %v1780_v52 = vrot.slane %v1778_v60, 3 }
 0x112   : > { %1597 = vrot.lane.b32.xlu0 %v1585_v41, %s6051_s11  ;;  %v7237_v25 = vpop.permute.xlu1 %2039  ;;  %v2034_v41 = vshll.u32 %v5960_v35, 16  ;;  %v2033_v63 = vrot.slane %v2031_v38, 2  ;;  %v6033_v38 = vld [vmem:[%s6136_s10 + $0x1c] sm:$0xf] }
 0x113   : > { %v7255_v2 = vor.u32 %v1780_v52, %v1777_v20  ;;  %v333_v52 = vld [vmem:[%s6136_s10 + $0x18] sm:$0x8] }
 0x114   : > { %v7242_v21 = vpop.permute.xlu0 %1994  ;;  %1739 = vrot.lane.b32.xlu1 %v1719_v61, %s6054_s14  ;;  %v2036_v35 = vrot.slane %v2034_v41, 3  ;;  %v7288_v41 = vcombine.low %v333_v52, %v6033_v38 }
 0x115   : > { %v1782_v61 = vsel %vm11603_vm5, %v7156_v37, %v7255_v2 }
 0x116   : > { %1654 = vrot.lane.b32.xlu0 %v1633_v4, %s6052_s12  ;;  %v7253_v24 = vpop.permute.xlu1 %1890  ;;  %v7284_v59 = vor.u32 %v2036_v35, %v2033_v63  ;;  %v1720_v63 = vshrl.u32 %v7171_v57, 16  ;;  %v779_v10 = vshll.u32 %v7288_v41, 16 }
 0x118   : > { %v7258_v60 = vpop.permute.xlu0 %1963  ;;  %1839 = vrot.lane.b32.xlu1 %v1822_v15, %s6056_s16  ;;  %v331_v15 = vld [vmem:[%s6136_s10 + $0x18] sm:$0xc]  ;;  %v2038_v52 = vsel %vm11603_vm5, %v7187_v23, %v7284_v59  ;;  %v1722_v57 = vor.u32 %v1720_v63, %v7217_v42  ;;  %v733_v23 = vrot.slane %v6344_v0, 2 }
 0x119   : > { %v5584_v35 = vcombine.low %v331_v15, %v6033_v38  ;;  %v781_v38 = vrot.slane %v779_v10, 3 }
 0x11a   : > { %1677 = vrot.lane.b32.xlu0 %v7063_v48, %s6053_s13  ;;  %v7267_v20 = vpop.permute.xlu1 %1965  ;;  %v11866_v48 = vrot.slane %v7092_v16, 2 }
 0x11b   : > { %11865 = vst [vmem:[#allocation97_spill] sm:$0xff] %v7267_v20 }
 0x11c   : > { %v7276_v44 = vpop.permute.xlu0 %925  ;;  %1977 = vrot.lane.b32.xlu1 %v1960_v36, %s6057_s17  ;;  %v1993_v4 = vsel %vm11619_vm7, %v11866_v48, %v11582_v5  ;;  %v11868_v36 = vrot.slane %v7007_v43, 7  ;;  %v1635_v48 = vshll.u32 %v5961_v46, 16  ;;  %v11871_v5 = vshrl.u32 %v6344_v0, 16 }
 0x11e   : > { %1799 = vrot.lane.b32.xlu0 %v1782_v61, %s6055_s15  ;;  %v7291_v37 = vpop.permute.xlu1 %1009  ;;  %v1881_v53 = vsel %vm11589_vm3, %v11868_v36, %v1880_v7  ;;  %v776_v61 = vshrl.u32 %v7288_v41, 16  ;;  %v1588_v7 = vor.u32 %v1586_v1, %v7205_v3  ;;  %v11873_v1 = vrot.slane %v7125_v9, 7 }
 0x11f   : > { %11867 = vst [vmem:[#allocation98_spill] sm:$0xff] %v7291_v37  ;;  %v783_v37 = vrot.slane %v11871_v5, 2 }
 0x120   : > { %v7298_v20 = vpop.permute.xlu0 %1007  ;;  %2002 = vrot.lane.b32.xlu1 %v1993_v4, %s6060_s20  ;;  %v732_v4 = vrot.slane %v5584_v35, 2  ;;  %v778_v15 = vrot.slane %v776_v61, 2  ;;  %v1637_v42 = vsel %vm11589_vm3, %v11873_v1, %v1635_v48  ;;  %v339_v1 = vld [vmem:[%s6136_s10 + $0x24] sm:$0x8] }
 0x122   : > { %1902 = vrot.lane.b32.xlu0 %v1881_v53, %s6058_s18  ;;  %v7308_v43 = vpop.permute.xlu1 %1667  ;;  %v11872_v53 = vshll.u32 %v6344_v0, 16  ;;  %v734_v35 = vsel %vm11619_vm7, %v732_v4, %v733_v23  ;;  %v782_v5 = vor.u32 %v781_v38, %v778_v15  ;;  %v335_v4 = vld [vmem:[%s6136_s10 + $0x24] sm:$0xc]  ;;  %v6034_v15 = vld [vmem:[%s6136_s10 + $0x28] sm:$0xf] }
 0x123   : > { %11869 = vst [vmem:[#allocation99_spill] sm:$0xff] %v7308_v43  ;;  %v5588_v38 = vcombine.low %v335_v4, %v6034_v15 }
 0x124   : > { %v7311_v36 = vpop.permute.xlu0 %927  ;;  %2047 = vrot.lane.b32.xlu1 %v2038_v52, %s6059_s19  ;;  %v784_v43 = vrot.slane %v11872_v53, 3 }
 0x125   : > { %11870 = vst [vmem:[#allocation100_spill] sm:$0xff] %v7311_v36 }
 0x126   : > { %1599 = vrot.lane.b32.xlu0 %v1588_v7, %s6051_s11  ;;  %v7321_v3 = vpop.permute.xlu1 %1789  ;;  %v785_v52 = vor.u32 %v784_v43, %v783_v37  ;;  %v11584_v7 = vrot.slane %v6352_v49, 2  ;;  %s6065_s11 = smov 56  }
 0x128   : > { %v7326_v63 = vpop.permute.xlu0 %1644  ;;  %1741 = vrot.lane.b32.xlu1 %v1722_v57, %s6054_s14  ;;  %v786_v9 = vsel %vm11603_vm5, %v782_v5, %v785_v52  ;;  %v5964_v57 = vld [vmem:[%s6136_s10 + $0x84] ss:$0 sps:$4 sm:$0x11]   ;;  %v736_v43 = vsel %vm11619_vm7, %v733_v23, %v11584_v7  ;;  %v847_v7 = vrot.slane %v7288_v41, 3  ;;  %v11880_v5 = vshll.u32 %v6352_v49, 16 }
 0x129   : > { %v11587_v41 = vrot.slane %v6352_v49, 3 }
 0x12a   : > { %1656 = vrot.lane.b32.xlu0 %v1637_v42, %s6052_s12  ;;  %v7331_v61 = vpop.permute.xlu1 %1892 }
 0x12c   : > { %v7333_v10 = vpop.permute.xlu0 %1729  ;;  %751 = vrot.lane.b32.xlu1 %v734_v35, %s6056_s16  ;;  %v898_v35 = vrot.slane %v5588_v38, 2 }
 0x12e   : > { %1679 = vrot.lane.b32.xlu0 %v5961_v46, %s6053_s13  ;;  %v7339_v48 = vpop.permute.xlu1 %929  ;;  %v1883_v46 = vshll.u32 %v5964_v57, 16  ;;  %v5592_v57 = vcombine.low %v339_v1, %v6034_v15 }
 0x12f   : > { %11874 = vst [vmem:[#allocation101_spill] sm:$0xff] %v7339_v48 }
 0x130   : > { %v7343_v37 = vpop.permute.xlu0 %1829  ;;  %824 = vrot.lane.b32.xlu1 %v786_v9, %s6058_s18  ;;  %v11876_v9 = vrot.slane %v7092_v16, 7  ;;  %v788_v16 = vrot.slane %v11880_v5, 3  ;;  %v944_v1 = vshll.u32 %v5592_v57, 16 }
 0x132   : > { %1801 = vrot.lane.b32.xlu0 %v7255_v2, %s6055_s15  ;;  %v7352_v53 = vpop.permute.xlu1 %1646  ;;  %v11878_v2 = vrot.slane %v7112_v18, 7  ;;  %v11882_v18 = vrot.slane %v6163_v8, 2 }
 0x133   : > { %11875 = vst [vmem:[#allocation102_spill] sm:$0xff] %v7352_v53  ;;  %v848_v53 = vrot.slane %v6344_v0, 3 }
 0x134   : > { %v7355_v42 = vpop.permute.xlu0 %1967  ;;  %753 = vrot.lane.b32.xlu1 %v736_v43, %s6056_s16  ;;  %v1885_v4 = vsel %vm11589_vm3, %v11878_v2, %v1883_v46  ;;  %v11879_v43 = vshrl.u32 %v6352_v49, 16  ;;  %v900_v15 = vsel %vm11619_vm7, %v898_v35, %v11882_v18  ;;  %v941_v46 = vshrl.u32 %v5592_v57, 16  ;;  %v343_v2 = vld [vmem:[%s6136_s10 + $0x28] sm:$0xc]  ;;  %v6035_v18 = vld [vmem:[%s6136_s10 + $0x2c] sm:$0xf] }
 0x135   : > { %v849_v5 = vsel %vm11615_vm2, %v847_v7, %v848_v53  ;;  %v341_v35 = vld [vmem:[%s6136_s10 + $0x28] sm:$0xe]  ;;  %v946_v7 = vrot.slane %v944_v1, 3  ;;  %vm1427_vm3 = vcmask 326656  }
 0x136   : > { %1841 = vrot.lane.b32.xlu0 %v11876_v9, %s6056_s16  ;;  %v7362_v23 = vpop.permute.xlu1 %1731  ;;  %v787_v38 = vrot.slane %v11879_v43, 2 }
 0x137   : > { %11877 = vst [vmem:[#allocation103_spill] sm:$0xff] %v7362_v23 }
 0x138   : > { %v7373_v9 = vpop.permute.xlu0 %1011  ;;  %1979 = vrot.lane.b32.xlu1 %v7250_v62, %s6057_s17  ;;  %v7386_v43 = vor.u32 %v788_v16, %v787_v38  ;;  %v851_v62 = vsel %vm11615_vm2, %v848_v53, %v11587_v41  ;;  %v11886_v38 = vshrl.u32 %v6163_v8, 16  ;;  %v5594_v41 = vcombine.low %v341_v35, %v6035_v18 }
 0x139   : > { %11881 = vst [vmem:[#allocation104_spill] sm:$0xff] %v7373_v9  ;;  %v943_v9 = vrot.slane %v941_v46, 2 }
 0x13a   : > { %1904 = vrot.lane.b32.xlu0 %v1885_v4, %s6058_s18  ;;  %v7382_v0 = vpop.permute.xlu1 %1831  ;;  %v7396_v4 = vcombine.low %v343_v2, %v6035_v18  ;;  %v948_v16 = vrot.slane %v11886_v38, 2  ;;  %v790_v48 = vsel %vm11603_vm5, %v785_v52, %v7386_v43  ;;  %v1022_v2 = vrot.slane %v5592_v57, 3 }
 0x13b   : > { %11883 = vst [vmem:[#allocation105_spill] sm:$0xff] %v7382_v0  ;;  %v947_v38 = vor.u32 %v946_v7, %v943_v9  ;;  %v1058_v57 = vrot.slane %v5594_v41, 1  ;;  %v11889_v9 = vrot.slane %v7196_v28, 2  ;;  %v901_v41 = vrot.slane %v6191_v19, 2 }
 0x13c   : > { %v7388_v23 = vpop.permute.xlu0 %1669  ;;  %917 = vrot.lane.b32.xlu1 %v900_v15, %s6060_s20  ;;  %v1105_v46 = vshll.u32 %v7396_v4, 16  ;;  %v1023_v52 = vsel %vm11615_vm2, %v1022_v2, %v6338_v33  ;;  %v2052_v33 = vsel %vm11616_vm8, %v6579_v12, %v7054_v54  ;;  %v11891_v2 = vshll.u32 %v6191_v19, 16  ;;  %v5970_v54 = vld [vmem:[%s11487_s1 + $0x30] sm:$0x3f]  }
 0x13d   : > { %11884 = vst [vmem:[#allocation106_spill] sm:$0xff] %v7388_v23  ;;  %v11887_v23 = vshll.u32 %v6163_v8, 16 }
 0x13e   : > { %866 = vrot.lane.b32.xlu0 %v849_v5, %s6057_s17  ;;  %v7399_v0 = vpop.permute.xlu1 %1969  ;;  %v1102_v5 = vshrl.u32 %v7396_v4, 16  ;;  %v1107_v18 = vrot.slane %v1105_v46, 2 }
 0x13f   : > { %11885 = vst [vmem:[#allocation107_spill] sm:$0xff] %v7399_v0  ;;  %v949_v15 = vrot.slane %v11887_v23, 3 }
 0x140   : > { %v7407_v53 = vpop.permute.xlu0 %1791  ;;  %868 = vrot.lane.b32.xlu1 %v851_v62, %s6057_s17  ;;  %v1059_v62 = vrot.slane %v6385_v11, 1  ;;  %v1104_v35 = vrot.slane %v1102_v5, 1  ;;  %v953_v5 = vrot.slane %v11891_v2, 3  ;;  %v1183_v2 = vrot.slane %v7396_v4, 2 }
 0x141   : > { %11888 = vst [vmem:[#allocation108_spill] sm:$0xff] %v7407_v53  ;;  %v950_v0 = vor.u32 %v949_v15, %v948_v16  ;;  %v1109_v53 = vrot.slane %v6415_v56, 1  ;;  %v11890_v16 = vshrl.u32 %v6191_v19, 16 }
 0x142   : > { %826 = vrot.lane.b32.xlu0 %v790_v48, %s6058_s18  ;;  %v7413_v1 = vpop.permute.xlu1 %1591  ;;  %v1110_v48 = vrot.slane %v6428_v50, 2  ;;  %v1060_v28 = vsel %vm11613_vm1, %v1058_v57, %v1059_v62 }
 0x143   : > { %v952_v15 = vrot.slane %v11890_v16, 2 }
 0x144   : > { %v7415_v23 = vpop.permute.xlu0 %1894  ;;  %2049 = vrot.lane.b32.xlu1 %v7284_v59, %s6059_s19  ;;  %v951_v59 = vsel %vm11603_vm5, %v947_v38, %v950_v0  ;;  %v1108_v38 = vor.u32 %v1107_v18, %v1104_v35  ;;  %v7444_v12 = vor.u32 %v1110_v48, %v1109_v53  ;;  %v11892_v53 = vrot.slane %v6163_v8, 2 }
 0x145   : > { %v7461_v35 = vor.u32 %v953_v5, %v952_v15  ;;  %v11592_v18 = vmov 0.0   ;;  %v7468_v48 = vsel %vm11616_vm8, %v6191_v19, %v6668_v47  ;;  %v7480_v47 = vrot.slane %v6385_v11, 2 }
 0x146   : > { %2004 = vrot.lane.b32.xlu0 %v11889_v9, %s6060_s20  ;;  %v7427_v7 = vpop.permute.xlu1 %1648  ;;  %v2065_v9 = vsel %vm11617_vm9, %v2052_v33, %v7030_v30  ;;  %v902_v57 = vsel %vm11619_vm7, %v11892_v53, %v901_v41  ;;  %5791 = vmatprep.subr.bf16.mxu0 %v11592_v18  ;;  %v2503_v30 = vsel %vm11619_vm7, %v5970_v54, 0  ;;  %v1112_v15 = vsel %vm11612_vm4, %v1108_v38, %v7444_v12  ;;  %v11894_v53 = vld [vmem:[#allocation17_spill] sm:$0xff] }
 0x147   : > { %v2085_v16 = vsel %vm11618_vm10, %v2065_v9, %v7078_v14  ;;  %5792 = vmatpush3.bf16.msra.mxu0 %v2503_v30  ;;  %v955_v4 = vsel %vm11603_vm5, %v950_v0, %v7461_v35  ;;  %v11895_v30 = vld [vmem:[#allocation27_spill] sm:$0xff] }
 0x148   : > { %v7438_v46 = vpop.permute.xlu0 %931  ;;  %1030 = vrot.lane.b32.xlu1 %v1023_v52, %s6061_s21  ;;  %v2105_v14 = vsel %vm11590_vm11, %v2085_v16, %v7103_v58  ;;  %5793 = vmatprep.subr.bf16.mxu0 %v11592_v18  ;;  %v2067_v58 = vsel %vm11617_vm9, %v7468_v48, %v7048_v31  ;;  %v1061_v16 = vrot.slane %v6406_v45, 1 }
 0x149   : > { %v2125_v33 = vsel %vm1322_vm12, %v2105_v14, %v7127_v39  ;;  %v5971_v39 = vld [vmem:[%s11487_s1 + $0x28] sm:$0xff]  }
 0x14a   : > { %999 = vrot.lane.b32.xlu0 %v951_v59, %s6059_s19  ;;  %v7452_v52 = vpop.permute.xlu1 %1733  ;;  %v2145_v31 = vsel %vm11614_vm13, %v2125_v33, %v7118_v6 }
 0x14b   : > { %5794 = vmatpush3.bf16.msra.mxu0 %v5971_v39  ;;  %v2165_v9 = vsel %vm1364_vm14, %v2145_v31, %v7184_v29  ;;  %v5972_v29 = vld [vmem:[%s11487_s1 + $0x20] sm:$0xff]   ;;  %v791_v39 = vrot.slane %v6415_v56, 2 }
 0x14c   : > { %v7472_v59 = vpop.permute.xlu0 %1013  ;;  %1077 = vrot.lane.b32.xlu1 %v1060_v28, %s6063_s24  ;;  %v2087_v28 = vsel %vm11618_vm10, %v2067_v58, %v7067_v27  ;;  %v1184_v27 = vsel %vm11619_vm7, %v1183_v2, %v7480_v47  ;;  %5795 = vmatprep.subr.bf16.mxu0 %v11592_v18 }
 0x14d   : > { %v2107_v38 = vsel %vm11590_vm11, %v2087_v28, %v7142_v13  ;;  %v7512_v13 = vsel %vm11616_vm8, %v6215_v32, %v6665_v40  ;;  %v1114_v40 = vrot.slane %v11895_v30, 2 }
 0x14e   : > { %919 = vrot.lane.b32.xlu0 %v902_v57, %s6060_s20  ;;  %v7488_v5 = vpop.permute.xlu1 %1833  ;;  %11893 = vst [vmem:[#allocation109_spill] sm:$0xff] %v7512_v13  ;;  %v2127_v0 = vsel %vm1322_vm12, %v2107_v38, %v7135_v55  ;;  %v1113_v57 = vrot.slane %v11894_v53, 1  ;;  %v2069_v14 = vsel %vm11617_vm9, %v7512_v13, %v7095_v22  ;;  %v739_v55 = vrot.slane %v6406_v45, 2 }
 0x14f   : > { %v2147_v33 = vsel %vm11614_vm13, %v2127_v0, %v7210_v34  ;;  %5796 = vmatpush3.bf16.msra.mxu0 %v5972_v29  ;;  %v2089_v58 = vsel %vm11618_vm10, %v2069_v14, %v7161_v17  ;;  %v792_v34 = vrot.slane %v6428_v50, 3  ;;  %v1062_v50 = vsel %vm11613_vm1, %v1059_v62, %v1061_v16 }
 0x150   : > { %v7501_v54 = vpop.permute.xlu0 %1671  ;;  %1160 = vrot.lane.b32.xlu1 %v1112_v15, %s6064_s29  ;;  %v2185_v15 = vsel %vm1385_vm15, %v2165_v9, %v7175_v51  ;;  %5797 = vmatprep.subr.bf16.mxu0 %v11592_v18  ;;  %v11896_v51 = vld [vmem:[#allocation10_spill] sm:$0xff]  ;;  %v2167_v17 = vsel %vm1364_vm14, %v2147_v33, %v7199_v26  ;;  %v7557_v56 = vor.u32 %v1114_v40, %v1113_v57  ;;  %v11898_v26 = vld [vmem:[#allocation96_spill] sm:$0xff] }
 0x151   : > { %v2205_v22 = vsel %vm1406_vm6, %v2185_v15, %v7242_v21  ;;  %v11897_v21 = vld [vmem:[#allocation94_spill] sm:$0xff]  ;;  %v2187_v9 = vsel %vm1385_vm15, %v2167_v17, %v7258_v60  ;;  %v7579_v60 = vor.u32 %v792_v34, %v791_v39  ;;  %v11899_v15 = vld [vmem:[#allocation95_spill] sm:$0xff] }
 0x152   : > { %1001 = vrot.lane.b32.xlu0 %v955_v4, %s6059_s19  ;;  %v7515_v6 = vpop.permute.xlu1 %1971  ;;  %v5973_v4 = vld [vmem:[%s11487_s1 + $0x18] sm:$0xff]   ;;  %v2109_v38 = vsel %vm11590_vm11, %v2089_v58, %v11897_v21  ;;  %v2221_v31 = vsel %vm1427_vm3, %v2205_v22, %v7237_v25  ;;  %v2206_v29 = vsel %vm1406_vm6, %v2187_v9, %v7276_v44  ;;  %v7577_v25 = vsel %vm11619_vm7, %v7480_v47, %v739_v55  ;;  %v5975_v40 = vld [vmem:[%s11487_s1 + $0x10] sm:$0xff]  }
 0x153   : > { %5798 = vmatpush3.bf16.msra.mxu0 %v5973_v4  ;;  %v2129_v62 = vsel %vm1322_vm12, %v2109_v38, %v11898_v26  ;;  %v7584_v0 = vsel %vm1427_vm3, %v2206_v29, %v7298_v20  ;;  %v2238_v14 = vshll.u32 %v2221_v31, 16  ;;  %v1116_v33 = vsel %vm11612_vm4, %v7444_v12, %v7557_v56  ;;  %v11900_v4 = vld [vmem:[#allocation97_spill] sm:$0xff] }
 0x154   : > { %v7532_v2 = vpop.permute.xlu0 %1793  ;;  %1191 = vrot.lane.b32.xlu1 %v1184_v27, %s6065_s11  ;;  %5799 = vmatprep.subr.bf16.mxu0 %v11592_v18  ;;  %v2149_v58 = vsel %vm11614_vm13, %v2129_v62, %v11899_v15  ;;  %v2242_v34 = vshll.u32 %v7584_v0, 16  ;;  %v11595_v12 = vrot.slane %v6385_v11, 3  ;;  %v11901_v21 = vld [vmem:[#allocation41_spill] sm:$0xff]  ;;  %v11904_v62 = vrot.slane %v6352_v49, 2 }
 0x155   : > { %v2169_v39 = vsel %vm1364_vm14, %v2149_v58, %v7253_v24  ;;  %v5976_v24 = vld [vmem:[%s11487_s1 + $0x8] sm:$0xff]   ;;  %v11591_v15 = vrot.slane %v6215_v32, 2 }
 0x156   : > { %1032 = vrot.lane.b32.xlu0 %v11896_v51, %s6061_s21  ;;  %v7545_v28 = vpop.permute.xlu1 %1996  ;;  %v794_v51 = vsel %vm11603_vm5, %v7386_v43, %v7579_v60  ;;  %v2189_v17 = vsel %vm1385_vm15, %v2169_v39, %v11900_v4  ;;  %v11902_v38 = vld [vmem:[#allocation5_spill] sm:$0xff]  ;;  %v2240_v43 = vrot.slane %v2238_v14, 1  ;;  %v738_v29 = vsel %vm11619_vm7, %v11904_v62, %v7480_v47  ;;  %v11906_v47 = vld [vmem:[#allocation98_spill] sm:$0xff]  ;;  %v11908_v62 = vld [vmem:[#allocation19_spill] sm:$0xff] }
 0x157   : > { %5800 = vmatpush3.bf16.msra.mxu0 %v5975_v40  ;;  %v7620_v9 = vsel %vm11616_vm8, %v11902_v38, %v11901_v21  ;;  %v2207_v26 = vsel %vm1406_vm6, %v2189_v17, %v7311_v36  ;;  %v2236_v14 = vshrl.u32 %v2221_v31, 16  ;;  %v2244_v58 = vrot.slane %v2242_v34, 1  ;;  %v5979_v31 = vld [vmem:[%s11487_s1] sm:$0xff]  }
 0x158   : > { %v7565_v27 = vpop.permute.xlu0 %1896  ;;  %1217 = vrot.lane.b32.xlu1 %v6163_v8, %s6066_s23  ;;  %5801 = vmatprep.subr.bf16.mxu0 %v11592_v18  ;;  %11903 = vst [vmem:[#allocation17_spill] sm:$0xff] %v7620_v9  ;;  %v2071_v40 = vsel %vm11617_vm9, %v7620_v9, %v7326_v63  ;;  %v11905_v39 = vrot.slane %v6352_v49, 3  ;;  %v7643_v63 = vsel %vm1427_vm3, %v2207_v26, %v11906_v47  ;;  %v11907_v17 = vld [vmem:[#allocation99_spill] sm:$0xff]  ;;  %v11928_v47 = vld [vmem:[#allocation24_spill] sm:$0xff] }
 0x159   : > { %v2241_v34 = vor.u32 %v2240_v43, %v2236_v14  ;;  %v2091_v49 = vsel %vm11618_vm10, %v2071_v40, %v11907_v17  ;;  %v904_v26 = vsel %vm11619_vm7, %v901_v41, %v11591_v15  ;;  %v2249_v43 = vshll.u32 %v7643_v63, 16  ;;  %v11909_v14 = vld [vmem:[#allocation21_spill] sm:$0xff]  ;;  %v11911_v17 = vld [vmem:[#allocation6_spill] sm:$0xff]  ;;  %v11930_v36 = vld [vmem:[#allocation103_spill] sm:$0xff] }
 0x15a   : > { %1079 = vrot.lane.b32.xlu0 %v1062_v50, %s6063_s24  ;;  %v7587_v57 = vpop.permute.xlu1 %2041  ;;  %v853_v4 = vsel %vm11615_vm2, %v11905_v39, %v11595_v12  ;;  %v1118_v39 = vrot.slane %v11909_v14, 2  ;;  %v1121_v9 = vrot.slane %v11928_v47, 1 }
 0x15b   : > { %5802 = vmatpush3.bf16.msra.mxu0 %v5976_v24  ;;  %v2111_v24 = vsel %vm11590_vm11, %v2091_v49, %v7333_v10  ;;  %v2245_v40 = vsel %vm413_vm0, %v2241_v34, %v2244_v58  ;;  %vm11599_vm11 = vmmov 0   ;;  %v957_v34 = vrot.slane %v11911_v17, 3 }
 0x15c   : > { %v7597_v22 = vpop.permute.xlu0 %1593  ;;  %1193 = vrot.lane.b32.xlu1 %v7577_v25, %s6065_s11  ;;  %5803 = vmatprep.subr.bf16.mxu0 %v11592_v18  ;;  %v2131_v41 = vsel %vm1322_vm12, %v2111_v24, %v7321_v3  ;;  %v2251_v14 = vrot.slane %v2249_v43, 1  ;;  %v11914_v43 = vld [vmem:[#allocation101_spill] sm:$0xff] }
 0x15d   : > { %5805 = vmatprep.mubr.msk.bf16.mxu0 %vm11599_vm11, %v11592_v18  ;;  %v2151_v49 = vsel %vm11614_vm13, %v2131_v41, %v7343_v37  ;;  %vm11931_vm11 = vcmask 130048  }
 0x15e   : > { %1162 = vrot.lane.b32.xlu0 %v1116_v33, %s6064_s29  ;;  %v7612_v50 = vpop.permute.xlu1 %1735 }
 0x15f   : > { %5804 = vmatpush3.bf16.msra.mxu0 %v5979_v31 }
 0x160   : > { %v7631_v33 = vpop.permute.xlu0 %1650  ;;  %828 = vrot.lane.b32.xlu1 %v794_v51, %s6058_s18  ;;  %5841 = vmatprep.subr.bf16.mxu0 %v11592_v18 }
 0x162   : > { %755 = vrot.lane.b32.xlu0 %v738_v29, %s6056_s16  ;;  %v7646_v51 = vpop.permute.xlu1 %1835  ;;  %v1117_v29 = vrot.slane %v11908_v62, 1 }
 0x164   : > { %v7655_v21 = vpop.permute.xlu0 %1673  ;;  %870 = vrot.lane.b32.xlu1 %v853_v4, %s6057_s17  ;;  %v11910_v4 = vld [vmem:[#allocation7_spill] sm:$0xff]  ;;  %v7683_v15 = vor.u32 %v1118_v39, %v1117_v29  ;;  %v11913_v29 = vld [vmem:[#allocation16_spill] sm:$0xff] }
 0x165   : > { %v956_v31 = vrot.slane %v11910_v4, 2  ;;  %v2171_v4 = vsel %vm1364_vm14, %v2151_v49, %v7331_v61 }
 0x166   : > { %2304 = vrot.lane.b32.xlu0 %v2245_v40, %s6067_s25  ;;  %v7669_v10 = vpop.permute.xlu1 %1973  ;;  %v2246_v40 = vshrl.u32 %v7584_v0, 16  ;;  %v2191_v37 = vsel %vm1385_vm15, %v2171_v4, %v7355_v42  ;;  %v11912_v0 = vld [vmem:[#allocation12_spill] sm:$0xff] }
 0x167   : > { %v958_v17 = vor.u32 %v957_v34, %v956_v31  ;;  %v2208_v42 = vsel %vm1406_vm6, %v2191_v37, %v11914_v43  ;;  %v1063_v31 = vrot.slane %v11913_v29, 1  ;;  %v11915_v34 = vld [vmem:[#allocation104_spill] sm:$0xff]  ;;  %v795_v37 = vrot.slane %v11894_v53, 2 }
 0x168   : > { %v7679_v62 = vpop.permute.xlu0 %1795  ;;  %921 = vrot.lane.b32.xlu1 %v904_v26, %s6060_s20  ;;  %v2248_v24 = vor.u32 %v2246_v40, %v2244_v58  ;;  %v11594_v58 = vrot.slane %v11913_v29, 2  ;;  %v7712_v49 = vsel %vm1427_vm3, %v2208_v42, %v11915_v34  ;;  %v11922_v34 = vld [vmem:[#allocation102_spill] sm:$0xff] }
 0x169   : > { %v959_v39 = vsel %vm11603_vm5, %v7461_v35, %v958_v17  ;;  %v2256_v35 = vshll.u32 %v7712_v49, 16  ;;  %v1064_v4 = vsel %vm11613_vm1, %v1061_v16, %v1063_v31 }
 0x16a   : > { %1219 = vrot.lane.b32.xlu0 %v6191_v19, %s6066_s23  ;;  %v7687_v3 = vpop.permute.xlu1 %1998  ;;  %v2252_v26 = vsel %vm413_vm0, %v2248_v24, %v2251_v14  ;;  %v1120_v19 = vsel %vm11612_vm4, %v7557_v56, %v7683_v15  ;;  %v742_v56 = vsel %vm11619_vm7, %v739_v55, %v11594_v58  ;;  %v11918_v58 = vld [vmem:[#allocation38_spill] sm:$0xff] }
 0x16b   : > { %v7738_v42 = vrot.slane %v2256_v35, 1  ;;  %v854_v35 = vrot.slane %v6406_v45, 3  ;;  %v11921_v45 = vrot.slane %v6385_v11, 3 }
 0x16c   : > { %v7693_v41 = vpop.permute.xlu0 %1898  ;;  %1034 = vrot.lane.b32.xlu1 %v11912_v0, %s6061_s21  ;;  %v796_v0 = vrot.slane %v11895_v30, 3 }
 0x16e   : > { %2306 = vrot.lane.b32.xlu0 %v2252_v26, %s6067_s25  ;;  %v7703_v61 = vpop.permute.xlu1 %2043 }
 0x170   : > { %v7714_v40 = vpop.permute.xlu0 %1595  ;;  %1164 = vrot.lane.b32.xlu1 %v1120_v19, %s6064_s29  ;;  %v2253_v19 = vshrl.u32 %v7643_v63, 16 }
 0x172   : > { %1003 = vrot.lane.b32.xlu0 %v959_v39, %s6059_s19  ;;  %v7723_v24 = vpop.permute.xlu1 %1737  ;;  %v797_v39 = vor.u32 %v796_v0, %v795_v37  ;;  %v2255_v16 = vor.u32 %v2253_v19, %v2251_v14  ;;  %v11916_v37 = vld [vmem:[#allocation18_spill] sm:$0xff]  ;;  %v11924_v19 = vld [vmem:[#allocation9_spill] sm:$0xff] }
 0x173   : > { %v963_v14 = vsel %vm11603_vm5, %v958_v17, %v11916_v37  ;;  %v11917_v0 = vld [vmem:[#allocation22_spill] sm:$0xff] }
 0x174   : > { %v7731_v26 = vpop.permute.xlu0 %1652  ;;  %1195 = vrot.lane.b32.xlu1 %v742_v56, %s6065_s11  ;;  %v798_v30 = vsel %vm11603_vm5, %v7579_v60, %v797_v39  ;;  %v2259_v63 = vsel %vm413_vm0, %v2255_v16, %v7738_v42  ;;  %v11919_v60 = vld [vmem:[#allocation8_spill] sm:$0xff]  ;;  %v855_v16 = vsel %vm11615_vm2, %v11921_v45, %v854_v35  ;;  %v11925_v43 = vrot.slane %v11917_v0, 1 }
 0x175   : > { %v7765_v12 = vsel %vm11616_vm8, %v11919_v60, %v11918_v58  ;;  %v2054_v58 = vsel %vm11616_vm8, %v11924_v19, %v7413_v1 }
 0x176   : > { %1081 = vrot.lane.b32.xlu0 %v1064_v4, %s6063_s24  ;;  %v7735_v55 = vpop.permute.xlu1 %1837  ;;  %11920 = vst [vmem:[#allocation27_spill] sm:$0xff] %v7765_v12  ;;  %v1066_v11 = vsel %vm11613_vm1, %v1063_v31, %v11925_v43  ;;  %v2075_v13 = vsel %vm11617_vm9, %v2054_v58, %v7427_v7  ;;  %v11932_v31 = vld [vmem:[#allocation108_spill] sm:$0xff]  ;;  %v11934_v58 = vld [vmem:[#allocation31_spill] sm:$0xff] }
 0x178   : > { %v7740_v18 = vpop.permute.xlu0 %1675  ;;  %1221 = vrot.lane.b32.xlu1 %v6215_v32, %s6066_s23 }
 0x17a   : > { %757 = vrot.lane.b32.xlu0 %v7577_v25, %s6056_s16  ;;  %v7746_v53 = vpop.permute.xlu1 %1975 }
 0x17c   : > { %v7753_v4 = vpop.permute.xlu0 %1797  ;;  %2308 = vrot.lane.b32.xlu1 %v2259_v63, %s6067_s25  ;;  %v2073_v63 = vsel %vm11617_vm9, %v7765_v12, %v11922_v34  ;;  %v11926_v34 = vld [vmem:[#allocation40_spill] sm:$0xff]  ;;  %v11927_v12 = vrot.slane %v6215_v32, 2 }
 0x17e   : > { %830 = vrot.lane.b32.xlu0 %v798_v30, %s6058_s18  ;;  %v7760_v25 = vpop.permute.xlu1 %2000  ;;  %v11923_v30 = vld [vmem:[#allocation106_spill] sm:$0xff] }
 0x17f   : > { %v2093_v37 = vsel %vm11618_vm10, %v2073_v63, %v11923_v30  ;;  %v11929_v63 = vld [vmem:[#allocation29_spill] sm:$0xff] }
 0x180   : > { %v7773_v17 = vpop.permute.xlu0 %1900  ;;  %1005 = vrot.lane.b32.xlu1 %v963_v14, %s6059_s19  ;;  %v906_v14 = vsel %vm11619_vm7, %v11927_v12, %v11926_v34  ;;  %v1122_v30 = vrot.slane %v11929_v63, 2  ;;  %v2113_v1 = vsel %vm11931_vm11, %v2093_v37, %v11930_v36  ;;  %v2095_v12 = vsel %vm11618_vm10, %v2075_v13, %v7501_v54  ;;  %v11933_v34 = vld [vmem:[#allocation105_spill] sm:$0xff] }
 0x181   : > { %v2115_v63 = vsel %vm11931_vm11, %v2095_v12, %v7452_v52  ;;  %v11935_v54 = vld [vmem:[#allocation13_spill] sm:$0xff]  ;;  %v11937_v52 = vld [vmem:[#allocation23_spill] sm:$0xff] }
 0x182   : > { %872 = vrot.lane.b32.xlu0 %v855_v16, %s6057_s17  ;;  %v7785_v45 = vpop.permute.xlu1 %2045  ;;  %v2133_v16 = vsel %vm1322_vm12, %v2113_v1, %v11932_v31  ;;  %v1123_v47 = vor.u32 %v1122_v30, %v1121_v9  ;;  %v2135_v9 = vsel %vm1322_vm12, %v2115_v63, %v7532_v2  ;;  %v11936_v30 = vld [vmem:[#allocation107_spill] sm:$0xff]  ;;  %v1125_v31 = vrot.slane %v11937_v52, 1 }
 0x183   : > { %v2153_v36 = vsel %vm11614_vm13, %v2133_v16, %v11933_v34  ;;  %v11938_v16 = vld [vmem:[#allocation25_spill] sm:$0xff]  ;;  %v2260_v52 = vshrl.u32 %v7712_v49, 16 }
 0x184   : > { %v7797_v43 = vpop.permute.xlu0 %1597  ;;  %1083 = vrot.lane.b32.xlu1 %v1066_v11, %s6063_s24  ;;  %v2173_v7 = vsel %vm1364_vm14, %v2153_v36, %v7415_v23  ;;  %v802_v11 = vsel %vm11603_vm5, %v797_v39, %v11934_v58  ;;  %v743_v23 = vrot.slane %v11917_v0, 2  ;;  %v1126_v12 = vrot.slane %v11938_v16, 2 }
 0x185   : > { %v2193_v39 = vsel %vm1385_vm15, %v2173_v7, %v11936_v30  ;;  %v2155_v36 = vsel %vm11614_vm13, %v2135_v9, %v7488_v5  ;;  %vm11949_vm5 = vcmask 130048  }
 0x186   : > { %923 = vrot.lane.b32.xlu0 %v906_v14, %s6060_s20  ;;  %v7803_v32 = vpop.permute.xlu1 %1739  ;;  %v856_v14 = vrot.slane %v11913_v29, 3  ;;  %v2209_v34 = vsel %vm1406_vm6, %v2193_v39, %v7438_v46  ;;  %v2175_v58 = vsel %vm1364_vm14, %v2155_v36, %v7565_v27  ;;  %v11940_v27 = vld [vmem:[#allocation15_spill] sm:$0xff] }
 0x187   : > { %v2195_v5 = vsel %vm1385_vm15, %v2175_v58, %v7515_v6 }
 0x188   : > { %v7809_v37 = vpop.permute.xlu0 %1654  ;;  %759 = vrot.lane.b32.xlu1 %v742_v56, %s6056_s16  ;;  %v1124_v56 = vsel %vm11612_vm4, %v7683_v15, %v1123_v47  ;;  %v857_v2 = vsel %vm11615_vm2, %v854_v35, %v856_v14  ;;  %v2225_v15 = vsel %vm1427_vm3, %v2209_v34, %v7472_v59  ;;  %v7855_v35 = vor.u32 %v1126_v12, %v1125_v31  ;;  %v11941_v12 = vld [vmem:[#allocation20_spill] sm:$0xff] }
 0x189   : > { %v2263_v30 = vshll.u32 %v2225_v15, 16  ;;  %v2211_v16 = vsel %vm1406_vm6, %v2195_v5, %v7545_v28  ;;  %v11602_v6 = vrot.slane %v11941_v12, 2  ;;  %v1067_v36 = vrot.slane %v11941_v12, 1  ;;  %v11943_v5 = vld [vmem:[#allocation52_spill] sm:$0xff] }
 0x18a   : > { %1036 = vrot.lane.b32.xlu0 %v11935_v54, %s6061_s21  ;;  %v7821_v13 = vpop.permute.xlu1 %1839  ;;  %v1128_v39 = vsel %vm11612_vm4, %v1123_v47, %v7855_v35  ;;  %v7880_v47 = vsel %vm1427_vm3, %v2211_v16, %v7587_v57 }
 0x18b   : > { %v2265_v31 = vrot.slane %v2263_v30, 1 }
 0x18c   : > { %v7830_v1 = vpop.permute.xlu0 %1677  ;;  %832 = vrot.lane.b32.xlu1 %v802_v11, %s6058_s18  ;;  %v11939_v11 = vrot.slane %v11913_v29, 2 }
 0x18e   : > { %1166 = vrot.lane.b32.xlu0 %v1124_v56, %s6064_s29  ;;  %v7845_v7 = vpop.permute.xlu1 %1977  ;;  %v744_v63 = vsel %vm11619_vm7, %v11939_v11, %v743_v23  ;;  %v11942_v11 = vrot.slane %v11917_v0, 1 }
 0x190   : > { %v7852_v54 = vpop.permute.xlu0 %1799  ;;  %874 = vrot.lane.b32.xlu1 %v857_v2, %s6057_s17  ;;  %v2262_v2 = vor.u32 %v2260_v52, %v7738_v42  ;;  %v2270_v42 = vshll.u32 %v7880_v47, 16  ;;  %v1068_v57 = vsel %vm11613_vm1, %v11942_v11, %v1067_v36 }
 0x192   : > { %1197 = vrot.lane.b32.xlu0 %v744_v63, %s6065_s11  ;;  %v7860_v9 = vpop.permute.xlu1 %2002  ;;  %v2266_v28 = vsel %vm413_vm0, %v2262_v2, %v2265_v31  ;;  %v7905_v52 = vrot.slane %v2270_v42, 1 }
 0x194   : > { %v7862_v56 = vpop.permute.xlu0 %1902  ;;  %1038 = vrot.lane.b32.xlu1 %v11940_v27, %s6061_s21  ;;  %v2056_v27 = vsel %vm11616_vm8, %v11943_v5, %v7597_v22  ;;  %v11944_v22 = vld [vmem:[#allocation26_spill] sm:$0xff] }
 0x195   : > { %v2077_v16 = vsel %vm11617_vm9, %v2056_v27, %v7631_v33 }
 0x196   : > { %1223 = vrot.lane.b32.xlu0 %v11902_v38, %s6066_s23  ;;  %v7874_v34 = vpop.permute.xlu1 %2047  ;;  %v746_v38 = vsel %vm11619_vm7, %v743_v23, %v11602_v6  ;;  %v2097_v2 = vsel %vm11618_vm10, %v2077_v16, %v7655_v21  ;;  %v1069_v6 = vrot.slane %v11944_v22, 1  ;;  %v858_v21 = vrot.slane %v11917_v0, 3  ;;  %v11946_v0 = vld [vmem:[#allocation28_spill] sm:$0xff]  ;;  %v11947_v16 = vld [vmem:[#allocation30_spill] sm:$0xff] }
 0x198   : > { %v7882_v49 = vpop.permute.xlu0 %1599  ;;  %1168 = vrot.lane.b32.xlu1 %v1128_v39, %s6064_s29  ;;  %v2267_v39 = vshrl.u32 %v2225_v15, 16  ;;  %v2117_v15 = vsel %vm11931_vm11, %v2097_v2, %v7612_v50  ;;  %v1130_v2 = vrot.slane %v11947_v16, 2  ;;  %vm11610_vm11 = vcmask 60416  }
 0x199   : > { %v2137_v42 = vsel %vm1322_vm12, %v2117_v15, %v7679_v62  ;;  %v859_v62 = vsel %vm11615_vm2, %v856_v14, %v858_v21  ;;  %v11948_v15 = vld [vmem:[#allocation60_spill] sm:$0xff] }
 0x19a   : > { %2310 = vrot.lane.b32.xlu0 %v2266_v28, %s6067_s25  ;;  %v7890_v58 = vpop.permute.xlu1 %1741  ;;  %v2269_v11 = vor.u32 %v2267_v39, %v2265_v31  ;;  %v2157_v31 = vsel %vm11614_vm13, %v2137_v42, %v7646_v51  ;;  %v1129_v39 = vrot.slane %v11946_v0, 1  ;;  %v11951_v0 = vld [vmem:[#allocation39_spill] sm:$0xff] }
 0x19c   : > { %v7896_v30 = vpop.permute.xlu0 %1656  ;;  %1199 = vrot.lane.b32.xlu1 %v746_v38, %s6065_s11  ;;  %v2273_v33 = vsel %vm413_vm0, %v2269_v11, %v7905_v52  ;;  %v2177_v11 = vsel %vm1364_vm14, %v2157_v31, %v7693_v41  ;;  %v1131_v42 = vor.u32 %v1130_v2, %v1129_v39  ;;  %v11950_v31 = vld [vmem:[#allocation14_spill] sm:$0xff]  ;;  %v11952_v39 = vld [vmem:[#allocation65_spill] sm:$0xff] }
 0x19d   : > { %v2197_v14 = vsel %vm1385_vm15, %v2177_v11, %v7669_v10  ;;  %v1136_v16 = vrot.slane %v11952_v39, 1  ;;  %v11953_v2 = vld [vmem:[#allocation61_spill] sm:$0xff] }
 0x19e   : > { %1085 = vrot.lane.b32.xlu0 %v1068_v57, %s6063_s24  ;;  %v7903_v23 = vpop.permute.xlu1 %751  ;;  %v1139_v11 = vrot.slane %v11953_v2, 2 }
 0x1a0   : > { %v7911_v28 = vpop.permute.xlu0 %1679  ;;  %1225 = vrot.lane.b32.xlu1 %v11919_v60, %s6066_s23  ;;  %v1070_v60 = vsel %vm11613_vm1, %v1067_v36, %v1069_v6 }
 0x1a2   : > { %761 = vrot.lane.b32.xlu0 %v744_v63, %s6056_s16  ;;  %v7917_v57 = vpop.permute.xlu1 %824  ;;  %v11945_v63 = vld [vmem:[#allocation33_spill] sm:$0xff] }
 0x1a4   : > { %v7926_v27 = vpop.permute.xlu0 %1801  ;;  %2312 = vrot.lane.b32.xlu1 %v2273_v33, %s6067_s25  ;;  %v2058_v33 = vsel %vm11616_vm8, %v11948_v15, %v7714_v40  ;;  %v11608_v40 = vrot.slane %v11941_v12, 3 }
 0x1a5   : > { %v2079_v51 = vsel %vm11617_vm9, %v2058_v33, %v7731_v26  ;;  %v2213_v26 = vsel %vm1406_vm6, %v2197_v14, %v7687_v3  ;;  %v11607_v33 = vrot.slane %v11943_v5, 3 }
 0x1a6   : > { %834 = vrot.lane.b32.xlu0 %v11945_v63, %s6058_s18  ;;  %v7934_v50 = vpop.permute.xlu1 %753  ;;  %v2099_v41 = vsel %vm11618_vm10, %v2079_v51, %v7740_v18  ;;  %v11604_v18 = vmov 0  }
 0x1a7   : > { %2760 = vst.msk [vmem:[#allocation2 + $0x14] sm:$0xf] %vm11610_vm11, %v11604_v18  ;;  %2761 = vst.msk [vmem:[#allocation2 + $0x18] sm:$0xf] %vm11610_vm11, %v11604_v18  ;;  %5918 = vset.pattern.permute.xlu1 %v11604_v18  ;;  %5917 = vset.pattern.permute.xlu0 %v11604_v18 }
 0x1a8   : > { %v7945_v36 = vpop.permute.xlu0 %1841  ;;  %1087 = vrot.lane.b32.xlu1 %v1070_v60, %s6063_s24  ;;  %v2119_v60 = vsel %vm11949_vm5, %v2099_v41, %v7723_v24  ;;  %2762 = vst.msk [vmem:[#allocation2 + $0x1c] sm:$0xf] %vm11610_vm11, %v11604_v18  ;;  %2763 = vst.msk [vmem:[#allocation2 + $0x20] sm:$0xf] %vm11610_vm11, %v11604_v18  ;;  %v1132_v24 = vsel %vm11612_vm4, %v7855_v35, %v1131_v42  ;;  %5205 = vmatprep.subr.bf16.mxu1 %v11604_v18 }
 0x1a9   : > { %2764 = vst.msk [vmem:[#allocation2 + $0x24] sm:$0xf] %vm11610_vm11, %v11604_v18  ;;  %2769 = vst.msk [vmem:[#allocation2 + $0x74] sm:$0xf] %vm11610_vm11, %v11604_v18  ;;  %v2139_v3 = vsel %vm1322_vm12, %v2119_v60, %v7753_v4  ;;  %v2229_v4 = vsel %vm1427_vm3, %v2213_v26, %v7703_v61  ;;  %v861_v35 = vsel %vm11615_vm2, %v858_v21, %v11608_v40  ;;  %v11954_v60 = vrot.slane %v11941_v12, 2  ;;  %v11967_v40 = vld [vmem:[#allocation88_spill] sm:$0xff] }
 0x1aa   : > { %876 = vrot.lane.b32.xlu0 %v859_v62, %s6057_s17  ;;  %v7954_v29 = vpop.permute.xlu1 %1979  ;;  %2770 = vst.msk [vmem:[#allocation2 + $0x78] sm:$0xf] %vm11610_vm11, %v11604_v18  ;;  %2771 = vst.msk [vmem:[#allocation2 + $0x7c] sm:$0xf] %vm11610_vm11, %v11604_v18  ;;  %v2159_v51 = vsel %vm11614_vm13, %v2139_v3, %v7735_v55  ;;  %v2277_v26 = vshll.u32 %v2229_v4, 16  ;;  %v8028_v21 = vor.u32 %v1139_v11, %v1136_v16  ;;  %v11955_v55 = vld [vmem:[#allocation11_spill] sm:$0xff] }
 0x1ab   : > { %2772 = vst.msk [vmem:[#allocation2 + $0x80] sm:$0xf] %vm11610_vm11, %v11604_v18  ;;  %2773 = vst.msk [vmem:[#allocation2 + $0x84] sm:$0xf] %vm11610_vm11, %v11604_v18  ;;  %v2179_v41 = vsel %vm1364_vm14, %v2159_v51, %v7773_v17  ;;  %v1025_v3 = vsel %vm11615_vm2, %v11955_v55, %v11607_v33  ;;  %v2274_v16 = vshrl.u32 %v7880_v47, 16  ;;  %v2281_v18 = vshrl.u32 %v2229_v4, 16 }
 0x1ac   : > { %v7960_v63 = vpop.permute.xlu0 %1904  ;;  %763 = vrot.lane.b32.xlu1 %v746_v38, %s6056_s16  ;;  %v7998_v38 = vrot.slane %v11944_v22, 2  ;;  %v2199_v17 = vsel %vm1385_vm15, %v2179_v41, %v7746_v53  ;;  %v1141_v39 = vsel %vm11612_vm4, %v1131_v42, %v8028_v21  ;;  %v2279_v2 = vrot.slane %v2277_v26, 1  ;;  %v11961_v33 = vld [vmem:[#allocation35_spill] sm:$0xff] }
 0x1ad   : > { %v2215_v11 = vsel %vm1406_vm6, %v2199_v17, %v7760_v25  ;;  %v2276_v41 = vor.u32 %v2274_v16, %v7905_v52  ;;  %v11957_v25 = vld [vmem:[#allocation74_spill] sm:$0xff]  ;;  %vm1448_vm11 = vcmask 359424  }
 0x1ae   : > { %1040 = vrot.lane.b32.xlu0 %v11950_v31, %s6061_s21  ;;  %v7970_v10 = vpop.permute.xlu1 %917  ;;  %v748_v61 = vsel %vm11619_vm7, %v11954_v60, %v7998_v38  ;;  %v8056_v47 = vsel %vm1427_vm3, %v2215_v11, %v7785_v45  ;;  %v2060_v26 = vsel %vm11616_vm8, %v11957_v25, %v7797_v43  ;;  %v307_v17 = vld [vmem:[%s6136_s10 + $0x14] sm:$0xf] }
 0x1af   : > { %v2280_v55 = vsel %vm413_vm0, %v2276_v41, %v2279_v2  ;;  %v6036_v41 = vld [vmem:[%s6136_s10 + $0x18] sm:$0xf] }
 0x1b0   : > { %v8002_v62 = vpop.permute.xlu0 %866  ;;  %836 = vrot.lane.b32.xlu1 %v11951_v0, %s6058_s18 }
 0x1b2   : > { %1170 = vrot.lane.b32.xlu0 %v1132_v24, %s6064_s29  ;;  %v8017_v14 = vpop.permute.xlu1 %868 }
 0x1b4   : > { %v8025_v31 = vpop.permute.xlu0 %826  ;;  %878 = vrot.lane.b32.xlu1 %v861_v35, %s6057_s17  ;;  %v11956_v35 = vld [vmem:[#allocation57_spill] sm:$0xff] }
 0x1b5   : > { %v11606_v53 = vrot.slane %v11956_v35, 2  ;;  %v1071_v60 = vrot.slane %v11956_v35, 1 }
 0x1b6   : > { %1201 = vrot.lane.b32.xlu0 %v748_v61, %s6065_s11  ;;  %v8037_v24 = vpop.permute.xlu1 %2049 }
 0x1b7   : > { %v1186_v52 = vsel %vm11619_vm7, %v7998_v38, %v11606_v53  ;;  %v1072_v16 = vsel %vm11613_vm1, %v1069_v6, %v1071_v60 }
 0x1b8   : > { %v8039_v0 = vpop.permute.xlu0 %2004  ;;  %1042 = vrot.lane.b32.xlu1 %v1025_v3, %s6061_s21  ;;  %v2081_v3 = vsel %vm11617_vm9, %v2060_v26, %v7809_v37  ;;  %v5560_v37 = vcombine.low %v307_v17, %v6036_v41  ;;  %v11959_v41 = vld [vmem:[#allocation81_spill] sm:$0xff] }
 0x1b9   : > { %v2101_v43 = vsel %vm11618_vm10, %v2081_v3, %v7830_v1  ;;  %v11958_v3 = vld [vmem:[#allocation71_spill] sm:$0xff] }
 0x1ba   : > { %1227 = vrot.lane.b32.xlu0 %v11924_v19, %s6066_s23  ;;  %v8050_v51 = vpop.permute.xlu1 %1030  ;;  %v2121_v26 = vsel %vm11949_vm5, %v2101_v43, %v7803_v32  ;;  %v11609_v17 = vrot.slane %v11958_v3, 1  ;;  %v1145_v32 = vrot.slane %v11959_v41, 1  ;;  %v11960_v43 = vld [vmem:[#allocation75_spill] sm:$0xff]  ;;  %v1240_v4 = vsel %vm11616_vm8, %v5560_v37, %v11961_v33 }
 0x1bb   : > { %v2141_v1 = vsel %vm1322_vm12, %v2121_v26, %v7852_v54  ;;  %v11962_v26 = vld [vmem:[#allocation45_spill] sm:$0xff]  ;;  %v11611_v33 = vrot.slane %v11944_v22, 3  ;;  %v11963_v37 = vld [vmem:[#allocation59_spill] sm:$0xff] }
 0x1bc   : > { %v8058_v42 = vpop.permute.xlu0 %999  ;;  %1172 = vrot.lane.b32.xlu1 %v1141_v39, %s6064_s29  ;;  %v2284_v39 = vshll.u32 %v8056_v47, 16 }
 0x1be   : > { %2314 = vrot.lane.b32.xlu0 %v2280_v55, %s6067_s25  ;;  %v8072_v45 = vpop.permute.xlu1 %1077  ;;  %v8090_v53 = vrot.slane %v2284_v39, 1  ;;  %v2161_v39 = vsel %vm11614_vm13, %v2141_v1, %v7821_v13 }
 0x1c0   : > { %v8081_v11 = vpop.permute.xlu0 %919  ;;  %1203 = vrot.lane.b32.xlu1 %v1186_v52, %s6065_s11  ;;  %v2283_v52 = vor.u32 %v2281_v18, %v2279_v2  ;;  %v1261_v18 = vsel %vm11617_vm9, %v1240_v4, %v11962_v26  ;;  %v2181_v2 = vsel %vm1364_vm14, %v2161_v39, %v7862_v56  ;;  %v1074_v4 = vsel %vm11613_vm1, %v1071_v60, %v11609_v17  ;;  %v11965_v39 = vld [vmem:[#allocation37_spill] sm:$0xff] }
 0x1c1   : > { %v1282_v13 = vsel %vm11618_vm10, %v1261_v18, %v11963_v37  ;;  %v2201_v37 = vsel %vm1385_vm15, %v2181_v2, %v7845_v7  ;;  %v8142_v60 = vld [vmem:[%s6136_s10 + $0x6c] ss:$0 sps:$4 sm:$0x77]   ;;  %v1026_v2 = vrot.slane %v11948_v15, 3  ;;  %vm1511_vm1 = vcmask 457728  }
 0x1c2   : > { %1089 = vrot.lane.b32.xlu0 %v1072_v16, %s6063_s24  ;;  %v8088_v55 = vpop.permute.xlu1 %1160  ;;  %v1148_v16 = vrot.slane %v11960_v43, 2  ;;  %v2287_v41 = vsel %vm413_vm0, %v2283_v52, %v8090_v53  ;;  %v11966_v52 = vld [vmem:[#allocation4_spill] sm:$0xff] }
 0x1c3   : > { %v1242_v26 = vsel %vm11616_vm8, %v11966_v52, %v11965_v39 }
 0x1c4   : > { %v8094_v6 = vpop.permute.xlu0 %1001  ;;  %1229 = vrot.lane.b32.xlu1 %v11943_v5, %s6066_s23  ;;  %v8125_v56 = vor.u32 %v1148_v16, %v1145_v32  ;;  %v11969_v32 = vld [vmem:[#allocation42_spill] sm:$0xff] }
 0x1c5   : > { %v1263_v16 = vsel %vm11617_vm9, %v1242_v26, %v11969_v32 }
 0x1c6   : > { %765 = vrot.lane.b32.xlu0 %v748_v61, %s6056_s16  ;;  %v8106_v54 = vpop.permute.xlu1 %1191  ;;  %v11964_v61 = vld [vmem:[#allocation73_spill] sm:$0xff]  ;;  %v1150_v26 = vsel %vm11612_vm4, %v8028_v21, %v8125_v56  ;;  %v11973_v21 = vrot.slane %v11943_v5, 3  ;;  %v11975_v5 = vrot.slane %v11956_v35, 2  ;;  %vm1490_vm4 = vcmask 424960  }
 0x1c7   : > { %v1303_v43 = vsel %vm11949_vm5, %v1282_v13, %v11964_v61  ;;  %v8139_v61 = vld [vmem:[%s6136_s10 + $0x60] ss:$0 sps:$4 sm:$0x77]  }
 0x1c8   : > { %v8117_v1 = vpop.permute.xlu0 %1032  ;;  %2316 = vrot.lane.b32.xlu1 %v2287_v41, %s6067_s25  ;;  %v1324_v18 = vsel %vm1322_vm12, %v1303_v43, %v11967_v40  ;;  %v11968_v41 = vld [vmem:[#allocation54_spill] sm:$0xff]  ;;  %v11970_v40 = vrot.slane %v11941_v12, 3  ;;  %v11971_v43 = vld [vmem:[#allocation55_spill] sm:$0xff] }
 0x1c9   : > { %v1345_v39 = vsel %vm11614_vm13, %v1324_v18, %v7903_v23  ;;  %v1284_v52 = vsel %vm11618_vm10, %v1263_v16, %v11971_v43  ;;  %v2217_v23 = vsel %vm1406_vm6, %v2201_v37, %v7860_v9  ;;  %v1187_v18 = vrot.slane %v11958_v3, 2  ;;  %v11972_v37 = vld [vmem:[#allocation69_spill] sm:$0xff] }
 0x1ca   : > { %838 = vrot.lane.b32.xlu0 %v11968_v41, %s6058_s18  ;;  %v8136_v13 = vpop.permute.xlu1 %1217  ;;  %v863_v7 = vsel %vm11615_vm2, %v11970_v40, %v11611_v33  ;;  %v1366_v41 = vsel %vm1364_vm14, %v1345_v39, %v7917_v57  ;;  %v816_v57 = vshrl.u32 %v8139_v61, 16  ;;  %v991_v16 = vshrl.u32 %v8142_v60, 16  ;;  %v11974_v40 = vld [vmem:[#allocation85_spill] sm:$0xff] }
 0x1cb   : > { %v1387_v12 = vsel %vm1385_vm15, %v1366_v41, %v8002_v62  ;;  %v994_v9 = vshll.u32 %v8142_v60, 16  ;;  %v1305_v62 = vsel %vm11949_vm5, %v1284_v52, %v11972_v37  ;;  %v1027_v39 = vsel %vm11615_vm2, %v11973_v21, %v1026_v2  ;;  %v11977_v21 = vld [vmem:[#allocation3_spill] sm:$0xff] }
 0x1cc   : > { %v8158_v17 = vpop.permute.xlu0 %1079  ;;  %1091 = vrot.lane.b32.xlu1 %v1074_v4, %s6063_s24  ;;  %v819_v4 = vshll.u32 %v8139_v61, 16  ;;  %v8187_v43 = vsel %vm1427_vm3, %v2217_v23, %v7874_v34  ;;  %v1408_v41 = vsel %vm1406_vm6, %v1387_v12, %v7970_v10  ;;  %vm1469_vm5 = vcmask 392192  }
 0x1cd   : > { %v1429_v52 = vsel %vm1427_vm3, %v1408_v41, %v8058_v42  ;;  %v1188_v37 = vsel %vm11619_vm7, %v11975_v5, %v1187_v18  ;;  %v749_v34 = vrot.slane %v8139_v61, 2  ;;  %v8203_v23 = vrot.slane %v816_v57, 2  ;;  %v11999_v61 = vld [vmem:[#allocation36_spill] sm:$0xff] }
 0x1ce   : > { %880 = vrot.lane.b32.xlu0 %v863_v7, %s6057_s17  ;;  %v8170_v32 = vpop.permute.xlu1 %1193  ;;  %v1326_v7 = vsel %vm1322_vm12, %v1305_v62, %v11974_v40  ;;  %v821_v12 = vrot.slane %v819_v4, 3  ;;  %v996_v42 = vrot.slane %v994_v9, 3  ;;  %v11976_v62 = vld [vmem:[#allocation34_spill] sm:$0xff]  ;;  %v2291_v40 = vshll.u32 %v8187_v43, 16 }
 0x1cf   : > { %v1244_v35 = vsel %vm11616_vm8, %v11977_v21, %v11976_v62  ;;  %v1347_v41 = vsel %vm11614_vm13, %v1326_v7, %v7934_v50  ;;  %v1450_v4 = vsel %vm1448_vm11, %v1429_v52, %v8050_v51  ;;  %v8221_v9 = vld [vmem:[%s6136_s10 + $0x70] ss:$0 sps:$4 sm:$0x33]   ;;  %v8224_v62 = vld [vmem:[%s6136_s10 + $0x74] ss:$0 sps:$4 sm:$0x11]  }
 0x1d0   : > { %v1163_v33 = vpop.permute.xlu0 %1162  ;;  %1174 = vrot.lane.b32.xlu1 %v1150_v26, %s6064_s29  ;;  %v8205_v26 = vrot.slane %v991_v16, 2  ;;  %v1368_v57 = vsel %vm1364_vm14, %v1347_v41, %v8025_v31  ;;  %v1471_v50 = vsel %vm1469_vm5, %v1450_v4, %v8072_v45  ;;  %vm11624_vm13 = vcmask 490496  }
 0x1d1   : > { %vm11621_vm2 = vcmask 523264   ;;  %v750_v31 = vsel %vm11619_vm7, %v7998_v38, %v749_v34  ;;  %v1492_v51 = vsel %vm1490_vm4, %v1471_v50, %v8088_v55  ;;  %v822_v52 = vor.u32 %v821_v12, %v8203_v23 }
 0x1d2   : > { %1044 = vrot.lane.b32.xlu0 %v1027_v39, %s6061_s21  ;;  %v8201_v10 = vpop.permute.xlu1 %828  ;;  %v11978_v39 = vld [vmem:[#allocation47_spill] sm:$0xff]  ;;  %v997_v45 = vor.u32 %v996_v42, %v8205_v26  ;;  %v8242_v41 = vrot.slane %v2291_v40, 1  ;;  %v1389_v38 = vsel %vm1385_vm15, %v1368_v57, %v8017_v14  ;;  %v1513_v55 = vsel %vm1511_vm1, %v1492_v51, %v8106_v54 }
 0x1d3   : > { %v1265_v5 = vsel %vm11617_vm9, %v1244_v35, %v11978_v39  ;;  %v2288_v35 = vshrl.u32 %v8056_v47, 16  ;;  %v1410_v39 = vsel %vm1406_vm6, %v1389_v38, %v8081_v11  ;;  %v1534_v12 = vsel %vm11624_vm13, %v1513_v55, %v8136_v13  ;;  %v11979_v13 = vld [vmem:[#allocation63_spill] sm:$0xff]  ;;  %v11982_v38 = vld [vmem:[#allocation78_spill] sm:$0xff] }
 0x1d4   : > { %v756_v16 = vpop.permute.xlu0 %755  ;;  %1205 = vrot.lane.b32.xlu1 %v1188_v37, %s6065_s11  ;;  %v6037_v37 = vld [vmem:[%s6136_s10 + $0x60] sm:$0xf]  ;;  %v1152_v47 = vshrl.u32 %v8221_v9, 16  ;;  %v1155_v42 = vshll.u32 %v8221_v9, 16  ;;  %v2063_v14 = vsel %vm11616_vm8, %v8224_v62, %v7882_v49  ;;  %v1431_v11 = vsel %vm1427_vm3, %v1410_v39, %v8094_v6 }
 0x1d5   : > { %v5587_v21 = vcombine.low %v6037_v37, %v6037_v37  ;;  %v2290_v40 = vor.u32 %v2288_v35, %v8090_v53  ;;  %v1286_v57 = vsel %vm11618_vm10, %v1265_v5, %v11979_v13  ;;  %v2083_v50 = vsel %vm11617_vm9, %v2063_v14, %v7896_v30  ;;  %v11980_v35 = vld [vmem:[#allocation50_spill] sm:$0xff] }
 0x1d6   : > { %721 = vrot.lane.b32.xlu0 %v11944_v22, %s6055_s15  ;;  %v8236_v7 = vpop.permute.xlu1 %870  ;;  %v1452_v51 = vsel %vm1448_vm11, %v1431_v11, %v8117_v1  ;;  %v2103_v49 = vsel %vm11618_vm10, %v2083_v50, %v7911_v28  ;;  %vm11981_vm8 = vsmask.f32 5376  ;;  %vm11983_vm9 = vcmask 130048   ;;  %v11984_v28 = vld [vmem:[#allocation80_spill] sm:$0xff] }
 0x1d7   : > { %v8270_v37 = vrot.slane %v5587_v21, 3  ;;  %v1473_v6 = vsel %vm1469_vm5, %v1452_v51, %v8158_v17  ;;  %v823_v5 = vsel %vm11981_vm8, %v11980_v35, %v822_v52  ;;  %v2294_v30 = vsel %vm413_vm0, %v2290_v40, %v8242_v41  ;;  %vm11985_vm10 = vmmov %vm11981_vm8 }
 0x1d8   : > { %v2305_v4 = vpop.permute.xlu0 %2304  ;;  %1231 = vrot.lane.b32.xlu1 %v11948_v15, %s6066_s23  ;;  %v1307_v1 = vsel %vm11983_vm9, %v1286_v57, %v11982_v38  ;;  %v998_v39 = vsel %vm11985_vm10, %v11984_v28, %v997_v45  ;;  %v1075_v17 = vrot.slane %v8221_v9, 1  ;;  %v1157_v52 = vrot.slane %v1155_v42, 2  ;;  %vm11987_vm8 = vmmov %vm11983_vm9  ;;  %v12009_v9 = vld [vmem:[#allocation49_spill] sm:$0xff] }
 0x1d9   : > { %v2326_v54 = vsel %vm11621_vm2, %v1534_v12, %v2305_v4  ;;  %v8287_v12 = vrot.slane %v1152_v47, 1  ;;  %v11986_v4 = vld [vmem:[#allocation90_spill] sm:$0xff]  ;;  %v2123_v14 = vsel %vm11987_vm8, %v2103_v49, %v7890_v58  ;;  %v11988_v11 = vrot.slane %v11944_v22, 3  ;;  %v6038_v58 = vld [vmem:[%s6136_s10 + $0x6c] sm:$0xf] }
 0x1da   : > { %767 = vrot.lane.b32.xlu0 %v750_v31, %s6056_s16  ;;  %v922_v53 = vpop.permute.xlu1 %921  ;;  %v1494_v31 = vsel %vm1490_vm4, %v1473_v6, %v1163_v33  ;;  %v2368_v55 = vshll.u32 %v2326_v54, 16  ;;  %v1328_v40 = vsel %vm1322_vm12, %v1307_v1, %v11986_v4  ;;  %vm11989_vm9 = vcmask 1044480  }
 0x1db   : > { %v865_v13 = vsel %vm11989_vm9, %v11988_v11, %v8270_v37  ;;  %v915_v45 = vrot.slane %v8142_v60, 2  ;;  %v2143_v47 = vsel %vm1322_vm12, %v2123_v14, %v7926_v27  ;;  %vm11990_vm10 = vcmask 195584  }
 0x1dc   : > { %v1220_v21 = vpop.permute.xlu0 %1219  ;;  %2318 = vrot.lane.b32.xlu1 %v2294_v30, %s6067_s25  ;;  %v1349_v42 = vsel %vm11990_vm10, %v1328_v40, %v756_v16  ;;  %v1515_v57 = vsel %vm1511_vm1, %v1494_v31, %v8170_v32  ;;  %v5593_v50 = vcombine.low %v6038_v58, %v6038_v58  ;;  %vm11991_vm8 = vmmov %vm11990_vm10  ;;  %v2370_v49 = vrot.slane %v2368_v55, 1  ;;  %v11994_v55 = vld [vmem:[#allocation77_spill] sm:$0xff]  ;;  %v5983_v58 = vld [vmem:[%s6136_s10 + $0x60] ss:$0 sps:$4 sm:$0x11]  }
 0x1dd   : > { %v2163_v51 = vsel %vm11991_vm8, %v2143_v47, %v7945_v36  ;;  %v1536_v22 = vsel %vm11624_vm13, %v1515_v57, %v1220_v21  ;;  %v11992_v32 = vrot.slane %v11958_v3, 1  ;;  %vm11993_vm9 = vcmask 1046528   ;;  %v8319_v36 = vld [vmem:[%s6136_s10 + $0x70] ss:$0 sps:$4 sm:$0x77]  }
 0x1de   : > { %840 = vrot.lane.b32.xlu0 %v823_v5, %s6058_s18  ;;  %v1035_v33 = vpop.permute.xlu1 %1034  ;;  %v2183_v35 = vsel %vm1364_vm14, %v2163_v51, %v7960_v63  ;;  %v1158_v5 = vor.u32 %v1157_v52, %v8287_v12  ;;  %v1370_v30 = vsel %vm1364_vm14, %v1349_v42, %v8201_v10  ;;  %v2366_v38 = vshrl.u32 %v2326_v54, 16 }
 0x1df   : > { %v1076_v16 = vsel %vm11993_vm9, %v11992_v32, %v1075_v17  ;;  %v1391_v31 = vsel %vm1385_vm15, %v1370_v30, %v8236_v7  ;;  %v916_v21 = vsel %vm11619_vm7, %v11994_v55, %v915_v45  ;;  %vm11620_vm10 = vcmask 883712  }
 0x1e0   : > { %v2307_v6 = vpop.permute.xlu0 %2306  ;;  %1015 = vrot.lane.b32.xlu1 %v998_v39, %s6059_s19  ;;  %v8330_v28 = vrot.slane %v5593_v50, 3  ;;  %v2203_v39 = vsel %vm1385_vm15, %v2183_v35, %v7954_v29  ;;  %v2371_v10 = vor.u32 %v2370_v49, %v2366_v38  ;;  %v1412_v54 = vsel %vm1406_vm6, %v1391_v31, %v922_v53  ;;  %v12001_v31 = vld [vmem:[#allocation44_spill] sm:$0xff] }
 0x1e1   : > { %v2328_v27 = vsel %vm11621_vm2, %v1536_v22, %v2307_v6  ;;  %v2219_v7 = vsel %vm1406_vm6, %v2203_v39, %v8039_v0  ;;  %vm11995_vm8 = vsmask.f32 6400  ;;  %v1189_v11 = vrot.slane %v8319_v36, 2 }
 0x1e2   : > { %v2372_v1 = vshll.u32 %v2328_v27, 16  ;;  %882 = vrot.lane.b32.xlu0 %v865_v13, %s6057_s17  ;;  %v1165_v63 = vpop.permute.xlu1 %1164  ;;  %v1159_v14 = vsel %vm11995_vm8, %v8125_v56, %v1158_v5  ;;  %vm11996_vm9 = vcmask 1044480   ;;  %v8351_v13 = vsel %vm1427_vm3, %v2219_v7, %v8037_v24 }
 0x1e3   : > { %v1029_v0 = vsel %vm11996_vm9, %v1026_v2, %v8330_v28  ;;  %v11997_v42 = vmov 0.0   ;;  %vm11998_vm8 = vmmov 0   ;;  %v1190_v15 = vsel %vm11619_vm7, %v1187_v18, %v1189_v11 }
 0x1e4   : > { %v2374_v52 = vrot.slane %v2372_v1, 1  ;;  %v1004_v4 = vpop.permute.xlu0 %1003  ;;  %1093 = vrot.lane.b32.xlu1 %v1076_v16, %s6063_s24  ;;  %v2295_v18 = vshrl.u32 %v8187_v43, 16  ;;  %v2376_v35 = vshrl.u32 %v2328_v27, 16  ;;  %vm12000_vm9 = vcmask 31744  }
 0x1e5   : > { %v1433_v40 = vsel %vm1427_vm3, %v1412_v54, %v1004_v4  ;;  %vm12002_vm7 = vcmask 64512   ;;  %v12007_v54 = vld [vmem:[#allocation87_spill] sm:$0xff]  ;;  %v2302_v60 = vshrl.u32 %v8351_v13, 16 }
 0x1e6   : > { %933 = vrot.lane.b32.xlu0 %v916_v21, %s6060_s20  ;;  %v2375_v29 = vsel %vm413_vm0, %v2371_v10, %v2374_v52  ;;  %v1196_v53 = vpop.permute.xlu1 %1195  ;;  %v1454_v56 = vsel %vm1448_vm11, %v1433_v40, %v1035_v33  ;;  %v2298_v33 = vshll.u32 %v8351_v13, 16  ;;  %v2297_v5 = vor.u32 %v2295_v18, %v8242_v41  ;;  %v2629_v13 = vld [vmem:[%s11493_s7 + $0x8] sm:$0xff] }
 0x1e7   : > { %5806 = vmatmul.mubr.msk.bf16.vlgmr.msra.gmra.mxu0 %vm11620_vm10, %v2375_v29  ;;  %v2378_v36 = vor.u32 %v2376_v35, %v2374_v52 }
 0x1e8   : > { %v1082_v47 = vpop.permute.xlu0 %1081  ;;  %1176 = vrot.lane.b32.xlu1 %v1159_v14, %s6064_s29  ;;  %5809 = vmatprep.mubr.msk.bf16.mxu0 %vm11998_vm8, %v11997_v42  ;;  %v2300_v22 = vrot.slane %v2298_v33, 1  ;;  %v12011_v14 = vld [vmem:[#allocation66_spill] sm:$0xff] }
 0x1e9   : > { %v1475_v57 = vsel %vm1469_vm5, %v1454_v56, %v1082_v47  ;;  %v12015_v56 = vld [vmem:[#allocation92_spill] sm:$0xff] }
 0x1ea   : > { %v1496_v2 = vsel %vm1490_vm4, %v1475_v57, %v1165_v63  ;;  %1046 = vrot.lane.b32.xlu0 %v1029_v0, %s6061_s21  ;;  %v1222_v24 = vpop.permute.xlu1 %1221  ;;  %v2301_v38 = vsel %vm413_vm0, %v2297_v5, %v2300_v22  ;;  %v12013_v0 = vld [vmem:[#allocation82_spill] sm:$0xff]  ;;  %v2628_v22 = vld [vmem:[%s11493_s7] sm:$0xff] }
 0x1eb   : > { %v1517_v50 = vsel %vm1511_vm1, %v1496_v2, %v1196_v53 }
 0x1ec   : > { %v758_v51 = vpop.permute.xlu0 %757  ;;  %1207 = vrot.lane.b32.xlu1 %v1190_v15, %s6065_s11  ;;  %v1538_v49 = vsel %vm11624_vm13, %v1517_v50, %v1222_v24 }
 0x1ee   : > { %723 = vrot.lane.b32.xlu0 %v5983_v58, %s6055_s15  ;;  %v2309_v3 = vpop.permute.xlu1 %2308  ;;  %s6073_s15 = smov 96  }
 0x1ef   : > { %v8371_v6 = vsel %vm11621_vm2, %v1538_v49, %v2309_v3 }
 0x1f0   : > { %v2379_v32 = vshll.u32 %v8371_v6, 16  ;;  %v831_v16 = vpop.permute.xlu0 %830  ;;  %1233 = vrot.lane.b32.xlu1 %v11957_v25, %s6066_s23 }
 0x1f2   : > { %v8377_v30 = vrot.slane %v2379_v32, 1  ;;  %769 = vrot.lane.b32.xlu0 %v749_v34, %s6056_s16  ;;  %v1006_v43 = vpop.permute.xlu1 %1005  ;;  %v1246_v34 = vsel %vm12000_vm9, %v6163_v8, %v11999_v61  ;;  %v12005_v8 = vld [vmem:[#allocation72_spill] sm:$0xff]  ;;  %vm12006_vm9 = vcmask 130048  }
 0x1f3   : > { %v1267_v55 = vsel %vm12002_vm7, %v1246_v34, %v12001_v31  ;;  %vm12008_vm7 = vcmask 195584   ;;  %v2633_v31 = vld [vmem:[%s11493_s7 + $0x28] sm:$0xff] }
 0x1f4   : > { %v873_v1 = vpop.permute.xlu0 %872  ;;  %2320 = vrot.lane.b32.xlu1 %v2301_v38, %s6067_s25  ;;  %v2382_v27 = vsel %vm413_vm0, %v2378_v36, %v8377_v30  ;;  %v2631_v38 = vld [vmem:[%s11493_s7 + $0x18] sm:$0xff] }
 0x1f5   : > { %5810 = vmatmul.mubr.msk.bf16.gmra.mxu0 %vm11620_vm10, %v2382_v27  ;;  %vm12004_vm10 = vcmask 97280  }
 0x1f6   : > { %842 = vrot.lane.b32.xlu0 %v8203_v23, %s6058_s18  ;;  %v1084_v25 = vpop.permute.xlu1 %1083  ;;  %5813 = vmatprep.mubr.msk.bf16.mxu0 %vm11998_vm8, %v11997_v42  ;;  %v12003_v23 = vld [vmem:[#allocation58_spill] sm:$0xff]  ;;  %s6076_s18 = smov 120  }
 0x1f7   : > { %v1288_v21 = vsel %vm12004_vm10, %v1267_v55, %v12003_v23  ;;  %vm12010_vm10 = vcmask 64512   ;;  %v2636_v23 = vld [vmem:[%s11493_s7 + $0x40] sm:$0xff] }
 0x1f8   : > { %v924_v41 = vpop.permute.xlu0 %923  ;;  %1017 = vrot.lane.b32.xlu1 %v8205_v26, %s6059_s19  ;;  %v1309_v10 = vsel %vm12006_vm9, %v1288_v21, %v12005_v8  ;;  %vm12012_vm9 = vcmask 97280  }
 0x1f9   : > { %v1330_v26 = vsel %vm1322_vm12, %v1309_v10, %v12007_v54  ;;  %v2635_v10 = vld [vmem:[%s11493_s7 + $0x38] sm:$0xff] }
 0x1fa   : > { %884 = vrot.lane.b32.xlu0 %v8270_v37, %s6057_s17  ;;  %v760_v63 = vpop.permute.xlu1 %759  ;;  %v1351_v52 = vsel %vm12008_vm7, %v1330_v26, %v758_v51  ;;  %vm12014_vm7 = vcmask 130048   ;;  %v2630_v51 = vld [vmem:[%s11493_s7 + $0x10] sm:$0xff] }
 0x1fb   : > { %v1372_v4 = vsel %vm1364_vm14, %v1351_v52, %v831_v16  ;;  %v2638_v52 = vld [vmem:[%s11493_s7 + $0x50] sm:$0xff] }
 0x1fc   : > { %v1037_v39 = vpop.permute.xlu0 %1036  ;;  %1095 = vrot.lane.b32.xlu1 %v1075_v17, %s6063_s24  ;;  %v1269_v17 = vsel %vm12010_vm10, %v7468_v48, %v12009_v9  ;;  %v1393_v40 = vsel %vm1385_vm15, %v1372_v4, %v873_v1  ;;  %vm12016_vm10 = vcmask 195584  }
 0x1fd   : > { %v1290_v29 = vsel %vm12012_vm9, %v1269_v17, %v12011_v14  ;;  %vm12017_vm9 = vcmask 883712   ;;  %v12018_v17 = vld [vmem:[#allocation46_spill] sm:$0xff] }
 0x1fe   : > { %935 = vrot.lane.b32.xlu0 %v915_v45, %s6060_s20  ;;  %v833_v37 = vpop.permute.xlu1 %832  ;;  %v1414_v45 = vsel %vm1406_vm6, %v1393_v40, %v924_v41  ;;  %v12019_v40 = vld [vmem:[#allocation109_spill] sm:$0xff] }
 0x1ff   : > { %v1435_v15 = vsel %vm1427_vm3, %v1414_v45, %v1006_v43 }
 0x200   : > { %v1167_v7 = vpop.permute.xlu0 %1166  ;;  %1209 = vrot.lane.b32.xlu1 %v1189_v11, %s6065_s11  ;;  %v1311_v11 = vsel %vm12014_vm7, %v1290_v29, %v12013_v0  ;;  %vm12020_vm7 = vcmask 64512   ;;  %v2637_v29 = vld [vmem:[%s11493_s7 + $0x48] sm:$0xff] }
 0x201   : > { %v1332_v47 = vsel %vm1322_vm12, %v1311_v11, %v12015_v56  ;;  %v1271_v14 = vsel %vm12020_vm7, %v12019_v40, %v12018_v17  ;;  %v12023_v11 = vld [vmem:[#allocation76_spill] sm:$0xff]  ;;  %vm12027_vm7 = vcmask 195584  }
 0x202   : > { %1048 = vrot.lane.b32.xlu0 %v8330_v28, %s6061_s21  ;;  %v875_v53 = vpop.permute.xlu1 %874  ;;  %v1353_v57 = vsel %vm12016_vm10, %v1332_v47, %v760_v63  ;;  %v1456_v28 = vsel %vm1448_vm11, %v1435_v15, %v1037_v39  ;;  %vm12022_vm10 = vcmask 97280   ;;  %v2640_v47 = vld [vmem:[%s11493_s7 + $0x60] sm:$0xff] }
 0x203   : > { %v1374_v2 = vsel %vm1364_vm14, %v1353_v57, %v833_v37  ;;  %v1477_v50 = vsel %vm1469_vm5, %v1456_v28, %v1084_v25  ;;  %v2639_v28 = vld [vmem:[%s11493_s7 + $0x58] sm:$0xff] }
 0x204   : > { %v1198_v48 = vpop.permute.xlu0 %1197  ;;  %2322 = vrot.lane.b32.xlu1 %v2302_v60, %s6067_s25  ;;  %v1395_v58 = vsel %vm1385_vm15, %v1374_v2, %v875_v53  ;;  %v1498_v49 = vsel %vm1490_vm4, %v1477_v50, %v1167_v7  ;;  %v12021_v60 = vld [vmem:[#allocation62_spill] sm:$0xff] }
 0x205   : > { %v1416_v3 = vsel %vm1406_vm6, %v1395_v58, %v7276_v44  ;;  %v1519_v18 = vsel %vm1511_vm1, %v1498_v49, %v1198_v48  ;;  %v2632_v44 = vld [vmem:[%s11493_s7 + $0x20] sm:$0xff]  ;;  %v1292_v45 = vsel %vm12022_vm10, %v1271_v14, %v12021_v60  ;;  %v12026_v48 = vld [vmem:[#allocation89_spill] sm:$0xff] }
 0x206   : > { %1178 = vrot.lane.b32.xlu0 %v8287_v12, %s6064_s29  ;;  %v1039_v24 = vpop.permute.xlu1 %1038  ;;  %v1437_v16 = vsel %vm1427_vm3, %v1416_v3, %v7298_v20  ;;  %v12028_v49 = vld [vmem:[#allocation100_spill] sm:$0xff]  ;;  %s6070_s29 = smov 72  }
 0x207   : > { %v1458_v27 = vsel %vm1448_vm11, %v1437_v16, %v1039_v24  ;;  %v12032_v16 = vld [vmem:[#allocation68_spill] sm:$0xff] }
 0x208   : > { %v1224_v33 = vpop.permute.xlu0 %1223  ;;  %2653 = vperm.xlu1 %5918, %v2629_v13  }
 0x209   : > { %v1540_v35 = vsel %vm11624_vm13, %v1519_v18, %v1224_v33  ;;  %v2642_v33 = vld [vmem:[%s11493_s7 + $0x70] sm:$0xff] }
 0x20a   : > { %1235 = vrot.lane.b32.xlu0 %v8224_v62, %s6066_s23  ;;  %v1169_v12 = vpop.permute.xlu1 %1168  ;;  %v2383_v62 = vshrl.u32 %v8371_v6, 16  ;;  %v2634_v6 = vld [vmem:[%s11493_s7 + $0x30] sm:$0xff] }
 0x20b   : > { %v12029_v18 = vld [vmem:[#allocation53_spill] sm:$0xff] }
 0x20c   : > { %v2311_v32 = vpop.permute.xlu0 %2310  ;;  %2658 = vperm.xlu1 %5918, %v2630_v51   ;;  %v2385_v1 = vor.u32 %v2383_v62, %v8377_v30  ;;  %v2641_v51 = vld [vmem:[%s11493_s7 + $0x68] sm:$0xff] }
 0x20d   : > { %v2332_v5 = vsel %vm11621_vm2, %v1540_v35, %v2311_v32  ;;  %v2644_v32 = vld [vmem:[%s11493_s7 + $0x80] sm:$0xff] }
 0x20e   : > { %v2386_v36 = vshll.u32 %v2332_v5, 16  ;;  %v1200_v43 = vpop.permute.xlu1 %1199  ;;  %2648 = vperm.xlu0 %5917, %v2628_v22   ;;  %v2390_v54 = vshrl.u32 %v2332_v5, 16  ;;  %v12030_v22 = vld [vmem:[#allocation17_spill] sm:$0xff]  ;;  %v12033_v62 = vld [vmem:[#allocation84_spill] sm:$0xff] }
 0x210   : > { %v2388_v20 = vrot.slane %v2386_v36, 1  ;;  %v1086_v25 = vpop.permute.xlu0 %1085  ;;  %2668 = vperm.xlu1 %5918, %v2632_v44  }
 0x211   : > { %v1479_v61 = vsel %vm1469_vm5, %v1458_v27, %v1086_v25  ;;  %v12035_v27 = vld [vmem:[#allocation93_spill] sm:$0xff] }
 0x212   : > { %v1500_v34 = vsel %vm1490_vm4, %v1479_v61, %v1169_v12  ;;  %v2389_v41 = vsel %vm413_vm0, %v2385_v1, %v2388_v20  ;;  %v1226_v63 = vpop.permute.xlu1 %1225  ;;  %2663 = vperm.xlu0 %5917, %v2631_v38   ;;  %v2392_v4 = vor.u32 %v2390_v54, %v2388_v20  ;;  %v2643_v1 = vld [vmem:[%s11493_s7 + $0x78] sm:$0xff] }
 0x213   : > { %5814 = vmatmul.mubr.msk.bf16.gmra.mxu0 %vm12017_vm9, %v2389_v41  ;;  %v1521_v30 = vsel %vm1511_vm1, %v1500_v34, %v1200_v43  ;;  %vm12024_vm9 = vcmask 130048   ;;  %v12034_v43 = vld [vmem:[#allocation98_spill] sm:$0xff] }
 0x214   : > { %v762_v55 = vpop.permute.xlu0 %761  ;;  %5817 = vmatprep.mubr.msk.bf16.mxu0 %vm11998_vm8, %v11997_v42  ;;  %2678 = vperm.xlu1 %5918, %v2634_v6   ;;  %v1542_v21 = vsel %vm11624_vm13, %v1521_v30, %v1226_v63  ;;  %v1313_v56 = vsel %vm12024_vm9, %v1292_v45, %v12023_v11  ;;  %v2645_v30 = vld [vmem:[%s11493_s7 + $0x88] sm:$0xff] }
 0x215   : > { %v1334_v57 = vsel %vm1322_vm12, %v1313_v56, %v12026_v48 }
 0x216   : > { %v2313_v39 = vpop.permute.xlu1 %2312  ;;  %2673 = vperm.xlu0 %5917, %v2633_v31   ;;  %v1355_v13 = vsel %vm12027_vm7, %v1334_v57, %v762_v55  ;;  %v12036_v31 = vmov 0  }
 0x217   : > { %v8484_v8 = vsel %vm11621_vm2, %v1542_v21, %v2313_v39  ;;  %vm12025_vm2 = vcmask 883712   ;;  %v12037_v39 = vld [vmem:[#allocation101_spill] sm:$0xff] }
 0x218   : > { %v2393_v26 = vshll.u32 %v8484_v8, 16  ;;  %v835_v37 = vpop.permute.xlu0 %834  ;;  %2688 = vperm.xlu1 %5918, %v2636_v23   ;;  %v2397_v14 = vshrl.u32 %v8484_v8, 16 }
 0x219   : > { %v1376_v2 = vsel %vm1364_vm14, %v1355_v13, %v835_v37  ;;  %v12041_v13 = vld [vmem:[#allocation48_spill] sm:$0xff] }
 0x21a   : > { %v8493_v7 = vrot.slane %v2393_v26, 1  ;;  %v1088_v9 = vpop.permute.xlu1 %1087  ;;  %2683 = vperm.xlu0 %5917, %v2635_v10  }
 0x21c   : > { %v877_v53 = vpop.permute.xlu0 %876  ;;  %v2396_v0 = vsel %vm413_vm0, %v2392_v4, %v8493_v7  ;;  %2698 = vperm.xlu1 %5918, %v2638_v52   ;;  %v12038_v4 = vld [vmem:[#allocation104_spill] sm:$0xff]  ;;  %v2399_v60 = vor.u32 %v2397_v14, %v8493_v7  ;;  %v12057_v14 = vld [vmem:[#allocation70_spill] sm:$0xff] }
 0x21d   : > { %5818 = vmatmul.mubr.msk.bf16.gmra.mxu0 %vm12025_vm2, %v2396_v0  ;;  %v1397_v58 = vsel %vm1385_vm15, %v1376_v2, %v877_v53  ;;  %vm12031_vm2 = vcmask 64512  }
 0x21e   : > { %v764_v15 = vpop.permute.xlu1 %763  ;;  %5821 = vmatprep.mubr.msk.bf16.mxu0 %vm11998_vm8, %v11997_v42  ;;  %2693 = vperm.xlu0 %5917, %v2637_v29   ;;  %v1418_v3 = vsel %vm1406_vm6, %v1397_v58, %v12028_v49  ;;  %v1273_v35 = vsel %vm12031_vm2, %v12030_v22, %v12029_v18  ;;  %vm11623_vm2 = vcmask 60418   ;;  %v12045_v58 = vld [vmem:[#allocation64_spill] sm:$0xff]  ;;  %v12049_v18 = vld [vmem:[#allocation91_spill] sm:$0xff] }
 0x21f   : > { %v1294_v5 = vsel %vm12022_vm10, %v1273_v35, %v12032_v16  ;;  %v1439_v38 = vsel %vm1427_vm3, %v1418_v3, %v12034_v43  ;;  %2768 = vst.msk [vmem:[#allocation2 + $0x70] sm:$0xc] %vm11623_vm2, %v12036_v31  ;;  %vm12039_vm10 = vcmask 523264   ;;  %vm12046_vm2 = vcmask 97280   ;;  %v12047_v3 = vld [vmem:[#allocation79_spill] sm:$0xff] }
 0x220   : > { %v1041_v24 = vpop.permute.xlu0 %1040  ;;  %2708 = vperm.xlu1 %5918, %v2640_v47   ;;  %v1315_v36 = vsel %vm12024_vm9, %v1294_v5, %v12033_v62  ;;  %vm11622_vm9 = vcmask 58368  }
 0x221   : > { %v1336_v20 = vsel %vm1322_vm12, %v1315_v36, %v12035_v27  ;;  %v1460_v6 = vsel %vm1448_vm11, %v1439_v38, %v1041_v24  ;;  %2766 = vst.msk [vmem:[#allocation2 + $0x28] sm:$0x3] %vm11622_vm9, %v12036_v31  ;;  %vm12044_vm9 = vcmask 523264  }
 0x222   : > { %v837_v50 = vpop.permute.xlu1 %836  ;;  %2703 = vperm.xlu0 %5917, %v2639_v28   ;;  %v1357_v61 = vsel %vm12027_vm7, %v1336_v20, %v764_v15  ;;  %v1481_v23 = vsel %vm1469_vm5, %v1460_v6, %v1088_v9  ;;  %vm12040_vm7 = vcmask 883712   ;;  %v12042_v28 = vld [vmem:[#allocation27_spill] sm:$0xff] }
 0x223   : > { %v1378_v34 = vsel %vm1364_vm14, %v1357_v61, %v837_v50 }
 0x224   : > { %v1171_v12 = vpop.permute.xlu0 %1170  ;;  %2718 = vperm.xlu1 %5918, %v2642_v33  }
 0x225   : > { %v1502_v21 = vsel %vm1490_vm4, %v1481_v23, %v1171_v12 }
 0x226   : > { %v879_v44 = vpop.permute.xlu1 %878  ;;  %2713 = vperm.xlu0 %5917, %v2641_v51  }
 0x227   : > { %v1399_v63 = vsel %vm1385_vm15, %v1378_v34, %v879_v44 }
 0x228   : > { %v1202_v25 = vpop.permute.xlu0 %1201  ;;  %2728 = vperm.xlu1 %5918, %v2644_v32   ;;  %v1420_v10 = vsel %vm1406_vm6, %v1399_v63, %v12037_v39 }
 0x229   : > { %v1523_v26 = vsel %vm1511_vm1, %v1502_v21, %v1202_v25  ;;  %v1441_v17 = vsel %vm1427_vm3, %v1420_v10, %v12038_v4 }
 0x22a   : > { %v1043_v41 = vpop.permute.xlu1 %1042  ;;  %2723 = vperm.xlu0 %5917, %v2643_v1  }
 0x22b   : > { %v1462_v45 = vsel %vm1448_vm11, %v1441_v17, %v1043_v41 }
 0x22c   : > { %v1228_v55 = vpop.permute.xlu0 %1227 }
 0x22d   : > { %v1544_v37 = vsel %vm11624_vm13, %v1523_v26, %v1228_v55 }
 0x22e   : > { %v1173_v54 = vpop.permute.xlu1 %1172  ;;  %2733 = vperm.xlu0 %5917, %v2645_v30  }
 0x230   : > { %v2315_v52 = vpop.permute.xlu0 %2314 }
 0x231   : > { %v2336_v40 = vsel %vm12039_vm10, %v1544_v37, %v2315_v52  ;;  %vm12043_vm10 = vcmask 64512   ;;  %v12055_v37 = vld [vmem:[#allocation56_spill] sm:$0xff] }
 0x232   : > { %v2400_v9 = vshll.u32 %v2336_v40, 16  ;;  %v1204_v29 = vpop.permute.xlu1 %1203  ;;  %v1275_v2 = vsel %vm12043_vm10, %v12042_v28, %v12041_v13  ;;  %v2404_v50 = vshrl.u32 %v2336_v40, 16  ;;  %vm12054_vm10 = vcmask 31744  }
 0x233   : > { %v1296_v33 = vsel %vm12046_vm2, %v1275_v2, %v12045_v58  ;;  %vm12051_vm2 = vcmask 883712  }
 0x234   : > { %v2402_v53 = vrot.slane %v2400_v9, 1  ;;  %v1090_v0 = vpop.permute.xlu0 %1089 }
 0x235   : > { %v1483_v11 = vsel %vm1469_vm5, %v1462_v45, %v1090_v0 }
 0x236   : > { %v1504_v56 = vsel %vm1490_vm4, %v1483_v11, %v1173_v54  ;;  %v2403_v47 = vsel %vm413_vm0, %v2399_v60, %v2402_v53  ;;  %v1230_v48 = vpop.permute.xlu1 %1229  ;;  %v2406_v35 = vor.u32 %v2404_v50, %v2402_v53  ;;  %v12053_v54 = vld [vmem:[#allocation43_spill] sm:$0xff] }
 0x237   : > { %5822 = vmatmul.mubr.msk.bf16.gmra.mxu0 %vm12040_vm7, %v2403_v47  ;;  %v1525_v8 = vsel %vm1511_vm1, %v1504_v56, %v1204_v29  ;;  %vm12048_vm7 = vcmask 130048   ;;  %v1256_v26 = vsel %vm12054_vm10, %v11924_v19, %v12053_v54  ;;  %v12059_v29 = vld [vmem:[#allocation86_spill] sm:$0xff]  ;;  %vm12062_vm10 = vcmask 195584  }
 0x238   : > { %v766_v57 = vpop.permute.xlu0 %765  ;;  %5825 = vmatprep.mubr.msk.bf16.mxu0 %vm11998_vm8, %v11997_v42  ;;  %v1546_v7 = vsel %vm11624_vm13, %v1525_v8, %v1230_v48  ;;  %v1317_v12 = vsel %vm12048_vm7, %v1296_v33, %v12047_v3  ;;  %vm12050_vm13 = vcmask 195584   ;;  %vm12056_vm7 = vcmask 64512  }
 0x239   : > { %v1338_v22 = vsel %vm1322_vm12, %v1317_v12, %v12049_v18  ;;  %v1277_v52 = vsel %vm12056_vm7, %v1256_v26, %v12055_v37  ;;  %vm12063_vm7 = vcmask 490496  }
 0x23a   : > { %v2317_v15 = vpop.permute.xlu1 %2316  ;;  %v1359_v5 = vsel %vm12050_vm13, %v1338_v22, %v766_v57  ;;  %vm12052_vm13 = vcmask 490496  }
 0x23b   : > { %v2338_v24 = vsel %vm12044_vm9, %v1546_v7, %v2317_v15 }
 0x23c   : > { %v2407_v51 = vshll.u32 %v2338_v24, 16  ;;  %v839_v49 = vpop.permute.xlu0 %838  ;;  %v2411_v39 = vshrl.u32 %v2338_v24, 16 }
 0x23d   : > { %v1380_v44 = vsel %vm1364_vm14, %v1359_v5, %v839_v49 }
 0x23e   : > { %v2409_v32 = vrot.slane %v2407_v51, 1  ;;  %v1092_v16 = vpop.permute.xlu1 %1091 }
 0x240   : > { %v881_v62 = vpop.permute.xlu0 %880  ;;  %v2410_v36 = vsel %vm413_vm0, %v2406_v35, %v2409_v32  ;;  %v2413_v4 = vor.u32 %v2411_v39, %v2409_v32  ;;  %v6039_v32 = vld [vmem:[%s6136_s10 + $0x5c] ss:$0 sps:$4 sm:$0x11]  }
 0x241   : > { %v1401_v43 = vsel %vm1385_vm15, %v1380_v44, %v881_v62  ;;  %5826 = vmatmul.mubr.msk.bf16.gmra.mxu0 %vm12051_vm2, %v2410_v36  ;;  %vm12058_vm2 = vcmask 97280   ;;  %v12067_v44 = vld [vmem:[#allocation51_spill] sm:$0xff] }
 0x242   : > { %v1422_v38 = vsel %vm1406_vm6, %v1401_v43, %v7438_v46  ;;  %v1175_v1 = vpop.permute.xlu1 %1174  ;;  %5829 = vmatprep.mubr.msk.bf16.mxu0 %vm11998_vm8, %v11997_v42  ;;  %v1298_v9 = vsel %vm12058_vm2, %v1277_v52, %v12057_v14  ;;  %vm12064_vm2 = vcmask 523264  }
 0x243   : > { %v1443_v27 = vsel %vm1427_vm3, %v1422_v38, %v7472_v59  ;;  %v12069_v38 = vld [vmem:[#allocation67_spill] sm:$0xff] }
 0x244   : > { %v1045_v20 = vpop.permute.xlu0 %1044 }
 0x245   : > { %v1464_v25 = vsel %vm1448_vm11, %v1443_v27, %v1045_v20  ;;  %v12071_v20 = vld [vmem:[#allocation83_spill] sm:$0xff] }
 0x246   : > { %v1206_v61 = vpop.permute.xlu1 %1205  ;;  %v1485_v6 = vsel %vm1469_vm5, %v1464_v25, %v1092_v16  ;;  %v12065_v16 = vld [vmem:[#allocation32_spill] sm:$0xff] }
 0x247   : > { %v1506_v41 = vsel %vm1490_vm4, %v1485_v6, %v1175_v1 }
 0x248   : > { %v722_v34 = vpop.permute.xlu0 %721  ;;  %v1527_v46 = vsel %vm1511_vm1, %v1506_v41, %v1206_v61 }
 0x24a   : > { %v1232_v63 = vpop.permute.xlu1 %1231 }
 0x24b   : > { %v1548_v55 = vsel %vm12052_vm13, %v1527_v46, %v1232_v63  ;;  %vm12060_vm13 = vcmask 130048  }
 0x24c   : > { %v768_v30 = vpop.permute.xlu0 %767  ;;  %v1319_v60 = vsel %vm12060_vm13, %v1298_v9, %v12059_v29  ;;  %vm12066_vm13 = vcmask 31744  }
 0x24d   : > { %v1340_v0 = vsel %vm1322_vm12, %v1319_v60, %v722_v34  ;;  %v1258_v5 = vsel %vm12066_vm13, %v6039_v32, %v12065_v16  ;;  %vm12074_vm13 = vcmask 195584  }
 0x24e   : > { %v2319_v23 = vpop.permute.xlu1 %2318  ;;  %v1361_v19 = vsel %vm12062_vm10, %v1340_v0, %v768_v30  ;;  %vm12070_vm10 = vcmask 97280   ;;  %v8661_v0 = vld [vmem:[%s11488_s2] ss:$0 sm:$0xff] }
 0x24f   : > { %v2340_v21 = vsel %vm12044_vm9, %v1548_v55, %v2319_v23  ;;  %vm12061_vm9 = vcmask 883712  }
 0x250   : > { %v2414_v59 = vshll.u32 %v2340_v21, 16  ;;  %v841_v10 = vpop.permute.xlu0 %840  ;;  %v2418_v18 = vshrl.u32 %v2340_v21, 16 }
 0x251   : > { %v1382_v56 = vsel %vm1364_vm14, %v1361_v19, %v841_v10 }
 0x252   : > { %v2416_v17 = vrot.slane %v2414_v59, 1  ;;  %v1016_v40 = vpop.permute.xlu1 %1015 }
 0x254   : > { %v883_v45 = vpop.permute.xlu0 %882  ;;  %v2417_v53 = vsel %vm413_vm0, %v2413_v4, %v2416_v17  ;;  %v2420_v36 = vor.u32 %v2418_v18, %v2416_v17 }
 0x255   : > { %5830 = vmatmul.mubr.msk.bf16.gmra.mxu0 %vm12061_vm9, %v2417_v53  ;;  %v1403_v47 = vsel %vm1385_vm15, %v1382_v56, %v883_v45  ;;  %vm12068_vm9 = vcmask 64512  }
 0x256   : > { %v1094_v11 = vpop.permute.xlu1 %1093  ;;  %5833 = vmatprep.mubr.msk.bf16.mxu0 %vm11998_vm8, %v11997_v42  ;;  %v1279_v62 = vsel %vm12068_vm9, %v1258_v5, %v12067_v44  ;;  %vm12078_vm9 = vcmask 60418  }
 0x257   : > { %v1300_v1 = vsel %vm12070_vm10, %v1279_v62, %v12069_v38 }
 0x258   : > { %v934_v48 = vpop.permute.xlu0 %933 }
 0x259   : > { %v1424_v8 = vsel %vm1406_vm6, %v1403_v47, %v934_v48 }
 0x25a   : > { %v1177_v57 = vpop.permute.xlu1 %1176  ;;  %v1445_v7 = vsel %vm1427_vm3, %v1424_v8, %v1016_v40 }
 0x25c   : > { %v1047_v15 = vpop.permute.xlu0 %1046 }
 0x25d   : > { %v1466_v13 = vsel %vm1448_vm11, %v1445_v7, %v1047_v15 }
 0x25e   : > { %v1208_v28 = vpop.permute.xlu1 %1207  ;;  %v1487_v2 = vsel %vm1469_vm5, %v1466_v13, %v1094_v11 }
 0x25f   : > { %v1508_v58 = vsel %vm1490_vm4, %v1487_v2, %v1177_v57 }
 0x260   : > { %v724_v24 = vpop.permute.xlu0 %723  ;;  %v1529_v51 = vsel %vm1511_vm1, %v1508_v58, %v1208_v28 }
 0x262   : > { %v1234_v33 = vpop.permute.xlu1 %1233 }
 0x263   : > { %v1550_v49 = vsel %vm12063_vm7, %v1529_v51, %v1234_v33  ;;  %vm12072_vm7 = vcmask 130048  }
 0x264   : > { %v770_v50 = vpop.permute.xlu0 %769  ;;  %v1321_v25 = vsel %vm12072_vm7, %v1300_v1, %v12071_v20  ;;  %vm12081_vm7 = vcmask 60416  }
 0x265   : > { %v1342_v34 = vsel %vm1322_vm12, %v1321_v25, %v724_v24  ;;  %vm12075_vm12 = vcmask 490496  }
 0x266   : > { %v2321_v3 = vpop.permute.xlu1 %2320  ;;  %v1363_v41 = vsel %vm12074_vm13, %v1342_v34, %v770_v50 }
 0x267   : > { %v2342_v12 = vsel %vm12064_vm2, %v1550_v49, %v2321_v3  ;;  %vm12073_vm2 = vcmask 883712  }
 0x268   : > { %v2421_v22 = vshll.u32 %v2342_v12, 16  ;;  %v843_v35 = vpop.permute.xlu0 %842  ;;  %v2425_v9 = vshrl.u32 %v2342_v12, 16 }
 0x269   : > { %v1384_v63 = vsel %vm1364_vm14, %v1363_v41, %v843_v35  ;;  %vm12076_vm14 = vcmask 523264  }
 0x26a   : > { %v2423_v43 = vrot.slane %v2421_v22, 1  ;;  %v1018_v27 = vpop.permute.xlu1 %1017 }
 0x26c   : > { %v885_v61 = vpop.permute.xlu0 %884  ;;  %v2424_v6 = vsel %vm413_vm0, %v2420_v36, %v2423_v43  ;;  %v2427_v60 = vor.u32 %v2425_v9, %v2423_v43 }
 0x26d   : > { %5834 = vmatmul.mubr.msk.bf16.gmra.mxu0 %vm12073_vm2, %v2424_v6  ;;  %v1405_v30 = vsel %vm1385_vm15, %v1384_v63, %v885_v61 }
 0x26e   : > { %5837 = vmatprep.mubr.msk.bf16.mxu0 %vm11998_vm8, %v11997_v42  ;;  %v1096_v55 = vpop.permute.xlu1 %1095 }
 0x270   : > { %v936_v46 = vpop.permute.xlu0 %935 }
 0x271   : > { %v1426_v23 = vsel %vm1406_vm6, %v1405_v30, %v936_v46  ;;  %vm12077_vm6 = vmmov %vm12073_vm2 }
 0x272   : > { %v1447_v21 = vsel %vm1427_vm3, %v1426_v23, %v1018_v27  ;;  %v1210_v10 = vpop.permute.xlu1 %1209  ;;  %vm12082_vm2 = vmmov %vm12081_vm7 }
 0x273   : > { %vm12083_vm13 = vmmov %vm12082_vm2 }
 0x274   : > { %v1049_v39 = vpop.permute.xlu0 %1048 }
 0x275   : > { %v1468_v59 = vsel %vm1448_vm11, %v1447_v21, %v1049_v39  ;;  %vm2834_vm11 = vcmask 1045508  }
 0x276   : > { %v1489_v54 = vsel %vm1469_vm5, %v1468_v59, %v1096_v55  ;;  %v2323_v17 = vpop.permute.xlu1 %2322 }
 0x278   : > { %v1179_v26 = vpop.permute.xlu0 %1178 }
 0x279   : > { %v1510_v37 = vsel %vm1490_vm4, %v1489_v54, %v1179_v26  ;;  %vm2833_vm4 = vcmask 1041408  }
 0x27a   : > { %v1531_v52 = vsel %vm1511_vm1, %v1510_v37, %v1210_v10  ;;  %vm8666_vm10 = vmor %vm2833_vm4, %vm2834_vm11  ;;  %vm12093_vm11 = vcmask 1046528  }
 0x27b   : > { %vm12088_vm4 = vmmov %vm12082_vm2 }
 0x27c   : > { %v1236_v4 = vpop.permute.xlu0 %1235 }
 0x27d   : > { %v1552_v40 = vsel %vm12075_vm12, %v1531_v52, %v1236_v4  ;;  %vm12084_vm12 = vmmov %vm12082_vm2 }
 0x27e   : > { %v2344_v14 = vsel %vm12076_vm14, %v1552_v40, %v2323_v17  ;;  %vm12086_vm14 = vmmov %vm12082_vm2 }
 0x27f   : > { %v2428_v29 = vshll.u32 %v2344_v14, 16 }
 0x281   : > { %v2430_v45 = vrot.slane %v2428_v29, 1 }
 0x283   : > { %v2431_v53 = vsel %vm413_vm0, %v2427_v60, %v2430_v45  ;;  %v2654_v13 = vpop.permute.xlu1 %2653 }
 0x284   : > { %5838 = vmatmul.mubr.msk.bf16.gmra.mxu0 %vm12077_vm6, %v2431_v53  ;;  %vm12087_vm6 = vmmov %vm12082_vm2 }
 0x285   : > { %5843 = vmatprep.mubr.msk.bf16.mxu0 %vm11998_vm8, %v11997_v42 }
 0x287   : > { %v2659_v35 = vpop.permute.xlu1 %2658 }
 0x289   : > { %v2649_v47 = vpop.permute.xlu0 %2648 }
 0x28b   : > { %v2669_v59 = vpop.permute.xlu1 %2668 }
 0x28d   : > { %v2664_v36 = vpop.permute.xlu0 %2663 }
 0x291   : > { %v2674_v17 = vpop.permute.xlu0 %2673 }
 0x2a7   : > { %v2539_v19 = vpop.f32.mrf.mxu0 }
 0x2a8   : > { %v2540_v11 = vadd.f32 %v8661_v0, %v2539_v19 }
 0x2a9   : > { %v5807_v56 = vpop.f32.mrf.mxu0 }
 0x2aa   : > { %v2610_v48 = vmax.f32 %v2540_v11, 0.0 }
 0x2ab   : > { %v2542_v8 = vpop.f32.mrf.mxu0 }
 0x2ac   : > { %v2736_v57 = vmul.f32 %v2649_v47, %v2610_v48  ;;  %v2543_v7 = vadd.f32 %v8661_v0, %v2542_v8 }
 0x2ad   : > { %v5808_v15 = vpop.f32.mrf.mxu0 }
 0x2ae   : > { %v5747_v28 = vpack.c.bf16 %v2736_v57, %v2736_v57  ;;  %v2611_v2 = vmax.f32 %v2543_v7, 0.0  ;;  %v2679_v57 = vpop.permute.xlu1 %2678 }
 0x2b0   : > { %v2836_v24 = vrot.slane %v5747_v28, 6  ;;  %v2737_v58 = vmul.f32 %v2654_v13, %v2611_v2 }
 0x2b2   : > { %2908 = vst.msk [vmem:[#allocation2 + $0x28] sm:$0xc] %vm12078_vm9, %v2836_v24  ;;  %v5748_v33 = vpack.c.bf16 %v2737_v58, %v2737_v58  ;;  %v2837_v51 = vrot.slane %v2836_v24, 4  ;;  %vm12094_vm9 = vsmask.f32 256 }
 0x2b4   : > { %v2838_v49 = vrot.slane %v5748_v33, 6 }
 0x2b5   : > { %v2547_v3 = vpop.f32.mrf.mxu0 }
 0x2b6   : > { %v2839_v12 = vsel %vm8666_vm10, %v2837_v51, %v2838_v49  ;;  %v2548_v18 = vadd.f32 %v8661_v0, %v2547_v3  ;;  %v2840_v1 = vrot.slane %v2838_v49, 4  ;;  %v2684_v51 = vpop.permute.xlu0 %2683  ;;  %v8700_v49 = vld [vmem:[#allocation2 + $0x18] sm:$0xf]  ;;  %v2946_v3 = vld [vmem:[#allocation2 + $0x14] sm:$0xe] }
 0x2b7   : > { %2909 = vst.msk [vmem:[#allocation2 + $0x2c] sm:$0xf] %vm12081_vm7, %v2839_v12  ;;  %v5811_v22 = vpop.f32.mrf.mxu0  ;;  %vm12096_vm7 = vmmov %vm12082_vm2 }
 0x2b8   : > { %v2612_v32 = vmax.f32 %v2548_v18, 0.0 }
 0x2b9   : > { %v2550_v16 = vpop.f32.mrf.mxu0 }
 0x2ba   : > { %v2738_v5 = vmul.f32 %v2659_v35, %v2612_v32  ;;  %v2551_v44 = vadd.f32 %v8661_v0, %v2550_v16 }
 0x2bb   : > { %v5812_v62 = vpop.f32.mrf.mxu0 }
 0x2bc   : > { %v5749_v43 = vpack.c.bf16 %v2738_v5, %v2738_v5  ;;  %v2613_v38 = vmax.f32 %v2551_v44, 0.0  ;;  %v8707_v62 = vcombine.low %v2946_v3, %v8700_v49 }
 0x2be   : > { %v2841_v27 = vrot.slane %v5749_v43, 6  ;;  %v2739_v20 = vmul.f32 %v2664_v36, %v2613_v38  ;;  %v2967_v19 = vld [vmem:[#allocation2 + $0x2c] sm:$0xe] }
 0x2c0   : > { %v2842_v25 = vsel %vm8666_vm10, %v2840_v1, %v2841_v27  ;;  %v5750_v61 = vpack.c.bf16 %v2739_v20, %v2739_v20  ;;  %v2843_v6 = vrot.slane %v2841_v27, 4 }
 0x2c1   : > { %2910 = vst.msk [vmem:[#allocation2 + $0x30] sm:$0xf] %vm12082_vm2, %v2842_v25  ;;  %vm12097_vm2 = vsmask.f32 5376 }
 0x2c2   : > { %v2844_v34 = vrot.slane %v5750_v61, 6 }
 0x2c4   : > { %v2845_v41 = vsel %vm8666_vm10, %v2843_v6, %v2844_v34  ;;  %v2846_v40 = vrot.slane %v2844_v34, 4 }
 0x2c5   : > { %2911 = vst.msk [vmem:[#allocation2 + $0x34] sm:$0xf] %vm12083_vm13, %v2845_v41  ;;  %v8722_v41 = vld [vmem:[#allocation2 + $0x1c] sm:$0xf]  ;;  %vm12099_vm13 = vsmask.f32 6400 }
 0x2c8   : > { %v8681_v63 = vld [vmem:[#allocation2 + $0x30] sm:$0xf] }
 0x2c9   : > { %v8693_v56 = vcombine.low %v2967_v19, %v8681_v63 }
 0x2cb   : > { %12085 = vst [vmem:[#allocation10_spill] sm:$0xff] %v8693_v56  ;;  %v4167_v24 = vshll.u32 %v8693_v56, 16  ;;  %v4165_v43 = vshrl.u32 %v8693_v56, 16 }
 0x2cc   : > { %v2935_v30 = vld [vmem:[#allocation2 + $0x34] sm:$0xf] }
 0x2cd   : > { %v8684_v46 = vcombine.low %v8681_v63, %v2935_v30  ;;  %v4169_v16 = vrot.slane %v4167_v24, 1  ;;  %v3134_v24 = vrot.slane %v8707_v62, 1 }
 0x2cf   : > { %v4170_v61 = vor.u32 %v4169_v16, %v4165_v43 }
 0x2d3   : > { %v2555_v55 = vpop.f32.mrf.mxu0 }
 0x2d4   : > { %v2556_v23 = vadd.f32 %v8661_v0, %v2555_v55  ;;  %v3036_v55 = vshll.u32 %v8707_v62, 16 }
 0x2d5   : > { %v5815_v21 = vpop.f32.mrf.mxu0 }
 0x2d6   : > { %v2614_v39 = vmax.f32 %v2556_v23, 0.0 }
 0x2d7   : > { %v2558_v10 = vpop.f32.mrf.mxu0 }
 0x2d8   : > { %v2740_v54 = vmul.f32 %v2669_v59, %v2614_v39  ;;  %v2559_v26 = vadd.f32 %v8661_v0, %v2558_v10 }
 0x2d9   : > { %v5816_v37 = vpop.f32.mrf.mxu0 }
 0x2da   : > { %v5751_v52 = vpack.c.bf16 %v2740_v54, %v2740_v54  ;;  %v2615_v4 = vmax.f32 %v2559_v26, 0.0 }
 0x2dc   : > { %v2847_v14 = vrot.slane %v5751_v52, 6  ;;  %v2741_v9 = vmul.f32 %v2674_v17, %v2615_v4  ;;  %v3034_v4 = vshrl.u32 %v8707_v62, 16  ;;  %v3038_v17 = vrot.slane %v3036_v55, 1 }
 0x2dd   : > { %v2563_v29 = vpop.f32.mrf.mxu0 }
 0x2de   : > { %v2848_v60 = vsel %vm8666_vm10, %v2846_v40, %v2847_v14  ;;  %v5752_v45 = vpack.c.bf16 %v2741_v9, %v2741_v9  ;;  %v2564_v53 = vadd.f32 %v8661_v0, %v2563_v29  ;;  %v2849_v47 = vrot.slane %v2847_v14, 4 }
 0x2df   : > { %2912 = vst.msk [vmem:[#allocation2 + $0x38] sm:$0xf] %vm12084_vm12, %v2848_v60  ;;  %v5819_v11 = vpop.f32.mrf.mxu0  ;;  %v3039_v19 = vor.u32 %v3038_v17, %v3034_v4  ;;  %vm12101_vm12 = vmmov %vm12088_vm4 }
 0x2e0   : > { %v2850_v48 = vrot.slane %v5752_v45, 6  ;;  %v2616_v8 = vmax.f32 %v2564_v53, 0.0 }
 0x2e1   : > { %v2566_v7 = vpop.f32.mrf.mxu0 }
 0x2e2   : > { %v2851_v15 = vsel %vm8666_vm10, %v2849_v47, %v2850_v48  ;;  %v2742_v13 = vmul.f32 %v2679_v57, %v2616_v8  ;;  %v2567_v28 = vadd.f32 %v8661_v0, %v2566_v7  ;;  %v2852_v12 = vrot.slane %v2850_v48, 4 }
 0x2e3   : > { %2913 = vst.msk [vmem:[#allocation2 + $0x3c] sm:$0xf] %vm12086_vm14, %v2851_v15  ;;  %v5820_v2 = vpop.f32.mrf.mxu0  ;;  %vm12102_vm14 = vmmov %vm12097_vm2 }
 0x2e4   : > { %v5753_v58 = vpack.c.bf16 %v2742_v13, %v2742_v13  ;;  %v2617_v33 = vmax.f32 %v2567_v28, 0.0 }
 0x2e6   : > { %v2853_v18 = vrot.slane %v5753_v58, 6  ;;  %v2743_v22 = vmul.f32 %v2684_v51, %v2617_v33  ;;  %v2936_v35 = vld [vmem:[#allocation2 + $0x38] sm:$0xf] }
 0x2e7   : > { %v8702_v32 = vcombine.low %v2935_v30, %v2936_v35  ;;  %v8724_v30 = vld [vmem:[#allocation2 + $0x20] sm:$0xf]  ;;  %v2973_v52 = vld [vmem:[#allocation2 + $0x38] sm:$0xe] }
 0x2e8   : > { %v2854_v5 = vsel %vm8666_vm10, %v2852_v12, %v2853_v18  ;;  %v5754_v44 = vpack.c.bf16 %v2743_v22, %v2743_v22  ;;  %v2855_v38 = vrot.slane %v2853_v18, 4  ;;  %v8740_v54 = vcombine.low %v8722_v41, %v8724_v30  ;;  %v2975_v58 = vld [vmem:[#allocation2 + $0x38] sm:$0x8] }
 0x2e9   : > { %2914 = vst.msk [vmem:[#allocation2 + $0x40] sm:$0xf] %vm12087_vm6, %v2854_v5  ;;  %v3065_v36 = vshll.u32 %v8702_v32, 16  ;;  %v3069_v20 = vshrl.u32 %v8702_v32, 16  ;;  %vm12104_vm6 = vcmask 1044480  }
 0x2ea   : > { %v8712_v1 = vrot.slane %v5754_v44, 6  ;;  %v2937_v27 = vld [vmem:[#allocation2 + $0x3c] sm:$0xf]  ;;  %12089 = vst [vmem:[#allocation94_spill] sm:$0xff] %v8740_v54  ;;  %v3041_v45 = vshll.u32 %v8740_v54, 16  ;;  %v2689_v44 = vpop.permute.xlu1 %2688 }
 0x2eb   : > { %v8715_v25 = vrot.slane %v3065_v36, 1  ;;  %v8717_v6 = vcombine.low %v2936_v35, %v2937_v27  ;;  %v3566_v39 = vrot.slane %v3069_v20, 2  ;;  %v3567_v26 = vrot.slane %v3065_v36, 3 }
 0x2ec   : > { %v2857_v34 = vsel %vm8666_vm10, %v2855_v38, %v8712_v1  ;;  %v5700_v9 = vcombine.low %v2973_v52, %v2937_v27  ;;  %v8771_v15 = vrot.slane %v3041_v45, 1  ;;  %v5702_v18 = vcombine.low %v2975_v58, %v2937_v27 }
 0x2ed   : > { %2915 = vst.msk [vmem:[#allocation2 + $0x44] sm:$0xf] %vm12088_vm4, %v2857_v34  ;;  %v4171_v23 = vsel %vm413_vm0, %v4170_v61, %v8715_v25  ;;  %v8731_v21 = vshrl.u32 %v8717_v6, 16  ;;  %v8736_v10 = vshll.u32 %v8717_v6, 16  ;;  %v8751_v29 = vor.u32 %v3567_v26, %v3566_v39  ;;  %vm12105_vm4 = vmmov %vm12097_vm2 }
 0x2ee   : > { %4194 = vrot.lane.b32.xlu1 %v4171_v23, %s6052_s12  ;;  %v3071_v47 = vor.u32 %v3069_v20, %v8715_v25  ;;  %v4292_v8 = vshll.u32 %v5700_v9, 16  ;;  %v3044_v51 = vsel %vm413_vm0, %v3039_v19, %v8771_v15  ;;  %v3135_v35 = vrot.slane %v8740_v54, 1  ;;  %v2948_v20 = vld [vmem:[#allocation2 + $0x14] sm:$0x8] }
 0x2ef   : > { %v3261_v59 = vrot.slane %v8731_v21, 7  ;;  %v3726_v16 = vrot.slane %v8731_v21, 1  ;;  %v3727_v5 = vrot.slane %v8736_v10, 2  ;;  %v4290_v43 = vshrl.u32 %v5700_v9, 16 }
 0x2f0   : > { %v8742_v37 = vld [vmem:[#allocation2 + $0x40] sm:$0xf]  ;;  %v4294_v12 = vrot.slane %v4292_v8, 1  ;;  %v3136_v55 = vsel %vm12093_vm11, %v3134_v24, %v3135_v35  ;;  %v4355_v4 = vshrl.u32 %v5702_v18, 16  ;;  %v4358_v17 = vshll.u32 %v5702_v18, 16  ;;  %v2694_v8 = vpop.permute.xlu0 %2693  ;;  %vm12107_vm11 = vmmov %vm12096_vm7 }
 0x2f1   : > { %v8746_v40 = vcombine.low %v2937_v27, %v8742_v37  ;;  %v8749_v14 = vor.u32 %v8736_v10, %v3261_v59  ;;  %v8800_v23 = vor.u32 %v3727_v5, %v3726_v16  ;;  %v2858_v24 = vrot.slane %v8712_v1, 4 }
 0x2f2   : > { %v4295_v52 = vor.u32 %v4294_v12, %v4290_v43  ;;  %v4357_v18 = vrot.slane %v4355_v4, 2  ;;  %v3409_v4 = vrot.slane %v8731_v21, 2 }
 0x2f3   : > { %12090 = vst [vmem:[#allocation96_spill] sm:$0xff] %v8746_v40  ;;  %12091 = vst [vmem:[#allocation95_spill] sm:$0xff] %v8749_v14  ;;  %4243 = vrot.lane.b32.xlu0 %v8749_v14, %s6054_s14  ;;  %v8756_v60 = vshll.u32 %v8746_v40, 16  ;;  %v8793_v61 = vshrl.u32 %v8746_v40, 16  ;;  %v2951_v14 = vld [vmem:[#allocation2 + $0x18] sm:$0xc] }
 0x2f4   : > { %v8759_v53 = vld [vmem:[#allocation2 + $0x44] sm:$0xf] }
 0x2f5   : > { %v8763_v11 = vcombine.low %v8742_v37, %v8759_v53  ;;  %v3075_v48 = vrot.slane %v8756_v60, 1 }
 0x2f7   : > { %12092 = vst [vmem:[#allocation97_spill] sm:$0xff] %v8763_v11  ;;  %4266 = vrot.lane.b32.xlu0 %v5700_v9, %s6056_s16  ;;  %v2571_v57 = vpop.f32.mrf.mxu0  ;;  %v3076_v7 = vsel %vm413_vm0, %v3071_v47, %v3075_v48  ;;  %v8774_v13 = vshrl.u32 %v8763_v11, 16  ;;  %v8777_v28 = vshll.u32 %v8763_v11, 16  ;;  %v5665_v47 = vcombine.low %v2948_v20, %v8700_v49 }
 0x2f8   : > { %v2572_v2 = vadd.f32 %v8661_v0, %v2571_v57  ;;  %3119 = vrot.lane.b32.xlu1 %v3076_v7, %s6052_s12  ;;  %v3570_v7 = vrot.slane %v8793_v61, 2 }
 0x2f9   : > { %v5823_v33 = vpop.f32.mrf.mxu0  ;;  %v3269_v3 = vrot.slane %v8774_v13, 7  ;;  %v4296_v38 = vrot.slane %v8777_v28, 1  ;;  %v3413_v19 = vrot.slane %v8774_v13, 2  ;;  %v3731_v5 = vrot.slane %v8777_v28, 2 }
 0x2fa   : > { %v2618_v22 = vmax.f32 %v2572_v2, 0.0  ;;  %v3571_v2 = vrot.slane %v8756_v60, 3 }
 0x2fb   : > { %v2574_v36 = vpop.f32.mrf.mxu0  ;;  %v3272_v62 = vor.u32 %v8777_v28, %v3269_v3  ;;  %v4297_v57 = vsel %vm413_vm0, %v4295_v52, %v4296_v38 }
 0x2fc   : > { %v2744_v27 = vmul.f32 %v2689_v44, %v2618_v22  ;;  %v2575_v34 = vadd.f32 %v8661_v0, %v2574_v36  ;;  %3111 = vrot.lane.b32.xlu1 %v3044_v51, %s6052_s12  ;;  %v3730_v51 = vrot.slane %v8774_v13, 1  ;;  %v4360_v22 = vrot.slane %v4358_v17, 3  ;;  %v2699_v17 = vpop.permute.xlu1 %2698 }
 0x2fd   : > { %v5824_v39 = vpop.f32.mrf.mxu0  ;;  %v8803_v26 = vsel %vm12094_vm9, %v3261_v59, %v3272_v62  ;;  %v3414_v59 = vrot.slane %v8777_v28, 3  ;;  %v8818_v16 = vor.u32 %v3571_v2, %v3570_v7  ;;  %vm12110_vm9 = vmmov %vm12096_vm7 }
 0x2fe   : > { %12095 = vst [vmem:[#allocation41_spill] sm:$0xff] %v8803_v26  ;;  %v5755_v9 = vpack.c.bf16 %v2744_v27, %v2744_v27  ;;  %v2619_v45 = vmax.f32 %v2575_v34, 0.0  ;;  %4245 = vrot.lane.b32.xlu0 %v8803_v26, %s6054_s14  ;;  %v8832_v27 = vor.u32 %v3731_v5, %v3730_v51 }
 0x2ff   : > { %v8825_v43 = vor.u32 %v3414_v59, %v3413_v19  ;;  %v8830_v20 = vsel %vm12097_vm2, %v8751_v29, %v8818_v16  ;;  %vm12113_vm2 = vsmask.f32 256 }
 0x300   : > { %v2859_v58 = vrot.slane %v5755_v9, 6  ;;  %v2745_v33 = vmul.f32 %v2694_v8, %v2619_v45  ;;  %4328 = vrot.lane.b32.xlu1 %v4297_v57, %s6057_s17  ;;  %12098 = vst [vmem:[#allocation5_spill] sm:$0xff] %v8830_v20  ;;  %v4361_v45 = vor.u32 %v4360_v22, %v4357_v18  ;;  %v3179_v8 = vrot.slane %v5665_v47, 3 }
 0x301   : > { %v2579_v12 = vpop.f32.mrf.mxu0  ;;  %v8839_v19 = vsel %vm12099_vm13, %v8800_v23, %v8832_v27  ;;  %v3410_v57 = vrot.slane %v8736_v10, 3  ;;  %v11629_v47 = vrot.slane %v8740_v54, 3  ;;  %v2704_v10 = vpop.permute.xlu0 %2703  ;;  %vm12116_vm13 = vmmov %vm12110_vm9 }
 0x302   : > { %v2860_v44 = vsel %vm8666_vm10, %v2858_v24, %v2859_v58  ;;  %v5756_v36 = vpack.c.bf16 %v2745_v33, %v2745_v33  ;;  %v2580_v62 = vadd.f32 %v8661_v0, %v2579_v12  ;;  %v2861_v34 = vrot.slane %v2859_v58, 4  ;;  %12100 = vst [vmem:[#allocation99_spill] sm:$0xff] %v8839_v19  ;;  %v8855_v12 = vld [vmem:[#allocation2 + $0x24] sm:$0xf] }
 0x303   : > { %2916 = vst.msk [vmem:[#allocation2 + $0x48] sm:$0xf] %vm12096_vm7, %v2860_v44  ;;  %v5827_v1 = vpop.f32.mrf.mxu0  ;;  %v8849_v24 = vor.u32 %v3410_v57, %v3409_v4  ;;  %v3181_v51 = vsel %vm12104_vm6, %v3179_v8, %v11629_v47  ;;  %vm12112_vm7 = vcmask 1046528   ;;  %vm12120_vm6 = vsmask.f32 6400 }
 0x304   : > { %v2862_v39 = vrot.slane %v5756_v36, 6  ;;  %v2620_v52 = vmax.f32 %v2580_v62, 0.0  ;;  %3153 = vrot.lane.b32.xlu1 %v3136_v55, %s6054_s14  ;;  %v4362_v55 = vsel %vm12102_vm14, %v4361_v45, %v8825_v43  ;;  %v8862_v62 = vld [vmem:[#allocation2 + $0x28] sm:$0xf]  ;;  %v3079_v45 = vor.u32 %v8793_v61, %v3075_v48  ;;  %vm12119_vm14 = vmmov %vm12110_vm9 }
 0x305   : > { %v2582_v9 = vpop.f32.mrf.mxu0  ;;  %12103 = vst [vmem:[#allocation19_spill] sm:$0xff] %v8849_v24  ;;  %v8860_v18 = vsel %vm12105_vm4, %v8849_v24, %v8825_v43  ;;  %v2980_v24 = vld [vmem:[#allocation2 + $0x3c] sm:$0x8] }
 0x306   : > { %v2863_v59 = vsel %vm8666_vm10, %v2861_v34, %v2862_v39  ;;  %v2746_v7 = vmul.f32 %v2699_v17, %v2620_v52  ;;  %v2583_v2 = vadd.f32 %v8661_v0, %v2582_v9  ;;  %12106 = vst [vmem:[#allocation21_spill] sm:$0xff] %v8860_v18  ;;  %v2864_v5 = vrot.slane %v2862_v39, 4 }
 0x307   : > { %2917 = vst.msk [vmem:[#allocation2 + $0x4c] sm:$0xf] %vm12101_vm12, %v2863_v59  ;;  %v5828_v21 = vpop.f32.mrf.mxu0  ;;  %v8876_v39 = vcombine.low %v8855_v12, %v8862_v62  ;;  %vm12117_vm12 = vmmov %vm12105_vm4  ;;  %vm12123_vm4 = vcmask 1040384  }
 0x308   : > { %v5757_v58 = vpack.c.bf16 %v2746_v7, %v2746_v7  ;;  %v2621_v33 = vmax.f32 %v2583_v2, 0.0  ;;  %4388 = vrot.lane.b32.xlu1 %v4362_v55, %s6059_s19  ;;  %v3045_v7 = vshrl.u32 %v8740_v54, 16 }
 0x309   : > { %12108 = vst [vmem:[#allocation7_spill] sm:$0xff] %v8876_v39  ;;  %v3049_v48 = vshll.u32 %v8876_v39, 16 }
 0x30a   : > { %v2940_v22 = vld [vmem:[#allocation2 + $0x48] sm:$0xf]  ;;  %v2865_v44 = vrot.slane %v5757_v58, 6  ;;  %v2747_v36 = vmul.f32 %v2704_v10, %v2621_v33  ;;  %v4298_v58 = vor.u32 %v4296_v38, %v8774_v13  ;;  %v8908_v10 = vcombine.low %v8700_v49, %v8722_v41 }
 0x30b   : > { %v8865_v1 = vcombine.low %v8759_v53, %v2940_v22 }
 0x30c   : > { %v2866_v34 = vsel %vm8666_vm10, %v2864_v5, %v2865_v44  ;;  %v5758_v52 = vpack.c.bf16 %v2747_v36, %v2747_v36  ;;  %3198 = vrot.lane.b32.xlu1 %v3181_v51, %s6056_s16  ;;  %v2867_v17 = vrot.slane %v2865_v44, 4  ;;  %v3047_v51 = vor.u32 %v3045_v7, %v8771_v15 }
 0x30d   : > { %2918 = vst.msk [vmem:[#allocation2 + $0x50] sm:$0xf] %vm12107_vm11, %v2866_v34  ;;  %v8872_v4 = vshll.u32 %v8865_v1, 16  ;;  %v8914_v36 = vrot.slane %v3049_v48, 1  ;;  %v11625_v34 = vrot.slane %v8876_v39, 1  ;;  %v8923_v15 = vshrl.u32 %v8865_v1, 16  ;;  %vm12124_vm11 = vmmov %vm12117_vm12 }
 0x30e   : > { %v8878_v9 = vrot.slane %v5758_v52, 6  ;;  %v2941_v53 = vld [vmem:[#allocation2 + $0x4c] sm:$0xf]  ;;  %v3228_v52 = vshrl.u32 %v8908_v10, 16 }
 0x30f   : > { %v11627_v8 = vrot.slane %v8872_v4, 1  ;;  %v8884_v57 = vcombine.low %v2940_v22, %v2941_v53  ;;  %v3052_v7 = vsel %vm413_vm0, %v3047_v51, %v8914_v36  ;;  %v3574_v51 = vrot.slane %v8923_v15, 2 }
 0x310   : > { %v2869_v59 = vsel %vm8666_vm10, %v2867_v17, %v8878_v9 }
 0x311   : > { %12109 = vst [vmem:[#allocation6_spill] sm:$0xff] %v8884_v57  ;;  %2919 = vst.msk [vmem:[#allocation2 + $0x54] sm:$0xf] %vm12110_vm9, %v2869_v59  ;;  %v3084_v2 = vsel %vm413_vm0, %v3079_v45, %v11627_v8  ;;  %v8895_v21 = vshll.u32 %v8884_v57, 16  ;;  %v8899_v55 = vshrl.u32 %v8884_v57, 16  ;;  %v2709_v59 = vpop.permute.xlu1 %2708  ;;  %v2870_v8 = vrot.slane %v8878_v9, 4 }
 0x312   : > { %3121 = vrot.lane.b32.xlu0 %v3084_v2, %s6052_s12  ;;  %v3138_v2 = vsel %vm12112_vm7, %v3135_v35, %v11625_v34  ;;  %v11630_v35 = vrot.slane %v8793_v61, 7  ;;  %v8946_v34 = vrot.slane %v3228_v52, 7  ;;  %vm12127_vm9 = vmmov %vm12120_vm6 }
 0x313   : > { %v11628_v33 = vrot.slane %v8895_v21, 1  ;;  %v11626_v28 = vrot.slane %v8899_v55, 7  ;;  %vm12129_vm7 = vmmov %vm12113_vm2 }
 0x314   : > { %v2942_v22 = vld [vmem:[#allocation2 + $0x50] sm:$0xf] }
 0x315   : > { %v4300_v5 = vsel %vm413_vm0, %v4298_v58, %v11628_v33  ;;  %v2587_v44 = vpop.f32.mrf.mxu0  ;;  %v8926_v17 = vcombine.low %v2941_v53, %v2942_v22  ;;  %v3280_v58 = vor.u32 %v8895_v21, %v11626_v28  ;;  %v3231_v28 = vshll.u32 %v8908_v10, 16 }
 0x316   : > { %4268 = vrot.lane.b32.xlu0 %v8763_v11, %s6056_s16  ;;  %4330 = vrot.lane.b32.xlu1 %v4300_v5, %s6057_s17  ;;  %v2588_v49 = vadd.f32 %v8661_v0, %v2587_v44  ;;  %v9074_v11 = vcombine.low %v2980_v24, %v8742_v37 }
 0x317   : > { %v5831_v38 = vpop.f32.mrf.mxu0  ;;  %12111 = vst [vmem:[#allocation12_spill] sm:$0xff] %v8926_v17  ;;  %v12176_v50 = vrot.slane %v8926_v17, 2 }
 0x318   : > { %v2622_v45 = vmax.f32 %v2588_v49, 0.0  ;;  %v8941_v44 = vld [vmem:[#allocation2 + $0x54] sm:$0xf]  ;;  %v3575_v49 = vrot.slane %v8872_v4, 3 }
 0x319   : > { %v2590_v48 = vpop.f32.mrf.mxu0  ;;  %v8962_v52 = vcombine.low %v2942_v22, %v8941_v44 }
 0x31a   : > { %v2748_v5 = vmul.f32 %v2709_v59, %v2622_v45  ;;  %3113 = vrot.lane.b32.xlu0 %v3052_v7, %s6052_s12  ;;  %3155 = vrot.lane.b32.xlu1 %v3138_v2, %s6054_s14  ;;  %v2591_v53 = vadd.f32 %v8661_v0, %v2590_v48  ;;  %v8950_v45 = vshll.u32 %v8926_v17, 16  ;;  %v2714_v2 = vpop.permute.xlu0 %2713  ;;  %v8955_v48 = vsel %vm12113_vm2, %v3269_v3, %v3280_v58 }
 0x31b   : > { %v5832_v38 = vpop.f32.mrf.mxu0  ;;  %12114 = vst [vmem:[#allocation16_spill] sm:$0xff] %v8955_v48  ;;  %12115 = vst [vmem:[#allocation18_spill] sm:$0xff] %v8962_v52  ;;  %v8969_v13 = vor.u32 %v3575_v49, %v3574_v51  ;;  %v4410_v3 = vrot.slane %v8746_v40, 7  ;;  %v3418_v51 = vrot.slane %v8895_v21, 3  ;;  %v2953_v49 = vld [vmem:[#allocation2 + $0x18] sm:$0x8] }
 0x31c   : > { %v5759_v59 = vpack.c.bf16 %v2748_v5, %v2748_v5  ;;  %v2623_v7 = vmax.f32 %v2591_v53, 0.0  ;;  %v8959_v38 = vcombine.low %v8724_v30, %v8855_v12  ;;  %v4451_v30 = vor.u32 %v11630_v35, %v8756_v60 }
 0x31d   : > { %v3233_v12 = vor.u32 %v3231_v28, %v8946_v34  ;;  %v11631_v9 = vrot.slane %v8950_v45, 1  ;;  %v3417_v5 = vrot.slane %v8899_v55, 2  ;;  %v8981_v53 = vshrl.u32 %v8926_v17, 16 }
 0x31e   : > { %v2871_v33 = vrot.slane %v5759_v59, 6  ;;  %v2749_v47 = vmul.f32 %v2714_v2, %v2623_v7  ;;  %4270 = vrot.lane.b32.xlu1 %v8884_v57, %s6056_s16  ;;  %4247 = vrot.lane.b32.xlu0 %v8955_v48, %s6054_s14  ;;  %v8986_v60 = vshll.u32 %v8962_v52, 16  ;;  %v8989_v28 = vshrl.u32 %v8962_v52, 16 }
 0x31f   : > { %v3734_v59 = vrot.slane %v8899_v55, 1  ;;  %v8999_v7 = vor.u32 %v8981_v53, %v11631_v9  ;;  %v9004_v2 = vsel %vm12117_vm12, %v8818_v16, %v8969_v13  ;;  %v3238_v35 = vshll.u32 %v8959_v38, 16 }
 0x320   : > { %v2872_v22 = vsel %vm8666_vm10, %v2870_v8, %v2871_v33  ;;  %v5760_v58 = vpack.c.bf16 %v2749_v47, %v2749_v47  ;;  %v2873_v8 = vrot.slane %v2871_v33, 4  ;;  %12118 = vst [vmem:[#allocation22_spill] sm:$0xff] %v9004_v2  ;;  %v3735_v33 = vrot.slane %v8895_v21, 2 }
 0x321   : > { %2920 = vst.msk [vmem:[#allocation2 + $0x58] sm:$0xf] %vm12116_vm13, %v2872_v22  ;;  %v3235_v22 = vshrl.u32 %v8959_v38, 16  ;;  %v9014_v9 = vcombine.low %v2953_v49, %v8722_v41  ;;  %v3419_v48 = vor.u32 %v3418_v51, %v3417_v5  ;;  %v3738_v18 = vrot.slane %v8989_v28, 1  ;;  %vm12136_vm13 = vmmov %vm12124_vm11 }
 0x322   : > { %v8992_v47 = vrot.slane %v5760_v58, 6  ;;  %4490 = vrot.lane.b32.xlu1 %v4451_v30, %s6065_s11  ;;  %4427 = vrot.lane.b32.xlu0 %v4410_v3, %s6063_s24  ;;  %v3736_v26 = vor.u32 %v3735_v33, %v3734_v59  ;;  %v3739_v58 = vrot.slane %v8986_v60, 2  ;;  %v12122_v59 = vrot.slane %v8865_v1, 7 }
 0x323   : > { %v9017_v16 = vrot.slane %v3235_v22, 7  ;;  %v3390_v33 = vshrl.u32 %v9014_v9, 16  ;;  %vm12132_vm2 = vcmask 1044480   ;;  %vm12140_vm12 = vcmask 1045504  }
 0x324   : > { %v2875_v30 = vsel %vm8666_vm10, %v2873_v8, %v8992_v47  ;;  %v2978_v8 = vld [vmem:[#allocation2 + $0x3c] sm:$0xc]  ;;  %v9029_v5 = vsel %vm12120_vm6, %v8832_v27, %v3736_v26  ;;  %v9036_v2 = vor.u32 %v3739_v58, %v3738_v18  ;;  %v3421_v27 = vrot.slane %v8989_v28, 2 }
 0x325   : > { %2921 = vst.msk [vmem:[#allocation2 + $0x5c] sm:$0xf] %vm12119_vm14, %v2875_v30  ;;  %v3240_v57 = vor.u32 %v3238_v35, %v9017_v16  ;;  %v5707_v49 = vcombine.low %v2978_v8, %v8742_v37  ;;  %12121 = vst [vmem:[#allocation38_spill] sm:$0xff] %v9029_v5  ;;  %v9040_v8 = vsel %vm12124_vm11, %v8825_v43, %v3419_v48  ;;  %v3422_v5 = vrot.slane %v8986_v60, 3 }
 0x326   : > { %3321 = vrot.lane.b32.xlu1 %v8908_v10, %s6059_s19  ;;  %3298 = vrot.lane.b32.xlu0 %v3233_v12, %s6057_s17  ;;  %v4412_v10 = vsel %vm12123_vm4, %v4410_v3, %v12122_v59  ;;  %12125 = vst [vmem:[#allocation8_spill] sm:$0xff] %v9040_v8  ;;  %v3393_v18 = vshll.u32 %v9014_v9, 16  ;;  %v3397_v3 = vrot.slane %v3235_v22, 2  ;;  %v3398_v58 = vrot.slane %v3238_v35, 3  ;;  %vm12141_vm14 = vmmov %vm12120_vm6 }
 0x327   : > { %v9053_v43 = vsel %vm12127_vm9, %v3736_v26, %v9036_v2  ;;  %v4517_v59 = vshrl.u32 %v5707_v49, 16  ;;  %v4520_v12 = vshll.u32 %v5707_v49, 16  ;;  %v4524_v22 = vrot.slane %v8923_v15, 1  ;;  %vm12143_vm6 = vmmov %vm12140_vm12 }
 0x328   : > { %v2944_v51 = vld [vmem:[#allocation2 + $0x58] sm:$0xf]  ;;  %12128 = vst [vmem:[#allocation106_spill] sm:$0xff] %v9053_v43  ;;  %v4525_v35 = vrot.slane %v8872_v4, 2  ;;  %v5677_v26 = vcombine.low %v2951_v14, %v8722_v41  ;;  %v12130_v43 = vrot.slane %v8876_v39, 3  ;;  %v9071_v19 = vor.u32 %v3422_v5, %v3421_v27  ;;  %vm12144_vm4 = vmmov %vm12124_vm11 }
 0x329   : > { %v9043_v30 = vcombine.low %v8941_v44, %v2944_v51  ;;  %v3241_v44 = vsel %vm12129_vm7, %v8946_v34, %v3240_v57  ;;  %v12131_v57 = vrot.slane %v8740_v54, 3  ;;  %v3392_v20 = vrot.slane %v3390_v33, 2 }
 0x32a   : > { %4429 = vrot.lane.b32.xlu1 %v4412_v10, %s6063_s24  ;;  %4390 = vrot.lane.b32.xlu0 %v9040_v8, %s6059_s19  ;;  %v12133_v41 = vrot.slane %v8895_v21, 1  ;;  %v3395_v54 = vrot.slane %v3393_v18, 3  ;;  %v4519_v27 = vrot.slane %v4517_v59, 1  ;;  %v9093_v21 = vrot.slane %v8865_v1, 2  ;;  %v2719_v18 = vpop.permute.xlu1 %2718 }
 0x32b   : > { %12126 = vst [vmem:[#allocation102_spill] sm:$0xff] %v9043_v30  ;;  %v9058_v56 = vshll.u32 %v9043_v30, 16  ;;  %v3183_v34 = vsel %vm12132_vm2, %v12131_v57, %v12130_v43  ;;  %v4522_v57 = vrot.slane %v4520_v12, 2  ;;  %v9086_v37 = vshrl.u32 %v9043_v30, 16 }
 0x32c   : > { %v9060_v10 = vld [vmem:[#allocation2 + $0x5c] sm:$0xf]  ;;  %v4301_v14 = vor.u32 %v12133_v41, %v8899_v55  ;;  %v3396_v40 = vor.u32 %v3395_v54, %v3392_v20  ;;  %v2876_v20 = vrot.slane %v8992_v47, 4  ;;  %vm12145_vm11 = vcmask 60416  }
 0x32d   : > { %v2595_v49 = vpop.f32.mrf.mxu0  ;;  %v9083_v43 = vcombine.low %v2944_v51, %v9060_v10  ;;  %v3099_v24 = vrot.slane %v9058_v56, 1  ;;  %v9097_v51 = vsel %vm12136_vm13, %v3419_v48, %v9071_v19  ;;  %vm12147_vm7 = vmmov %vm12145_vm11  ;;  %vm12149_vm2 = vsmask.f32 256 }
 0x32e   : > { %3300 = vrot.lane.b32.xlu1 %v3241_v44, %s6057_s17  ;;  %3200 = vrot.lane.b32.xlu0 %v3183_v34, %s6056_s16  ;;  %v2596_v8 = vadd.f32 %v8661_v0, %v2595_v49  ;;  %v12135_v44 = vrot.slane %v8986_v60, 1  ;;  %v4526_v49 = vor.u32 %v4525_v35, %v4524_v22  ;;  %12137 = vst [vmem:[#allocation40_spill] sm:$0xff] %v9097_v51  ;;  %v4588_v35 = vrot.slane %v9074_v11, 2  ;;  %vm12150_vm13 = vmmov %vm12127_vm9 }
 0x32f   : > { %12134 = vst [vmem:[#allocation9_spill] sm:$0xff] %v9083_v43  ;;  %v5835_v5 = vpop.f32.mrf.mxu0  ;;  %v9100_v59 = vshrl.u32 %v9083_v43, 16  ;;  %v9107_v41 = vor.u32 %v9086_v37, %v3099_v24 }
 0x330   : > { %v2624_v33 = vmax.f32 %v2596_v8, 0.0  ;;  %v4303_v34 = vsel %vm413_vm0, %v4301_v14, %v12135_v44  ;;  %v9104_v8 = vsel %vm413_vm0, %v8999_v7, %v3099_v24  ;;  %v9115_v14 = vshll.u32 %v9083_v43, 16 }
 0x331   : > { %v2598_v12 = vpop.f32.mrf.mxu0  ;;  %12138 = vst [vmem:[#allocation24_spill] sm:$0xff] %v9104_v8  ;;  %12139 = vst [vmem:[#allocation29_spill] sm:$0xff] %v9107_v41  ;;  %v4523_v44 = vor.u32 %v4522_v57, %v4519_v27  ;;  %v3347_v7 = vrot.slane %v5677_v26, 2  ;;  %v9117_v8 = vor.u32 %v3398_v58, %v3397_v3  ;;  %v4528_v43 = vrot.slane %v8981_v53, 1 }
 0x332   : > { %v2750_v22 = vmul.f32 %v2719_v18, %v2624_v33  ;;  %4332 = vrot.lane.b32.xlu0 %v4303_v34, %s6057_s17  ;;  %4392 = vrot.lane.b32.xlu1 %v9097_v51, %s6059_s19  ;;  %v2599_v48 = vadd.f32 %v8661_v0, %v2598_v12  ;;  %v4589_v34 = vsel %vm12140_vm12, %v4588_v35, %v9093_v21  ;;  %v11653_v18 = vrot.slane %v8923_v15, 7  ;;  %v2724_v51 = vpop.permute.xlu0 %2723  ;;  %v9122_v12 = vld [vmem:[#allocation2 + $0x2c] sm:$0xf]  ;;  %vm12154_vm12 = vmmov %vm12143_vm6 }
 0x333   : > { %v5836_v5 = vpop.f32.mrf.mxu0  ;;  %v4527_v41 = vsel %vm12141_vm14, %v4523_v44, %v4526_v49  ;;  %v4529_v27 = vrot.slane %v8950_v45, 2  ;;  %v3742_v54 = vrot.slane %v9100_v59, 1  ;;  %v3743_v26 = vrot.slane %v9115_v14, 2 }
 0x334   : > { %v5761_v24 = vpack.c.bf16 %v2750_v22, %v2750_v22  ;;  %v2625_v33 = vmax.f32 %v2599_v48, 0.0  ;;  %v12142_v57 = vrot.slane %v8959_v38, 2  ;;  %v3400_v48 = vsel %vm12144_vm4, %v3396_v40, %v9117_v8  ;;  %vm12159_vm4 = vmmov %vm12154_vm12 }
 0x335   : > { %v4453_v5 = vor.u32 %v11653_v18, %v8872_v4  ;;  %v9149_v44 = vor.u32 %v4529_v27, %v4528_v43  ;;  %v12148_v27 = vrot.slane %v8793_v61, 7  ;;  %v9179_v61 = vrot.slane %v9043_v30, 3 }
 0x336   : > { %v2877_v3 = vrot.slane %v5761_v24, 6  ;;  %v2751_v58 = vmul.f32 %v2724_v51, %v2625_v33  ;;  %4565 = vrot.lane.b32.xlu0 %v4527_v41, %s6067_s25  ;;  %4598 = vrot.lane.b32.xlu1 %v4589_v34, %s6070_s29  ;;  %v3349_v22 = vsel %vm12143_vm6, %v3347_v7, %v12142_v57  ;;  %v9141_v51 = vcombine.low %v8862_v62, %v9122_v12 }
 0x337   : > { %v9143_v41 = vor.u32 %v3743_v26, %v3742_v54  ;;  %v4454_v54 = vsel %vm12149_vm2, %v12148_v27, %v4453_v5  ;;  %v4617_v26 = vshll.u32 %v9074_v11, 16  ;;  %12151 = vst [vmem:[#allocation108_spill] sm:$0xff] %v9179_v61  ;;  %vm12155_vm14 = vcmask 1044480  }
 0x338   : > { %v2878_v35 = vsel %vm8666_vm10, %v2876_v20, %v2877_v3  ;;  %v5762_v47 = vpack.c.bf16 %v2751_v58, %v2751_v58  ;;  %v2879_v7 = vrot.slane %v2877_v3, 4  ;;  %v11651_v34 = vshrl.u32 %v9141_v51, 16 }
 0x339   : > { %2922 = vst.msk [vmem:[#allocation2 + $0x60] sm:$0xf] %vm12145_vm11, %v2878_v35  ;;  %v9158_v24 = vsel %vm12127_vm9, %v9036_v2, %v9143_v41  ;;  %v11650_v43 = vshll.u32 %v9141_v51, 16  ;;  %v4531_v20 = vsel %vm12150_vm13, %v4526_v49, %v9149_v44  ;;  %v11649_v2 = vrot.slane %v9141_v51, 2 }
 0x33a   : > { %v9151_v40 = vrot.slane %v5762_v47, 6  ;;  %3366 = vrot.lane.b32.xlu0 %v3349_v22, %s6063_s24  ;;  %3438 = vrot.lane.b32.xlu1 %v3400_v48, %s6065_s11  ;;  %12146 = vst [vmem:[#allocation103_spill] sm:$0xff] %v9158_v24  ;;  %v5666_v3 = vcombine.low %v9060_v10, %v9060_v10  ;;  %v4614_v58 = vshrl.u32 %v9074_v11, 16  ;;  %v3401_v49 = vrot.slane %v11651_v34, 2 }
 0x33b   : > { %v3402_v22 = vrot.slane %v11650_v43, 3  ;;  %v12153_v48 = vrot.slane %v8959_v38, 2  ;;  %v11652_v47 = vrot.slane %v8926_v17, 7  ;;  %v11654_v11 = vrot.slane %v8926_v17, 2 }
 0x33c   : > { %v2881_v33 = vsel %vm8666_vm10, %v2879_v7, %v9151_v40  ;;  %v9181_v57 = vrot.slane %v5666_v3, 3  ;;  %v4616_v7 = vrot.slane %v4614_v58, 2  ;;  %v12157_v43 = vrot.slane %v8865_v1, 7 }
 0x33d   : > { %2923 = vst.msk [vmem:[#allocation2 + $0x64] sm:$0xf] %vm12147_vm7, %v2881_v33  ;;  %v3351_v35 = vsel %vm12154_vm12, %v12153_v48, %v11649_v2  ;;  %v4619_v33 = vrot.slane %v4617_v26, 3  ;;  %vm12158_vm6 = vcmask 1040384   ;;  %v3522_v58 = vsel %vm12159_vm4, %v9093_v21, %v11654_v11  ;;  %vm12164_vm7 = vmmov %vm12155_vm14 }
 0x33e   : > { %4492 = vrot.lane.b32.xlu0 %v4454_v54, %s6065_s11  ;;  %4567 = vrot.lane.b32.xlu1 %v4531_v20, %s6067_s25  ;;  %12152 = vst [vmem:[#allocation105_spill] sm:$0xff] %v9181_v57  ;;  %v9197_v5 = vsel %vm12155_vm14, %v9179_v61, %v9181_v57  ;;  %v9202_v54 = vor.u32 %v3402_v22, %v3401_v49  ;;  %v3578_v20 = vrot.slane %v8981_v53, 2  ;;  %v3579_v26 = vrot.slane %v8950_v45, 3 }
 0x33f   : > { %12156 = vst [vmem:[#allocation31_spill] sm:$0xff] %v9197_v5  ;;  %v4414_v34 = vsel %vm12158_vm6, %v12157_v43, %v11652_v47  ;;  %v3461_v43 = vrot.slane %v9014_v9, 3  ;;  %v2729_v47 = vpop.permute.xlu1 %2728  ;;  %vm12161_vm11 = vsmask.f32 5376  ;;  %v11657_v57 = vrot.slane %v8959_v38, 3 }
 0x340   : > { %v9207_v48 = vld [vmem:[#allocation2 + $0x60] sm:$0xf]  ;;  %v3404_v11 = vsel %vm12161_vm11, %v9117_v8, %v9202_v54  ;;  %vm12162_vm9 = vmmov %vm12161_vm11  ;;  %vm12167_vm13 = vcmask 60416   ;;  %vm12169_vm12 = vsmask.f32 256  ;;  %v4533_v24 = vrot.slane %v9058_v56, 2 }
 0x341   : > { %vm12165_vm2 = vmmov %vm12162_vm9  ;;  %vm12171_vm14 = vsmask.f32 6400  ;;  %vm12175_vm11 = vcmask 58368   ;;  %v12197_v61 = vrot.slane %v8876_v39, 3 }
 0x342   : > { %3323 = vrot.lane.b32.xlu0 %v8959_v38, %s6059_s19  ;;  %3368 = vrot.lane.b32.xlu1 %v3351_v35, %s6063_s24  ;;  %vm12173_vm6 = vmmov %vm12167_vm13 }
 0x344   : > { %v2603_v27 = vpop.f32.mrf.mxu0  ;;  %v9205_v3 = vld [vmem:[#allocation2 + $0x64] sm:$0xf] }
 0x345   : > { %v2604_v2 = vadd.f32 %v8661_v0, %v2603_v27  ;;  %v9224_v22 = vcombine.low %v9207_v48, %v9205_v3  ;;  %v4620_v27 = vor.u32 %v4619_v33, %v4616_v7  ;;  %v3463_v33 = vsel %vm12164_vm7, %v3461_v43, %v11657_v57 }
 0x346   : > { %4431 = vrot.lane.b32.xlu0 %v4414_v34, %s6063_s24  ;;  %3539 = vrot.lane.b32.xlu1 %v3522_v58, %s6070_s29  ;;  %v5839_v49 = vpop.f32.mrf.mxu0  ;;  %v11656_v34 = vrot.slane %v8981_v53, 7  ;;  %v12166_v43 = vrot.slane %v8872_v4, 1  ;;  %v12168_v4 = vrot.slane %v8923_v15, 7 }
 0x347   : > { %12160 = vst [vmem:[#allocation13_spill] sm:$0xff] %v9224_v22  ;;  %v2626_v35 = vmax.f32 %v2604_v2, 0.0  ;;  %v4621_v5 = vsel %vm12162_vm9, %v4620_v27, %v8969_v13  ;;  %v9235_v2 = vor.u32 %v3579_v26, %v3578_v20  ;;  %v9240_v8 = vshrl.u32 %v9224_v22, 16  ;;  %v2734_v20 = vpop.permute.xlu0 %2733  ;;  %vm12178_vm9 = vmmov %vm12171_vm14 }
 0x348   : > { %v2606_v18 = vpop.f32.mrf.mxu0  ;;  %v9243_v7 = vshll.u32 %v9224_v22, 16  ;;  %v2882_v26 = vrot.slane %v9151_v40, 4 }
 0x349   : > { %v2752_v58 = vmul.f32 %v2729_v47, %v2626_v35  ;;  %v2607_v49 = vadd.f32 %v8661_v0, %v2606_v18  ;;  %v9247_v0 = vcombine.low %v9122_v12, %v8681_v63  ;;  %v3581_v63 = vsel %vm12165_vm2, %v8969_v13, %v9235_v2 }
 0x34a   : > { %4643 = vrot.lane.b32.xlu0 %v4621_v5, %s6071_s26  ;;  %3440 = vrot.lane.b32.xlu1 %v3404_v11, %s6065_s11  ;;  %v5840_v9 = vpop.f32.mrf.mxu0  ;;  %v2955_v5 = vld [vmem:[#allocation2 + $0x24] sm:$0xc]  ;;  %v4456_v11 = vor.u32 %v11656_v34, %v8950_v45  ;;  %v3752_v40 = vrot.slane %v9243_v7, 2  ;;  %v4532_v13 = vrot.slane %v9086_v37, 1 }
 0x34b   : > { %12163 = vst [vmem:[#allocation107_spill] sm:$0xff] %v9247_v0  ;;  %v5763_v18 = vpack.c.bf16 %v2752_v58, %v2752_v58  ;;  %v2627_v47 = vmax.f32 %v2607_v49, 0.0  ;;  %v3087_v58 = vor.u32 %v8923_v15, %v12166_v43  ;;  %v5681_v49 = vcombine.low %v2955_v5, %v8862_v62  ;;  %v2959_v34 = vld [vmem:[#allocation2 + $0x24] sm:$0x8] }
 0x34c   : > { %v3749_v9 = vrot.slane %v9240_v8, 1  ;;  %v12170_v5 = vrot.slane %v8950_v45, 1  ;;  %v11661_v43 = vrot.slane %v9043_v30, 2 }
 0x34d   : > { %v2883_v35 = vrot.slane %v5763_v18, 6  ;;  %v2753_v27 = vmul.f32 %v2734_v20, %v2627_v47  ;;  %v4457_v20 = vsel %vm12169_vm12, %v12168_v4, %v4456_v11  ;;  %v3512_v15 = vrot.slane %v5681_v49, 2 }
 0x34e   : > { %3480 = vrot.lane.b32.xlu0 %v3463_v33, %s6067_s25  ;;  %3621 = vrot.lane.b32.xlu1 %v3581_v63, %s6071_s26  ;;  %v3057_v33 = vshll.u32 %v9247_v0, 16  ;;  %v3092_v63 = vsel %vm413_vm0, %v3087_v58, %v12170_v5  ;;  %v9279_v57 = vor.u32 %v3752_v40, %v3749_v9  ;;  %v12174_v9 = vrot.slane %v9247_v0, 2 }
 0x34f   : > { %v2884_v18 = vsel %vm8666_vm10, %v2882_v26, %v2883_v35  ;;  %v5764_v47 = vpack.c.bf16 %v2753_v27, %v2753_v27  ;;  %v2885_v26 = vrot.slane %v2883_v35, 4  ;;  %v9293_v35 = vcombine.low %v2959_v34, %v8862_v62 }
 0x350   : > { %2924 = vst.msk [vmem:[#allocation2 + $0x68] sm:$0xf] %vm12167_vm13, %v2884_v18  ;;  %v9288_v45 = vsel %vm12171_vm14, %v9143_v41, %v9279_v57  ;;  %v3514_v40 = vsel %vm12159_vm4, %v3512_v15, %v12174_v9  ;;  %v3053_v49 = vshrl.u32 %v8876_v39, 16  ;;  %v9300_v18 = vrot.slane %v3057_v33, 1  ;;  %vm12180_vm13 = vmmov %vm12165_vm2 }
 0x351   : > { %v2886_v27 = vrot.slane %v5764_v47, 6  ;;  %12172 = vst [vmem:[#allocation23_spill] sm:$0xff] %v9288_v45  ;;  %v11663_v41 = vshrl.u32 %v9247_v0, 16  ;;  %v9309_v34 = vor.u32 %v4533_v24, %v4532_v13  ;;  %v3582_v47 = vrot.slane %v9086_v37, 2  ;;  %vm12184_vm14 = vmmov %vm12159_vm4 }
 0x352   : > { %4494 = vrot.lane.b32.xlu0 %v4457_v20, %s6065_s11  ;;  %3123 = vrot.lane.b32.xlu1 %v3092_v63, %s6052_s12  ;;  %v3583_v4 = vrot.slane %v9058_v56, 3  ;;  %v5997_v20 = vld [vmem:[%s11489_s3 + $0x38] sm:$0xff]   ;;  %v3055_v5 = vor.u32 %v3053_v49, %v8914_v36  ;;  %v3555_v63 = vshrl.u32 %v9293_v35, 16  ;;  %v11664_v24 = vrot.slane %v9141_v51, 3 }
 0x353   : > { %v2887_v11 = vsel %vm8666_vm10, %v2885_v26, %v2886_v27  ;;  %v2888_v58 = vrot.slane %v2886_v27, 4  ;;  %vm12177_vm10 = vmmov %vm12159_vm4  ;;  %v3558_v26 = vshll.u32 %v9293_v35, 16  ;;  %v3562_v13 = vrot.slane %v11663_v41, 2  ;;  %5206 = vmatpush1.bf16.msra.mxu1 %v5997_v20 }
 0x354   : > { %2925 = vst.msk [vmem:[#allocation2 + $0x6c] sm:$0xf] %vm12173_vm6, %v2887_v11  ;;  %v3524_v62 = vsel %vm12177_vm10, %v12176_v50, %v11661_v43  ;;  %v3563_v27 = vrot.slane %v3057_v33, 3  ;;  %v3060_v15 = vsel %vm413_vm0, %v3055_v5, %v9300_v18  ;;  %v4535_v11 = vsel %vm12178_vm9, %v9149_v44, %v9309_v34  ;;  %5207 = vmatprep.subr.bf16.mxu1 %v12036_v31  ;;  %v5998_v33 = vld [vmem:[%s11489_s3 + $0x30] sm:$0xff]   ;;  %vm12185_vm6 = vmmov %vm12165_vm2 }
 0x355   : > { %2926 = vst.msk [vmem:[#allocation2 + $0x70] sm:$0x3] %vm12175_vm11, %v2888_v58  ;;  %v9329_v58 = vor.u32 %v3583_v4, %v3582_v47  ;;  %v11658_v36 = vrot.slane %v8989_v28, 7  ;;  %v3557_v9 = vrot.slane %v3555_v63, 2  ;;  %v12179_v44 = vrot.slane %v8959_v38, 3  ;;  %v6000_v38 = vld [vmem:[%s11489_s3 + $0x28] sm:$0xff]   ;;  %vm12187_vm4 = vmmov %vm12164_vm7 }
 0x356   : > { %3531 = vrot.lane.b32.xlu0 %v3514_v40, %s6070_s29  ;;  %3541 = vrot.lane.b32.xlu1 %v3524_v62, %s6070_s29  ;;  %v3560_v40 = vrot.slane %v3558_v26, 3  ;;  %v3564_v62 = vor.u32 %v3563_v27, %v3562_v13  ;;  %v11660_v63 = vrot.slane %v8702_v32, 2  ;;  %v6001_v26 = vld [vmem:[%s11489_s3 + $0x20] sm:$0xff]   ;;  %vm12190_vm11 = vcmask 1046528   ;;  %vm12191_vm10 = vmmov %vm12187_vm4 }
 0x357   : > { %5208 = vmatpush1.bf16.msra.mxu1 %v5998_v33  ;;  %v3465_v49 = vsel %vm12164_vm7, %v12179_v44, %v11664_v24  ;;  %v3585_v50 = vsel %vm12165_vm2, %v9235_v2, %v9329_v58  ;;  %v3288_v47 = vor.u32 %v8986_v60, %v11658_v36  ;;  %v12181_v2 = vrot.slane %v8899_v55, 7  ;;  %v2961_v44 = vld [vmem:[#allocation2 + $0x28] sm:$0xe]  ;;  %vm12194_vm9 = vmmov %vm12190_vm11 }
 0x358   : > { %5209 = vmatprep.subr.bf16.mxu1 %v12036_v31  ;;  %v3561_v4 = vor.u32 %v3560_v40, %v3557_v9  ;;  %v12183_v55 = vrot.slane %v9247_v0, 2  ;;  %v3569_v27 = vsel %vm12185_vm6, %v3564_v62, %v8751_v29  ;;  %v6002_v9 = vld [vmem:[%s11489_s3 + $0x18] sm:$0xff]   ;;  %v3636_v40 = vrot.slane %v9293_v35, 3  ;;  %vm12198_vm7 = vmmov %vm12187_vm4 }
 0x359   : > { %v9359_v5 = vsel %vm12169_vm12, %v12181_v2, %v3288_v47  ;;  %v11662_v29 = vrot.slane %v9247_v0, 1  ;;  %v11659_v47 = vrot.slane %v8702_v32, 3  ;;  %v3673_v2 = vrot.slane %v8684_v46, 1  ;;  %vm12201_vm2 = vmmov %vm12194_vm9 }
 0x35a   : > { %3115 = vrot.lane.b32.xlu1 %v3060_v15, %s6052_s12  ;;  %4569 = vrot.lane.b32.xlu0 %v4535_v11, %s6067_s25  ;;  %v3565_v20 = vsel %vm12180_vm13, %v3561_v4, %v3564_v62  ;;  %12182 = vst [vmem:[#allocation25_spill] sm:$0xff] %v9359_v5  ;;  %v3516_v13 = vsel %vm12184_vm14, %v12183_v55, %v11660_v63  ;;  %v3184_v15 = vrot.slane %v9247_v0, 3  ;;  %v2963_v4 = vld [vmem:[#allocation2 + $0x28] sm:$0xc]  ;;  %v12189_v55 = vrot.slane %v8876_v39, 1 }
 0x35b   : > { %5210 = vmatpush1.bf16.msra.mxu1 %v6000_v38  ;;  %v9382_v33 = vld [vmem:[#allocation2 + $0x6c] sm:$0xf]  ;;  %v12195_v36 = vrot.slane %v8986_v60, 1  ;;  %v3425_v24 = vrot.slane %v9100_v59, 2  ;;  %v3426_v60 = vrot.slane %v9115_v14, 3  ;;  %vm11723_vm12 = vcmask 1043456  }
 0x35c   : > { %5211 = vmatprep.subr.bf16.mxu1 %v12036_v31  ;;  %12186 = vst [vmem:[#allocation15_spill] sm:$0xff] %v9382_v33  ;;  %v3637_v62 = vsel %vm12187_vm4, %v3636_v40, %v3184_v15  ;;  %v9420_v40 = vshll.u32 %v8684_v46, 16  ;;  %vm12203_vm13 = vsmask.f32 6400  ;;  %vm12208_vm4 = vsmask.f32 256 }
 0x35d   : > { %vm12205_vm14 = vmmov %vm12203_vm13 }
 0x35e   : > { %3482 = vrot.lane.b32.xlu0 %v3465_v49, %s6067_s25  ;;  %3623 = vrot.lane.b32.xlu1 %v3585_v50, %s6071_s26  ;;  %v5687_v49 = vcombine.low %v2961_v44, %v9122_v12  ;;  %v9390_v50 = vld [vmem:[#allocation2 + $0x68] sm:$0xf]  ;;  %v9425_v44 = vsel %vm12191_vm10, %v3184_v15, %v11659_v47  ;;  %v4304_v47 = vor.u32 %v12195_v36, %v8989_v28  ;;  %v3723_v41 = vrot.slane %v9420_v40, 2 }
 0x35f   : > { %5212 = vmatpush1.bf16.msra.mxu1 %v6001_v26  ;;  %v9396_v38 = vcombine.low %v9390_v50, %v9382_v33  ;;  %v9409_v26 = vcombine.low %v2963_v4, %v9122_v12  ;;  %v11665_v12 = vrot.slane %v9115_v14, 1  ;;  %vm12211_vm10 = vcmask 1045504  }
 0x360   : > { %5213 = vmatprep.subr.bf16.mxu1 %v12036_v31  ;;  %v9378_v11 = vpop.permute.xlu1 %4194 }
 0x361   : > { %12188 = vst [vmem:[#allocation20_spill] sm:$0xff] %v9396_v38  ;;  %v9432_v4 = vshll.u32 %v9396_v38, 16  ;;  %v3715_v63 = vshrl.u32 %v9409_v26, 16  ;;  %v3718_v43 = vshll.u32 %v9409_v26, 16 }
 0x362   : > { %3613 = vrot.lane.b32.xlu0 %v3565_v20, %s6071_s26  ;;  %4249 = vrot.lane.b32.xlu1 %v9359_v5, %s6054_s14  ;;  %v6003_v20 = vld [vmem:[%s11489_s3 + $0x10] sm:$0xff]  }
 0x363   : > { %5214 = vmatpush1.bf16.msra.mxu1 %v6002_v9  ;;  %v9417_v9 = vshrl.u32 %v8684_v46, 16  ;;  %12192 = vst [vmem:[#allocation52_spill] sm:$0xff] %v9432_v4  ;;  %v3761_v45 = vrot.slane %v9432_v4, 2  ;;  %v9479_v4 = vor.u32 %v3426_v60, %v3425_v24 }
 0x364   : > { %5215 = vmatprep.subr.bf16.mxu1 %v12036_v31 }
 0x365   : > { %12202 = vst [vmem:[#allocation28_spill] sm:$0xff] %v9479_v4 }
 0x366   : > { %3533 = vrot.lane.b32.xlu0 %v3516_v13, %s6070_s29  ;;  %3615 = vrot.lane.b32.xlu1 %v3569_v27, %s6071_s26  ;;  %v3140_v13 = vsel %vm12190_vm11, %v12189_v55, %v11662_v29  ;;  %v3672_v27 = vrot.slane %v5687_v49, 1  ;;  %v3722_v29 = vrot.slane %v9417_v9, 1  ;;  %vm12209_vm11 = vmmov %vm12203_vm13 }
 0x367   : > { %5216 = vmatpush1.bf16.msra.mxu1 %v6003_v20  ;;  %v6004_v20 = vld [vmem:[%s11489_s3 + $0x8] sm:$0xff]  }
 0x368   : > { %5217 = vmatprep.subr.bf16.mxu1 %v12036_v31  ;;  %v3674_v55 = vsel %vm12194_vm9, %v3672_v27, %v3673_v2  ;;  %v4306_v27 = vsel %vm413_vm0, %v4304_v47, %v11665_v12  ;;  %v3717_v47 = vrot.slane %v3715_v63, 1  ;;  %v3720_v12 = vrot.slane %v3718_v43, 2 }
 0x369   : > { %v3724_v33 = vor.u32 %v3723_v41, %v3722_v29  ;;  %vm12213_vm9 = vcmask 1040384  }
 0x36a   : > { %3644 = vrot.lane.b32.xlu0 %v3637_v62, %s6072_s30  ;;  %4272 = vrot.lane.b32.xlu1 %v8962_v52, %s6056_s16  ;;  %v9402_v35 = vpop.permute.xlu1 %3119  ;;  %v9429_v62 = vshrl.u32 %v9396_v38, 16  ;;  %v3185_v52 = vsel %vm12198_vm7, %v12197_v61, %v3184_v15  ;;  %v12199_v38 = vshrl.u32 %v9141_v51, 16  ;;  %v9487_v61 = vpop.permute.xlu0 %4243  ;;  %v3721_v41 = vor.u32 %v3720_v12, %v3717_v47  ;;  %vm12214_vm7 = vmmov %vm12211_vm10 }
 0x36b   : > { %5218 = vmatpush1.bf16.msra.mxu1 %v6004_v20  ;;  %v6005_v20 = vld [vmem:[%s11489_s3] sm:$0xff]   ;;  %v3729_v60 = vsel %vm12209_vm11, %v3724_v33, %v8800_v23 }
 0x36c   : > { %5219 = vmatprep.subr.bf16.mxu1 %v12036_v31  ;;  %v3758_v36 = vrot.slane %v9429_v62, 1  ;;  %v3725_v15 = vsel %vm12205_vm14, %v3721_v41, %v3724_v33  ;;  %v3405_v33 = vrot.slane %v9417_v9, 2  ;;  %vm12219_vm14 = vmmov %vm12209_vm11 }
 0x36e   : > { %3157 = vrot.lane.b32.xlu0 %v3140_v13, %s6054_s14  ;;  %3646 = vrot.lane.b32.xlu1 %v9425_v44, %s6072_s30  ;;  %v9438_v49 = vpop.permute.xlu1 %3111  ;;  %v9467_v5 = vor.u32 %v3761_v45, %v3758_v36  ;;  %v6007_v45 = vld [vmem:[%s11489_s3 + $0x68] ss:$0 sps:$4 sm:$0xff]   ;;  %v11677_v36 = vrot.slane %v9043_v30, 7 }
 0x36f   : > { %12193 = vst [vmem:[#allocation26_spill] sm:$0xff] %v9438_v49  ;;  %v9474_v49 = vrot.slane %v12199_v38, 7  ;;  %5220 = vmatpush1.bf16.msra.mxu1 %v6005_v20  ;;  %v5203_v63 = vsel %vm11723_vm12, %v6007_v45, 0  ;;  %v6008_v38 = vld [vmem:[%s11489_s3 + $0x60] sm:$0xff]   ;;  %v9523_v20 = vcombine.low %v9060_v10, %v9207_v48  ;;  %v3406_v10 = vrot.slane %v9420_v40, 3 }
 0x370   : > { %12196 = vst [vmem:[#allocation33_spill] sm:$0xff] %v9467_v5  ;;  %5225 = vmatprep.subr.bf16.mxu1 %v12036_v31  ;;  %v9485_v43 = vsel %vm12203_vm13, %v9279_v57, %v9467_v5  ;;  %v9501_v57 = vsel %vm12185_vm6, %v9071_v19, %v9479_v4  ;;  %v3352_v19 = vrot.slane %v8684_v46, 2  ;;  %v12212_v48 = vrot.slane %v8926_v17, 7  ;;  %vm12218_vm13 = vmmov %vm12214_vm7 }
 0x371   : > { %12204 = vst [vmem:[#allocation30_spill] sm:$0xff] %v9485_v43  ;;  %12206 = vst [vmem:[#allocation60_spill] sm:$0xff] %v9501_v57  ;;  %v11676_v45 = vrot.slane %v8717_v6, 2  ;;  %v9546_v41 = vshll.u32 %v9523_v20, 16  ;;  %v11679_v5 = vrot.slane %v8684_v46, 3 }
 0x372   : > { %3691 = vrot.lane.b32.xlu0 %v3674_v55, %s6073_s15  ;;  %4334 = vrot.lane.b32.xlu1 %v4306_v27, %s6057_s17  ;;  %v9462_v13 = vpop.permute.xlu1 %4328  ;;  %v12200_v55 = vrot.slane %v8717_v6, 1  ;;  %12210 = vst [vmem:[#allocation14_spill] sm:$0xff] %v9523_v20  ;;  %vm12347_vm12 = vsmask.f32 5376 }
 0x373   : > { %5226 = vmatpush2.bf16.msra.mxu1 %v5203_v63  ;;  %v6009_v63 = vld [vmem:[%s11489_s3 + $0x58] sm:$0xff]  }
 0x374   : > { %v3676_v27 = vsel %vm12201_vm2, %v3673_v2, %v12200_v55  ;;  %5227 = vmatprep.subr.bf16.mxu1 %v12036_v31  ;;  %v9513_v2 = vpop.permute.xlu0 %4266  ;;  %v3796_v55 = vrot.slane %v9409_v26, 2  ;;  %v9543_v26 = vshrl.u32 %v9523_v20, 16  ;;  %vm12215_vm2 = vmmov %vm12185_vm6 }
 0x375   : > { %vm12221_vm6 = vmmov %vm12208_vm4 }
 0x376   : > { %3202 = vrot.lane.b32.xlu0 %v3185_v52, %s6056_s16  ;;  %3693 = vrot.lane.b32.xlu1 %v3676_v27, %s6073_s15  ;;  %v9494_v24 = vpop.permute.xlu1 %3153  ;;  %v12207_v52 = vshll.u32 %v9141_v51, 16  ;;  %v3797_v23 = vsel %vm12211_vm10, %v3796_v55, %v3352_v19  ;;  %v4416_v27 = vsel %vm12213_vm9, %v12212_v48, %v11677_v36  ;;  %v4537_v55 = vrot.slane %v9546_v41, 2  ;;  %vm12225_vm11 = vmmov %vm12215_vm2 }
 0x377   : > { %5228 = vmatpush2.bf16.msra.mxu1 %v6008_v38  ;;  %v9563_v38 = vsel %vm12214_vm7, %v3352_v19, %v11676_v45  ;;  %v12217_v36 = vrot.slane %v9141_v51, 2  ;;  %vm12228_vm10 = vcmask 1046528   ;;  %vm12230_vm9 = vmmov %vm12214_vm7 }
 0x378   : > { %v3248_v29 = vor.u32 %v12207_v52, %v9474_v49  ;;  %5229 = vmatprep.subr.bf16.mxu1 %v12036_v31 }
 0x37a   : > { %3773 = vrot.lane.b32.xlu0 %v3725_v15, %s6074_s9  ;;  %4394 = vrot.lane.b32.xlu1 %v9501_v57, %s6059_s19  ;;  %v3249_v12 = vsel %vm12208_vm4, %v9017_v16, %v3248_v29  ;;  %v9525_v47 = vpop.permute.xlu1 %4388  ;;  %v9531_v16 = vpop.permute.xlu0 %4245  ;;  %v6010_v29 = vld [vmem:[%s11489_s3 + $0x50] sm:$0xff]   ;;  %vm12223_vm4 = vcmask 1044480  }
 0x37b   : > { %5230 = vmatpush2.bf16.msra.mxu1 %v6009_v63  ;;  %v11680_v63 = vrot.slane %v9086_v37, 7 }
 0x37c   : > { %5231 = vmatprep.subr.bf16.mxu1 %v12036_v31 }
 0x37e   : > { %3302 = vrot.lane.b32.xlu0 %v3249_v12, %s6057_s17  ;;  %3775 = vrot.lane.b32.xlu1 %v3729_v60, %s6074_s9  ;;  %v9553_v15 = vpop.permute.xlu1 %3198  ;;  %v9565_v12 = vor.u32 %v3406_v10, %v3405_v33  ;;  %v4536_v60 = vrot.slane %v9543_v26, 1  ;;  %v6011_v33 = vld [vmem:[%s11489_s3 + $0x48] sm:$0xff]  }
 0x37f   : > { %5232 = vmatpush2.bf16.msra.mxu1 %v6010_v29 }
 0x380   : > { %v3408_v10 = vsel %vm12215_vm2, %v9202_v54, %v9565_v12  ;;  %5233 = vmatprep.subr.bf16.mxu1 %v12036_v31  ;;  %v3353_v54 = vsel %vm12218_vm13, %v12217_v36, %v3352_v19  ;;  %v6013_v19 = vld [vmem:[%s11489_s3 + $0x40] sm:$0xff]   ;;  %vm12238_vm2 = vmmov %vm12223_vm4 }
 0x381   : > { %vm12240_vm13 = vmmov %vm12221_vm6 }
 0x382   : > { %3804 = vrot.lane.b32.xlu0 %v3797_v23, %s6075_s22  ;;  %4433 = vrot.lane.b32.xlu1 %v4416_v27, %s6063_s24  ;;  %v9584_v27 = vor.u32 %v4537_v55, %v4536_v60  ;;  %v4459_v55 = vor.u32 %v11680_v63, %v9058_v56 }
 0x383   : > { %5234 = vmatpush2.bf16.msra.mxu1 %v6011_v33 }
 0x384   : > { %v9555_v52 = vpop.permute.xlu0 %3121  ;;  %v4539_v60 = vsel %vm12219_vm14, %v9309_v34, %v9584_v27  ;;  %5235 = vmatprep.subr.bf16.mxu1 %v12036_v31  ;;  %v12220_v34 = vrot.slane %v8981_v53, 7  ;;  %v12222_v31 = vrot.slane %v9141_v51, 3  ;;  %v12224_v53 = vshrl.u32 %v9247_v0, 16  ;;  %vm12242_vm14 = vmmov %vm12221_vm6 }
 0x386   : > { %3325 = vrot.lane.b32.xlu0 %v9141_v51, %s6059_s19  ;;  %3806 = vrot.lane.b32.xlu1 %v9563_v38, %s6075_s22  ;;  %v4460_v56 = vsel %vm12221_vm6, %v12220_v34, %v4459_v55  ;;  %v3063_v55 = vor.u32 %v12224_v53, %v9300_v18  ;;  %v11683_v53 = vrot.slane %v8702_v32, 1  ;;  %vm12245_vm6 = vmmov %vm12225_vm11 }
 0x387   : > { %5236 = vmatpush2.bf16.msra.mxu1 %v6013_v19 }
 0x388   : > { %v9574_v23 = vpop.permute.xlu0 %4268  ;;  %v9576_v48 = vpop.permute.xlu1 %4330  ;;  %5879 = vmatprep.subr.bf16.mxu1 %v11997_v42  ;;  %v3068_v51 = vsel %vm413_vm0, %v3063_v55, %v8715_v25  ;;  %v12226_v25 = vld [vmem:[#allocation24_spill] sm:$0xff]  ;;  %v12227_v55 = vrot.slane %v9247_v0, 1 }
 0x389   : > { %v12231_v42 = vld [vmem:[#allocation96_spill] sm:$0xff] }
 0x38a   : > { %3830 = vrot.lane.b32.xlu0 %v9247_v0, %s6076_s18  ;;  %3442 = vrot.lane.b32.xlu1 %v3408_v10, %s6065_s11  ;;  %v3467_v10 = vsel %vm12223_vm4, %v12222_v31, %v11679_v5  ;;  %v11684_v5 = vrot.slane %v9523_v20, 2  ;;  %vm12250_vm4 = vcmask 64512  }
 0x38c   : > { %v9591_v29 = vpop.permute.xlu0 %3113  ;;  %v9593_v45 = vpop.permute.xlu1 %3155 }
 0x38d   : > { %12216 = vst [vmem:[#allocation39_spill] sm:$0xff] %v9593_v45  ;;  %v11694_v45 = vrot.slane %v9243_v7, 1 }
 0x38e   : > { %3370 = vrot.lane.b32.xlu0 %v3353_v54, %s6063_s24  ;;  %4571 = vrot.lane.b32.xlu1 %v4539_v60, %s6067_s25  ;;  %v3589_v54 = vrot.slane %v9543_v26, 2  ;;  %v3592_v60 = vrot.slane %v9546_v41, 3 }
 0x390   : > { %v9611_v36 = vpop.permute.xlu1 %4270  ;;  %v9613_v33 = vpop.permute.xlu0 %4247  ;;  %v9637_v31 = vor.u32 %v3592_v60, %v3589_v54 }
 0x392   : > { %4496 = vrot.lane.b32.xlu0 %v4460_v56, %s6065_s11  ;;  %3484 = vrot.lane.b32.xlu1 %v3467_v10, %s6067_s25  ;;  %v3594_v18 = vsel %vm12225_vm11, %v9329_v58, %v9637_v31  ;;  %v12229_v58 = vrot.slane %v9043_v30, 2  ;;  %vm12251_vm11 = vmmov %vm12250_vm4 }
 0x394   : > { %v9631_v19 = vpop.permute.xlu1 %4490  ;;  %v9633_v34 = vpop.permute.xlu0 %4427  ;;  %v3526_v63 = vsel %vm12230_vm9, %v12229_v58, %v11684_v5  ;;  %v11691_v5 = vrot.slane %v12231_v42, 3 }
 0x396   : > { %3832 = vrot.lane.b32.xlu0 %v8702_v32, %s6076_s18  ;;  %3117 = vrot.lane.b32.xlu1 %v3068_v51, %s6052_s12  ;;  %v3142_v51 = vsel %vm12228_vm10, %v12227_v55, %v11683_v53  ;;  %v11690_v55 = vrot.slane %v9417_v9, 7  ;;  %v12235_v53 = vrot.slane %v8702_v32, 2  ;;  %vm12253_vm10 = vcmask 130048  }
 0x397   : > { %vm12254_vm9 = vmmov %vm12253_vm10 }
 0x398   : > { %v9642_v56 = vpop.permute.xlu1 %3321  ;;  %v9644_v10 = vpop.permute.xlu0 %3298  ;;  %v3256_v17 = vor.u32 %v9420_v40, %v11690_v55 }
 0x39a   : > { %3125 = vrot.lane.b32.xlu0 %v12226_v25, %s6052_s12  ;;  %3625 = vrot.lane.b32.xlu1 %v3594_v18, %s6071_s26  ;;  %v11689_v25 = vrot.slane %v12231_v42, 2  ;;  %v9670_v18 = vrot.slane %v9100_v59, 7 }
 0x39c   : > { %v9654_v54 = vpop.permute.xlu1 %4429  ;;  %v9656_v60 = vpop.permute.xlu0 %4390  ;;  %12232 = vst [vmem:[#allocation65_spill] sm:$0xff] %v9670_v18  ;;  %v3518_v58 = vsel %vm12214_vm7, %v12235_v53, %v11689_v25  ;;  %v3296_v0 = vor.u32 %v9115_v14, %v9670_v18  ;;  %v12237_v53 = vrot.slane %v8702_v32, 3  ;;  %vm12256_vm7 = vcmask 1046528  }
 0x39e   : > { %3159 = vrot.lane.b32.xlu1 %v3142_v51, %s6054_s14  ;;  %3543 = vrot.lane.b32.xlu0 %v3526_v63, %s6070_s29  ;;  %v12236_v51 = vld [vmem:[#allocation9_spill] sm:$0xff]  ;;  %v9702_v25 = vsel %vm12238_vm2, %v12237_v53, %v11691_v5  ;;  %v3257_v53 = vsel %vm12242_vm14, %v9474_v49, %v3256_v17  ;;  %v12246_v17 = vrot.slane %v9115_v14, 1  ;;  %vm12257_vm2 = vcmask 195584  }
 0x3a0   : > { %v9674_v43 = vpop.permute.xlu1 %3300  ;;  %v9676_v57 = vpop.permute.xlu0 %3200  ;;  %v4307_v49 = vor.u32 %v12246_v17, %v9100_v59  ;;  %v9750_v59 = vsel %vm12251_vm11, %v8702_v32, %v9402_v35  ;;  %vm12263_vm11 = vcmask 1040384  }
 0x3a1   : > { %12233 = vst [vmem:[#allocation61_spill] sm:$0xff] %v9674_v43  ;;  %12234 = vst [vmem:[#allocation11_spill] sm:$0xff] %v9676_v57  ;;  %v12239_v43 = vrot.slane %v8989_v28, 7  ;;  %v4364_v57 = vrot.slane %v9243_v7, 3  ;;  %v12243_v28 = vld [vmem:[#allocation5_spill] sm:$0xff] }
 0x3a2   : > { %4274 = vrot.lane.b32.xlu1 %v12236_v51, %s6056_s16  ;;  %3535 = vrot.lane.b32.xlu0 %v3518_v58, %s6070_s29  ;;  %v4363_v58 = vrot.slane %v9240_v8, 2  ;;  %12252 = vst [vmem:[#allocation71_spill] sm:$0xff] %v9750_v59 }
 0x3a3   : > { %v9707_v51 = vsel %vm12240_vm13, %v12239_v43, %v3296_v0  ;;  %vm12258_vm13 = vmmov %vm12257_vm2 }
 0x3a4   : > { %v9690_v63 = vpop.permute.xlu0 %4332  ;;  %v9692_v39 = vpop.permute.xlu1 %4392  ;;  %12241 = vst [vmem:[#allocation57_spill] sm:$0xff] %v9707_v51  ;;  %v9717_v5 = vor.u32 %v4364_v57, %v4363_v58 }
 0x3a6   : > { %3648 = vrot.lane.b32.xlu1 %v9702_v25, %s6072_s30  ;;  %4251 = vrot.lane.b32.xlu0 %v9707_v51, %s6054_s14  ;;  %v4366_v51 = vsel %vm12245_vm6, %v9479_v4, %v9717_v5  ;;  %v11695_v4 = vrot.slane %v9543_v26, 7  ;;  %vm12261_vm6 = vcmask 523264  }
 0x3a8   : > { %v4566_v40 = vpop.permute.xlu0 %4565  ;;  %v4599_v55 = vpop.permute.xlu1 %4598  ;;  %v4462_v35 = vor.u32 %v11695_v4, %v9546_v41 }
 0x3aa   : > { %3304 = vrot.lane.b32.xlu1 %v3257_v53, %s6057_s17  ;;  %3617 = vrot.lane.b32.xlu0 %v12243_v28, %s6071_s26  ;;  %v4309_v53 = vsel %vm413_vm0, %v4307_v49, %v11694_v45  ;;  %v12247_v28 = vld [vmem:[#allocation97_spill] sm:$0xff] }
 0x3ac   : > { %v9722_v0 = vpop.permute.xlu0 %3366  ;;  %v9724_v43 = vpop.permute.xlu1 %3438 }
 0x3ad   : > { %12244 = vst [vmem:[#allocation74_spill] sm:$0xff] %v9724_v43  ;;  %v11699_v43 = vrot.slane %v12247_v28, 1 }
 0x3ae   : > { %3204 = vrot.lane.b32.xlu0 %v9425_v44, %s6056_s16  ;;  %4396 = vrot.lane.b32.xlu1 %v4366_v51, %s6059_s19  ;;  %v12248_v44 = vld [vmem:[#allocation99_spill] sm:$0xff]  ;;  %v12249_v51 = vld [vmem:[#allocation10_spill] sm:$0xff] }
 0x3af   : > { %v4656_v14 = vsel %vm12250_vm4, %v12249_v51, %v9378_v11  ;;  %v12255_v11 = vrot.slane %v8717_v6, 1  ;;  %vm4011_vm4 = vcmask 588800  }
 0x3b0   : > { %v4493_v57 = vpop.permute.xlu0 %4492  ;;  %v4568_v58 = vpop.permute.xlu1 %4567  ;;  %v4669_v45 = vsel %vm12253_vm10, %v4656_v14, %v9487_v61  ;;  %vm4032_vm10 = vcmask 654336  }
 0x3b1   : > { %v4689_v51 = vsel %vm12257_vm2, %v4669_v45, %v9513_v2  ;;  %vm12269_vm2 = vmmov %vm12261_vm6 }
 0x3b2   : > { %4336 = vrot.lane.b32.xlu0 %v4309_v53, %s6057_s17  ;;  %3777 = vrot.lane.b32.xlu1 %v12248_v44, %s6074_s9  ;;  %v4671_v53 = vsel %vm12254_vm9, %v9750_v59, %v9531_v16  ;;  %v3678_v44 = vsel %vm12256_vm7, %v12255_v11, %v11699_v43  ;;  %v4709_v16 = vsel %vm1385_vm15, %v4689_v51, %v9462_v13  ;;  %vm12265_vm9 = vcmask 1045504  }
 0x3b3   : > { %v4691_v61 = vsel %vm12258_vm13, %v4671_v53, %v9574_v23  ;;  %v4729_v14 = vsel %vm1427_vm3, %v4709_v16, %v9525_v47  ;;  %v9782_v11 = vcombine.low %v9205_v3, %v9390_v50  ;;  %v12260_v23 = vrot.slane %v9086_v37, 7 }
 0x3b4   : > { %v9752_v17 = vpop.permute.xlu0 %3323  ;;  %v9754_v49 = vpop.permute.xlu1 %3368  ;;  %v4711_v45 = vsel %vm1385_vm15, %v4691_v61, %v9576_v48  ;;  %v11698_v47 = vrot.slane %v9523_v20, 7  ;;  %v11697_v50 = vrot.slane %v12247_v28, 2  ;;  %v11696_v48 = vrot.slane %v8717_v6, 3 }
 0x3b5   : > { %v4463_v13 = vsel %vm12242_vm14, %v12260_v23, %v4462_v35  ;;  %v4731_v3 = vsel %vm1427_vm3, %v4711_v45, %v9656_v60  ;;  %v9811_v60 = vshll.u32 %v9782_v11, 16  ;;  %v12262_v61 = vrot.slane %v9043_v30, 7 }
 0x3b6   : > { %3695 = vrot.lane.b32.xlu0 %v3678_v44, %s6073_s15  ;;  %3372 = vrot.lane.b32.xlu1 %v9563_v38, %s6063_s24  ;;  %v4749_v38 = vsel %vm1469_vm5, %v4729_v14, %v9633_v34  ;;  %v9808_v44 = vshrl.u32 %v9782_v11, 16  ;;  %v4751_v51 = vsel %vm1469_vm5, %v4731_v3, %v9654_v54  ;;  %v12266_v14 = vrot.slane %v8684_v46, 3 }
 0x3b7   : > { %v4769_v34 = vsel %vm1511_vm1, %v4749_v38, %v9631_v19  ;;  %v4418_v19 = vsel %vm12263_vm11, %v12262_v61, %v11698_v47  ;;  %v4771_v16 = vsel %vm1511_vm1, %v4751_v51, %v4493_v57  ;;  %vm12267_vm7 = vcmask 1044480  }
 0x3b8   : > { %v9784_v4 = vpop.permute.xlu0 %4431  ;;  %v9786_v2 = vpop.permute.xlu1 %3539  ;;  %v4789_v35 = vsel %vm12261_vm6, %v4769_v34, %v4566_v40  ;;  %v12264_v40 = vrot.slane %v8717_v6, 2  ;;  %v3469_v45 = vsel %vm12267_vm7, %v12266_v14, %v11696_v48  ;;  %v4540_v3 = vrot.slane %v9808_v44, 1 }
 0x3b9   : > { %12259 = vst [vmem:[#allocation81_spill] sm:$0xff] %v9786_v2  ;;  %v4809_v57 = vsel %vm4011_vm4, %v4789_v35, %v4599_v55  ;;  %v4541_v34 = vrot.slane %v9811_v60, 2  ;;  %v4791_v51 = vsel %vm12269_vm2, %v4771_v16, %v4568_v58  ;;  %vm12270_vm13 = vcmask 64512  }
 0x3ba   : > { %3327 = vrot.lane.b32.xlu0 %v8684_v46, %s6059_s19  ;;  %4498 = vrot.lane.b32.xlu1 %v4463_v13, %s6065_s11  ;;  %v9830_v54 = vsel %vm12265_vm9, %v12264_v40, %v11697_v50  ;;  %v11703_v13 = vrot.slane %v9546_v41, 1  ;;  %v3598_v46 = vrot.slane %v9808_v44, 2  ;;  %v9852_v55 = vsel %vm12270_vm13, %v12231_v42, %v9555_v52  ;;  %v12273_v52 = vld [vmem:[#allocation19_spill] sm:$0xff] }
 0x3bb   : > { %12271 = vst [vmem:[#allocation35_spill] sm:$0xff] %v9852_v55  ;;  %v4810_v35 = vsel %vm4011_vm4, %v4791_v51, %v9786_v2  ;;  %vm12272_vm14 = vcmask 130048   ;;  %vm12274_vm6 = vsmask.f32 5376  ;;  %v12275_v51 = vld [vmem:[#allocation29_spill] sm:$0xff]  ;;  %v9873_v48 = vor.u32 %v4541_v34, %v4540_v3 }
 0x3bc   : > { %v4644_v37 = vpop.permute.xlu0 %4643  ;;  %v9805_v53 = vpop.permute.xlu1 %3440  ;;  %v4673_v58 = vsel %vm12272_vm14, %v9852_v55, %v9613_v33  ;;  %vm12276_vm11 = vcmask 195584   ;;  %vm12278_vm9 = vsmask.f32 6400  ;;  %vm12279_vm7 = vmmov %vm12274_vm6  ;;  %v11700_v34 = vrot.slane %v12231_v42, 1 }
 0x3bd   : > { %v4825_v61 = vsel %vm4032_vm10, %v4809_v57, %v4644_v37  ;;  %v3412_v57 = vsel %vm12274_vm6, %v9565_v12, %v12273_v52  ;;  %v4693_v33 = vsel %vm12276_vm11, %v4673_v58, %v9611_v36  ;;  %v4543_v3 = vsel %vm12278_vm9, %v9584_v27, %v9873_v48 }
 0x3be   : > { %4435 = vrot.lane.b32.xlu0 %v4418_v19, %s6063_s24  ;;  %3834 = vrot.lane.b32.xlu1 %v12231_v42, %s6076_s18  ;;  %v3601_v19 = vrot.slane %v9811_v60, 3  ;;  %v4842_v16 = vshll.u32 %v4825_v61, 16  ;;  %v4713_v12 = vsel %vm1385_vm15, %v4693_v33, %v9690_v63  ;;  %vm12282_vm13 = vcmask 1046528  }
 0x3bf   : > { %v4733_v63 = vsel %vm1427_vm3, %v4713_v12, %v9692_v39  ;;  %v12281_v39 = vrot.slane %v8702_v32, 1  ;;  %vm12284_vm14 = vcmask 1045504   ;;  %vm12289_vm11 = vcmask 1044480  }
 0x3c0   : > { %v9838_v38 = vpop.permute.xlu0 %3480  ;;  %v9840_v23 = vpop.permute.xlu1 %3621  ;;  %v9875_v50 = vor.u32 %v3601_v19, %v3598_v46  ;;  %v4844_v52 = vrot.slane %v4842_v16, 1  ;;  %v9895_v46 = vrot.slane %v9782_v11, 2  ;;  %v4840_v19 = vshrl.u32 %v4825_v61, 16  ;;  %vm12287_vm6 = vmmov %vm12284_vm14 }
 0x3c1   : > { %12268 = vst [vmem:[#allocation75_spill] sm:$0xff] %v9840_v23  ;;  %v4826_v37 = vsel %vm4032_vm10, %v4810_v35, %v9840_v23  ;;  %v4753_v27 = vsel %vm1469_vm5, %v4733_v63, %v9784_v4  ;;  %v3144_v61 = vsel %vm12282_vm13, %v12281_v39, %v11700_v34  ;;  %v11701_v4 = vrot.slane %v9240_v8, 7 }
 0x3c2   : > { %3808 = vrot.lane.b32.xlu0 %v9830_v54, %s6075_s22  ;;  %3486 = vrot.lane.b32.xlu1 %v3469_v45, %s6067_s25  ;;  %v4173_v45 = vsel %vm413_vm0, %v12275_v51, %v11703_v13  ;;  %v4846_v35 = vshll.u32 %v4826_v37, 16  ;;  %v3603_v36 = vsel %vm12279_vm7, %v9637_v31, %v9875_v50  ;;  %v4845_v16 = vor.u32 %v4844_v52, %v4840_v19 }
 0x3c3   : > { %v12286_v19 = vrot.slane %v12231_v42, 2  ;;  %vm12290_vm9 = vsmask.f32 256  ;;  %vm12296_vm13 = vsmask.f32 5376  ;;  %v12314_v59 = vrot.slane %v12247_v28, 2 }
 0x3c4   : > { %v4495_v40 = vpop.permute.xlu0 %4494  ;;  %v9864_v14 = vpop.permute.xlu1 %3123  ;;  %v4848_v58 = vrot.slane %v4846_v35, 1  ;;  %v12283_v35 = vrot.slane %v9523_v20, 2  ;;  %vm12294_vm7 = vmmov %vm12290_vm9 }
 0x3c5   : > { %v4773_v31 = vsel %vm1511_vm1, %v4753_v27, %v4495_v40  ;;  %v3520_v27 = vsel %vm12287_vm6, %v12286_v19, %v9093_v21  ;;  %v12288_v21 = vrot.slane %v12231_v42, 3  ;;  %vm12307_vm6 = vmmov %vm12294_vm7 }
 0x3c6   : > { %3444 = vrot.lane.b32.xlu0 %v3412_v57, %s6065_s11  ;;  %4196 = vrot.lane.b32.xlu1 %v4173_v45, %s6052_s12  ;;  %v3528_v12 = vsel %vm12284_vm14, %v12283_v35, %v9895_v46  ;;  %v4849_v40 = vsel %vm413_vm0, %v4845_v16, %v4848_v58  ;;  %v4218_v16 = vor.u32 %v11701_v4, %v9243_v7  ;;  %vm12302_vm14 = vcmask 1046528  }
 0x3c7   : > { %v4953_v4 = vshrl.u32 %v4849_v40, 16 }
 0x3c8   : > { %v9883_v47 = vpop.permute.xlu0 %3531  ;;  %v9885_v43 = vpop.permute.xlu1 %3541 }
 0x3c9   : > { %12277 = vst [vmem:[#allocation45_spill] sm:$0xff] %v9885_v43 }
 0x3ca   : > { %4573 = vrot.lane.b32.xlu0 %v4543_v3, %s6067_s25  ;;  %3627 = vrot.lane.b32.xlu1 %v3603_v36, %s6071_s26  ;;  %v11702_v36 = vrot.slane %v8865_v1, 3 }
 0x3cc   : > { %v9904_v57 = vpop.permute.xlu1 %3115  ;;  %v4570_v45 = vpop.permute.xlu0 %4569  ;;  %v9948_v19 = vsel %vm12289_vm11, %v12288_v21, %v11702_v36  ;;  %vm12309_vm11 = vcmask 64512  }
 0x3cd   : > { %12280 = vst [vmem:[#allocation59_spill] sm:$0xff] %v9904_v57  ;;  %v4793_v33 = vsel %vm12269_vm2, %v4773_v31, %v4570_v45  ;;  %v4955_v31 = vshll.u32 %v4849_v40, 16  ;;  %v4850_v45 = vshrl.u32 %v4826_v37, 16  ;;  %v4219_v37 = vsel %vm12290_vm9, %v9670_v18, %v4218_v16  ;;  %v12292_v16 = vld [vmem:[#allocation95_spill] sm:$0xff]  ;;  %v12295_v40 = vld [vmem:[#allocation22_spill] sm:$0xff] }
 0x3ce   : > { %3161 = vrot.lane.b32.xlu1 %v3144_v61, %s6054_s14  ;;  %3545 = vrot.lane.b32.xlu0 %v3528_v12, %s6070_s29  ;;  %v4811_v52 = vsel %vm4011_vm4, %v4793_v33, %v9885_v43  ;;  %vm4053_vm2 = vcmask 719872   ;;  %vm12311_vm9 = vcmask 1040384   ;;  %v10108_v57 = vld [vmem:[#allocation2 + $0x74] sm:$0xf] }
 0x3cf   : > { %v4852_v39 = vor.u32 %v4850_v45, %v4848_v58  ;;  %v4957_v34 = vrot.slane %v4955_v31, 1  ;;  %v12291_v58 = vld [vmem:[#allocation52_spill] sm:$0xff]  ;;  %v12293_v31 = vrot.slane %v9417_v9, 7 }
 0x3d0   : > { %v9922_v3 = vpop.permute.xlu0 %3482  ;;  %v9924_v32 = vpop.permute.xlu1 %3623  ;;  %v4368_v45 = vrot.slane %v12291_v58, 3 }
 0x3d1   : > { %12285 = vst [vmem:[#allocation73_spill] sm:$0xff] %v9924_v32  ;;  %v4827_v63 = vsel %vm4032_vm10, %v4811_v52, %v9924_v32  ;;  %v3265_v32 = vsel %vm12294_vm7, %v12293_v31, %v12292_v16  ;;  %v2927_v16 = vld [vmem:[#allocation2 + $0x14] sm:$0xf]  ;;  %vm12312_vm7 = vcmask 130048  }
 0x3d2   : > { %v4853_v33 = vshll.u32 %v4827_v63, 16  ;;  %4276 = vrot.lane.b32.xlu1 %v9224_v22, %s6056_s16  ;;  %3537 = vrot.lane.b32.xlu0 %v3520_v27, %s6070_s29  ;;  %v4857_v35 = vshrl.u32 %v4827_v63, 16  ;;  %v4367_v27 = vrot.slane %v9429_v62, 2 }
 0x3d4   : > { %v4855_v61 = vrot.slane %v4853_v33, 1  ;;  %v9939_v12 = vpop.permute.xlu0 %3613  ;;  %v9941_v52 = vpop.permute.xlu1 %4249  ;;  %v9968_v55 = vor.u32 %v4368_v45, %v4367_v27 }
 0x3d6   : > { %v9954_v63 = vor.u32 %v4857_v35, %v4855_v61  ;;  %3650 = vrot.lane.b32.xlu1 %v9948_v19, %s6072_s30  ;;  %4253 = vrot.lane.b32.xlu0 %v4219_v37, %s6054_s14  ;;  %v4856_v33 = vsel %vm413_vm0, %v4852_v39, %v4855_v61  ;;  %v4958_v35 = vor.u32 %v4957_v34, %v4953_v4  ;;  %v11708_v4 = vrot.slane %v12291_v58, 1 }
 0x3d7   : > { %v4960_v21 = vshll.u32 %v4856_v33, 16  ;;  %v4971_v43 = vshrl.u32 %v4856_v33, 16  ;;  %v4370_v34 = vsel %vm12296_vm13, %v9717_v5, %v9968_v55  ;;  %v12299_v5 = vld [vmem:[#allocation6_spill] sm:$0xff]  ;;  %vm12315_vm13 = vcmask 1045504  }
 0x3d8   : > { %v9960_v36 = vpop.permute.xlu0 %3533  ;;  %v9962_v13 = vpop.permute.xlu1 %3615  ;;  %v11710_v33 = vrot.slane %v12299_v5, 1 }
 0x3d9   : > { %v4962_v18 = vrot.slane %v4960_v21, 1  ;;  %v11711_v21 = vrot.slane %v9808_v44, 7 }
 0x3da   : > { %3306 = vrot.lane.b32.xlu1 %v3265_v32, %s6057_s17  ;;  %3619 = vrot.lane.b32.xlu0 %v12295_v40, %s6071_s26 }
 0x3db   : > { %v4963_v39 = vsel %vm413_vm0, %v4958_v35, %v4962_v18  ;;  %v9974_v61 = vor.u32 %v4971_v43, %v4962_v18  ;;  %v12297_v18 = vrot.slane %v9243_v7, 1  ;;  %v12301_v35 = vrot.slane %v12247_v28, 1 }
 0x3dc   : > { %v9976_v37 = vpop.permute.xlu0 %3644  ;;  %5726 = vmatprep.mubr.msk.bf16.mxu1 %vm4053_vm2, %v4963_v39  ;;  %v9979_v9 = vpop.permute.xlu1 %4272  ;;  %v4465_v39 = vor.u32 %v11711_v21, %v9811_v60  ;;  %v11714_v21 = vrot.slane %v9782_v11, 7 }
 0x3dd   : > { %v4310_v43 = vor.u32 %v12297_v18, %v9240_v8  ;;  %v3680_v40 = vsel %vm12302_vm14, %v12301_v35, %v11710_v33  ;;  %v6040_v18 = vld [vmem:[#allocation2 + $0x18] sm:$0xf]  ;;  %v12306_v35 = vrot.slane %v9543_v26, 7  ;;  %vm12318_vm14 = vcmask 1044480  }
 0x3de   : > { %3206 = vrot.lane.b32.xlu0 %v9702_v25, %s6056_s16  ;;  %4398 = vrot.lane.b32.xlu1 %v4370_v34, %s6059_s19  ;;  %v12300_v25 = vld [vmem:[#allocation38_spill] sm:$0xff]  ;;  %v2965_v34 = vld [vmem:[#allocation2 + $0x70] sm:$0xf] }
 0x3df   : > { %v4312_v45 = vsel %vm413_vm0, %v4310_v43, %v11708_v4  ;;  %v5653_v43 = vcombine.low %v2927_v16, %v6040_v18  ;;  %v12304_v4 = vld [vmem:[#allocation15_spill] sm:$0xff]  ;;  %v4466_v33 = vsel %vm12307_vm6, %v12306_v35, %v4465_v39  ;;  %v12310_v35 = vrot.slane %v9523_v20, 7 }
 0x3e0   : > { %v9991_v32 = vpop.permute.xlu0 %3157  ;;  %v9993_v27 = vpop.permute.xlu1 %3646  ;;  %v10023_v23 = vcombine.low %v12304_v4, %v2965_v34  ;;  %v11721_v4 = vrot.slane %v12299_v5, 2  ;;  %vm12319_vm6 = vcmask 195584  }
 0x3e1   : > { %12298 = vst [vmem:[#allocation37_spill] sm:$0xff] %v9991_v32 }
 0x3e2   : > { %4338 = vrot.lane.b32.xlu0 %v4312_v45, %s6057_s17  ;;  %3779 = vrot.lane.b32.xlu1 %v12300_v25, %s6074_s9  ;;  %12305 = vst [vmem:[#allocation88_spill] sm:$0xff] %v10023_v23  ;;  %v10041_v39 = vshll.u32 %v10023_v23, 16  ;;  %v10049_v51 = vshrl.u32 %v10023_v23, 16 }
 0x3e4   : > { %v10003_v7 = vpop.permute.xlu0 %3691  ;;  %v10005_v31 = vpop.permute.xlu1 %4334  ;;  %v4545_v22 = vrot.slane %v10041_v39, 2  ;;  %v4544_v30 = vrot.slane %v10049_v51, 1 }
 0x3e6   : > { %3697 = vrot.lane.b32.xlu0 %v3680_v40, %s6073_s15  ;;  %3374 = vrot.lane.b32.xlu1 %v9830_v54, %s6063_s24  ;;  %v12308_v54 = vld [vmem:[#allocation26_spill] sm:$0xff] }
 0x3e7   : > { %v3852_v16 = vsel %vm12309_vm11, %v5653_v43, %v12308_v54 }
 0x3e8   : > { %v10018_v45 = vpop.permute.xlu0 %3202  ;;  %v10020_v25 = vpop.permute.xlu1 %3693  ;;  %v3872_v43 = vsel %vm12312_vm7, %v3852_v16, %v9494_v24  ;;  %v12317_v24 = vrot.slane %v8717_v6, 3 }
 0x3e9   : > { %12303 = vst [vmem:[#allocation4_spill] sm:$0xff] %v10018_v45  ;;  %v3892_v20 = vsel %vm12319_vm6, %v3872_v43, %v9553_v15 }
 0x3ea   : > { %3329 = vrot.lane.b32.xlu0 %v8717_v6, %s6059_s19  ;;  %4500 = vrot.lane.b32.xlu1 %v4466_v33, %s6065_s11  ;;  %v4420_v33 = vsel %vm12311_vm9, %v12310_v35, %v11714_v21  ;;  %v10065_v35 = vsel %vm12315_vm13, %v12314_v59, %v11721_v4  ;;  %v12316_v21 = vrot.slane %v12247_v28, 3  ;;  %v4623_v59 = vrot.slane %v10041_v39, 3  ;;  %v12320_v6 = vld [vmem:[#allocation94_spill] sm:$0xff]  ;;  %vm12321_vm9 = vmmov %vm12315_vm13 }
 0x3eb   : > { %v3912_v4 = vsel %vm1385_vm15, %v3892_v20, %v9644_v10  ;;  %v10095_v10 = vor.u32 %v4545_v22, %v4544_v30  ;;  %vm12325_vm13 = vmmov %vm12319_vm6  ;;  %vm12328_vm6 = vsmask.f32 5376 }
 0x3ec   : > { %v10034_v40 = vpop.permute.xlu0 %3773  ;;  %v10036_v18 = vpop.permute.xlu1 %4394  ;;  %v3471_v16 = vsel %vm12318_vm14, %v12317_v24, %v12316_v21  ;;  %v3854_v21 = vsel %vm12309_vm11, %v12320_v6, %v9591_v29  ;;  %v3932_v43 = vsel %vm1427_vm3, %v3912_v4, %v9642_v56  ;;  %v12323_v6 = vld [vmem:[#allocation21_spill] sm:$0xff]  ;;  %v12324_v56 = vld [vmem:[#allocation11_spill] sm:$0xff]  ;;  %vm12327_vm14 = vsmask.f32 6400 }
 0x3ed   : > { %v3952_v29 = vsel %vm1469_vm5, %v3932_v43, %v9722_v0  ;;  %v4547_v43 = vsel %vm12327_vm14, %v9873_v48, %v10095_v10  ;;  %vm12330_vm11 = vcmask 523264   ;;  %vm11735_vm14 = vcmask 982016  }
 0x3ee   : > { %4437 = vrot.lane.b32.xlu0 %v4420_v33, %s6063_s24  ;;  %3836 = vrot.lane.b32.xlu1 %v8865_v1, %s6076_s18  ;;  %v11722_v33 = vrot.slane %v10023_v23, 2 }
 0x3f0   : > { %v10056_v54 = vpop.permute.xlu0 %3302  ;;  %v10058_v2 = vpop.permute.xlu1 %3775  ;;  %v4591_v20 = vsel %vm12321_vm9, %v9895_v46, %v11722_v33  ;;  %vm4074_vm9 = vcmask 785408   ;;  %v12332_v33 = vld [vmem:[#allocation12_spill] sm:$0xff] }
 0x3f1   : > { %12313 = vst [vmem:[#allocation54_spill] sm:$0xff] %v10056_v54  ;;  %v4622_v54 = vrot.slane %v10049_v51, 2 }
 0x3f2   : > { %3810 = vrot.lane.b32.xlu0 %v10065_v35, %s6075_s22  ;;  %3488 = vrot.lane.b32.xlu1 %v3471_v16, %s6067_s25  ;;  %v12322_v16 = vld [vmem:[#allocation39_spill] sm:$0xff] }
 0x3f3   : > { %v10097_v45 = vor.u32 %v4623_v59, %v4622_v54  ;;  %v3874_v32 = vsel %vm12312_vm7, %v3854_v21, %v12322_v16  ;;  %v11733_v54 = vrot.slane %v9811_v60, 1  ;;  %v10114_v59 = vcombine.low %v2965_v34, %v10108_v57  ;;  %v12326_v21 = vld [vmem:[#allocation74_spill] sm:$0xff]  ;;  %v12329_v16 = vld [vmem:[#allocation61_spill] sm:$0xff] }
 0x3f4   : > { %v3805_v24 = vpop.permute.xlu0 %3804  ;;  %v10087_v15 = vpop.permute.xlu1 %4433  ;;  %v3894_v4 = vsel %vm12325_vm13, %v3874_v32, %v12324_v56  ;;  %v3972_v0 = vsel %vm1511_vm1, %v3952_v29, %v12326_v21  ;;  %v12331_v29 = vrot.slane %v9546_v41, 1  ;;  %vm4095_vm7 = vcmask 850944  }
 0x3f5   : > { %v4625_v32 = vsel %vm12328_vm6, %v9875_v50, %v10097_v45  ;;  %v3992_v34 = vsel %vm12330_vm11, %v3972_v0, %v9838_v38  ;;  %v10147_v41 = vshrl.u32 %v10114_v59, 16  ;;  %vm4116_vm13 = vcmask 916480   ;;  %vm12334_vm6 = vmmov %vm12330_vm11 }
 0x3f6   : > { %3446 = vrot.lane.b32.xlu0 %v12323_v6, %s6065_s11  ;;  %4600 = vrot.lane.b32.xlu1 %v4591_v20, %s6070_s29  ;;  %v11731_v20 = vrot.slane %v9429_v62, 7  ;;  %v3914_v6 = vsel %vm1385_vm15, %v3894_v4, %v12329_v16  ;;  %v4174_v48 = vor.u32 %v12331_v29, %v9543_v26  ;;  %v4013_v21 = vsel %vm4011_vm4, %v3992_v34, %v9883_v47 }
 0x3f7   : > { %v3934_v56 = vsel %vm1427_vm3, %v3914_v6, %v9752_v17  ;;  %v11732_v4 = vrot.slane %v12332_v33, 3  ;;  %v4034_v38 = vsel %vm4032_vm10, %v4013_v21, %v9939_v12  ;;  %v10155_v12 = vshll.u32 %v10114_v59, 16  ;;  %v12333_v6 = vld [vmem:[#allocation20_spill] sm:$0xff] }
 0x3f8   : > { %v10110_v30 = vpop.permute.xlu0 %3325  ;;  %v3807_v22 = vpop.permute.xlu1 %3806  ;;  %v4176_v26 = vsel %vm413_vm0, %v4174_v48, %v11733_v54  ;;  %v4055_v17 = vsel %vm4053_vm2, %v4034_v38, %v9976_v37  ;;  %v4221_v47 = vor.u32 %v11731_v20, %v12291_v58  ;;  %v11730_v29 = vrot.slane %v8865_v1, 1  ;;  %v12366_v20 = vld [vmem:[#allocation7_spill] sm:$0xff]  ;;  %v12369_v54 = vld [vmem:[#allocation37_spill] sm:$0xff] }
 0x3f9   : > { %v4076_v16 = vsel %vm4074_vm9, %v4055_v17, %v10003_v7  ;;  %v12335_v21 = vrot.slane %v8865_v1, 3  ;;  %vm12336_vm11 = vcmask 1044480   ;;  %v4372_v17 = vrot.slane %v10155_v12, 3 }
 0x3fa   : > { %4575 = vrot.lane.b32.xlu0 %v4547_v43, %s6067_s25  ;;  %4645 = vrot.lane.b32.xlu1 %v4625_v32, %s6071_s26  ;;  %v3954_v32 = vsel %vm1469_vm5, %v3934_v56, %v9754_v49  ;;  %v4097_v34 = vsel %vm4095_vm7, %v4076_v16, %v10034_v40 }
 0x3fb   : > { %v3974_v37 = vsel %vm1511_vm1, %v3954_v32, %v9805_v53  ;;  %v4118_v48 = vsel %vm4116_vm13, %v4097_v34, %v3805_v24  ;;  %v10179_v38 = vsel %vm12336_vm11, %v12335_v21, %v11732_v4  ;;  %v4371_v53 = vrot.slane %v10147_v41, 2  ;;  %v12368_v4 = vld [vmem:[#allocation8_spill] sm:$0xff] }
 0x3fc   : > { %v3831_v0 = vpop.permute.xlu0 %3830  ;;  %v10141_v43 = vpop.permute.xlu1 %3442  ;;  %v3994_v49 = vsel %vm12334_vm6, %v3974_v37, %v9922_v3  ;;  %v12337_v3 = vrot.slane %v9240_v8, 7  ;;  %vm12338_vm6 = vsmask.f32 256  ;;  %v12339_v8 = vrot.slane %v12231_v42, 1 }
 0x3fd   : > { %v4015_v40 = vsel %vm4011_vm4, %v3994_v49, %v9960_v36  ;;  %vm12340_vm11 = vcmask 1046528  }
 0x3fe   : > { %4198 = vrot.lane.b32.xlu0 %v4176_v26, %s6052_s12  ;;  %4278 = vrot.lane.b32.xlu1 %v12333_v6, %s6056_s16  ;;  %v4139_v26 = vsel %vm11735_vm14, %v4118_v48, %v3831_v0  ;;  %v4222_v24 = vsel %vm12338_vm6, %v12337_v3, %v4221_v47  ;;  %v4036_v32 = vsel %vm4032_vm10, %v4015_v40, %v9962_v13  ;;  %v12341_v13 = vld [vmem:[#allocation41_spill] sm:$0xff]  ;;  %vm12342_vm6 = vcmask 64512  }
 0x3ff   : > { %v4944_v16 = vshll.u32 %v4139_v26, 16  ;;  %v4057_v36 = vsel %vm4053_vm2, %v4036_v32, %v9993_v27  ;;  %v3146_v0 = vsel %vm12340_vm11, %v12339_v8, %v11730_v29  ;;  %v10203_v47 = vor.u32 %v4372_v17, %v4371_v53  ;;  %v12365_v29 = vld [vmem:[#allocation59_spill] sm:$0xff] }
 0x400   : > { %v10172_v7 = vpop.permute.xlu0 %3370  ;;  %v4572_v56 = vpop.permute.xlu1 %4571  ;;  %v4078_v49 = vsel %vm4074_vm9, %v4057_v36, %v10020_v25  ;;  %v10213_v27 = vsel %vm12342_vm6, %v8865_v1, %v9864_v14  ;;  %vm12344_vm11 = vcmask 130048   ;;  %v12345_v3 = vrot.slane %v12291_v58, 1 }
 0x401   : > { %12343 = vst [vmem:[#allocation42_spill] sm:$0xff] %v10213_v27  ;;  %v4099_v42 = vsel %vm4095_vm7, %v4078_v49, %v10058_v2  ;;  %v4675_v48 = vsel %vm12344_vm11, %v10213_v27, %v9941_v52  ;;  %v4946_v25 = vrot.slane %v4944_v16, 1  ;;  %vm12346_vm6 = vcmask 195584  }
 0x402   : > { %3652 = vrot.lane.b32.xlu1 %v10179_v38, %s6072_s30  ;;  %4255 = vrot.lane.b32.xlu0 %v4222_v24, %s6054_s14  ;;  %v4120_v21 = vsel %vm4116_vm13, %v4099_v42, %v3807_v22  ;;  %v4313_v24 = vor.u32 %v12345_v3, %v9429_v62  ;;  %v4695_v14 = vsel %vm12346_vm6, %v4675_v48, %v9979_v9  ;;  %v11727_v52 = vrot.slane %v10155_v12, 1 }
 0x403   : > { %v4374_v2 = vsel %vm12347_vm12, %v9968_v55, %v10203_v47  ;;  %v4715_v22 = vsel %vm1385_vm15, %v4695_v14, %v10005_v31  ;;  %v4942_v32 = vshrl.u32 %v4139_v26, 16  ;;  %vm12351_vm12 = vcmask 523264   ;;  %v2970_v14 = vld [vmem:[#allocation2 + $0x78] sm:$0xf] }
 0x404   : > { %v4497_v37 = vpop.permute.xlu0 %4496  ;;  %v10194_v34 = vpop.permute.xlu1 %3484  ;;  %v4735_v58 = vsel %vm1427_vm3, %v4715_v22, %v10036_v18  ;;  %v11725_v18 = vrot.slane %v10049_v51, 7  ;;  %vm12354_vm11 = vcmask 1046528   ;;  %vm12356_vm6 = vsmask.f32 256 }
 0x405   : > { %v4755_v9 = vsel %vm1469_vm5, %v4735_v58, %v10087_v15  ;;  %v4947_v55 = vor.u32 %v4946_v25, %v4942_v32  ;;  %v12353_v25 = vrot.slane %v12299_v5, 1 }
 0x406   : > { %3308 = vrot.lane.b32.xlu1 %v12341_v13, %s6057_s17  ;;  %3163 = vrot.lane.b32.xlu0 %v3146_v0, %s6054_s14  ;;  %v4775_v26 = vsel %vm1511_vm1, %v4755_v9, %v4497_v37  ;;  %v4315_v0 = vsel %vm413_vm0, %v4313_v24, %v11727_v52  ;;  %v12350_v13 = vld [vmem:[#allocation106_spill] sm:$0xff]  ;;  %v4468_v3 = vor.u32 %v11725_v18, %v10041_v39  ;;  %v11724_v9 = vrot.slane %v10023_v23, 7 }
 0x407   : > { %v4795_v42 = vsel %vm12351_vm12, %v4775_v26, %v4572_v56  ;;  %vm12358_vm12 = vcmask 1040384   ;;  %v12361_v18 = vrot.slane %v12299_v5, 2 }
 0x408   : > { %v3833_v53 = vpop.permute.xlu0 %3832  ;;  %v10221_v40 = vpop.permute.xlu1 %3117 }
 0x409   : > { %v10229_v17 = vsel %vm11735_vm14, %v4120_v21, %v3833_v53  ;;  %vm12372_vm14 = vcmask 195584  }
 0x40a   : > { %v4948_v16 = vshll.u32 %v10229_v17, 16  ;;  %4400 = vrot.lane.b32.xlu1 %v4374_v2, %s6059_s19  ;;  %3208 = vrot.lane.b32.xlu0 %v9948_v19, %s6056_s16  ;;  %v12349_v19 = vld [vmem:[#allocation18_spill] sm:$0xff] }
 0x40b   : > { %v11726_v49 = vrot.slane %v12349_v19, 1 }
 0x40c   : > { %v10245_v36 = vrot.slane %v4948_v16, 1  ;;  %v10247_v8 = vpop.permute.xlu0 %3125  ;;  %v10249_v31 = vpop.permute.xlu1 %3625  ;;  %v12355_v16 = vrot.slane %v9808_v44, 7 }
 0x40d   : > { %12348 = vst [vmem:[#allocation55_spill] sm:$0xff] %v10249_v31  ;;  %v3682_v53 = vsel %vm12354_vm11, %v12353_v25, %v11726_v49  ;;  %vm12360_vm11 = vcmask 1044480  }
 0x40e   : > { %3781 = vrot.lane.b32.xlu1 %v12350_v13, %s6074_s9  ;;  %4340 = vrot.lane.b32.xlu0 %v4315_v0, %s6057_s17  ;;  %v4951_v15 = vsel %vm413_vm0, %v4947_v55, %v10245_v36  ;;  %v4469_v58 = vsel %vm12356_vm6, %v12355_v16, %v4468_v3  ;;  %vm12362_vm6 = vcmask 1045504  }
 0x40f   : > { %5238 = vmatmul.mubr.bf16.vlgmr.msra.gmra.mxu1 %v4951_v15 }
 0x410   : > { %v10263_v37 = vpop.permute.xlu1 %3159  ;;  %v10265_v48 = vpop.permute.xlu0 %3543 }
 0x411   : > { %12352 = vst [vmem:[#allocation69_spill] sm:$0xff] %v10265_v48  ;;  %v4812_v21 = vsel %vm4011_vm4, %v4795_v42, %v10265_v48  ;;  %v12357_v42 = vrot.slane %v9782_v11, 7 }
 0x412   : > { %v10279_v56 = vsel %vm4032_vm10, %v4812_v21, %v10249_v31  ;;  %3376 = vrot.lane.b32.xlu1 %v10065_v35, %s6063_s24  ;;  %3699 = vrot.lane.b32.xlu0 %v3682_v53, %s6073_s15  ;;  %v10299_v35 = vcombine.low %v10108_v57, %v2970_v14  ;;  %v11729_v21 = vrot.slane %v12299_v5, 3  ;;  %v12371_v31 = vld [vmem:[#allocation4_spill] sm:$0xff] }
 0x413   : > { %v4860_v24 = vshll.u32 %v10279_v56, 16  ;;  %v4422_v57 = vsel %vm12358_vm12, %v12357_v42, %v11724_v9  ;;  %vm12364_vm12 = vmmov %vm12362_vm6 }
 0x414   : > { %v10285_v2 = vpop.permute.xlu1 %4274  ;;  %v10287_v22 = vpop.permute.xlu0 %3535  ;;  %v10312_v15 = vshll.u32 %v10299_v35, 16  ;;  %v10327_v53 = vshrl.u32 %v10299_v35, 16 }
 0x415   : > { %v10289_v32 = vrot.slane %v4860_v24, 1 }
 0x416   : > { %4502 = vrot.lane.b32.xlu1 %v4469_v58, %s6065_s11  ;;  %3331 = vrot.lane.b32.xlu0 %v12247_v28, %s6059_s19  ;;  %v11744_v58 = vrot.slane %v10299_v35, 2  ;;  %v4626_v42 = vrot.slane %v10327_v53, 2  ;;  %v4627_v9 = vrot.slane %v10312_v15, 3  ;;  %v4548_v49 = vrot.slane %v10327_v53, 1 }
 0x417   : > { %v10304_v55 = vsel %vm413_vm0, %v9954_v63, %v10289_v32  ;;  %v11728_v63 = vrot.slane %v12349_v19, 2  ;;  %v4549_v52 = vrot.slane %v10312_v15, 2 }
 0x418   : > { %v10306_v26 = vpop.permute.xlu1 %3648  ;;  %v10308_v0 = vpop.permute.xlu0 %4251  ;;  %v4975_v13 = vshll.u32 %v10304_v55, 16 }
 0x41a   : > { %3838 = vrot.lane.b32.xlu1 %v12332_v33, %s6076_s18  ;;  %4439 = vrot.lane.b32.xlu0 %v4422_v57, %s6063_s24  ;;  %v10324_v25 = vrot.slane %v4975_v13, 1  ;;  %v12359_v13 = vrot.slane %v12247_v28, 3 }
 0x41c   : > { %v10329_v3 = vpop.permute.xlu1 %3304  ;;  %v3618_v24 = vpop.permute.xlu0 %3617  ;;  %v4978_v16 = vsel %vm413_vm0, %v9974_v61, %v10324_v25  ;;  %v3473_v57 = vsel %vm12360_vm11, %v12359_v13, %v11729_v21  ;;  %v10348_v61 = vsel %vm12362_vm6, %v12361_v18, %v11728_v63  ;;  %v10359_v13 = vor.u32 %v4627_v9, %v4626_v42  ;;  %v10376_v42 = vld [vmem:[#allocation2 + $0x7c] sm:$0xf] }
 0x41d   : > { %5727 = vmatprep.mubr.msk.bf16.mxu1 %vm4053_vm2, %v4978_v16  ;;  %v12363_v18 = vrot.slane %v10023_v23, 2  ;;  %v10366_v21 = vor.u32 %v4549_v52, %v4548_v49  ;;  %vm12367_vm11 = vcmask 64512   ;;  %vm12370_vm6 = vcmask 130048  }
 0x41e   : > { %3490 = vrot.lane.b32.xlu1 %v3473_v57, %s6067_s25  ;;  %3812 = vrot.lane.b32.xlu0 %v10348_v61, %s6075_s22  ;;  %v3856_v57 = vsel %vm12367_vm11, %v12366_v20, %v12365_v29  ;;  %v12374_v20 = vld [vmem:[#allocation54_spill] sm:$0xff]  ;;  %vm12375_vm11 = vsmask.f32 6400 }
 0x41f   : > { %v4593_v63 = vsel %vm12364_vm12, %v12363_v18, %v11744_v58  ;;  %v3876_v9 = vsel %vm12370_vm6, %v3856_v57, %v12369_v54  ;;  %vm12373_vm12 = vsmask.f32 5376  ;;  %v11743_v54 = vrot.slane %v10041_v39, 1 }
 0x420   : > { %v10355_v16 = vpop.permute.xlu0 %3204  ;;  %v10357_v28 = vpop.permute.xlu1 %4396  ;;  %v3896_v48 = vsel %vm12372_vm14, %v3876_v9, %v12371_v31  ;;  %v4629_v49 = vsel %vm12373_vm12, %v10097_v45, %v10359_v13  ;;  %v10393_v57 = vcombine.low %v2970_v14, %v10376_v42  ;;  %vm12377_vm14 = vcmask 523264  }
 0x421   : > { %v3916_v29 = vsel %vm1385_vm15, %v3896_v48, %v12374_v20  ;;  %vm12380_vm6 = vcmask 1044480   ;;  %vm12382_vm12 = vsmask.f32 256  ;;  %v12407_v58 = vrot.slane %v12349_v19, 2 }
 0x422   : > { %4602 = vrot.lane.b32.xlu1 %v4593_v63, %s6070_s29  ;;  %3448 = vrot.lane.b32.xlu0 %v12368_v4, %s6065_s11  ;;  %v4551_v4 = vsel %vm12375_vm11, %v10095_v10, %v10366_v21  ;;  %v11737_v63 = vrot.slane %v10147_v41, 7  ;;  %v3936_v31 = vsel %vm1427_vm3, %v3916_v29, %v10110_v30  ;;  %v12376_v10 = vrot.slane %v9811_v60, 1 }
 0x423   : > { %v3956_v45 = vsel %vm1469_vm5, %v3936_v31, %v10172_v7  ;;  %vm12384_vm11 = vcmask 1046528  }
 0x424   : > { %v4337_v18 = vpop.permute.xlu0 %4336  ;;  %v3778_v52 = vpop.permute.xlu1 %3777  ;;  %v4177_v48 = vor.u32 %v12376_v10, %v9808_v44  ;;  %v4229_v14 = vor.u32 %v10155_v12, %v11737_v63  ;;  %v3976_v7 = vsel %vm1511_vm1, %v3956_v45, %v10141_v43  ;;  %v10419_v44 = vshrl.u32 %v10393_v57, 16  ;;  %v12378_v45 = vld [vmem:[#allocation108_spill] sm:$0xff] }
 0x425   : > { %v3996_v60 = vsel %vm12377_vm14, %v3976_v7, %v10194_v34  ;;  %v11742_v10 = vrot.slane %v12332_v33, 1  ;;  %v12381_v34 = vrot.slane %v9429_v62, 7  ;;  %v12383_v62 = vrot.slane %v8865_v1, 1 }
 0x426   : > { %4647 = vrot.lane.b32.xlu1 %v4629_v49, %s6071_s26  ;;  %4577 = vrot.lane.b32.xlu0 %v4551_v4, %s6067_s25  ;;  %v4182_v30 = vsel %vm413_vm0, %v4177_v48, %v11743_v54  ;;  %v10411_v49 = vshll.u32 %v10393_v57, 16  ;;  %v4017_v29 = vsel %vm4011_vm4, %v3996_v60, %v10287_v22  ;;  %v4375_v43 = vrot.slane %v10419_v44, 2 }
 0x427   : > { %v12379_v48 = vrot.slane %v12332_v33, 3  ;;  %v4230_v7 = vsel %vm12382_vm12, %v12381_v34, %v4229_v14  ;;  %v3148_v14 = vsel %vm12384_vm11, %v12383_v62, %v11742_v10  ;;  %v12385_v34 = vld [vmem:[#allocation16_spill] sm:$0xff]  ;;  %vm12386_vm14 = vcmask 64512  }
 0x428   : > { %v3696_v9 = vpop.permute.xlu0 %3695  ;;  %v10402_v20 = vpop.permute.xlu1 %3372  ;;  %v4376_v22 = vrot.slane %v10411_v49, 3  ;;  %vm12389_vm12 = vsmask.f32 5376  ;;  %v11741_v62 = vrot.slane %v10411_v49, 1  ;;  %vm12391_vm11 = vcmask 982016  }
 0x429   : > { %v12405_v54 = vrot.slane %v12299_v5, 3 }
 0x42a   : > { %4280 = vrot.lane.b32.xlu1 %v10114_v59, %s6056_s16  ;;  %4200 = vrot.lane.b32.xlu0 %v4182_v30, %s6052_s12  ;;  %v4038_v59 = vsel %vm4032_vm10, %v4017_v29, %v3618_v24  ;;  %v10434_v30 = vsel %vm12380_vm6, %v12379_v48, %v12378_v45  ;;  %v10451_v48 = vor.u32 %v4376_v22, %v4375_v43  ;;  %vm12388_vm6 = vcmask 130048  }
 0x42b   : > { %v4059_v24 = vsel %vm4053_vm2, %v4038_v59, %v10306_v26  ;;  %v10459_v26 = vsel %vm12386_vm14, %v12332_v33, %v10247_v8  ;;  %vm12392_vm14 = vcmask 195584  }
 0x42c   : > { %v10425_v4 = vpop.permute.xlu0 %3327  ;;  %v4499_v31 = vpop.permute.xlu1 %4498  ;;  %v4080_v63 = vsel %vm4074_vm9, %v4059_v24, %v3696_v9  ;;  %12387 = vst [vmem:[#allocation85_spill] sm:$0xff] %v10459_v26  ;;  %v4677_v9 = vsel %vm12388_vm6, %v10459_v26, %v10308_v0  ;;  %v4378_v22 = vsel %vm12389_vm12, %v10203_v47, %v10451_v48  ;;  %v12390_v24 = vrot.slane %v10155_v12, 1 }
 0x42d   : > { %v4101_v1 = vsel %vm4095_vm7, %v4080_v63, %v3778_v52  ;;  %v4964_v0 = vshrl.u32 %v10229_v17, 16  ;;  %v4697_v52 = vsel %vm12392_vm14, %v4677_v9, %v10285_v2  ;;  %v11738_v17 = vrot.slane %v10327_v53, 7  ;;  %v12394_v2 = vld [vmem:[#allocation103_spill] sm:$0xff] }
 0x42e   : > { %3654 = vrot.lane.b32.xlu1 %v10434_v30, %s6072_s30  ;;  %4257 = vrot.lane.b32.xlu0 %v4230_v7, %s6054_s14  ;;  %v4316_v8 = vor.u32 %v12390_v24, %v10147_v41  ;;  %v4717_v12 = vsel %vm1385_vm15, %v4697_v52, %v4337_v18  ;;  %vm12397_vm6 = vcmask 1046528   ;;  %vm12398_vm12 = vcmask 523264  }
 0x42f   : > { %v4737_v18 = vsel %vm1427_vm3, %v4717_v12, %v10357_v28  ;;  %v4476_v28 = vor.u32 %v10312_v15, %v11738_v17  ;;  %vm12403_vm14 = vcmask 1040384  }
 0x430   : > { %v4436_v60 = vpop.permute.xlu0 %4435  ;;  %v3835_v29 = vpop.permute.xlu1 %3834 }
 0x432   : > { %3310 = vrot.lane.b32.xlu1 %v12385_v34, %s6057_s17  ;;  %3165 = vrot.lane.b32.xlu0 %v3148_v14, %s6054_s14 }
 0x434   : > { %v3809_v59 = vpop.permute.xlu0 %3808  ;;  %v10465_v7 = vpop.permute.xlu1 %3486 }
 0x435   : > { %v4122_v43 = vsel %vm4116_vm13, %v4101_v1, %v3809_v59  ;;  %v4966_v1 = vor.u32 %v4964_v0, %v10245_v36  ;;  %v10505_v36 = vld [vmem:[#allocation2 + $0x80] sm:$0xf]  ;;  %v12396_v0 = vrot.slane %v12349_v19, 1 }
 0x436   : > { %v10476_v14 = vsel %vm12391_vm11, %v4122_v43, %v3835_v29  ;;  %4402 = vrot.lane.b32.xlu1 %v4378_v22, %s6059_s19  ;;  %3210 = vrot.lane.b32.xlu0 %v10179_v38, %s6056_s16  ;;  %v12393_v29 = vld [vmem:[#allocation9_spill] sm:$0xff]  ;;  %v4318_v38 = vsel %vm413_vm0, %v4316_v8, %v11741_v62  ;;  %v4757_v22 = vsel %vm1469_vm5, %v4737_v18, %v4436_v60  ;;  %vm12401_vm11 = vsmask.f32 256 }
 0x437   : > { %v4967_v47 = vshll.u32 %v10476_v14, 16  ;;  %v11740_v59 = vrot.slane %v12393_v29, 1  ;;  %v10523_v60 = vcombine.low %v10376_v42, %v10505_v36  ;;  %v11739_v18 = vrot.slane %v10299_v35, 7 }
 0x438   : > { %v10486_v63 = vpop.permute.xlu0 %3444  ;;  %v10488_v34 = vpop.permute.xlu1 %4196 }
 0x439   : > { %v10492_v43 = vrot.slane %v4967_v47, 1  ;;  %v3684_v52 = vsel %vm12397_vm6, %v12396_v0, %v11740_v59  ;;  %v4777_v47 = vsel %vm1511_vm1, %v4757_v22, %v4499_v31  ;;  %v10545_v31 = vshrl.u32 %v10523_v60, 16 }
 0x43a   : > { %3783 = vrot.lane.b32.xlu1 %v12394_v2, %s6074_s9  ;;  %4342 = vrot.lane.b32.xlu0 %v4318_v38, %s6057_s17  ;;  %v12400_v2 = vrot.slane %v10049_v51, 7  ;;  %vm12406_vm6 = vcmask 1044480  }
 0x43b   : > { %v4970_v9 = vsel %vm413_vm0, %v4966_v1, %v10492_v43 }
 0x43c   : > { %5246 = vmatmul.mubr.bf16.gmra.mxu1 %v4970_v9  ;;  %v4574_v24 = vpop.permute.xlu0 %4573  ;;  %v10508_v8 = vpop.permute.xlu1 %3627  ;;  %v4864_v9 = vshrl.u32 %v10279_v56, 16 }
 0x43d   : > { %12395 = vst [vmem:[#allocation34_spill] sm:$0xff] %v10508_v8  ;;  %v4797_v12 = vsel %vm12398_vm12, %v4777_v47, %v4574_v24  ;;  %v10550_v24 = vshll.u32 %v10523_v60, 16  ;;  %vm12408_vm12 = vcmask 1045504  }
 0x43e   : > { %3378 = vrot.lane.b32.xlu1 %v10348_v61, %s6063_s24  ;;  %3701 = vrot.lane.b32.xlu0 %v3684_v52, %s6073_s15  ;;  %v4477_v61 = vsel %vm12401_vm11, %v12400_v2, %v4476_v28  ;;  %v11747_v28 = vrot.slane %v12349_v19, 3  ;;  %v4866_v47 = vor.u32 %v4864_v9, %v10289_v32  ;;  %v10566_v2 = vrot.slane %v12393_v29, 2  ;;  %vm12411_vm11 = vmmov %vm12408_vm12 }
 0x43f   : > { %v4630_v32 = vrot.slane %v10545_v31, 2 }
 0x440   : > { %v10527_v1 = vpop.permute.xlu1 %3161  ;;  %v10529_v38 = vpop.permute.xlu0 %3545  ;;  %v10595_v17 = vsel %vm12408_vm12, %v12407_v58, %v10566_v2  ;;  %vm12416_vm12 = vsmask.f32 5376 }
 0x441   : > { %12399 = vst [vmem:[#allocation3_spill] sm:$0xff] %v10529_v38  ;;  %v4813_v15 = vsel %vm4011_vm4, %v4797_v12, %v10529_v38 }
 0x442   : > { %v10539_v42 = vsel %vm4032_vm10, %v4813_v15, %v10508_v8  ;;  %4504 = vrot.lane.b32.xlu1 %v4477_v61, %s6065_s11  ;;  %3333 = vrot.lane.b32.xlu0 %v12299_v5, %s6059_s19  ;;  %v12402_v15 = vrot.slane %v10023_v23, 7  ;;  %v12404_v61 = vld [vmem:[#allocation102_spill] sm:$0xff]  ;;  %v12409_v5 = vrot.slane %v10523_v60, 2 }
 0x443   : > { %v4867_v22 = vshll.u32 %v10539_v42, 16  ;;  %v10597_v8 = vld [vmem:[#allocation2 + $0x74] ss:$0 sps:$4 sm:$0x33]  }
 0x444   : > { %v10552_v0 = vpop.permute.xlu1 %4276  ;;  %v10554_v52 = vpop.permute.xlu0 %3537  ;;  %v4424_v56 = vsel %vm12403_vm14, %v12402_v15, %v11739_v18  ;;  %v4552_v15 = vrot.slane %v10545_v31, 1  ;;  %v4553_v18 = vrot.slane %v10550_v24, 2  ;;  %vm12413_vm14 = vcmask 64512  }
 0x445   : > { %v10558_v12 = vrot.slane %v4867_v22, 1  ;;  %v4631_v22 = vrot.slane %v10550_v24, 3 }
 0x446   : > { %3840 = vrot.lane.b32.xlu1 %v12404_v61, %s6076_s18  ;;  %4441 = vrot.lane.b32.xlu0 %v4424_v56, %s6063_s24  ;;  %v4986_v56 = vshrl.u32 %v10304_v55, 16  ;;  %v10612_v58 = vor.u32 %v4553_v18, %v4552_v15  ;;  %v5703_v15 = vcombine.low %v10505_v36, %v10505_v36 }
 0x447   : > { %v10575_v9 = vsel %vm413_vm0, %v4866_v47, %v10558_v12  ;;  %v3475_v47 = vsel %vm12406_vm6, %v12405_v54, %v11747_v28  ;;  %v12410_v54 = vrot.slane %v10299_v35, 2  ;;  %v10610_v26 = vor.u32 %v4631_v22, %v4630_v32  ;;  %v12414_v32 = vld [vmem:[#allocation40_spill] sm:$0xff] }
 0x448   : > { %v10580_v59 = vpop.permute.xlu1 %3650  ;;  %v10582_v62 = vpop.permute.xlu0 %4253  ;;  %v4990_v10 = vshll.u32 %v10575_v9, 16  ;;  %v4988_v55 = vor.u32 %v4986_v56, %v10324_v25  ;;  %v4187_v25 = vshll.u32 %v10597_v8, 16  ;;  %vm12415_vm6 = vcmask 130048  }
 0x449   : > { %v4595_v28 = vsel %vm12411_vm11, %v12410_v54, %v12409_v5  ;;  %v4633_v22 = vsel %vm12416_vm12, %v10359_v13, %v10610_v26  ;;  %vm12417_vm11 = vsmask.f32 6400  ;;  %v4234_v13 = vrot.slane %v10419_v44, 7 }
 0x44a   : > { %3492 = vrot.lane.b32.xlu1 %v3475_v47, %s6067_s25  ;;  %3814 = vrot.lane.b32.xlu0 %v10595_v17, %s6075_s22  ;;  %v10603_v38 = vrot.slane %v4990_v10, 1  ;;  %v12412_v10 = vld [vmem:[#allocation107_spill] sm:$0xff]  ;;  %v10645_v54 = vrot.slane %v4187_v25, 1  ;;  %v4383_v36 = vshll.u32 %v5703_v15, 16  ;;  %v12420_v25 = vld [vmem:[#allocation14_spill] sm:$0xff] }
 0x44b   : > { %v3858_v56 = vsel %vm12413_vm14, %v12412_v10, %v10221_v40  ;;  %vm12418_vm14 = vcmask 195584   ;;  %vm12423_vm12 = vsmask.f32 256 }
 0x44c   : > { %v10614_v27 = vpop.permute.xlu1 %3306  ;;  %v3620_v47 = vpop.permute.xlu0 %3619  ;;  %v4993_v23 = vsel %vm413_vm0, %v4988_v55, %v10603_v38  ;;  %v3878_v18 = vsel %vm12415_vm6, %v3858_v56, %v10263_v37  ;;  %v12419_v37 = vrot.slane %v10041_v39, 1  ;;  %vm12421_vm6 = vcmask 1044480  }
 0x44d   : > { %5728 = vmatprep.mubr.msk.bf16.mxu1 %vm4053_vm2, %v4993_v23  ;;  %v4555_v23 = vsel %vm12417_vm11, %v10366_v21, %v10612_v58  ;;  %v3898_v40 = vsel %vm12418_vm14, %v3878_v18, %v10355_v16  ;;  %v4380_v16 = vshrl.u32 %v5703_v15, 16  ;;  %v4237_v18 = vor.u32 %v10411_v49, %v4234_v13 }
 0x44e   : > { %4604 = vrot.lane.b32.xlu1 %v4595_v28, %s6070_s29  ;;  %3450 = vrot.lane.b32.xlu0 %v12414_v32, %s6065_s11  ;;  %v4185_v5 = vor.u32 %v10049_v51, %v12419_v37  ;;  %v3918_v21 = vsel %vm1385_vm15, %v3898_v40, %v10329_v3  ;;  %v3638_v32 = vrot.slane %v12420_v25, 3  ;;  %vm12424_vm11 = vcmask 1043456  }
 0x44f   : > { %v3938_v10 = vsel %vm1427_vm3, %v3918_v21, %v10425_v4  ;;  %v4382_v4 = vrot.slane %v4380_v16, 2  ;;  %v3149_v16 = vrot.slane %v12404_v61, 1  ;;  %vm12425_vm14 = vcmask 523264  }
 0x450   : > { %v10638_v28 = vpop.permute.xlu0 %3206  ;;  %v10640_v55 = vpop.permute.xlu1 %4398  ;;  %v4190_v51 = vsel %vm413_vm0, %v4185_v5, %v10645_v54  ;;  %v3958_v3 = vsel %vm1469_vm5, %v3938_v10, %v10402_v20  ;;  %v5337_v5 = vld [vmem:[%s11491_s5] sm:$0xf]  ;;  %v12422_v20 = vrot.slane %v10147_v41, 7 }
 0x451   : > { %v3978_v15 = vsel %vm1511_vm1, %v3958_v3, %v10486_v63  ;;  %v5373_v63 = vsel %vm12424_vm11, %v5337_v5, 0  ;;  %v12426_v5 = vrot.slane %v12332_v33, 1  ;;  %vm12431_vm11 = vcmask 64512  }
 0x452   : > { %4649 = vrot.lane.b32.xlu1 %v4633_v22, %s6071_s26  ;;  %4579 = vrot.lane.b32.xlu0 %v4555_v23, %s6067_s25  ;;  %v4385_v22 = vrot.slane %v4383_v36, 3  ;;  %v10665_v23 = vld [vmem:[#allocation2 + $0x80] ss:$0 sps:$4 sm:$0x33]   ;;  %v4238_v21 = vsel %vm12423_vm12, %v12422_v20, %v4237_v18  ;;  %v3998_v36 = vsel %vm12425_vm14, %v3978_v15, %v10465_v7  ;;  %vm12429_vm12 = vsmask.f32 5376 }
 0x453   : > { %5842 = vmatpush3.bf16.msra.mxu0 %v5373_v63  ;;  %5880 = vmatpush3.bf16.msra.mxu1 %v5373_v63  ;;  %v4019_v41 = vsel %vm4011_vm4, %v3998_v36, %v10554_v52  ;;  %v4658_v33 = vsel %vm12431_vm11, %v12404_v61, %v10488_v34  ;;  %vm12432_vm14 = vcmask 130048   ;;  %v4481_v34 = vrot.slane %v10545_v31, 7  ;;  %v6041_v31 = vld [vmem:[#allocation2 + $0x60] sm:$0xf] }
 0x454   : > { %v4339_v56 = vpop.permute.xlu0 %4338  ;;  %v3780_v39 = vpop.permute.xlu1 %3779  ;;  %v10687_v10 = vor.u32 %v4385_v22, %v4382_v4  ;;  %v4040_v3 = vsel %vm4032_vm10, %v4019_v41, %v3620_v47  ;;  %v12428_v4 = vld [vmem:[#allocation25_spill] sm:$0xff]  ;;  %v12430_v22 = vrot.slane %v10411_v49, 1  ;;  %v4679_v63 = vsel %vm12432_vm14, %v4658_v33, %v10582_v62 }
 0x455   : > { %vm12438_vm11 = vcmask 1046528   ;;  %vm12440_vm14 = vsmask.f32 256 }
 0x456   : > { %4282 = vrot.lane.b32.xlu1 %v10393_v57, %s6056_s16  ;;  %4202 = vrot.lane.b32.xlu0 %v4190_v51, %s6052_s12  ;;  %v3639_v57 = vsel %vm12421_vm6, %v12378_v45, %v3638_v32  ;;  %v4321_v51 = vshll.u32 %v10665_v23, 16  ;;  %vm12427_vm6 = vcmask 1046528   ;;  %v4387_v52 = vsel %vm12429_vm12, %v10451_v48, %v10687_v10 }
 0x457   : > { %v3150_v7 = vsel %vm12427_vm6, %v12426_v5, %v3149_v16  ;;  %v4319_v15 = vor.u32 %v12430_v22, %v10419_v44  ;;  %vm12433_vm6 = vcmask 195584   ;;  %vm12435_vm12 = vcmask 982016  }
 0x458   : > { %v3698_v40 = vpop.permute.xlu0 %3697  ;;  %v10669_v37 = vpop.permute.xlu1 %3374  ;;  %v10709_v47 = vrot.slane %v4321_v51, 1 }
 0x45a   : > { %3656 = vrot.lane.b32.xlu1 %v3639_v57, %s6072_s30  ;;  %4259 = vrot.lane.b32.xlu0 %v4238_v21, %s6054_s14  ;;  %v4061_v57 = vsel %vm4053_vm2, %v4040_v3, %v10580_v59  ;;  %v4324_v49 = vsel %vm413_vm0, %v4319_v15, %v10709_v47  ;;  %v4699_v59 = vsel %vm12433_vm6, %v4679_v63, %v10552_v0  ;;  %v12434_v3 = vld [vmem:[#allocation13_spill] sm:$0xff]  ;;  %v4979_v0 = vshrl.u32 %v10476_v14, 16 }
 0x45b   : > { %v4082_v48 = vsel %vm4074_vm9, %v4061_v57, %v3698_v40  ;;  %v4719_v62 = vsel %vm1385_vm15, %v4699_v59, %v4339_v56  ;;  %v3685_v5 = vrot.slane %v12434_v3, 1  ;;  %v4484_v56 = vor.u32 %v10550_v24, %v4481_v34 }
 0x45c   : > { %v10692_v45 = vpop.permute.xlu0 %3329  ;;  %v4501_v18 = vpop.permute.xlu1 %4500  ;;  %v4103_v51 = vsel %vm4095_vm7, %v4082_v48, %v3780_v39  ;;  %v12437_v14 = vrot.slane %v12393_v29, 1  ;;  %v4425_v63 = vrot.slane %v10523_v60, 7  ;;  %vm12441_vm6 = vcmask 523264  }
 0x45e   : > { %3312 = vrot.lane.b32.xlu1 %v12428_v4, %s6057_s17  ;;  %3167 = vrot.lane.b32.xlu0 %v3150_v7, %s6054_s14  ;;  %v12436_v7 = vld [vmem:[#allocation23_spill] sm:$0xff]  ;;  %v4739_v4 = vsel %vm1427_vm3, %v4719_v62, %v10640_v55  ;;  %v3686_v57 = vsel %vm12438_vm11, %v12437_v14, %v3685_v5  ;;  %v12439_v55 = vrot.slane %v10327_v53, 7  ;;  %v4871_v62 = vshrl.u32 %v10539_v42, 16 }
 0x45f   : > { %v10799_v14 = vld [vmem:[#allocation2 + $0x80] ss:$0 sps:$4 sm:$0x11]   ;;  %vm12445_vm11 = vcmask 1044480  }
 0x460   : > { %v4438_v20 = vpop.permute.xlu0 %4437  ;;  %v3837_v21 = vpop.permute.xlu1 %3836 }
 0x461   : > { %v4759_v15 = vsel %vm1469_vm5, %v4739_v4, %v4438_v20  ;;  %v4485_v20 = vsel %vm12440_vm14, %v12439_v55, %v4484_v56  ;;  %v3476_v4 = vrot.slane %v12393_v29, 3  ;;  %vm12446_vm14 = vcmask 1045504  }
 0x462   : > { %4404 = vrot.lane.b32.xlu1 %v4387_v52, %s6059_s19  ;;  %3212 = vrot.lane.b32.xlu0 %v10434_v30, %s6056_s16 }
 0x464   : > { %v3811_v36 = vpop.permute.xlu0 %3810  ;;  %v10728_v41 = vpop.permute.xlu1 %3488 }
 0x465   : > { %v4124_v40 = vsel %vm4116_vm13, %v4103_v51, %v3811_v36 }
 0x466   : > { %v10734_v30 = vsel %vm12435_vm12, %v4124_v40, %v3837_v21  ;;  %3785 = vrot.lane.b32.xlu1 %v12436_v7, %s6074_s9  ;;  %4344 = vrot.lane.b32.xlu0 %v4324_v49, %s6057_s17  ;;  %v4981_v21 = vor.u32 %v4979_v0, %v10492_v43  ;;  %v4779_v49 = vsel %vm1511_vm1, %v4759_v15, %v4501_v18  ;;  %v10767_v43 = vld [vmem:[#allocation2 + $0x84] ss:$0 sps:$4 sm:$0x77]   ;;  %v12442_v18 = vrot.slane %v10299_v35, 7 }
 0x467   : > { %v4982_v39 = vshll.u32 %v10734_v30, 16  ;;  %vm12443_vm12 = vcmask 1040384   ;;  %v4560_v56 = vshll.u32 %v10767_v43, 16  ;;  %v4873_v35 = vor.u32 %v4871_v62, %v10558_v12 }
 0x468   : > { %v10746_v52 = vpop.permute.xlu0 %3446  ;;  %v4601_v22 = vpop.permute.xlu1 %4600  ;;  %v4426_v51 = vsel %vm12443_vm12, %v12442_v18, %v4425_v63  ;;  %v4596_v42 = vrot.slane %v10767_v43, 2  ;;  %v4240_v62 = vshll.u32 %v10799_v14, 16  ;;  %vm12450_vm12 = vcmask 130048  }
 0x469   : > { %v10749_v33 = vrot.slane %v4982_v39, 1  ;;  %v4557_v39 = vshrl.u32 %v10767_v43, 16  ;;  %v4562_v55 = vrot.slane %v4560_v56, 2  ;;  %v6024_v56 = vld [vmem:[#allocation2 + $0x84] ss:$0 sps:$4 sm:$0xff]  }
 0x46a   : > { %3380 = vrot.lane.b32.xlu1 %v10595_v17, %s6063_s24  ;;  %3703 = vrot.lane.b32.xlu0 %v3686_v57, %s6073_s15 }
 0x46b   : > { %v4985_v24 = vsel %vm413_vm0, %v4981_v21, %v10749_v33  ;;  %v4559_v12 = vrot.slane %v4557_v39, 1 }
 0x46c   : > { %v4576_v48 = vpop.permute.xlu0 %4575  ;;  %5254 = vmatmul.mubr.bf16.gmra.mxu1 %v4985_v24  ;;  %v4646_v59 = vpop.permute.xlu1 %4645 }
 0x46d   : > { %v4799_v17 = vsel %vm12441_vm6, %v4779_v49, %v4576_v48  ;;  %vm12448_vm6 = vmmov %vm12446_vm14  ;;  %v10835_v39 = vor.u32 %v4562_v55, %v4559_v12  ;;  %v12452_v12 = vld [vmem:[#allocation60_spill] sm:$0xff]  ;;  %v4191_v55 = vshrl.u32 %v10597_v8, 16 }
 0x46e   : > { %v4815_v36 = vsel %vm4011_vm4, %v4799_v17, %v4601_v22  ;;  %4506 = vrot.lane.b32.xlu1 %v4485_v20, %s6065_s11  ;;  %3335 = vrot.lane.b32.xlu0 %v12349_v19, %s6059_s19  ;;  %v3798_v22 = vrot.slane %v12434_v3, 2  ;;  %v12444_v20 = vrot.slane %v12349_v19, 3 }
 0x46f   : > { %v10775_v53 = vsel %vm4032_vm10, %v4815_v36, %v4646_v59  ;;  %v5001_v59 = vshrl.u32 %v10575_v9, 16  ;;  %v12447_v36 = vrot.slane %v10523_v60, 2 }
 0x470   : > { %v4874_v40 = vshll.u32 %v10775_v53, 16  ;;  %v10784_v7 = vpop.permute.xlu0 %4198  ;;  %v10786_v0 = vpop.permute.xlu1 %4278  ;;  %v3477_v48 = vsel %vm12445_vm11, %v12444_v20, %v3476_v4  ;;  %v3799_v49 = vsel %vm12446_vm14, %v10566_v2, %v3798_v22  ;;  %vm12451_vm11 = vcmask 195584  }
 0x471   : > { %v4597_v19 = vsel %vm12448_vm6, %v12447_v36, %v4596_v42  ;;  %v5003_v18 = vor.u32 %v5001_v59, %v10603_v38  ;;  %v10848_v59 = vld [vmem:[#allocation2 + $0x5c] ss:$0 sps:$4 sm:$0x11]   ;;  %vm12453_vm14 = vsmask.f32 256 }
 0x472   : > { %v10793_v15 = vrot.slane %v4874_v40, 1  ;;  %3842 = vrot.lane.b32.xlu1 %v12420_v25, %s6076_s18  ;;  %4443 = vrot.lane.b32.xlu0 %v4426_v51, %s6063_s24  ;;  %vm12454_vm6 = vsmask.f32 6400  ;;  %v3105_v8 = vshll.u32 %v10848_v59, 16 }
 0x474   : > { %v10803_v57 = vsel %vm413_vm0, %v4873_v35, %v10793_v15  ;;  %v10805_v21 = vpop.permute.xlu1 %3652  ;;  %v10807_v24 = vpop.permute.xlu0 %4255  ;;  %v12449_v35 = vld [vmem:[#allocation71_spill] sm:$0xff] }
 0x475   : > { %v5005_v17 = vshll.u32 %v10803_v57, 16  ;;  %v3880_v20 = vsel %vm12450_vm12, %v12449_v35, %v10527_v1  ;;  %v4242_v1 = vsel %vm12453_vm14, %v4234_v13, %v4240_v62  ;;  %v4193_v13 = vor.u32 %v4191_v55, %v10645_v54 }
 0x476   : > { %3494 = vrot.lane.b32.xlu1 %v3477_v48, %s6067_s25  ;;  %3816 = vrot.lane.b32.xlu0 %v3799_v49, %s6075_s22  ;;  %v10842_v49 = vld [vmem:[#allocation2 + $0x5c] ss:$0 sps:$4 sm:$0x33]   ;;  %v3900_v38 = vsel %vm12451_vm11, %v3880_v20, %v10638_v28  ;;  %v4564_v28 = vsel %vm12454_vm6, %v10612_v58, %v10835_v39  ;;  %vm12455_vm12 = vcmask 1046528   ;;  %v4325_v54 = vshrl.u32 %v10665_v23, 16  ;;  %v12459_v23 = vld [vmem:[#allocation81_spill] sm:$0xff] }
 0x477   : > { %v10828_v51 = vrot.slane %v5005_v17, 1  ;;  %v3920_v35 = vsel %vm1385_vm15, %v3900_v38, %v10614_v27  ;;  %v3151_v20 = vrot.slane %v10842_v49, 1  ;;  %vm12456_vm11 = vcmask 523264  }
 0x478   : > { %v10831_v40 = vpop.permute.xlu1 %3308  ;;  %v10833_v9 = vpop.permute.xlu0 %3163  ;;  %v3940_v44 = vsel %vm1427_vm3, %v3920_v35, %v10692_v45  ;;  %vm12460_vm14 = vsmask.f32 5376  ;;  %vm12462_vm6 = vcmask 64512  }
 0x479   : > { %v5008_v48 = vsel %vm413_vm0, %v5003_v18, %v10828_v51  ;;  %v4638_v18 = vshll.u32 %v6024_v56, 16  ;;  %v3960_v27 = vsel %vm1469_vm5, %v3940_v44, %v10669_v37  ;;  %v3152_v45 = vsel %vm12455_vm12, %v3149_v16, %v3151_v20  ;;  %v12457_v16 = vld [vmem:[#allocation31_spill] sm:$0xff] }
 0x47a   : > { %4606 = vrot.lane.b32.xlu1 %v4597_v19, %s6070_s29  ;;  %5729 = vmatprep.mubr.msk.bf16.mxu1 %vm4053_vm2, %v5008_v48  ;;  %v4635_v19 = vshrl.u32 %v6024_v56, 16  ;;  %v3980_v38 = vsel %vm1511_vm1, %v3960_v27, %v10746_v52  ;;  %vm12463_vm12 = vcmask 130048  }
 0x47b   : > { %3452 = vrot.lane.b32.xlu0 %v12452_v12, %s6065_s11  ;;  %v4640_v56 = vrot.slane %v4638_v18, 3  ;;  %v3107_v12 = vrot.slane %v3105_v8, 1  ;;  %v4327_v18 = vor.u32 %v4325_v54, %v10709_v47  ;;  %v4660_v47 = vsel %vm12462_vm6, %v12420_v25, %v10784_v7 }
 0x47c   : > { %v10856_v17 = vpop.permute.xlu1 %4400  ;;  %v10858_v36 = vpop.permute.xlu0 %3208  ;;  %v4637_v48 = vrot.slane %v4635_v19, 2  ;;  %v12458_v19 = vld [vmem:[#allocation29_spill] sm:$0xff]  ;;  %v3640_v7 = vrot.slane %v9782_v11, 3  ;;  %vm12466_vm6 = vcmask 982016  }
 0x47d   : > { %v3108_v52 = vsel %vm413_vm0, %v12458_v19, %v3107_v12  ;;  %v10913_v12 = vld [vmem:[#allocation2 + $0x60] ss:$0 sps:$4 sm:$0x77]  }
 0x47e   : > { %4261 = vrot.lane.b32.xlu1 %v4242_v1, %s6054_s14  ;;  %v10886_v37 = vor.u32 %v4640_v56, %v4637_v48  ;;  %v12461_v48 = vld [vmem:[#allocation75_spill] sm:$0xff]  ;;  %v3430_v19 = vshrl.u32 %v10913_v12, 16 }
 0x47f   : > { %4581 = vrot.lane.b32.xlu0 %v4564_v28, %s6067_s25  ;;  %v4000_v28 = vsel %vm12456_vm11, %v3980_v38, %v10728_v41  ;;  %vm12464_vm11 = vcmask 1046528  }
 0x480   : > { %v3782_v62 = vpop.permute.xlu1 %3781  ;;  %v4341_v58 = vpop.permute.xlu0 %4340  ;;  %v4021_v35 = vsel %vm4011_vm4, %v4000_v28, %v12459_v23  ;;  %v4642_v41 = vsel %vm12460_vm14, %v10610_v26, %v10886_v37  ;;  %v4681_v26 = vsel %vm12463_vm12, %v4660_v47, %v10807_v24  ;;  %vm12465_vm14 = vcmask 195584  }
 0x481   : > { %v4042_v56 = vsel %vm4032_vm10, %v4021_v35, %v12461_v48  ;;  %vm12467_vm12 = vcmask 1044480   ;;  %v10953_v48 = vrot.slane %v3430_v19, 2 }
 0x482   : > { %3169 = vrot.lane.b32.xlu1 %v3152_v45, %s6054_s14  ;;  %v4063_v27 = vsel %vm4053_vm2, %v4042_v56, %v10805_v21  ;;  %v4701_v21 = vsel %vm12465_vm14, %v4681_v26, %v10786_v0  ;;  %v3641_v0 = vsel %vm12467_vm12, %v3638_v32, %v3640_v7  ;;  %vm12470_vm14 = vcmask 1045504  }
 0x483   : > { %4204 = vrot.lane.b32.xlu0 %v4193_v13, %s6052_s12  ;;  %v3687_v13 = vrot.slane %v12333_v6, 1  ;;  %vm12474_vm12 = vmmov %vm12470_vm14 }
 0x484   : > { %v10884_v1 = vpop.permute.xlu1 %3376  ;;  %v3700_v55 = vpop.permute.xlu0 %3699 }
 0x485   : > { %v4084_v54 = vsel %vm4074_vm9, %v4063_v27, %v3700_v55  ;;  %v3688_v28 = vsel %vm12464_vm11, %v3685_v5, %v3687_v13  ;;  %v4721_v5 = vsel %vm1385_vm15, %v4701_v21, %v4341_v58  ;;  %vm12469_vm11 = vcmask 523264  }
 0x486   : > { %3214 = vrot.lane.b32.xlu1 %v12457_v16, %s6056_s16  ;;  %v4105_v24 = vsel %vm4095_vm7, %v4084_v54, %v3782_v62  ;;  %v4741_v58 = vsel %vm1427_vm3, %v4721_v5, %v10856_v17  ;;  %v12468_v17 = vld [vmem:[#allocation57_spill] sm:$0xff] }
 0x487   : > { %3127 = vrot.lane.b32.xlu0 %v3108_v52, %s6052_s12  ;;  %v3433_v52 = vshll.u32 %v10913_v12, 16 }
 0x488   : > { %v4503_v44 = vpop.permute.xlu1 %4502  ;;  %v10898_v8 = vpop.permute.xlu0 %3331 }
 0x489   : > { %v3435_v25 = vrot.slane %v3433_v52, 3 }
 0x48a   : > { %4346 = vrot.lane.b32.xlu1 %v4327_v18, %s6057_s17 }
 0x48b   : > { %4651 = vrot.lane.b32.xlu0 %v4642_v41, %s6071_s26 }
 0x48c   : > { %v3839_v45 = vpop.permute.xlu1 %3838  ;;  %v4440_v38 = vpop.permute.xlu0 %4439 }
 0x48d   : > { %v4761_v32 = vsel %vm1469_vm5, %v4741_v58, %v4440_v38  ;;  %v5016_v58 = vshrl.u32 %v10803_v57, 16 }
 0x48e   : > { %3705 = vrot.lane.b32.xlu1 %v3688_v28, %s6073_s15  ;;  %v4781_v38 = vsel %vm1511_vm1, %v4761_v32, %v4503_v44  ;;  %v4878_v44 = vshrl.u32 %v10775_v53, 16  ;;  %v12473_v53 = vld [vmem:[#allocation30_spill] sm:$0xff] }
 0x48f   : > { %4284 = vrot.lane.b32.xlu0 %v10799_v14, %s6056_s16  ;;  %v4994_v14 = vshrl.u32 %v10734_v30, 16  ;;  %v3800_v30 = vrot.slane %v12333_v6, 2  ;;  %v5018_v32 = vor.u32 %v5016_v58, %v10828_v51  ;;  %v12496_v6 = vld [vmem:[#allocation88_spill] sm:$0xff] }
 0x490   : > { %v10929_v16 = vpop.permute.xlu1 %3490  ;;  %v3813_v55 = vpop.permute.xlu0 %3812  ;;  %v4880_v52 = vor.u32 %v4878_v44, %v10793_v15 }
 0x491   : > { %v4126_v18 = vsel %vm4116_vm13, %v4105_v24, %v3813_v55  ;;  %v4996_v47 = vor.u32 %v4994_v14, %v10749_v33  ;;  %v3801_v60 = vsel %vm12470_vm14, %v3798_v22, %v3800_v30  ;;  %v3436_v33 = vor.u32 %v3435_v25, %v10953_v48  ;;  %v6026_v22 = vld [vmem:[#allocation2 + $0x84] ss:$0 sps:$4 sm:$0x11]  }
 0x492   : > { %v10937_v23 = vsel %vm12466_vm6, %v4126_v18, %v3839_v45  ;;  %3337 = vrot.lane.b32.xlu1 %v12393_v29, %s6059_s19  ;;  %v12471_v55 = vld [vmem:[#allocation28_spill] sm:$0xff]  ;;  %vm12472_vm6 = vsmask.f32 5376  ;;  %vm12477_vm14 = vcmask 130048   ;;  %v3109_v29 = vshrl.u32 %v10848_v59, 16 }
 0x493   : > { %v4997_v62 = vshll.u32 %v10937_v23, 16  ;;  %3658 = vrot.lane.b32.xlu0 %v3641_v0, %s6072_s30  ;;  %v3437_v19 = vsel %vm12472_vm6, %v12471_v55, %v3436_v33  ;;  %vm12478_vm6 = vcmask 195584  }
 0x494   : > { %v4603_v35 = vpop.permute.xlu1 %4602  ;;  %v10951_v41 = vpop.permute.xlu0 %3448 }
 0x495   : > { %v10956_v56 = vrot.slane %v4997_v62, 1  ;;  %v4487_v62 = vshll.u32 %v6026_v22, 16 }
 0x496   : > { %4445 = vrot.lane.b32.xlu1 %v4425_v63, %s6063_s24 }
 0x497   : > { %3314 = vrot.lane.b32.xlu0 %v12468_v17, %s6057_s17  ;;  %v5000_v27 = vsel %vm413_vm0, %v4996_v47, %v10956_v56 }
 0x498   : > { %v4648_v45 = vpop.permute.xlu1 %4647  ;;  %5262 = vmatmul.mubr.bf16.gmra.mxu1 %v5000_v27  ;;  %v4578_v26 = vpop.permute.xlu0 %4577 }
 0x499   : > { %v4801_v54 = vsel %vm12469_vm11, %v4781_v38, %v4578_v26  ;;  %vm12475_vm11 = vsmask.f32 256 }
 0x49a   : > { %v4817_v63 = vsel %vm4011_vm4, %v4801_v54, %v4603_v35  ;;  %3818 = vrot.lane.b32.xlu1 %v3801_v60, %s6075_s22  ;;  %v11005_v35 = vld [vmem:[#allocation2 + $0x6c] ss:$0 sps:$4 sm:$0x77]   ;;  %v4489_v27 = vsel %vm12475_vm11, %v4481_v34, %v4487_v62  ;;  %v5680_v34 = vcombine.low %v6041_v31, %v6041_v31  ;;  %vm12479_vm11 = vcmask 1044480  }
 0x49b   : > { %v10978_v28 = vsel %vm4032_vm10, %v4817_v63, %v4648_v45  ;;  %4406 = vrot.lane.b32.xlu0 %v10687_v10, %s6059_s19  ;;  %v3364_v10 = vrot.slane %v10913_v12, 2  ;;  %v12476_v45 = vld [vmem:[#allocation35_spill] sm:$0xff]  ;;  %v3529_v38 = vrot.slane %v11005_v35, 2  ;;  %v3608_v44 = vshll.u32 %v11005_v35, 16  ;;  %v6042_v62 = vld [vmem:[#allocation2 + $0x6c] sm:$0xf] }
 0x49c   : > { %v4881_v21 = vshll.u32 %v10978_v28, 16  ;;  %v10984_v24 = vpop.permute.xlu1 %4280  ;;  %v10986_v3 = vpop.permute.xlu0 %4200  ;;  %v5686_v58 = vcombine.low %v6042_v62, %v6042_v62 }
 0x49d   : > { %v3365_v25 = vsel %vm12474_vm12, %v10566_v2, %v3364_v10  ;;  %v3882_v2 = vsel %vm12477_vm14, %v12476_v45, %v10833_v9  ;;  %vm12480_vm14 = vcmask 523264   ;;  %v3610_v49 = vrot.slane %v3608_v44, 3 }
 0x49e   : > { %v10991_v5 = vrot.slane %v4881_v21, 1  ;;  %3454 = vrot.lane.b32.xlu1 %v3437_v19, %s6065_s11  ;;  %v3902_v51 = vsel %vm12478_vm6, %v3882_v2, %v10858_v36  ;;  %v3530_v36 = vsel %vm12474_vm12, %v9895_v46, %v3529_v38  ;;  %vm12485_vm6 = vcmask 64512  }
 0x49f   : > { %3787 = vrot.lane.b32.xlu0 %v12473_v53, %s6074_s9  ;;  %v3922_v54 = vsel %vm1385_vm15, %v3902_v51, %v10831_v40  ;;  %v12483_v53 = vld [vmem:[#allocation65_spill] sm:$0xff]  ;;  %v6028_v51 = vld [vmem:[#allocation2 + $0x60] ss:$0 sps:$4 sm:$0x11]   ;;  %vm12486_vm12 = vcmask 130048  }
 0x4a0   : > { %v3655_v18 = vpop.permute.xlu1 %3654  ;;  %v10997_v0 = vpop.permute.xlu0 %4257  ;;  %v11001_v14 = vsel %vm413_vm0, %v4880_v52, %v10991_v5  ;;  %v3942_v43 = vsel %vm1427_vm3, %v3922_v54, %v10898_v8  ;;  %v3605_v8 = vshrl.u32 %v11005_v35, 16 }
 0x4a1   : > { %v5020_v15 = vshll.u32 %v11001_v14, 16  ;;  %v3962_v40 = vsel %vm1469_vm5, %v3942_v43, %v10884_v1 }
 0x4a2   : > { %4583 = vrot.lane.b32.xlu1 %v10835_v39, %s6067_s25  ;;  %v3982_v63 = vsel %vm1511_vm1, %v3962_v40, %v10951_v41  ;;  %v11075_v22 = vrot.slane %v3605_v8, 2 }
 0x4a3   : > { %3382 = vrot.lane.b32.xlu0 %v3365_v25, %s6063_s24  ;;  %v11015_v47 = vrot.slane %v5020_v15, 1  ;;  %v4002_v41 = vsel %vm12480_vm14, %v3982_v63, %v10929_v16  ;;  %v11085_v15 = vld [vmem:[#allocation2 + $0x70] ss:$0 sps:$4 sm:$0x33]   ;;  %vm12488_vm14 = vcmask 195584  }
 0x4a4   : > { %v11017_v17 = vpop.permute.xlu1 %3310  ;;  %v11019_v57 = vpop.permute.xlu0 %3165  ;;  %v3611_v16 = vor.u32 %v3610_v49, %v11075_v22  ;;  %v12484_v25 = vld [vmem:[#allocation73_spill] sm:$0xff] }
 0x4a5   : > { %v5023_v39 = vsel %vm413_vm0, %v5018_v32, %v11015_v47  ;;  %v6031_v49 = vld [vmem:[#allocation2 + $0x70] ss:$0 sps:$4 sm:$0x77]  }
 0x4a6   : > { %5730 = vmatprep.mubr.msk.bf16.mxu1 %vm4053_vm2, %v5023_v39  ;;  %4608 = vrot.lane.b32.xlu1 %v4596_v42, %s6070_s29  ;;  %v11050_v42 = vrot.slane %v5680_v34, 3  ;;  %v3802_v62 = vrot.slane %v6031_v49, 2 }
 0x4a7   : > { %4508 = vrot.lane.b32.xlu0 %v4489_v27, %s6065_s11  ;;  %v4662_v27 = vsel %vm12485_vm6, %v9782_v11, %v10986_v3  ;;  %v3768_v3 = vshll.u32 %v11085_v15, 16  ;;  %vm12489_vm6 = vcmask 982016  }
 0x4a8   : > { %v11037_v26 = vpop.permute.xlu1 %4402  ;;  %v11039_v9 = vpop.permute.xlu0 %3210  ;;  %v3479_v46 = vsel %vm12479_vm11, %v3476_v4, %v11050_v42  ;;  %v12481_v4 = vld [vmem:[#allocation105_spill] sm:$0xff]  ;;  %v4683_v31 = vsel %vm12486_vm12, %v4662_v27, %v10997_v0  ;;  %vm12487_vm11 = vsmask.f32 5376  ;;  %vm12490_vm12 = vcmask 1044480  }
 0x4a9   : > { %v3612_v54 = vsel %vm12487_vm11, %v9875_v50, %v3611_v16  ;;  %vm12491_vm11 = vcmask 1046528   ;;  %v12493_v16 = vld [vmem:[#allocation33_spill] sm:$0xff] }
 0x4aa   : > { %3547 = vrot.lane.b32.xlu1 %v3530_v36, %s6070_s29  ;;  %v3765_v36 = vshrl.u32 %v11085_v15, 16 }
 0x4ab   : > { %3844 = vrot.lane.b32.xlu0 %v9782_v11, %s6076_s18 }
 0x4ac   : > { %v3784_v60 = vpop.permute.xlu1 %3783  ;;  %v4343_v33 = vpop.permute.xlu0 %4342 }
 0x4ae   : > { %3171 = vrot.lane.b32.xlu1 %v3151_v20, %s6054_s14  ;;  %v12482_v20 = vld [vmem:[#allocation45_spill] sm:$0xff] }
 0x4af   : > { %3496 = vrot.lane.b32.xlu0 %v3479_v46, %s6067_s25  ;;  %v4023_v55 = vsel %vm4011_vm4, %v4002_v41, %v12482_v20  ;;  %v3689_v46 = vrot.slane %v11085_v15, 1  ;;  %v4885_v15 = vshrl.u32 %v10978_v28, 16 }
 0x4b0   : > { %v11068_v21 = vpop.permute.xlu1 %3378  ;;  %v3702_v1 = vpop.permute.xlu0 %3701  ;;  %v4044_v32 = vsel %vm4032_vm10, %v4023_v55, %v12484_v25 }
 0x4b1   : > { %v4065_v45 = vsel %vm4053_vm2, %v4044_v32, %v3655_v18  ;;  %v4703_v18 = vsel %vm12488_vm14, %v4683_v31, %v10984_v24  ;;  %v11124_v24 = vrot.slane %v3765_v36, 1  ;;  %vm12492_vm14 = vcmask 523264   ;;  %v12497_v36 = vld [vmem:[#allocation42_spill] sm:$0xff] }
 0x4b2   : > { %3216 = vrot.lane.b32.xlu1 %v12481_v4, %s6056_s16  ;;  %v4086_v34 = vsel %vm4074_vm9, %v4065_v45, %v3702_v1  ;;  %v4723_v50 = vsel %vm1385_vm15, %v4703_v18, %v4343_v33  ;;  %v5009_v33 = vshrl.u32 %v10937_v23, 16  ;;  %v3690_v23 = vsel %vm12491_vm11, %v3687_v13, %v3689_v46  ;;  %s5882_s16 = smul.u32 144, %s12538_s28 }
 0x4b3   : > { %3129 = vrot.lane.b32.xlu0 %v3109_v29, %s6052_s12  ;;  %v4107_v0 = vsel %vm4095_vm7, %v4086_v34, %v3784_v60  ;;  %v3770_v60 = vrot.slane %v3768_v3, 2  ;;  %v4743_v41 = vsel %vm1427_vm3, %v4723_v50, %v11037_v26  ;;  %v4887_v27 = vor.u32 %v4885_v15, %v10991_v5 }
 0x4b4   : > { %v4505_v19 = vpop.permute.xlu1 %4504  ;;  %v11080_v52 = vpop.permute.xlu0 %3333  ;;  %v5011_v12 = vor.u32 %v5009_v33, %v10956_v56  ;;  %v5031_v5 = vshrl.u32 %v11001_v14, 16  ;;  %vm12498_vm11 = vcmask 130048  }
 0x4b5   : > { %v3884_v3 = vsel %vm12498_vm11, %v12497_v36, %v11019_v57  ;;  %vm12505_vm11 = vcmask 982016  }
 0x4b6   : > { %3316 = vrot.lane.b32.xlu1 %v12483_v53, %s6057_s17  ;;  %v5033_v31 = vor.u32 %v5031_v5, %v11015_v47 }
 0x4b7   : > { %4653 = vrot.lane.b32.xlu0 %v10886_v37, %s6071_s26  ;;  %v11101_v37 = vrot.slane %v5686_v58, 3 }
 0x4b8   : > { %v3841_v2 = vpop.permute.xlu1 %3840  ;;  %v4442_v39 = vpop.permute.xlu0 %4441 }
 0x4b9   : > { %v3643_v44 = vsel %vm12490_vm12, %v3640_v7, %v11101_v37  ;;  %v4763_v7 = vsel %vm1469_vm5, %v4743_v41, %v4442_v39  ;;  %vm12495_vm12 = vcmask 1045504  }
 0x4ba   : > { %3339 = vrot.lane.b32.xlu1 %v6028_v51, %s6059_s19  ;;  %v4783_v55 = vsel %vm1511_vm1, %v4763_v7, %v4505_v19 }
 0x4bb   : > { %3629 = vrot.lane.b32.xlu0 %v3612_v54, %s6071_s26 }
 0x4bc   : > { %v11108_v43 = vpop.permute.xlu1 %3492  ;;  %v3815_v40 = vpop.permute.xlu0 %3814 }
 0x4bd   : > { %v4128_v63 = vsel %vm4116_vm13, %v4107_v0, %v3815_v40 }
 0x4be   : > { %v11115_v8 = vsel %vm12489_vm6, %v4128_v63, %v3841_v2  ;;  %3384 = vrot.lane.b32.xlu1 %v3364_v10, %s6063_s24  ;;  %v3771_v10 = vor.u32 %v3770_v60, %v11124_v24  ;;  %vm12494_vm6 = vsmask.f32 6400 }
 0x4bf   : > { %v5012_v1 = vshll.u32 %v11115_v8, 16  ;;  %3660 = vrot.lane.b32.xlu0 %v3643_v44, %s6072_s30  ;;  %v5024_v15 = vshrl.u32 %v11115_v8, 16 }
 0x4c0   : > { %v4605_v29 = vpop.permute.xlu1 %4604  ;;  %v11131_v11 = vpop.permute.xlu0 %3450 }
 0x4c1   : > { %v11134_v4 = vrot.slane %v5012_v1, 1 }
 0x4c2   : > { %3456 = vrot.lane.b32.xlu1 %v10953_v48, %s6065_s11  ;;  %v3772_v48 = vsel %vm12494_vm6, %v12493_v16, %v3771_v10  ;;  %vm12500_vm6 = vcmask 64512  }
 0x4c3   : > { %3707 = vrot.lane.b32.xlu0 %v3690_v23, %s6073_s15  ;;  %v5015_v26 = vsel %vm413_vm0, %v5011_v12, %v11134_v4 }
 0x4c4   : > { %v4650_v20 = vpop.permute.xlu1 %4649  ;;  %5270 = vmatmul.mubr.bf16.gmra.mxu1 %v5015_v26  ;;  %v4580_v56 = vpop.permute.xlu0 %4579 }
 0x4c5   : > { %v4803_v53 = vsel %vm12492_vm14, %v4783_v55, %v4580_v56  ;;  %vm12499_vm14 = vcmask 195584  }
 0x4c6   : > { %v4819_v13 = vsel %vm4011_vm4, %v4803_v53, %v4605_v29  ;;  %3498 = vrot.lane.b32.xlu1 %v11050_v42, %s6067_s25  ;;  %v3803_v42 = vsel %vm12495_vm12, %v3800_v30, %v3802_v62  ;;  %v11186_v30 = vld [vmem:[%s11490_s4] ss:$0 sm:$0xff]  ;;  %v3904_v40 = vsel %vm12499_vm14, %v3884_v3, %v11039_v9  ;;  %vm12502_vm12 = vcmask 523264   ;;  %vm12506_vm14 = vmmov %vm12500_vm6  ;;  %s11429_s25 = scalar_lea.vmem %s11494_s8, %s5882_s16 }
 0x4c7   : > { %v11154_v58 = vsel %vm4032_vm10, %v4819_v13, %v4650_v20  ;;  %3789 = vrot.lane.b32.xlu0 %v3772_v48, %s6074_s9  ;;  %v3924_v44 = vsel %vm1385_vm15, %v3904_v40, %v11017_v17  ;;  %v11224_v17 = vld [vmem:[#allocation2 + $0x74] ss:$0 sps:$4 sm:$0x11]  }
 0x4c8   : > { %v4888_v19 = vshll.u32 %v11154_v58, 16  ;;  %v11159_v25 = vpop.permute.xlu1 %4282  ;;  %v11161_v32 = vpop.permute.xlu0 %4202  ;;  %v3944_v60 = vsel %vm1427_vm3, %v3924_v44, %v11080_v52  ;;  %v12501_v52 = vmov 0.0  }
 0x4c9   : > { %v3964_v29 = vsel %vm1469_vm5, %v3944_v60, %v11068_v21  ;;  %v12503_v21 = vld [vmem:[#allocation69_spill] sm:$0xff] }
 0x4ca   : > { %v11164_v45 = vrot.slane %v4888_v19, 1  ;;  %3631 = vrot.lane.b32.xlu1 %v11075_v22, %s6071_s26  ;;  %v3984_v7 = vsel %vm1511_vm1, %v3964_v29, %v11131_v11 }
 0x4cb   : > { %3820 = vrot.lane.b32.xlu0 %v3803_v42, %s6075_s22  ;;  %v4004_v23 = vsel %vm12502_vm12, %v3984_v7, %v11108_v43  ;;  %v4664_v42 = vsel %vm12506_vm14, %v12496_v6, %v11161_v32  ;;  %vm12508_vm12 = vcmask 195584  }
 0x4cc   : > { %v3657_v28 = vpop.permute.xlu1 %3656  ;;  %v11172_v2 = vpop.permute.xlu0 %4259  ;;  %v11176_v39 = vsel %vm413_vm0, %v4887_v27, %v11164_v45  ;;  %v4025_v11 = vsel %vm4011_vm4, %v4004_v23, %v12503_v21 }
 0x4cd   : > { %v5035_v51 = vshll.u32 %v11176_v39, 16 }
 0x4ce   : > { %3709 = vrot.lane.b32.xlu1 %v3689_v46, %s6073_s15 }
 0x4cf   : > { %3846 = vrot.lane.b32.xlu0 %v12496_v6, %s6076_s18  ;;  %v5239_v22 = vpop.f32.mrf.mxu1  ;;  %v11189_v34 = vrot.slane %v5035_v51, 1  ;;  %v5026_v51 = vor.u32 %v5024_v15, %v11134_v4 }
 0x4d0   : > { %v11191_v54 = vpop.permute.xlu1 %3312  ;;  %v11193_v14 = vpop.permute.xlu0 %3167  ;;  %v5240_v50 = vadd.f32 %v11186_v30, %v5239_v22 }
 0x4d1   : > { %v5241_v18 = vpop.f32.mrf.mxu1  ;;  %v5038_v0 = vsel %vm413_vm0, %v5033_v31, %v11189_v34 }
 0x4d2   : > { %5731 = vmatprep.mubr.msk.bf16.mxu1 %vm4053_vm2, %v5038_v0  ;;  %3822 = vrot.lane.b32.xlu1 %v3802_v62, %s6075_s22  ;;  %v5310_v33 = vmax.f32 %v5240_v50, 0.0 }
 0x4d3   : > { %3549 = vrot.lane.b32.xlu0 %v3529_v38, %s6070_s29  ;;  %v5242_v47 = vpop.f32.mrf.mxu1 }
 0x4d4   : > { %v5243_v57 = vadd.f32 %v11186_v30, %v5242_v47  ;;  %v4405_v63 = vpop.permute.xlu1 %4404  ;;  %v11209_v46 = vpop.permute.xlu0 %3212 }
 0x4d5   : > { %v5244_v9 = vpop.f32.mrf.mxu1 }
 0x4d6   : > { %v5311_v1 = vmax.f32 %v5243_v57, 0.0 }
 0x4d7   : > { %3662 = vrot.lane.b32.xlu0 %v11101_v37, %s6072_s30 }
 0x4d8   : > { %v5328_v35 = vpack.c.bf16 %v5311_v1, %v5310_v33  ;;  %v3786_v38 = vpop.permute.xlu1 %3785  ;;  %v4345_v41 = vpop.permute.xlu0 %4344  ;;  %v4892_v33 = vshrl.u32 %v11154_v58, 16 }
 0x4da   : > { %5844 = vmatmul.mubr.msk.bf16.vlgmr.msra.gmra.mxu0 %vm12500_vm6, %v5328_v35  ;;  %vm12507_vm6 = vcmask 130048   ;;  %v4894_v29 = vor.u32 %v4892_v33, %v11164_v45 }
 0x4db   : > { %3791 = vrot.lane.b32.xlu0 %v11124_v24, %s6074_s9  ;;  %5847 = vmatprep.mubr.msk.bf16.mxu0 %vm11998_vm8, %v12501_v52  ;;  %v12504_v24 = vld [vmem:[#allocation55_spill] sm:$0xff]  ;;  %v4685_v22 = vsel %vm12507_vm6, %v4664_v42, %v11172_v2  ;;  %vm12511_vm14 = vmmov %vm12507_vm6 }
 0x4dc   : > { %v11228_v37 = vpop.permute.xlu1 %3380  ;;  %v3704_v12 = vpop.permute.xlu0 %3703  ;;  %v4046_v26 = vsel %vm4032_vm10, %v4025_v11, %v12504_v24  ;;  %v4705_v8 = vsel %vm12508_vm12, %v4685_v22, %v11159_v25  ;;  %v12510_v11 = vld [vmem:[#allocation85_spill] sm:$0xff]  ;;  %vm12512_vm6 = vmmov %vm12508_vm12  ;;  %vm12513_vm12 = vcmask 64512  }
 0x4dd   : > { %v4067_v20 = vsel %vm4053_vm2, %v4046_v26, %v3657_v28  ;;  %v4725_v32 = vsel %vm1385_vm15, %v4705_v8, %v4345_v41 }
 0x4de   : > { %v4088_v53 = vsel %vm4074_vm9, %v4067_v20, %v3704_v12  ;;  %v4745_v18 = vsel %vm1427_vm3, %v4725_v32, %v4405_v63  ;;  %v12515_v32 = vld [vmem:[#allocation34_spill] sm:$0xff] }
 0x4df   : > { %3848 = vrot.lane.b32.xlu0 %v11224_v17, %s6076_s18  ;;  %v4109_v43 = vsel %vm4095_vm7, %v4088_v53, %v3786_v38 }
 0x4e0   : > { %v4507_v10 = vpop.permute.xlu1 %4506  ;;  %v11236_v49 = vpop.permute.xlu0 %3335 }
 0x4e4   : > { %v3843_v55 = vpop.permute.xlu1 %3842  ;;  %v4444_v56 = vpop.permute.xlu0 %4443 }
 0x4e5   : > { %v4765_v0 = vsel %vm1469_vm5, %v4745_v18, %v4444_v56 }
 0x4e6   : > { %v4785_v40 = vsel %vm1511_vm1, %v4765_v0, %v4507_v10  ;;  %v3886_v10 = vsel %vm12511_vm14, %v12510_v11, %v11193_v14  ;;  %vm12516_vm14 = vmmov %vm12513_vm12 }
 0x4e7   : > { %v3906_v20 = vsel %vm12512_vm6, %v3886_v10, %v11209_v46  ;;  %vm12517_vm6 = vcmask 130048  }
 0x4e8   : > { %v11242_v13 = vpop.permute.xlu1 %3494  ;;  %v3817_v16 = vpop.permute.xlu0 %3816 }
 0x4e9   : > { %v4130_v48 = vsel %vm4116_vm13, %v4109_v43, %v3817_v16 }
 0x4ea   : > { %v11247_v62 = vsel %vm12505_vm11, %v4130_v48, %v3843_v55  ;;  %vm12509_vm11 = vcmask 523264   ;;  %v5046_v55 = vshrl.u32 %v11176_v39, 16  ;;  %v3926_v48 = vsel %vm1385_vm15, %v3906_v20, %v11191_v54 }
 0x4eb   : > { %v5027_v19 = vshll.u32 %v11247_v62, 16  ;;  %v3946_v46 = vsel %vm1427_vm3, %v3926_v48, %v11236_v49 }
 0x4ec   : > { %v4607_v27 = vpop.permute.xlu1 %4606  ;;  %v5048_v16 = vor.u32 %v5046_v55, %v11189_v34 }
 0x4ed   : > { %v11254_v28 = vrot.slane %v5027_v19, 1  ;;  %v3453_v5 = vpop.permute.xlu0 %3452  ;;  %v3966_v19 = vsel %vm1469_vm5, %v3946_v46, %v11228_v37 }
 0x4ee   : > { %v3986_v54 = vsel %vm1511_vm1, %v3966_v19, %v3453_v5 }
 0x4ef   : > { %v5030_v31 = vsel %vm413_vm0, %v5026_v51, %v11254_v28  ;;  %v4006_v49 = vsel %vm12509_vm11, %v3986_v54, %v11242_v13 }
 0x4f0   : > { %v11261_v36 = vpop.permute.xlu1 %4261  ;;  %5278 = vmatmul.mubr.bf16.gmra.mxu1 %v5030_v31  ;;  %v12514_v31 = vld [vmem:[#allocation3_spill] sm:$0xff] }
 0x4f1   : > { %v4582_v3 = vpop.permute.xlu0 %4581  ;;  %v4027_v8 = vsel %vm4011_vm4, %v4006_v49, %v12514_v31 }
 0x4f2   : > { %v4805_v47 = vsel %vm12509_vm11, %v4785_v40, %v4582_v3  ;;  %v4048_v18 = vsel %vm4032_vm10, %v4027_v8, %v12515_v32  ;;  %vm12519_vm11 = vcmask 982016  }
 0x4f3   : > { %v4821_v44 = vsel %vm4011_vm4, %v4805_v47, %v4607_v27 }
 0x4f4   : > { %v11266_v6 = vpop.permute.xlu1 %3169 }
 0x4f5   : > { %v4205_v4 = vpop.permute.xlu0 %4204 }
 0x4f6   : > { %v4667_v5 = vsel %vm12516_vm14, %v11224_v17, %v4205_v4  ;;  %v5039_v4 = vshrl.u32 %v11247_v62, 16  ;;  %vm12520_vm14 = vcmask 523264  }
 0x4f8   : > { %v11270_v2 = vpop.permute.xlu1 %3214 }
 0x4f9   : > { %v11273_v50 = vpop.permute.xlu0 %3127 }
 0x4fc   : > { %v5247_v57 = vpop.f32.mrf.mxu1  ;;  %v4347_v25 = vpop.permute.xlu1 %4346 }
 0x4fd   : > { %v4652_v9 = vpop.permute.xlu0 %4651  ;;  %v5248_v1 = vadd.f32 %v11186_v30, %v5247_v57  ;;  %v4687_v57 = vsel %vm12517_vm6, %v4667_v5, %v11261_v36  ;;  %vm12521_vm6 = vcmask 64512  }
 0x4fe   : > { %v11278_v60 = vsel %vm4032_vm10, %v4821_v44, %v4652_v9  ;;  %v5249_v63 = vpop.f32.mrf.mxu1 }
 0x4ff   : > { %v4895_v35 = vshll.u32 %v11278_v60, 16  ;;  %v5312_v24 = vmax.f32 %v5248_v1, 0.0 }
 0x500   : > { %v5250_v38 = vpop.f32.mrf.mxu1  ;;  %v3706_v41 = vpop.permute.xlu1 %3705 }
 0x501   : > { %v11284_v7 = vrot.slane %v4895_v35, 1  ;;  %v5251_v12 = vadd.f32 %v11186_v30, %v5250_v38  ;;  %v4285_v23 = vpop.permute.xlu0 %4284 }
 0x502   : > { %v5252_v21 = vpop.f32.mrf.mxu1 }
 0x503   : > { %v11292_v58 = vsel %vm413_vm0, %v4894_v29, %v11284_v7  ;;  %v5313_v26 = vmax.f32 %v5251_v12, 0.0 }
 0x504   : > { %v11296_v45 = vpop.permute.xlu1 %3337  ;;  %v5050_v56 = vshll.u32 %v11292_v58, 16 }
 0x505   : > { %v5329_v53 = vpack.c.bf16 %v5313_v26, %v5312_v24  ;;  %v3659_v43 = vpop.permute.xlu0 %3658 }
 0x506   : > { %v11301_v14 = vrot.slane %v5050_v56, 1  ;;  %v4069_v37 = vsel %vm4053_vm2, %v4048_v18, %v3659_v43 }
 0x507   : > { %5848 = vmatmul.mubr.msk.bf16.gmra.mxu0 %vm12513_vm12, %v5329_v53  ;;  %v4090_v47 = vsel %vm4074_vm9, %v4069_v37, %v3706_v41  ;;  %vm12518_vm12 = vcmask 195584   ;;  %v4899_v53 = vshrl.u32 %v11278_v60, 16 }
 0x508   : > { %v5053_v15 = vsel %vm413_vm0, %v5048_v16, %v11301_v14  ;;  %v4446_v39 = vpop.permute.xlu1 %4445  ;;  %5851 = vmatprep.mubr.msk.bf16.mxu0 %vm11998_vm8, %v12501_v52  ;;  %v4707_v9 = vsel %vm12518_vm12, %v4687_v57, %v4285_v23  ;;  %v5041_v23 = vor.u32 %v5039_v4, %v11254_v28  ;;  %v3868_v28 = vsel %vm12521_vm6, %v12404_v61, %v11273_v50 }
 0x509   : > { %5732 = vmatprep.mubr.msk.bf16.mxu1 %vm4053_vm2, %v5053_v15  ;;  %v3315_v34 = vpop.permute.xlu0 %3314  ;;  %v4727_v35 = vsel %vm1385_vm15, %v4707_v9, %v4347_v25  ;;  %vm12522_vm12 = vcmask 130048   ;;  %v4901_v15 = vor.u32 %v4899_v53, %v11284_v7  ;;  %v5061_v61 = vshrl.u32 %v11292_v58, 16 }
 0x50a   : > { %v3888_v46 = vsel %vm12522_vm12, %v3868_v28, %v11266_v6  ;;  %vm12525_vm12 = vcmask 523264  }
 0x50c   : > { %v3819_v27 = vpop.permute.xlu1 %3818 }
 0x50d   : > { %v4407_v42 = vpop.permute.xlu0 %4406 }
 0x50e   : > { %v4747_v38 = vsel %vm1427_vm3, %v4727_v35, %v4407_v42 }
 0x50f   : > { %v4767_v21 = vsel %vm1469_vm5, %v4747_v38, %v4446_v39 }
 0x510   : > { %v11318_v51 = vpop.permute.xlu1 %3454 }
 0x511   : > { %v3788_v22 = vpop.permute.xlu0 %3787 }
 0x512   : > { %v4111_v44 = vsel %vm4095_vm7, %v4090_v47, %v3788_v22 }
 0x513   : > { %v4132_v1 = vsel %vm4116_vm13, %v4111_v44, %v3819_v27 }
 0x514   : > { %v4584_v3 = vpop.permute.xlu1 %4583 }
 0x515   : > { %v3383_v0 = vpop.permute.xlu0 %3382 }
 0x518   : > { %v4609_v40 = vpop.permute.xlu1 %4608 }
 0x519   : > { %v4509_v13 = vpop.permute.xlu0 %4508 }
 0x51a   : > { %v4787_v11 = vsel %vm1511_vm1, %v4767_v21, %v4509_v13 }
 0x51b   : > { %v4807_v24 = vsel %vm12520_vm14, %v4787_v11, %v4584_v3  ;;  %v5063_v3 = vor.u32 %v5061_v61, %v11301_v14  ;;  %vm12524_vm14 = vmmov %vm12521_vm6 }
 0x51c   : > { %v11332_v63 = vpop.permute.xlu1 %3547  ;;  %v4823_v20 = vsel %vm4011_vm4, %v4807_v24, %v4609_v40 }
 0x51d   : > { %v3845_v33 = vpop.permute.xlu0 %3844 }
 0x51e   : > { %v11337_v17 = vsel %vm12519_vm11, %v4132_v1, %v3845_v33  ;;  %vm12523_vm11 = vcmask 195584  }
 0x51f   : > { %v5042_v36 = vshll.u32 %v11337_v17, 16  ;;  %v3908_v50 = vsel %vm12523_vm11, %v3888_v46, %v11270_v2  ;;  %vm12526_vm11 = vcmask 130048  }
 0x520   : > { %v3172_v41 = vpop.permute.xlu1 %3171  ;;  %v3928_v22 = vsel %vm1385_vm15, %v3908_v50, %v3315_v34 }
 0x521   : > { %v11342_v29 = vrot.slane %v5042_v36, 1  ;;  %v3497_v12 = vpop.permute.xlu0 %3496  ;;  %v3948_v58 = vsel %vm1427_vm3, %v3928_v22, %v11296_v45 }
 0x522   : > { %v3968_v2 = vsel %vm1469_vm5, %v3948_v58, %v3383_v0 }
 0x523   : > { %v5045_v25 = vsel %vm413_vm0, %v5041_v23, %v11342_v29  ;;  %v3988_v47 = vsel %vm1511_vm1, %v3968_v2, %v11318_v51 }
 0x524   : > { %5286 = vmatmul.mubr.bf16.gmra.mxu1 %v5045_v25  ;;  %v3217_v10 = vpop.permute.xlu1 %3216  ;;  %v4008_v45 = vsel %vm12525_vm12, %v3988_v47, %v3497_v12  ;;  %v5054_v25 = vshrl.u32 %v11337_v17, 16 }
 0x525   : > { %v3130_v62 = vpop.permute.xlu0 %3129  ;;  %v4029_v44 = vsel %vm4011_vm4, %v4008_v45, %v11332_v63 }
 0x526   : > { %v3870_v14 = vsel %vm12521_vm6, %v10848_v59, %v3130_v62  ;;  %vm12528_vm6 = vcmask 982016  }
 0x527   : > { %v3890_v0 = vsel %vm12526_vm11, %v3870_v14, %v3172_v41 }
 0x528   : > { %v3317_v26 = vpop.permute.xlu1 %3316 }
 0x529   : > { %v4654_v55 = vpop.permute.xlu0 %4653 }
 0x52a   : > { %v4839_v56 = vsel %vm4032_vm10, %v4823_v20, %v4654_v55 }
 0x52b   : > { %v4902_v43 = vshll.u32 %v4839_v56, 16  ;;  %v4906_v1 = vshrl.u32 %v4839_v56, 16 }
 0x52c   : > { %v5255_v16 = vpop.f32.mrf.mxu1  ;;  %v3340_v48 = vpop.permute.xlu1 %3339 }
 0x52d   : > { %v4904_v39 = vrot.slane %v4902_v43, 1  ;;  %v3630_v19 = vpop.permute.xlu0 %3629  ;;  %v5256_v42 = vadd.f32 %v11186_v30, %v5255_v16  ;;  %v5080_v63 = vshll.u32 %v4906_v1, 16 }
 0x52e   : > { %v5257_v54 = vpop.f32.mrf.mxu1  ;;  %v4050_v9 = vsel %vm4032_vm10, %v4029_v44, %v3630_v19 }
 0x52f   : > { %v4905_v27 = vsel %vm413_vm0, %v4901_v15, %v4904_v39  ;;  %v5314_v18 = vmax.f32 %v5256_v42, 0.0  ;;  %v5082_v43 = vrot.slane %v5080_v63, 1 }
 0x530   : > { %v5258_v60 = vpop.f32.mrf.mxu1  ;;  %v5065_v49 = vshll.u32 %v4905_v27, 16  ;;  %v3385_v7 = vpop.permute.xlu1 %3384  ;;  %v5076_v23 = vshrl.u32 %v4905_v27, 16 }
 0x531   : > { %v5259_v6 = vadd.f32 %v11186_v30, %v5258_v60  ;;  %v3661_v31 = vpop.permute.xlu0 %3660 }
 0x532   : > { %v5260_v8 = vpop.f32.mrf.mxu1  ;;  %v5067_v32 = vrot.slane %v5065_v49, 1  ;;  %v4071_v59 = vsel %vm4053_vm2, %v4050_v9, %v3661_v31 }
 0x533   : > { %v5315_v37 = vmax.f32 %v5259_v6, 0.0 }
 0x534   : > { %v5068_v5 = vsel %vm413_vm0, %v5063_v3, %v5067_v32  ;;  %v3457_v13 = vpop.permute.xlu1 %3456  ;;  %v5078_v55 = vor.u32 %v5076_v23, %v5067_v32 }
 0x535   : > { %v5330_v40 = vpack.c.bf16 %v5315_v37, %v5314_v18  ;;  %5733 = vmatprep.mubr.msk.bf16.mxu1 %vm4053_vm2, %v5068_v5  ;;  %v3708_v34 = vpop.permute.xlu0 %3707 }
 0x536   : > { %v4092_v4 = vsel %vm4074_vm9, %v4071_v59, %v3708_v34  ;;  %v5083_v17 = vsel %vm413_vm0, %v5078_v55, %v5082_v43 }
 0x537   : > { %5852 = vmatmul.mubr.msk.bf16.gmra.mxu0 %vm12524_vm14, %v5330_v40  ;;  %vm12527_vm14 = vcmask 195584  }
 0x538   : > { %5855 = vmatprep.mubr.msk.bf16.mxu0 %vm11998_vm8, %v12501_v52  ;;  %v3910_v51 = vsel %vm12527_vm14, %v3890_v0, %v3217_v10  ;;  %v3499_v35 = vpop.permute.xlu1 %3498 }
 0x539   : > { %v3790_v57 = vpop.permute.xlu0 %3789  ;;  %v3930_v36 = vsel %vm1385_vm15, %v3910_v51, %v3317_v26  ;;  %v5056_v26 = vor.u32 %v5054_v25, %v11342_v29  ;;  %vm12529_vm15 = vmmov %vm12525_vm12 }
 0x53a   : > { %v4113_v38 = vsel %vm4095_vm7, %v4092_v4, %v3790_v57  ;;  %v3950_v21 = vsel %vm1427_vm3, %v3930_v36, %v3340_v48  ;;  %vm12531_vm3 = vcmask 64512  }
 0x53b   : > { %v3970_v10 = vsel %vm1469_vm5, %v3950_v21, %v3385_v7 }
 0x53c   : > { %v3990_v24 = vsel %vm1511_vm1, %v3970_v10, %v3457_v13  ;;  %v3632_v20 = vpop.permute.xlu1 %3631  ;;  %vm12530_vm1 = vmmov %vm12528_vm6 }
 0x53d   : > { %v3821_v33 = vpop.permute.xlu0 %3820  ;;  %v4010_v28 = vsel %vm12529_vm15, %v3990_v24, %v3499_v35 }
 0x53e   : > { %v4134_v41 = vsel %vm4116_vm13, %v4113_v38, %v3821_v33  ;;  %v11424_v33 = vld [vmem:[%s11492_s6] ss:$0 sm:$0xff] }
 0x540   : > { %v3710_v39 = vpop.permute.xlu1 %3709 }
 0x541   : > { %v3847_v12 = vpop.permute.xlu0 %3846 }
 0x542   : > { %v4155_v11 = vsel %vm12528_vm6, %v4134_v41, %v3847_v12 }
 0x543   : > { %v5057_v62 = vshll.u32 %v4155_v11, 16  ;;  %v5069_v49 = vshrl.u32 %v4155_v11, 16 }
 0x544   : > { %v3823_v42 = vpop.permute.xlu1 %3822 }
 0x545   : > { %v5059_v56 = vrot.slane %v5057_v62, 1  ;;  %v3550_v53 = vpop.permute.xlu0 %3549 }
 0x546   : > { %v4031_v16 = vsel %vm4011_vm4, %v4010_v28, %v3550_v53 }
 0x547   : > { %v5060_v48 = vsel %vm413_vm0, %v5056_v26, %v5059_v56  ;;  %v4052_v15 = vsel %vm4032_vm10, %v4031_v16, %v3632_v20  ;;  %v5071_v6 = vor.u32 %v5069_v49, %v5059_v56 }
 0x548   : > { %5294 = vmatmul.mubr.bf16.gmra.mxu1 %v5060_v48 }
 0x549   : > { %v3663_v46 = vpop.permute.xlu0 %3662  ;;  %5734 = vmatprep.mubr.msk.bf16.mxu1 %vm4053_vm2, %v5083_v17 }
 0x54a   : > { %v4073_v29 = vsel %vm4053_vm2, %v4052_v15, %v3663_v46 }
 0x54b   : > { %v4094_v54 = vsel %vm4074_vm9, %v4073_v29, %v3710_v39 }
 0x54d   : > { %v3792_v19 = vpop.permute.xlu0 %3791 }
 0x54e   : > { %v4115_v27 = vsel %vm4095_vm7, %v4094_v54, %v3792_v19 }
 0x54f   : > { %v4136_v50 = vsel %vm4116_vm13, %v4115_v27, %v3823_v42 }
 0x551   : > { %v3849_v61 = vpop.permute.xlu0 %3848 }
 0x552   : > { %v4157_v60 = vsel %vm12530_vm1, %v4136_v50, %v3849_v61 }
 0x553   : > { %v5072_v22 = vshll.u32 %v4157_v60, 16 }
 0x555   : > { %v5074_v31 = vrot.slane %v5072_v22, 1 }
 0x557   : > { %v5075_v7 = vsel %vm413_vm0, %v5071_v6, %v5074_v31  ;;  %vm12532_vm0 = vmmov %vm12531_vm3 }
 0x558   : > { %5302 = vmatmul.mubr.bf16.gmra.mxu1 %v5075_v7  ;;  %v5263_v8 = vpop.f32.mrf.mxu1  ;;  %vm12533_vm5 = vmmov %vm12532_vm0 }
 0x559   : > { %5871 = vmatprep.mubr.msk.bf16.mxu1 %vm11998_vm8, %v12501_v52  ;;  %v5264_v32 = vadd.f32 %v11186_v30, %v5263_v8  ;;  %vm12534_vm4 = vmmov %vm12532_vm0 }
 0x55a   : > { %v5265_v3 = vpop.f32.mrf.mxu1  ;;  %vm12535_vm10 = vmmov %vm12532_vm0 }
 0x55b   : > { %v5316_v5 = vmax.f32 %v5264_v32, 0.0  ;;  %vm12536_vm2 = vmmov %vm12532_vm0 }
 0x55c   : > { %v5266_v18 = vpop.f32.mrf.mxu1 }
 0x55d   : > { %v5267_v37 = vadd.f32 %v11186_v30, %v5266_v18 }
 0x55e   : > { %v5268_v58 = vpop.f32.mrf.mxu1 }
 0x55f   : > { %v5317_v2 = vmax.f32 %v5267_v37, 0.0 }
 0x561   : > { %v5331_v40 = vpack.c.bf16 %v5317_v2, %v5316_v5 }
 0x563   : > { %5856 = vmatmul.mubr.msk.bf16.gmra.mxu0 %vm12531_vm3, %v5331_v40 }
 0x564   : > { %5859 = vmatprep.mubr.msk.bf16.mxu0 %vm11998_vm8, %v12501_v52 }
 0x584   : > { %v5271_v34 = vpop.f32.mrf.mxu1 }
 0x585   : > { %v5272_v14 = vadd.f32 %v11186_v30, %v5271_v34 }
 0x586   : > { %v5273_v47 = vpop.f32.mrf.mxu1 }
 0x587   : > { %v5318_v0 = vmax.f32 %v5272_v14, 0.0 }
 0x588   : > { %v5274_v13 = vpop.f32.mrf.mxu1 }
 0x589   : > { %v5275_v45 = vadd.f32 %v11186_v30, %v5274_v13 }
 0x58a   : > { %v5276_v57 = vpop.f32.mrf.mxu1 }
 0x58b   : > { %v5319_v44 = vmax.f32 %v5275_v45, 0.0 }
 0x58d   : > { %v5332_v9 = vpack.c.bf16 %v5319_v44, %v5318_v0 }
 0x58f   : > { %5860 = vmatmul.mubr.msk.bf16.gmra.mxu0 %vm12532_vm0, %v5332_v9 }
 0x590   : > { %5863 = vmatprep.mubr.msk.bf16.mxu0 %vm11998_vm8, %v12501_v52 }
 0x59a   : > { %v5409_v51 = vpop.f32.mrf.mxu0 }
 0x59b   : > { %v5410_v1 = vadd.f32 %v11424_v33, %v5409_v51 }
 0x59c   : > { %v5845_v59 = vpop.f32.mrf.mxu0 }
 0x59d   : > { %5480 = vst [vmem:[%s11429_s25] sm:$0xff] %v5410_v1 }
 0x59e   : > { %v5412_v35 = vpop.f32.mrf.mxu0 }
 0x59f   : > { %v5413_v4 = vadd.f32 %v11424_v33, %v5412_v35 }
 0x5a0   : > { %v5846_v38 = vpop.f32.mrf.mxu0 }
 0x5a1   : > { %5481 = vst [vmem:[%s11429_s25 + $0x8] sm:$0xff] %v5413_v4 }
 0x5b0   : > { %v5279_v36 = vpop.f32.mrf.mxu1 }
 0x5b1   : > { %v5280_v12 = vadd.f32 %v11186_v30, %v5279_v36 }
 0x5b2   : > { %v5281_v41 = vpop.f32.mrf.mxu1 }
 0x5b3   : > { %v5320_v11 = vmax.f32 %v5280_v12, 0.0 }
 0x5b4   : > { %v5282_v23 = vpop.f32.mrf.mxu1 }
 0x5b5   : > { %v5283_v63 = vadd.f32 %v11186_v30, %v5282_v23 }
 0x5b6   : > { %v5284_v21 = vpop.f32.mrf.mxu1 }
 0x5b7   : > { %v5321_v25 = vmax.f32 %v5283_v63, 0.0 }
 0x5b9   : > { %v5333_v10 = vpack.c.bf16 %v5321_v25, %v5320_v11 }
 0x5bb   : > { %5864 = vmatmul.mubr.msk.bf16.gmra.mxu0 %vm12533_vm5, %v5333_v10 }
 0x5bc   : > { %5867 = vmatprep.mubr.msk.bf16.mxu0 %vm11998_vm8, %v12501_v52 }
 0x5c7   : > { %v5417_v62 = vpop.f32.mrf.mxu0 }
 0x5c8   : > { %v5418_v24 = vadd.f32 %v11424_v33, %v5417_v62 }
 0x5c9   : > { %v5849_v20 = vpop.f32.mrf.mxu0 }
 0x5ca   : > { %5482 = vst [vmem:[%s11429_s25 + $0x10] sm:$0xff] %v5418_v24 }
 0x5cb   : > { %v5420_v55 = vpop.f32.mrf.mxu0 }
 0x5cc   : > { %v5421_v26 = vadd.f32 %v11424_v33, %v5420_v55 }
 0x5cd   : > { %v5850_v28 = vpop.f32.mrf.mxu0 }
 0x5ce   : > { %5483 = vst [vmem:[%s11429_s25 + $0x18] sm:$0xff] %v5421_v26 }
 0x5e4   : > { %v5287_v56 = vpop.f32.mrf.mxu1 }
 0x5e5   : > { %v5288_v43 = vadd.f32 %v11186_v30, %v5287_v56 }
 0x5e6   : > { %v5289_v53 = vpop.f32.mrf.mxu1 }
 0x5e7   : > { %v5322_v46 = vmax.f32 %v5288_v43, 0.0 }
 0x5e8   : > { %v5290_v16 = vpop.f32.mrf.mxu1 }
 0x5e9   : > { %v5291_v48 = vadd.f32 %v11186_v30, %v5290_v16 }
 0x5ea   : > { %v5292_v17 = vpop.f32.mrf.mxu1 }
 0x5eb   : > { %v5323_v15 = vmax.f32 %v5291_v48, 0.0 }
 0x5ed   : > { %v5334_v39 = vpack.c.bf16 %v5323_v15, %v5322_v46 }
 0x5ef   : > { %5868 = vmatmul.mubr.msk.bf16.gmra.mxu0 %vm12534_vm4, %v5334_v39 }
 0x5f7   : > { %v5425_v29 = vpop.f32.mrf.mxu0 }
 0x5f8   : > { %v5426_v19 = vadd.f32 %v11424_v33, %v5425_v29 }
 0x5f9   : > { %v5853_v54 = vpop.f32.mrf.mxu0 }
 0x5fa   : > { %5484 = vst [vmem:[%s11429_s25 + $0x20] sm:$0xff] %v5426_v19 }
 0x5fb   : > { %v5428_v27 = vpop.f32.mrf.mxu0 }
 0x5fc   : > { %v5429_v42 = vadd.f32 %v11424_v33, %v5428_v27 }
 0x5fd   : > { %v5854_v61 = vpop.f32.mrf.mxu0 }
 0x5fe   : > { %5485 = vst [vmem:[%s11429_s25 + $0x28] sm:$0xff] %v5429_v42 }
 0x608   : > { %v5295_v50 = vpop.f32.mrf.mxu1 }
 0x609   : > { %v5296_v49 = vadd.f32 %v11186_v30, %v5295_v50 }
 0x60a   : > { %v5297_v60 = vpop.f32.mrf.mxu1 }
 0x60b   : > { %v5324_v7 = vmax.f32 %v5296_v49, 0.0 }
 0x60c   : > { %v5298_v22 = vpop.f32.mrf.mxu1 }
 0x60d   : > { %v5299_v6 = vadd.f32 %v11186_v30, %v5298_v22 }
 0x60e   : > { %v5300_v31 = vpop.f32.mrf.mxu1 }
 0x60f   : > { %v5325_v8 = vmax.f32 %v5299_v6, 0.0 }
 0x611   : > { %v5335_v3 = vpack.c.bf16 %v5325_v8, %v5324_v7 }
 0x613   : > { %5872 = vmatmul.mubr.msk.bf16.vlgmr.msra.gmra.mxu1 %vm12535_vm10, %v5335_v3 }
 0x614   : > { %5875 = vmatprep.mubr.msk.bf16.mxu1 %vm11998_vm8, %v12501_v52 }
 0x618   : > { %v5303_v32 = vpop.f32.mrf.mxu1 }
 0x619   : > { %v5304_v37 = vadd.f32 %v11186_v30, %v5303_v32 }
 0x61a   : > { %v5305_v18 = vpop.f32.mrf.mxu1 }
 0x61b   : > { %v5326_v40 = vmax.f32 %v5304_v37, 0.0 }
 0x61c   : > { %v5306_v58 = vpop.f32.mrf.mxu1 }
 0x61d   : > { %v5307_v5 = vadd.f32 %v11186_v30, %v5306_v58 }
 0x61e   : > { %v5308_v2 = vpop.f32.mrf.mxu1 }
 0x61f   : > { %v5327_v34 = vmax.f32 %v5307_v5, 0.0 }
 0x621   : > { %v5336_v47 = vpack.c.bf16 %v5327_v34, %v5326_v40 }
 0x623   : > { %5876 = vmatmul.mubr.msk.bf16.gmra.mxu1 %vm12536_vm2, %v5336_v47  ;;  %v5433_v14 = vpop.f32.mrf.mxu0 }
 0x624   : > { %v5434_v13 = vadd.f32 %v11424_v33, %v5433_v14 }
 0x625   : > { %v5857_v52 = vpop.f32.mrf.mxu0 }
 0x626   : > { %5486 = vst [vmem:[%s11429_s25 + $0x30] sm:$0xff] %v5434_v13 }
 0x627   : > { %v5436_v45 = vpop.f32.mrf.mxu0 }
 0x628   : > { %v5437_v57 = vadd.f32 %v11424_v33, %v5436_v45 }
 0x629   : > { %v5858_v0 = vpop.f32.mrf.mxu0 }
 0x62a   : > { %5487 = vst [vmem:[%s11429_s25 + $0x38] sm:$0xff] %v5437_v57 }
 0x64f   : > { %v5441_v30 = vpop.f32.mrf.mxu0 }
 0x650   : > { %v5442_v44 = vadd.f32 %v11424_v33, %v5441_v30 }
 0x651   : > { %v5861_v9 = vpop.f32.mrf.mxu0 }
 0x652   : > { %5488 = vst [vmem:[%s11429_s25 + $0x40] sm:$0xff] %v5442_v44 }
 0x653   : > { %v5444_v51 = vpop.f32.mrf.mxu0 }
 0x654   : > { %v5445_v1 = vadd.f32 %v11424_v33, %v5444_v51 }
 0x655   : > { %v5862_v59 = vpop.f32.mrf.mxu0 }
 0x656   : > { %5489 = vst [vmem:[%s11429_s25 + $0x48] sm:$0xff] %v5445_v1 }
 0x67b   : > { %v5449_v35 = vpop.f32.mrf.mxu0 }
 0x67c   : > { %v5450_v4 = vadd.f32 %v11424_v33, %v5449_v35 }
 0x67d   : > { %v5865_v38 = vpop.f32.mrf.mxu0 }
 0x67e   : > { %5490 = vst [vmem:[%s11429_s25 + $0x50] sm:$0xff] %v5450_v4 }
 0x67f   : > { %v5452_v36 = vpop.f32.mrf.mxu0 }
 0x680   : > { %v5453_v41 = vadd.f32 %v11424_v33, %v5452_v36 }
 0x681   : > { %v5866_v12 = vpop.f32.mrf.mxu0 }
 0x682   : > { %5491 = vst [vmem:[%s11429_s25 + $0x58] sm:$0xff] %v5453_v41 }
 0x6af   : > { %v5457_v23 = vpop.f32.mrf.mxu0 }
 0x6b0   : > { %v5458_v63 = vadd.f32 %v11424_v33, %v5457_v23 }
 0x6b1   : > { %v5869_v21 = vpop.f32.mrf.mxu0 }
 0x6b2   : > { %5492 = vst [vmem:[%s11429_s25 + $0x60] sm:$0xff] %v5458_v63 }
 0x6b3   : > { %v5460_v11 = vpop.f32.mrf.mxu0 }
 0x6b4   : > { %v5461_v25 = vadd.f32 %v11424_v33, %v5460_v11 }
 0x6b5   : > { %v5870_v10 = vpop.f32.mrf.mxu0 }
 0x6b6   : > { %5493 = vst [vmem:[%s11429_s25 + $0x68] sm:$0xff] %v5461_v25 }
 0x6d3   : > { %v5465_v62 = vpop.f32.mrf.mxu1 }
 0x6d4   : > { %v5466_v24 = vadd.f32 %v11424_v33, %v5465_v62 }
 0x6d5   : > { %v5873_v20 = vpop.f32.mrf.mxu1 }
 0x6d6   : > { %5494 = vst [vmem:[%s11429_s25 + $0x70] sm:$0xff] %v5466_v24 }
 0x6d7   : > { %v5468_v55 = vpop.f32.mrf.mxu1 }
 0x6d8   : > { %v5469_v26 = vadd.f32 %v11424_v33, %v5468_v55 }
 0x6d9   : > { %v5874_v28 = vpop.f32.mrf.mxu1 }
 0x6da   : > { %5495 = vst [vmem:[%s11429_s25 + $0x78] sm:$0xff] %v5469_v26 }
 0x6e3   : > { %v5473_v56 = vpop.f32.mrf.mxu1 }
 0x6e4   : > { %v5474_v53 = vadd.f32 %v11424_v33, %v5473_v56 }
 0x6e5   : > { %v5877_v43 = vpop.f32.mrf.mxu1 }
 0x6e6   : > { %5496 = vst [vmem:[%s11429_s25 + $0x80] sm:$0xff] %v5474_v53 }
 0x6e7   : > { %v5476_v16 = vpop.f32.mrf.mxu1 }
 0x6e8   : > { %v5477_v48 = vadd.f32 %v11424_v33, %v5476_v16 }
 0x6e9   : > { %v5878_v17 = vpop.f32.mrf.mxu1 }
 0x6ea   : > { %5497 = vst [vmem:[%s11429_s25 + $0x88] sm:$0xff] %v5477_v48 }
 0x6eb PF: > { %s18_s27 = sadd.s32 1, %s6049_s27  }
 0x6ec   : > { %p15_p4 = scmp.ge.s32.totalorder %s18_s27, 4  }
 0x6ee   :  { %17 = sbr.rel (!%p15_p4) target bundleno = 1 (0x1), region = 82 }

</bundles_post_ra>
